<compile_context>
chip_gen: v7x
topology: tpu7x:2x2x1
jax: 0.10.0
libtpu: 0.0.40
codegen_flags: <defaults>
</compile_context>

<pallas_src>
import functools
from collections import namedtuple

import jax
import jax.numpy as jnp
import numpy as np
from jax.experimental import pallas as pl
from jax.experimental.pallas import tpu as pltpu

MXU_DTYPE = jnp.bfloat16   # MXU operand dtype (accumulation stays f32)
LANE = 128
BT_MAX = 128               # max images stacked per grid step (M-fill vs scratch)


# ----------------------------------------------------------------------------
# Shape planning
# ----------------------------------------------------------------------------
def conv2d_size_out(size, kernel_size=5, stride=2):
    return (size - (kernel_size - 1) - 1) // stride + 1


def _round_up(x, m):
    return ((x + m - 1) // m) * m


Plan = namedtuple("Plan", "OH1 OW1 OH2 OW2 OH3 OW3 Hip Wip K0p")


def _plan(h, w):
    """Padded per-layer compute extents (only final valid outputs reach the head)."""
    s1h, s1w = conv2d_size_out(h), conv2d_size_out(w)
    s2h, s2w = conv2d_size_out(s1h), conv2d_size_out(s1w)
    s3h, s3w = conv2d_size_out(s2h), conv2d_size_out(s2w)
    assert s3h >= 1 and s3w >= 1, "input spatial size too small for 3 stride-2 convs"
    OH3, OW3 = s3h, s3w
    OH2 = 2 * OH3 + 4                       # even -> 2-way row-parity split
    OW2 = _round_up(2 * OW3 + 3, 4)         # OW2*32 lanes -> multiple of 128
    OH1 = 2 * OH2 + 4                       # multiple of 4 -> 4-way parity split
    OW1 = _round_up(2 * OW2 + 3, 8)         # OW1*16 lanes -> multiple of 128
    Hip = _round_up(max(2 * OH1 + 3, h), 8)
    Wip = w                                 # no width padding (taps are clamped)
    K0p = _round_up(Wip * 3, LANE)          # lane-dense fused (W, C) input dim

    # Bounds: every in-kernel row slice stays inside its (padded) buffer.
    assert Hip % 8 == 0 and Hip >= 2 * OH1 + 8
    assert OH1 % 4 == 0 and OH1 == 2 * OH2 + 4
    assert OH2 % 2 == 0 and OH2 == 2 * OH3 + 4
    assert OW1 >= 2 * OW2 + 3 and OW2 >= 2 * OW3 + 3
    assert (OW1 * 16) % LANE == 0 and (OW2 * 32) % LANE == 0
    # Validity: rows/cols consumed by VALID outputs are themselves valid, so the
    # padded garbage rows/cols (zero-padded input through a nonzero folded bias,
    # or clamped taps) are never read by anything that reaches the head output.
    assert 2 * (OH3 - 1) + 4 < s2h and 2 * (OW3 - 1) + 4 < s2w
    assert 2 * (s2h - 1) + 4 < s1h and 2 * (s2w - 1) + 4 < s1w
    assert 2 * (s1h - 1) + 4 < h and 2 * (s1w - 1) + 4 < w
    return Plan(OH1, OW1, OH2, OW2, OH3, OW3, Hip, Wip, K0p)


def _pick_btile(batch):
    """Batch tile: multiple of 8, at most BT_MAX, evenly splitting the grid."""
    steps = -(-batch // BT_MAX)
    return _round_up(-(-batch // steps), 8)


# ----------------------------------------------------------------------------
# Parameter preparation (done once, outside the kernel)
# ----------------------------------------------------------------------------
def _banded(w_kkio, win, wout, kpad=None):
    """Block-banded matmul weight for a k=5, stride=2 conv on the fused (W,C) lanes.

    B[ky][(2j+kx)*Cin + ci, j*Cout + co] = w[ky, kx, ci, co].
    Taps that would read past `win` source columns are dropped: they can only
    affect padded output columns that are never consumed downstream (asserted
    in _plan)."""
    k, _, ci, co = w_kkio.shape
    kdim = win * ci if kpad is None else kpad
    big = np.zeros((k, kdim, wout * co), np.float32)
    for j in range(wout):
        for kx in range(k):
            src = 2 * j + kx
            if src >= win:
                continue
            big[:, src * ci:(src + 1) * ci, j * co:(j + 1) * co] = w_kkio[:, kx]
    return big


def prepare_params(params, h, w, eps=1e-5):
    """Fold BN into conv weights, build banded matmul weights, permute/pad head."""
    plan = _plan(h, w)

    def fold(p):
        w_hwio, b, gamma, beta, mean, var = (np.asarray(a, np.float32) for a in p)
        scale = gamma / np.sqrt(var + eps)
        return w_hwio * scale, (b - mean) * scale + beta

    w1, b1 = fold(params["conv1"])
    w2, b2 = fold(params["conv2"])
    w3, b3 = fold(params["conv3"])

    w1b = _banded(w1, plan.Wip, plan.OW1, kpad=plan.K0p)   # K padded to 128 lanes
    w2b = _banded(w2, plan.OW1, plan.OW2)
    w3b = _banded(w3, plan.OW2, plan.OW3)
    b1t = np.tile(b1, plan.OW1)[None, :]
    b2t = np.tile(b2, plan.OW2)[None, :]
    b3t = np.tile(b3, plan.OW3)[None, :]

    head_w, head_b = (np.asarray(a, np.float32) for a in params["head"])
    c3 = w3.shape[-1]
    s3h, s3w = plan.OH3, plan.OW3
    outs = head_w.shape[1]
    assert head_w.shape[0] == c3 * s3h * s3w
    # PyTorch flattens NCHW; our activation row order is (row, col, chan) -> permute.
    hw = head_w.reshape(c3, s3h, s3w, outs).transpose(1, 2, 0, 3)
    hw = hw.reshape(s3h * s3w * c3, outs)
    outp = _round_up(outs, LANE)                           # lane-dense head output
    hw = np.pad(hw, ((0, 0), (0, outp - outs)))
    hb = np.pad(head_b, (0, outp - outs))[None, :]

    mxu = lambda a: jnp.asarray(a, MXU_DTYPE)
    f32 = lambda a: jnp.asarray(a, jnp.float32)
    return (mxu(w1b), f32(b1t), mxu(w2b), f32(b2t), mxu(w3b), f32(b3t),
            mxu(hw), f32(hb))


# ----------------------------------------------------------------------------
# Fused Pallas kernel: conv1+bn+relu -> conv2+bn+relu -> conv3+bn+relu -> head
# Processes `bt` images per grid step; every dot has M = bt * rows.
# ----------------------------------------------------------------------------
def _dqn_kernel(x_ref, w1_ref, b1_ref, w2_ref, b2_ref, w3_ref, b3_ref,
                hw_ref, hb_ref, o_ref, a1_ref, a2_ref, *, bt, oh1, oh2, oh3, k3):
    kh = w1_ref.shape[0]   # 5

    # ---- conv1 + bn1 + relu : 4 row-parity groups, M = bt*oh1/4 -------------
    bias1 = b1_ref[...]
    n1 = bt * (oh1 // 4)
    for p in range(4):
        acc = None
        for ky in range(kh):
            m = 2 * p + ky                       # input row offset (8-way split)
            s = (m // 8) * bt
            rows = x_ref[0, m % 8, s:s + n1, :]  # bf16 from HBM
            t = jnp.dot(rows, w1_ref[ky], preferred_element_type=jnp.float32)
            acc = t if acc is None else acc + t
        a1_ref[p] = jnp.maximum(acc + bias1, 0.0)

    # ---- conv2 + bn2 + relu : 2 row-parity groups, M = bt*oh2/2 -------------
    bias2 = b2_ref[...]
    n2 = bt * (oh2 // 2)
    for q in range(2):
        acc = None
        for ky in range(kh):
            m = 2 * q + ky
            s = (m // 4) * bt
            rows = a1_ref[m % 4, s:s + n2, :].astype(w2_ref.dtype)
            t = jnp.dot(rows, w2_ref[ky], preferred_element_type=jnp.float32)
            acc = t if acc is None else acc + t
        a2_ref[q] = jnp.maximum(acc + bias2, 0.0)

    # ---- conv3 + bn3 + relu : M = bt*oh3 -------------------------------------
    bias3 = b3_ref[...]
    n3 = bt * oh3
    acc = None
    for ky in range(kh):
        s = (ky // 2) * bt
        rows = a2_ref[ky % 2, s:s + n3, :].astype(w3_ref.dtype)
        t = jnp.dot(rows, w3_ref[ky], preferred_element_type=jnp.float32)
        acc = t if acc is None else acc + t
    y3 = jnp.maximum(acc + bias3, 0.0)           # (bt*oh3, ow3*c3), rows = (h3, b)

    # ---- head : oh3 dots of (bt, k3) x (k3, OUT_pad), lane-dense output -----
    y3m = y3.astype(hw_ref.dtype)
    acc = None
    for j in range(oh3):
        t = jnp.dot(y3m[j * bt:(j + 1) * bt, :],
                    hw_ref[j * k3:(j + 1) * k3, :],
                    preferred_element_type=jnp.float32)
        acc = t if acc is None else acc + t
    o_ref[...] = (acc + hb_ref[...]).astype(o_ref.dtype)


@functools.partial(jax.jit, static_argnames=("outputs",))
def dqn_forward(x_nchw, prepped, outputs):
    w1b, b1t, w2b, b2t, w3b, b3t, hw, hb = prepped
    B, C0, H, W = x_nchw.shape
    p = _plan(H, W)
    outp = hw.shape[1]
    k3 = hw.shape[0] // p.OH3

    bt = _pick_btile(B)
    nb = -(-B // bt)
    Bp = nb * bt

    # Layout plumbing (XLA-side, once per call): NCHW -> lane-fused NHWC,
    # zero-pad batch/rows/lanes, 8-way row-parity split, batch tile minor to rows.
    x = jnp.transpose(x_nchw, (0, 2, 3, 1)).reshape(B, H, W * C0)
    x = jnp.pad(x, ((0, Bp - B), (0, p.Hip - H), (0, p.K0p - W * C0)))
    x = x.astype(MXU_DTYPE)
    x = x.reshape(nb, bt, p.Hip // 8, 8, p.K0p).transpose(0, 3, 2, 1, 4)
    x = x.reshape(nb, 8, (p.Hip // 8) * bt, p.K0p)

    n1c, n2c = w1b.shape[2], w2b.shape[2]

    # VMEM budget: double-buffered input/output + resident weights + scratch.
    est = (2 * 8 * (p.Hip // 8) * bt * p.K0p * x.dtype.itemsize
           + sum(int(a.size) * a.dtype.itemsize
                 for a in (w1b, b1t, w2b, b2t, w3b, b3t, hw, hb))
           + (4 * (p.OH1 // 4) * bt * n1c + 2 * (p.OH2 // 2) * bt * n2c) * 4
           + 2 * bt * outp * 4)
    vmem_limit = int(min(max(1.5 * est + (8 << 20), 32 << 20), 56 << 20))

    kern = functools.partial(_dqn_kernel, bt=bt, oh1=p.OH1, oh2=p.OH2,
                             oh3=p.OH3, k3=k3)

    out = pl.pallas_call(
        kern,
        out_shape=jax.ShapeDtypeStruct((Bp, outp), jnp.float32),
        grid=(nb,),
        in_specs=[
            pl.BlockSpec((1, 8, (p.Hip // 8) * bt, p.K0p), lambda i: (i, 0, 0, 0)),
            pl.BlockSpec(w1b.shape, lambda i: (0, 0, 0)),
            pl.BlockSpec(b1t.shape, lambda i: (0, 0)),
            pl.BlockSpec(w2b.shape, lambda i: (0, 0, 0)),
            pl.BlockSpec(b2t.shape, lambda i: (0, 0)),
            pl.BlockSpec(w3b.shape, lambda i: (0, 0, 0)),
            pl.BlockSpec(b3t.shape, lambda i: (0, 0)),
            pl.BlockSpec(hw.shape, lambda i: (0, 0)),
            pl.BlockSpec(hb.shape, lambda i: (0, 0)),
        ],
        out_specs=pl.BlockSpec((bt, outp), lambda i: (i, 0)),
        scratch_shapes=[
            pltpu.VMEM((4, (p.OH1 // 4) * bt, n1c), jnp.float32),  # act1
            pltpu.VMEM((2, (p.OH2 // 2) * bt, n2c), jnp.float32),  # act2
        ],
        compiler_params=pltpu.CompilerParams(
            dimension_semantics=("parallel",),
            vmem_limit_bytes=vmem_limit,
        ),
    )(x, w1b, b1t, w2b, b2t, w3b, b3t, hw, hb)
    return out[:B, :outputs]


# ----------------------------------------------------------------------------
# Deterministic synthetic parameters (shapes from DQN.__init__)
# ----------------------------------------------------------------------------
def init_params(key, h, w, outputs):
    ks = jax.random.split(key, 8)

    def conv_layer(kw, kb, cin, cout):
        w_hwio = jax.random.normal(kw, (5, 5, cin, cout), jnp.float32) * 0.05
        b = jax.random.normal(kb, (cout,), jnp.float32) * 0.05
        gamma = jnp.ones((cout,), jnp.float32)        # BatchNorm2d defaults (eval)
        beta = jnp.zeros((cout,), jnp.float32)
        mean = jnp.zeros((cout,), jnp.float32)
        var = jnp.ones((cout,), jnp.float32)
        return (w_hwio, b, gamma, beta, mean, var)

    convw = conv2d_size_out(conv2d_size_out(conv2d_size_out(w)))
    convh = conv2d_size_out(conv2d_size_out(conv2d_size_out(h)))
    linear_input_size = convw * convh * 32

    head_w = jax.random.normal(ks[6], (linear_input_size, outputs), jnp.float32) * 0.05
    head_b = jax.random.normal(ks[7], (outputs,), jnp.float32) * 0.05

    return {
        "conv1": conv_layer(ks[0], ks[1], 3, 16),
        "conv2": conv_layer(ks[2], ks[3], 16, 32),
        "conv3": conv_layer(ks[4], ks[5], 32, 32),
        "head": (head_w, head_b),
    }


# ----------------------------------------------------------------------------
# Pure-JAX reference (lax.conv, unfolded params) for a correctness cross-check
# ----------------------------------------------------------------------------
def dqn_reference(x_nchw, params, eps=1e-5):
    x = jnp.transpose(x_nchw, (0, 2, 3, 1))

    def layer(x, p):
        w_hwio, b, gamma, beta, mean, var = p
        y = jax.lax.conv_general_dilated(
            x, w_hwio, window_strides=(2, 2), padding="VALID",
            dimension_numbers=("NHWC", "HWIO", "NHWC"),
            precision=jax.lax.Precision.HIGHEST)
        y = y + b
        y = (y - mean) / jnp.sqrt(var + eps) * gamma + beta
        return jnp.maximum(y, 0.0)

    x = layer(x, params["conv1"])
    x = layer(x, params["conv2"])
    x = layer(x, params["conv3"])
    flat = jnp.transpose(x, (0, 3, 1, 2)).reshape(x.shape[0], -1)
    head_w, head_b = params["head"]
    return jnp.dot(flat, head_w, precision=jax.lax.Precision.HIGHEST) + head_b


# ----------------------------------------------------------------------------
if __name__ == "__main__":
    H = W = 40            # smallest-ish size that survives three k=5, s=2 convs
    OUTPUTS = 4

    key = jax.random.PRNGKey(0)
    k_params, k_x = jax.random.split(key)

    params = init_params(k_params, H, W, OUTPUTS)
    prepped = prepare_params(params, H, W)

    # batch=2: small single-tile demo; batch=144: exercises the batch-tiled
    # (bt=72, 2-step "parallel" grid) path.
    for batch in (2, 144):
        kx = jax.random.fold_in(k_x, batch)
        x = jax.random.normal(kx, (batch, 3, H, W), jnp.float32)   # NCHW like PyTorch

        out = jax.block_until_ready(dqn_forward(x, prepped, OUTPUTS))
        ref = jax.block_until_ready(dqn_reference(x, params))

        # bf16 MXU operands with f32 accumulation -> loosened tolerance.
        np.testing.assert_allclose(np.asarray(out), np.asarray(ref),
                                   rtol=2e-2, atol=2e-2)
        assert out.shape == (batch, OUTPUTS), out.shape

    print("KERNEL_OK")
</pallas_src>

<mosaic_0001>
module attributes {stable_mosaic.version = 11 : i64} {
  func.func @_dqn_kernel(%arg0: i32, %arg1: memref<1x8x48x128xbf16, #tpu.memory_space<vmem>>, %arg2: memref<5x128x384xbf16, #tpu.memory_space<vmem>>, %arg3: memref<1x384xf32, #tpu.memory_space<vmem>>, %arg4: memref<5x384x256xbf16, #tpu.memory_space<vmem>>, %arg5: memref<1x256xf32, #tpu.memory_space<vmem>>, %arg6: memref<5x256x64xbf16, #tpu.memory_space<vmem>>, %arg7: memref<1x64xf32, #tpu.memory_space<vmem>>, %arg8: memref<128x128xbf16, #tpu.memory_space<vmem>>, %arg9: memref<1x128xf32, #tpu.memory_space<vmem>>, %arg10: memref<8x128xf32, #tpu.memory_space<vmem>>, %arg11: memref<4x40x384xf32, #tpu.memory_space<vmem>>, %arg12: memref<2x32x256xf32, #tpu.memory_space<vmem>>) attributes {dimension_semantics = [#tpu.dimension_semantics<parallel>], iteration_bounds = array<i64: 1>, scalar_prefetch = 0 : i64, scratch_operands = 2 : i64, tpu.core_type = #tpu.core_type<tc>, window_params = [{transform_indices = @transform_0, window_bounds = array<i64: 1, 8, 48, 128>}, {pipeline_mode = #tpu.pipeline_mode<synchronous>, transform_indices = @transform_1, window_bounds = array<i64: 5, 128, 384>}, {pipeline_mode = #tpu.pipeline_mode<synchronous>, transform_indices = @transform_2, window_bounds = array<i64: 1, 384>}, {pipeline_mode = #tpu.pipeline_mode<synchronous>, transform_indices = @transform_3, window_bounds = array<i64: 5, 384, 256>}, {pipeline_mode = #tpu.pipeline_mode<synchronous>, transform_indices = @transform_4, window_bounds = array<i64: 1, 256>}, {pipeline_mode = #tpu.pipeline_mode<synchronous>, transform_indices = @transform_5, window_bounds = array<i64: 5, 256, 64>}, {pipeline_mode = #tpu.pipeline_mode<synchronous>, transform_indices = @transform_6, window_bounds = array<i64: 1, 64>}, {pipeline_mode = #tpu.pipeline_mode<synchronous>, transform_indices = @transform_7, window_bounds = array<i64: 128, 128>}, {pipeline_mode = #tpu.pipeline_mode<synchronous>, transform_indices = @transform_8, window_bounds = array<i64: 1, 128>}, {transform_indices = @transform_9, window_bounds = array<i64: 8, 128>}]} {
    %c0 = arith.constant 0 : index
    %c0_0 = arith.constant 0 : index
    %0 = vector.load %arg3[%c0, %c0_0] : memref<1x384xf32, #tpu.memory_space<vmem>>, vector<1x384xf32>
    %c0_1 = arith.constant 0 : index
    %c0_2 = arith.constant 0 : index
    %c0_3 = arith.constant 0 : index
    %c0_4 = arith.constant 0 : index
    %1 = vector.load %arg1[%c0_1, %c0_2, %c0_3, %c0_4] : memref<1x8x48x128xbf16, #tpu.memory_space<vmem>>, vector<1x1x40x128xbf16>
    %2 = vector.shape_cast %1 : vector<1x1x40x128xbf16> to vector<40x128xbf16>
    %c0_5 = arith.constant 0 : index
    %c0_6 = arith.constant 0 : index
    %c0_7 = arith.constant 0 : index
    %3 = vector.load %arg2[%c0_5, %c0_6, %c0_7] : memref<5x128x384xbf16, #tpu.memory_space<vmem>>, vector<1x128x384xbf16>
    %4 = vector.shape_cast %3 : vector<1x128x384xbf16> to vector<128x384xbf16>
    %cst = arith.constant dense<0.000000e+00> : vector<40x384xf32>
    %5 = tpu.matmul %2, %4, %cst {dimension_numbers = #tpu.dot_dimension_numbers<[1], [0], [0], [1], [0, 0, 1, 1], [], []>} : vector<40x128xbf16>, vector<128x384xbf16>, vector<40x384xf32> -> vector<40x384xf32>
    %c0_8 = arith.constant 0 : index
    %c1 = arith.constant 1 : index
    %c0_9 = arith.constant 0 : index
    %c0_10 = arith.constant 0 : index
    %6 = vector.load %arg1[%c0_8, %c1, %c0_9, %c0_10] : memref<1x8x48x128xbf16, #tpu.memory_space<vmem>>, vector<1x1x40x128xbf16>
    %7 = vector.shape_cast %6 : vector<1x1x40x128xbf16> to vector<40x128xbf16>
    %c1_11 = arith.constant 1 : index
    %c0_12 = arith.constant 0 : index
    %c0_13 = arith.constant 0 : index
    %8 = vector.load %arg2[%c1_11, %c0_12, %c0_13] : memref<5x128x384xbf16, #tpu.memory_space<vmem>>, vector<1x128x384xbf16>
    %9 = vector.shape_cast %8 : vector<1x128x384xbf16> to vector<128x384xbf16>
    %cst_14 = arith.constant dense<0.000000e+00> : vector<40x384xf32>
    %10 = tpu.matmul %7, %9, %cst_14 {dimension_numbers = #tpu.dot_dimension_numbers<[1], [0], [0], [1], [0, 0, 1, 1], [], []>} : vector<40x128xbf16>, vector<128x384xbf16>, vector<40x384xf32> -> vector<40x384xf32>
    %11 = arith.addf %5, %10 : vector<40x384xf32>
    %c0_15 = arith.constant 0 : index
    %c2 = arith.constant 2 : index
    %c0_16 = arith.constant 0 : index
    %c0_17 = arith.constant 0 : index
    %12 = vector.load %arg1[%c0_15, %c2, %c0_16, %c0_17] : memref<1x8x48x128xbf16, #tpu.memory_space<vmem>>, vector<1x1x40x128xbf16>
    %13 = vector.shape_cast %12 : vector<1x1x40x128xbf16> to vector<40x128xbf16>
    %c2_18 = arith.constant 2 : index
    %c0_19 = arith.constant 0 : index
    %c0_20 = arith.constant 0 : index
    %14 = vector.load %arg2[%c2_18, %c0_19, %c0_20] : memref<5x128x384xbf16, #tpu.memory_space<vmem>>, vector<1x128x384xbf16>
    %15 = vector.shape_cast %14 : vector<1x128x384xbf16> to vector<128x384xbf16>
    %cst_21 = arith.constant dense<0.000000e+00> : vector<40x384xf32>
    %16 = tpu.matmul %13, %15, %cst_21 {dimension_numbers = #tpu.dot_dimension_numbers<[1], [0], [0], [1], [0, 0, 1, 1], [], []>} : vector<40x128xbf16>, vector<128x384xbf16>, vector<40x384xf32> -> vector<40x384xf32>
    %17 = arith.addf %11, %16 : vector<40x384xf32>
    %c0_22 = arith.constant 0 : index
    %c3 = arith.constant 3 : index
    %c0_23 = arith.constant 0 : index
    %c0_24 = arith.constant 0 : index
    %18 = vector.load %arg1[%c0_22, %c3, %c0_23, %c0_24] : memref<1x8x48x128xbf16, #tpu.memory_space<vmem>>, vector<1x1x40x128xbf16>
    %19 = vector.shape_cast %18 : vector<1x1x40x128xbf16> to vector<40x128xbf16>
    %c3_25 = arith.constant 3 : index
    %c0_26 = arith.constant 0 : index
    %c0_27 = arith.constant 0 : index
    %20 = vector.load %arg2[%c3_25, %c0_26, %c0_27] : memref<5x128x384xbf16, #tpu.memory_space<vmem>>, vector<1x128x384xbf16>
    %21 = vector.shape_cast %20 : vector<1x128x384xbf16> to vector<128x384xbf16>
    %cst_28 = arith.constant dense<0.000000e+00> : vector<40x384xf32>
    %22 = tpu.matmul %19, %21, %cst_28 {dimension_numbers = #tpu.dot_dimension_numbers<[1], [0], [0], [1], [0, 0, 1, 1], [], []>} : vector<40x128xbf16>, vector<128x384xbf16>, vector<40x384xf32> -> vector<40x384xf32>
    %23 = arith.addf %17, %22 : vector<40x384xf32>
    %c0_29 = arith.constant 0 : index
    %c4 = arith.constant 4 : index
    %c0_30 = arith.constant 0 : index
    %c0_31 = arith.constant 0 : index
    %24 = vector.load %arg1[%c0_29, %c4, %c0_30, %c0_31] : memref<1x8x48x128xbf16, #tpu.memory_space<vmem>>, vector<1x1x40x128xbf16>
    %25 = vector.shape_cast %24 : vector<1x1x40x128xbf16> to vector<40x128xbf16>
    %c4_32 = arith.constant 4 : index
    %c0_33 = arith.constant 0 : index
    %c0_34 = arith.constant 0 : index
    %26 = vector.load %arg2[%c4_32, %c0_33, %c0_34] : memref<5x128x384xbf16, #tpu.memory_space<vmem>>, vector<1x128x384xbf16>
    %27 = vector.shape_cast %26 : vector<1x128x384xbf16> to vector<128x384xbf16>
    %cst_35 = arith.constant dense<0.000000e+00> : vector<40x384xf32>
    %28 = tpu.matmul %25, %27, %cst_35 {dimension_numbers = #tpu.dot_dimension_numbers<[1], [0], [0], [1], [0, 0, 1, 1], [], []>} : vector<40x128xbf16>, vector<128x384xbf16>, vector<40x384xf32> -> vector<40x384xf32>
    %29 = arith.addf %23, %28 : vector<40x384xf32>
    %30 = vector.broadcast %0 : vector<1x384xf32> to vector<40x384xf32>
    %31 = arith.addf %29, %30 : vector<40x384xf32>
    %cst_36 = arith.constant 0.000000e+00 : f32
    %32 = vector.broadcast %cst_36 : f32 to vector<40x384xf32>
    %33 = arith.maximumf %31, %32 : vector<40x384xf32>
    %c0_37 = arith.constant 0 : index
    %c0_38 = arith.constant 0 : index
    %c0_39 = arith.constant 0 : index
    %34 = vector.load %arg11[%c0_37, %c0_38, %c0_39] : memref<4x40x384xf32, #tpu.memory_space<vmem>>, vector<1x40x384xf32>
    %35 = vector.shape_cast %34 : vector<1x40x384xf32> to vector<40x384xf32>
    %36 = vector.shape_cast %33 : vector<40x384xf32> to vector<1x40x384xf32>
    tpu.vector_store %arg11[%c0_37, %c0_38, %c0_39], %36 {strides = array<i32>} : memref<4x40x384xf32, #tpu.memory_space<vmem>>, vector<1x40x384xf32>,
    %c0_40 = arith.constant 0 : index
    %c2_41 = arith.constant 2 : index
    %c0_42 = arith.constant 0 : index
    %c0_43 = arith.constant 0 : index
    %37 = vector.load %arg1[%c0_40, %c2_41, %c0_42, %c0_43] : memref<1x8x48x128xbf16, #tpu.memory_space<vmem>>, vector<1x1x40x128xbf16>
    %38 = vector.shape_cast %37 : vector<1x1x40x128xbf16> to vector<40x128xbf16>
    %c0_44 = arith.constant 0 : index
    %c0_45 = arith.constant 0 : index
    %c0_46 = arith.constant 0 : index
    %39 = vector.load %arg2[%c0_44, %c0_45, %c0_46] : memref<5x128x384xbf16, #tpu.memory_space<vmem>>, vector<1x128x384xbf16>
    %40 = vector.shape_cast %39 : vector<1x128x384xbf16> to vector<128x384xbf16>
    %cst_47 = arith.constant dense<0.000000e+00> : vector<40x384xf32>
    %41 = tpu.matmul %38, %40, %cst_47 {dimension_numbers = #tpu.dot_dimension_numbers<[1], [0], [0], [1], [0, 0, 1, 1], [], []>} : vector<40x128xbf16>, vector<128x384xbf16>, vector<40x384xf32> -> vector<40x384xf32>
    %c0_48 = arith.constant 0 : index
    %c3_49 = arith.constant 3 : index
    %c0_50 = arith.constant 0 : index
    %c0_51 = arith.constant 0 : index
    %42 = vector.load %arg1[%c0_48, %c3_49, %c0_50, %c0_51] : memref<1x8x48x128xbf16, #tpu.memory_space<vmem>>, vector<1x1x40x128xbf16>
    %43 = vector.shape_cast %42 : vector<1x1x40x128xbf16> to vector<40x128xbf16>
    %c1_52 = arith.constant 1 : index
    %c0_53 = arith.constant 0 : index
    %c0_54 = arith.constant 0 : index
    %44 = vector.load %arg2[%c1_52, %c0_53, %c0_54] : memref<5x128x384xbf16, #tpu.memory_space<vmem>>, vector<1x128x384xbf16>
    %45 = vector.shape_cast %44 : vector<1x128x384xbf16> to vector<128x384xbf16>
    %cst_55 = arith.constant dense<0.000000e+00> : vector<40x384xf32>
    %46 = tpu.matmul %43, %45, %cst_55 {dimension_numbers = #tpu.dot_dimension_numbers<[1], [0], [0], [1], [0, 0, 1, 1], [], []>} : vector<40x128xbf16>, vector<128x384xbf16>, vector<40x384xf32> -> vector<40x384xf32>
    %47 = arith.addf %41, %46 : vector<40x384xf32>
    %c0_56 = arith.constant 0 : index
    %c4_57 = arith.constant 4 : index
    %c0_58 = arith.constant 0 : index
    %c0_59 = arith.constant 0 : index
    %48 = vector.load %arg1[%c0_56, %c4_57, %c0_58, %c0_59] : memref<1x8x48x128xbf16, #tpu.memory_space<vmem>>, vector<1x1x40x128xbf16>
    %49 = vector.shape_cast %48 : vector<1x1x40x128xbf16> to vector<40x128xbf16>
    %c2_60 = arith.constant 2 : index
    %c0_61 = arith.constant 0 : index
    %c0_62 = arith.constant 0 : index
    %50 = vector.load %arg2[%c2_60, %c0_61, %c0_62] : memref<5x128x384xbf16, #tpu.memory_space<vmem>>, vector<1x128x384xbf16>
    %51 = vector.shape_cast %50 : vector<1x128x384xbf16> to vector<128x384xbf16>
    %cst_63 = arith.constant dense<0.000000e+00> : vector<40x384xf32>
    %52 = tpu.matmul %49, %51, %cst_63 {dimension_numbers = #tpu.dot_dimension_numbers<[1], [0], [0], [1], [0, 0, 1, 1], [], []>} : vector<40x128xbf16>, vector<128x384xbf16>, vector<40x384xf32> -> vector<40x384xf32>
    %53 = arith.addf %47, %52 : vector<40x384xf32>
    %c0_64 = arith.constant 0 : index
    %c5 = arith.constant 5 : index
    %c0_65 = arith.constant 0 : index
    %c0_66 = arith.constant 0 : index
    %54 = vector.load %arg1[%c0_64, %c5, %c0_65, %c0_66] : memref<1x8x48x128xbf16, #tpu.memory_space<vmem>>, vector<1x1x40x128xbf16>
    %55 = vector.shape_cast %54 : vector<1x1x40x128xbf16> to vector<40x128xbf16>
    %c3_67 = arith.constant 3 : index
    %c0_68 = arith.constant 0 : index
    %c0_69 = arith.constant 0 : index
    %56 = vector.load %arg2[%c3_67, %c0_68, %c0_69] : memref<5x128x384xbf16, #tpu.memory_space<vmem>>, vector<1x128x384xbf16>
    %57 = vector.shape_cast %56 : vector<1x128x384xbf16> to vector<128x384xbf16>
    %cst_70 = arith.constant dense<0.000000e+00> : vector<40x384xf32>
    %58 = tpu.matmul %55, %57, %cst_70 {dimension_numbers = #tpu.dot_dimension_numbers<[1], [0], [0], [1], [0, 0, 1, 1], [], []>} : vector<40x128xbf16>, vector<128x384xbf16>, vector<40x384xf32> -> vector<40x384xf32>
    %59 = arith.addf %53, %58 : vector<40x384xf32>
    %c0_71 = arith.constant 0 : index
    %c6 = arith.constant 6 : index
    %c0_72 = arith.constant 0 : index
    %c0_73 = arith.constant 0 : index
    %60 = vector.load %arg1[%c0_71, %c6, %c0_72, %c0_73] : memref<1x8x48x128xbf16, #tpu.memory_space<vmem>>, vector<1x1x40x128xbf16>
    %61 = vector.shape_cast %60 : vector<1x1x40x128xbf16> to vector<40x128xbf16>
    %c4_74 = arith.constant 4 : index
    %c0_75 = arith.constant 0 : index
    %c0_76 = arith.constant 0 : index
    %62 = vector.load %arg2[%c4_74, %c0_75, %c0_76] : memref<5x128x384xbf16, #tpu.memory_space<vmem>>, vector<1x128x384xbf16>
    %63 = vector.shape_cast %62 : vector<1x128x384xbf16> to vector<128x384xbf16>
    %cst_77 = arith.constant dense<0.000000e+00> : vector<40x384xf32>
    %64 = tpu.matmul %61, %63, %cst_77 {dimension_numbers = #tpu.dot_dimension_numbers<[1], [0], [0], [1], [0, 0, 1, 1], [], []>} : vector<40x128xbf16>, vector<128x384xbf16>, vector<40x384xf32> -> vector<40x384xf32>
    %65 = arith.addf %59, %64 : vector<40x384xf32>
    %66 = vector.broadcast %0 : vector<1x384xf32> to vector<40x384xf32>
    %67 = arith.addf %65, %66 : vector<40x384xf32>
    %cst_78 = arith.constant 0.000000e+00 : f32
    %68 = vector.broadcast %cst_78 : f32 to vector<40x384xf32>
    %69 = arith.maximumf %67, %68 : vector<40x384xf32>
    %c1_79 = arith.constant 1 : index
    %c0_80 = arith.constant 0 : index
    %c0_81 = arith.constant 0 : index
    %70 = vector.load %arg11[%c1_79, %c0_80, %c0_81] : memref<4x40x384xf32, #tpu.memory_space<vmem>>, vector<1x40x384xf32>
    %71 = vector.shape_cast %70 : vector<1x40x384xf32> to vector<40x384xf32>
    %72 = vector.shape_cast %69 : vector<40x384xf32> to vector<1x40x384xf32>
    tpu.vector_store %arg11[%c1_79, %c0_80, %c0_81], %72 {strides = array<i32>} : memref<4x40x384xf32, #tpu.memory_space<vmem>>, vector<1x40x384xf32>,
    %c0_82 = arith.constant 0 : index
    %c4_83 = arith.constant 4 : index
    %c0_84 = arith.constant 0 : index
    %c0_85 = arith.constant 0 : index
    %73 = vector.load %arg1[%c0_82, %c4_83, %c0_84, %c0_85] : memref<1x8x48x128xbf16, #tpu.memory_space<vmem>>, vector<1x1x40x128xbf16>
    %74 = vector.shape_cast %73 : vector<1x1x40x128xbf16> to vector<40x128xbf16>
    %c0_86 = arith.constant 0 : index
    %c0_87 = arith.constant 0 : index
    %c0_88 = arith.constant 0 : index
    %75 = vector.load %arg2[%c0_86, %c0_87, %c0_88] : memref<5x128x384xbf16, #tpu.memory_space<vmem>>, vector<1x128x384xbf16>
    %76 = vector.shape_cast %75 : vector<1x128x384xbf16> to vector<128x384xbf16>
    %cst_89 = arith.constant dense<0.000000e+00> : vector<40x384xf32>
    %77 = tpu.matmul %74, %76, %cst_89 {dimension_numbers = #tpu.dot_dimension_numbers<[1], [0], [0], [1], [0, 0, 1, 1], [], []>} : vector<40x128xbf16>, vector<128x384xbf16>, vector<40x384xf32> -> vector<40x384xf32>
    %c0_90 = arith.constant 0 : index
    %c5_91 = arith.constant 5 : index
    %c0_92 = arith.constant 0 : index
    %c0_93 = arith.constant 0 : index
    %78 = vector.load %arg1[%c0_90, %c5_91, %c0_92, %c0_93] : memref<1x8x48x128xbf16, #tpu.memory_space<vmem>>, vector<1x1x40x128xbf16>
    %79 = vector.shape_cast %78 : vector<1x1x40x128xbf16> to vector<40x128xbf16>
    %c1_94 = arith.constant 1 : index
    %c0_95 = arith.constant 0 : index
    %c0_96 = arith.constant 0 : index
    %80 = vector.load %arg2[%c1_94, %c0_95, %c0_96] : memref<5x128x384xbf16, #tpu.memory_space<vmem>>, vector<1x128x384xbf16>
    %81 = vector.shape_cast %80 : vector<1x128x384xbf16> to vector<128x384xbf16>
    %cst_97 = arith.constant dense<0.000000e+00> : vector<40x384xf32>
    %82 = tpu.matmul %79, %81, %cst_97 {dimension_numbers = #tpu.dot_dimension_numbers<[1], [0], [0], [1], [0, 0, 1, 1], [], []>} : vector<40x128xbf16>, vector<128x384xbf16>, vector<40x384xf32> -> vector<40x384xf32>
    %83 = arith.addf %77, %82 : vector<40x384xf32>
    %c0_98 = arith.constant 0 : index
    %c6_99 = arith.constant 6 : index
    %c0_100 = arith.constant 0 : index
    %c0_101 = arith.constant 0 : index
    %84 = vector.load %arg1[%c0_98, %c6_99, %c0_100, %c0_101] : memref<1x8x48x128xbf16, #tpu.memory_space<vmem>>, vector<1x1x40x128xbf16>
    %85 = vector.shape_cast %84 : vector<1x1x40x128xbf16> to vector<40x128xbf16>
    %c2_102 = arith.constant 2 : index
    %c0_103 = arith.constant 0 : index
    %c0_104 = arith.constant 0 : index
    %86 = vector.load %arg2[%c2_102, %c0_103, %c0_104] : memref<5x128x384xbf16, #tpu.memory_space<vmem>>, vector<1x128x384xbf16>
    %87 = vector.shape_cast %86 : vector<1x128x384xbf16> to vector<128x384xbf16>
    %cst_105 = arith.constant dense<0.000000e+00> : vector<40x384xf32>
    %88 = tpu.matmul %85, %87, %cst_105 {dimension_numbers = #tpu.dot_dimension_numbers<[1], [0], [0], [1], [0, 0, 1, 1], [], []>} : vector<40x128xbf16>, vector<128x384xbf16>, vector<40x384xf32> -> vector<40x384xf32>
    %89 = arith.addf %83, %88 : vector<40x384xf32>
    %c0_106 = arith.constant 0 : index
    %c7 = arith.constant 7 : index
    %c0_107 = arith.constant 0 : index
    %c0_108 = arith.constant 0 : index
    %90 = vector.load %arg1[%c0_106, %c7, %c0_107, %c0_108] : memref<1x8x48x128xbf16, #tpu.memory_space<vmem>>, vector<1x1x40x128xbf16>
    %91 = vector.shape_cast %90 : vector<1x1x40x128xbf16> to vector<40x128xbf16>
    %c3_109 = arith.constant 3 : index
    %c0_110 = arith.constant 0 : index
    %c0_111 = arith.constant 0 : index
    %92 = vector.load %arg2[%c3_109, %c0_110, %c0_111] : memref<5x128x384xbf16, #tpu.memory_space<vmem>>, vector<1x128x384xbf16>
    %93 = vector.shape_cast %92 : vector<1x128x384xbf16> to vector<128x384xbf16>
    %cst_112 = arith.constant dense<0.000000e+00> : vector<40x384xf32>
    %94 = tpu.matmul %91, %93, %cst_112 {dimension_numbers = #tpu.dot_dimension_numbers<[1], [0], [0], [1], [0, 0, 1, 1], [], []>} : vector<40x128xbf16>, vector<128x384xbf16>, vector<40x384xf32> -> vector<40x384xf32>
    %95 = arith.addf %89, %94 : vector<40x384xf32>
    %c0_113 = arith.constant 0 : index
    %c0_114 = arith.constant 0 : index
    %c8 = arith.constant 8 : index
    %c0_115 = arith.constant 0 : index
    %96 = vector.load %arg1[%c0_113, %c0_114, %c8, %c0_115] : memref<1x8x48x128xbf16, #tpu.memory_space<vmem>>, vector<1x1x40x128xbf16>
    %97 = vector.shape_cast %96 : vector<1x1x40x128xbf16> to vector<40x128xbf16>
    %c4_116 = arith.constant 4 : index
    %c0_117 = arith.constant 0 : index
    %c0_118 = arith.constant 0 : index
    %98 = vector.load %arg2[%c4_116, %c0_117, %c0_118] : memref<5x128x384xbf16, #tpu.memory_space<vmem>>, vector<1x128x384xbf16>
    %99 = vector.shape_cast %98 : vector<1x128x384xbf16> to vector<128x384xbf16>
    %cst_119 = arith.constant dense<0.000000e+00> : vector<40x384xf32>
    %100 = tpu.matmul %97, %99, %cst_119 {dimension_numbers = #tpu.dot_dimension_numbers<[1], [0], [0], [1], [0, 0, 1, 1], [], []>} : vector<40x128xbf16>, vector<128x384xbf16>, vector<40x384xf32> -> vector<40x384xf32>
    %101 = arith.addf %95, %100 : vector<40x384xf32>
    %102 = vector.broadcast %0 : vector<1x384xf32> to vector<40x384xf32>
    %103 = arith.addf %101, %102 : vector<40x384xf32>
    %cst_120 = arith.constant 0.000000e+00 : f32
    %104 = vector.broadcast %cst_120 : f32 to vector<40x384xf32>
    %105 = arith.maximumf %103, %104 : vector<40x384xf32>
    %c2_121 = arith.constant 2 : index
    %c0_122 = arith.constant 0 : index
    %c0_123 = arith.constant 0 : index
    %106 = vector.load %arg11[%c2_121, %c0_122, %c0_123] : memref<4x40x384xf32, #tpu.memory_space<vmem>>, vector<1x40x384xf32>
    %107 = vector.shape_cast %106 : vector<1x40x384xf32> to vector<40x384xf32>
    %108 = vector.shape_cast %105 : vector<40x384xf32> to vector<1x40x384xf32>
    tpu.vector_store %arg11[%c2_121, %c0_122, %c0_123], %108 {strides = array<i32>} : memref<4x40x384xf32, #tpu.memory_space<vmem>>, vector<1x40x384xf32>,
    %c0_124 = arith.constant 0 : index
    %c6_125 = arith.constant 6 : index
    %c0_126 = arith.constant 0 : index
    %c0_127 = arith.constant 0 : index
    %109 = vector.load %arg1[%c0_124, %c6_125, %c0_126, %c0_127] : memref<1x8x48x128xbf16, #tpu.memory_space<vmem>>, vector<1x1x40x128xbf16>
    %110 = vector.shape_cast %109 : vector<1x1x40x128xbf16> to vector<40x128xbf16>
    %c0_128 = arith.constant 0 : index
    %c0_129 = arith.constant 0 : index
    %c0_130 = arith.constant 0 : index
    %111 = vector.load %arg2[%c0_128, %c0_129, %c0_130] : memref<5x128x384xbf16, #tpu.memory_space<vmem>>, vector<1x128x384xbf16>
    %112 = vector.shape_cast %111 : vector<1x128x384xbf16> to vector<128x384xbf16>
    %cst_131 = arith.constant dense<0.000000e+00> : vector<40x384xf32>
    %113 = tpu.matmul %110, %112, %cst_131 {dimension_numbers = #tpu.dot_dimension_numbers<[1], [0], [0], [1], [0, 0, 1, 1], [], []>} : vector<40x128xbf16>, vector<128x384xbf16>, vector<40x384xf32> -> vector<40x384xf32>
    %c0_132 = arith.constant 0 : index
    %c7_133 = arith.constant 7 : index
    %c0_134 = arith.constant 0 : index
    %c0_135 = arith.constant 0 : index
    %114 = vector.load %arg1[%c0_132, %c7_133, %c0_134, %c0_135] : memref<1x8x48x128xbf16, #tpu.memory_space<vmem>>, vector<1x1x40x128xbf16>
    %115 = vector.shape_cast %114 : vector<1x1x40x128xbf16> to vector<40x128xbf16>
    %c1_136 = arith.constant 1 : index
    %c0_137 = arith.constant 0 : index
    %c0_138 = arith.constant 0 : index
    %116 = vector.load %arg2[%c1_136, %c0_137, %c0_138] : memref<5x128x384xbf16, #tpu.memory_space<vmem>>, vector<1x128x384xbf16>
    %117 = vector.shape_cast %116 : vector<1x128x384xbf16> to vector<128x384xbf16>
    %cst_139 = arith.constant dense<0.000000e+00> : vector<40x384xf32>
    %118 = tpu.matmul %115, %117, %cst_139 {dimension_numbers = #tpu.dot_dimension_numbers<[1], [0], [0], [1], [0, 0, 1, 1], [], []>} : vector<40x128xbf16>, vector<128x384xbf16>, vector<40x384xf32> -> vector<40x384xf32>
    %119 = arith.addf %113, %118 : vector<40x384xf32>
    %c0_140 = arith.constant 0 : index
    %c0_141 = arith.constant 0 : index
    %c8_142 = arith.constant 8 : index
    %c0_143 = arith.constant 0 : index
    %120 = vector.load %arg1[%c0_140, %c0_141, %c8_142, %c0_143] : memref<1x8x48x128xbf16, #tpu.memory_space<vmem>>, vector<1x1x40x128xbf16>
    %121 = vector.shape_cast %120 : vector<1x1x40x128xbf16> to vector<40x128xbf16>
    %c2_144 = arith.constant 2 : index
    %c0_145 = arith.constant 0 : index
    %c0_146 = arith.constant 0 : index
    %122 = vector.load %arg2[%c2_144, %c0_145, %c0_146] : memref<5x128x384xbf16, #tpu.memory_space<vmem>>, vector<1x128x384xbf16>
    %123 = vector.shape_cast %122 : vector<1x128x384xbf16> to vector<128x384xbf16>
    %cst_147 = arith.constant dense<0.000000e+00> : vector<40x384xf32>
    %124 = tpu.matmul %121, %123, %cst_147 {dimension_numbers = #tpu.dot_dimension_numbers<[1], [0], [0], [1], [0, 0, 1, 1], [], []>} : vector<40x128xbf16>, vector<128x384xbf16>, vector<40x384xf32> -> vector<40x384xf32>
    %125 = arith.addf %119, %124 : vector<40x384xf32>
    %c0_148 = arith.constant 0 : index
    %c1_149 = arith.constant 1 : index
    %c8_150 = arith.constant 8 : index
    %c0_151 = arith.constant 0 : index
    %126 = vector.load %arg1[%c0_148, %c1_149, %c8_150, %c0_151] : memref<1x8x48x128xbf16, #tpu.memory_space<vmem>>, vector<1x1x40x128xbf16>
    %127 = vector.shape_cast %126 : vector<1x1x40x128xbf16> to vector<40x128xbf16>
    %c3_152 = arith.constant 3 : index
    %c0_153 = arith.constant 0 : index
    %c0_154 = arith.constant 0 : index
    %128 = vector.load %arg2[%c3_152, %c0_153, %c0_154] : memref<5x128x384xbf16, #tpu.memory_space<vmem>>, vector<1x128x384xbf16>
    %129 = vector.shape_cast %128 : vector<1x128x384xbf16> to vector<128x384xbf16>
    %cst_155 = arith.constant dense<0.000000e+00> : vector<40x384xf32>
    %130 = tpu.matmul %127, %129, %cst_155 {dimension_numbers = #tpu.dot_dimension_numbers<[1], [0], [0], [1], [0, 0, 1, 1], [], []>} : vector<40x128xbf16>, vector<128x384xbf16>, vector<40x384xf32> -> vector<40x384xf32>
    %131 = arith.addf %125, %130 : vector<40x384xf32>
    %c0_156 = arith.constant 0 : index
    %c2_157 = arith.constant 2 : index
    %c8_158 = arith.constant 8 : index
    %c0_159 = arith.constant 0 : index
    %132 = vector.load %arg1[%c0_156, %c2_157, %c8_158, %c0_159] : memref<1x8x48x128xbf16, #tpu.memory_space<vmem>>, vector<1x1x40x128xbf16>
    %133 = vector.shape_cast %132 : vector<1x1x40x128xbf16> to vector<40x128xbf16>
    %c4_160 = arith.constant 4 : index
    %c0_161 = arith.constant 0 : index
    %c0_162 = arith.constant 0 : index
    %134 = vector.load %arg2[%c4_160, %c0_161, %c0_162] : memref<5x128x384xbf16, #tpu.memory_space<vmem>>, vector<1x128x384xbf16>
    %135 = vector.shape_cast %134 : vector<1x128x384xbf16> to vector<128x384xbf16>
    %cst_163 = arith.constant dense<0.000000e+00> : vector<40x384xf32>
    %136 = tpu.matmul %133, %135, %cst_163 {dimension_numbers = #tpu.dot_dimension_numbers<[1], [0], [0], [1], [0, 0, 1, 1], [], []>} : vector<40x128xbf16>, vector<128x384xbf16>, vector<40x384xf32> -> vector<40x384xf32>
    %137 = arith.addf %131, %136 : vector<40x384xf32>
    %138 = vector.broadcast %0 : vector<1x384xf32> to vector<40x384xf32>
    %139 = arith.addf %137, %138 : vector<40x384xf32>
    %cst_164 = arith.constant 0.000000e+00 : f32
    %140 = vector.broadcast %cst_164 : f32 to vector<40x384xf32>
    %141 = arith.maximumf %139, %140 : vector<40x384xf32>
    %c3_165 = arith.constant 3 : index
    %c0_166 = arith.constant 0 : index
    %c0_167 = arith.constant 0 : index
    %142 = vector.load %arg11[%c3_165, %c0_166, %c0_167] : memref<4x40x384xf32, #tpu.memory_space<vmem>>, vector<1x40x384xf32>
    %143 = vector.shape_cast %142 : vector<1x40x384xf32> to vector<40x384xf32>
    %144 = vector.shape_cast %141 : vector<40x384xf32> to vector<1x40x384xf32>
    tpu.vector_store %arg11[%c3_165, %c0_166, %c0_167], %144 {strides = array<i32>} : memref<4x40x384xf32, #tpu.memory_space<vmem>>, vector<1x40x384xf32>,
    %c0_168 = arith.constant 0 : index
    %c0_169 = arith.constant 0 : index
    %145 = vector.load %arg5[%c0_168, %c0_169] : memref<1x256xf32, #tpu.memory_space<vmem>>, vector<1x256xf32>
    %c0_170 = arith.constant 0 : index
    %c0_171 = arith.constant 0 : index
    %c0_172 = arith.constant 0 : index
    %146 = vector.load %arg11[%c0_170, %c0_171, %c0_172] : memref<4x40x384xf32, #tpu.memory_space<vmem>>, vector<1x32x384xf32>
    %147 = vector.shape_cast %146 : vector<1x32x384xf32> to vector<32x384xf32>
    %148 = arith.truncf %147 : vector<32x384xf32> to vector<32x384xbf16>
    %c0_173 = arith.constant 0 : index
    %c0_174 = arith.constant 0 : index
    %c0_175 = arith.constant 0 : index
    %149 = vector.load %arg4[%c0_173, %c0_174, %c0_175] : memref<5x384x256xbf16, #tpu.memory_space<vmem>>, vector<1x384x256xbf16>
    %150 = vector.shape_cast %149 : vector<1x384x256xbf16> to vector<384x256xbf16>
    %cst_176 = arith.constant dense<0.000000e+00> : vector<32x256xf32>
    %151 = tpu.matmul %148, %150, %cst_176 {dimension_numbers = #tpu.dot_dimension_numbers<[1], [0], [0], [1], [0, 0, 1, 1], [], []>} : vector<32x384xbf16>, vector<384x256xbf16>, vector<32x256xf32> -> vector<32x256xf32>
    %c1_177 = arith.constant 1 : index
    %c0_178 = arith.constant 0 : index
    %c0_179 = arith.constant 0 : index
    %152 = vector.load %arg11[%c1_177, %c0_178, %c0_179] : memref<4x40x384xf32, #tpu.memory_space<vmem>>, vector<1x32x384xf32>
    %153 = vector.shape_cast %152 : vector<1x32x384xf32> to vector<32x384xf32>
    %154 = arith.truncf %153 : vector<32x384xf32> to vector<32x384xbf16>
    %c1_180 = arith.constant 1 : index
    %c0_181 = arith.constant 0 : index
    %c0_182 = arith.constant 0 : index
    %155 = vector.load %arg4[%c1_180, %c0_181, %c0_182] : memref<5x384x256xbf16, #tpu.memory_space<vmem>>, vector<1x384x256xbf16>
    %156 = vector.shape_cast %155 : vector<1x384x256xbf16> to vector<384x256xbf16>
    %cst_183 = arith.constant dense<0.000000e+00> : vector<32x256xf32>
    %157 = tpu.matmul %154, %156, %cst_183 {dimension_numbers = #tpu.dot_dimension_numbers<[1], [0], [0], [1], [0, 0, 1, 1], [], []>} : vector<32x384xbf16>, vector<384x256xbf16>, vector<32x256xf32> -> vector<32x256xf32>
    %158 = arith.addf %151, %157 : vector<32x256xf32>
    %c2_184 = arith.constant 2 : index
    %c0_185 = arith.constant 0 : index
    %c0_186 = arith.constant 0 : index
    %159 = vector.load %arg11[%c2_184, %c0_185, %c0_186] : memref<4x40x384xf32, #tpu.memory_space<vmem>>, vector<1x32x384xf32>
    %160 = vector.shape_cast %159 : vector<1x32x384xf32> to vector<32x384xf32>
    %161 = arith.truncf %160 : vector<32x384xf32> to vector<32x384xbf16>
    %c2_187 = arith.constant 2 : index
    %c0_188 = arith.constant 0 : index
    %c0_189 = arith.constant 0 : index
    %162 = vector.load %arg4[%c2_187, %c0_188, %c0_189] : memref<5x384x256xbf16, #tpu.memory_space<vmem>>, vector<1x384x256xbf16>
    %163 = vector.shape_cast %162 : vector<1x384x256xbf16> to vector<384x256xbf16>
    %cst_190 = arith.constant dense<0.000000e+00> : vector<32x256xf32>
    %164 = tpu.matmul %161, %163, %cst_190 {dimension_numbers = #tpu.dot_dimension_numbers<[1], [0], [0], [1], [0, 0, 1, 1], [], []>} : vector<32x384xbf16>, vector<384x256xbf16>, vector<32x256xf32> -> vector<32x256xf32>
    %165 = arith.addf %158, %164 : vector<32x256xf32>
    %c3_191 = arith.constant 3 : index
    %c0_192 = arith.constant 0 : index
    %c0_193 = arith.constant 0 : index
    %166 = vector.load %arg11[%c3_191, %c0_192, %c0_193] : memref<4x40x384xf32, #tpu.memory_space<vmem>>, vector<1x32x384xf32>
    %167 = vector.shape_cast %166 : vector<1x32x384xf32> to vector<32x384xf32>
    %168 = arith.truncf %167 : vector<32x384xf32> to vector<32x384xbf16>
    %c3_194 = arith.constant 3 : index
    %c0_195 = arith.constant 0 : index
    %c0_196 = arith.constant 0 : index
    %169 = vector.load %arg4[%c3_194, %c0_195, %c0_196] : memref<5x384x256xbf16, #tpu.memory_space<vmem>>, vector<1x384x256xbf16>
    %170 = vector.shape_cast %169 : vector<1x384x256xbf16> to vector<384x256xbf16>
    %cst_197 = arith.constant dense<0.000000e+00> : vector<32x256xf32>
    %171 = tpu.matmul %168, %170, %cst_197 {dimension_numbers = #tpu.dot_dimension_numbers<[1], [0], [0], [1], [0, 0, 1, 1], [], []>} : vector<32x384xbf16>, vector<384x256xbf16>, vector<32x256xf32> -> vector<32x256xf32>
    %172 = arith.addf %165, %171 : vector<32x256xf32>
    %c0_198 = arith.constant 0 : index
    %c8_199 = arith.constant 8 : index
    %c0_200 = arith.constant 0 : index
    %173 = vector.load %arg11[%c0_198, %c8_199, %c0_200] : memref<4x40x384xf32, #tpu.memory_space<vmem>>, vector<1x32x384xf32>
    %174 = vector.shape_cast %173 : vector<1x32x384xf32> to vector<32x384xf32>
    %175 = arith.truncf %174 : vector<32x384xf32> to vector<32x384xbf16>
    %c4_201 = arith.constant 4 : index
    %c0_202 = arith.constant 0 : index
    %c0_203 = arith.constant 0 : index
    %176 = vector.load %arg4[%c4_201, %c0_202, %c0_203] : memref<5x384x256xbf16, #tpu.memory_space<vmem>>, vector<1x384x256xbf16>
    %177 = vector.shape_cast %176 : vector<1x384x256xbf16> to vector<384x256xbf16>
    %cst_204 = arith.constant dense<0.000000e+00> : vector<32x256xf32>
    %178 = tpu.matmul %175, %177, %cst_204 {dimension_numbers = #tpu.dot_dimension_numbers<[1], [0], [0], [1], [0, 0, 1, 1], [], []>} : vector<32x384xbf16>, vector<384x256xbf16>, vector<32x256xf32> -> vector<32x256xf32>
    %179 = arith.addf %172, %178 : vector<32x256xf32>
    %180 = vector.broadcast %145 : vector<1x256xf32> to vector<32x256xf32>
    %181 = arith.addf %179, %180 : vector<32x256xf32>
    %cst_205 = arith.constant 0.000000e+00 : f32
    %182 = vector.broadcast %cst_205 : f32 to vector<32x256xf32>
    %183 = arith.maximumf %181, %182 : vector<32x256xf32>
    %c0_206 = arith.constant 0 : index
    %c0_207 = arith.constant 0 : index
    %c0_208 = arith.constant 0 : index
    %184 = vector.load %arg12[%c0_206, %c0_207, %c0_208] : memref<2x32x256xf32, #tpu.memory_space<vmem>>, vector<1x32x256xf32>
    %185 = vector.shape_cast %184 : vector<1x32x256xf32> to vector<32x256xf32>
    %186 = vector.shape_cast %183 : vector<32x256xf32> to vector<1x32x256xf32>
    tpu.vector_store %arg12[%c0_206, %c0_207, %c0_208], %186 {strides = array<i32>} : memref<2x32x256xf32, #tpu.memory_space<vmem>>, vector<1x32x256xf32>,
    %c2_209 = arith.constant 2 : index
    %c0_210 = arith.constant 0 : index
    %c0_211 = arith.constant 0 : index
    %187 = vector.load %arg11[%c2_209, %c0_210, %c0_211] : memref<4x40x384xf32, #tpu.memory_space<vmem>>, vector<1x32x384xf32>
    %188 = vector.shape_cast %187 : vector<1x32x384xf32> to vector<32x384xf32>
    %189 = arith.truncf %188 : vector<32x384xf32> to vector<32x384xbf16>
    %c0_212 = arith.constant 0 : index
    %c0_213 = arith.constant 0 : index
    %c0_214 = arith.constant 0 : index
    %190 = vector.load %arg4[%c0_212, %c0_213, %c0_214] : memref<5x384x256xbf16, #tpu.memory_space<vmem>>, vector<1x384x256xbf16>
    %191 = vector.shape_cast %190 : vector<1x384x256xbf16> to vector<384x256xbf16>
    %cst_215 = arith.constant dense<0.000000e+00> : vector<32x256xf32>
    %192 = tpu.matmul %189, %191, %cst_215 {dimension_numbers = #tpu.dot_dimension_numbers<[1], [0], [0], [1], [0, 0, 1, 1], [], []>} : vector<32x384xbf16>, vector<384x256xbf16>, vector<32x256xf32> -> vector<32x256xf32>
    %c3_216 = arith.constant 3 : index
    %c0_217 = arith.constant 0 : index
    %c0_218 = arith.constant 0 : index
    %193 = vector.load %arg11[%c3_216, %c0_217, %c0_218] : memref<4x40x384xf32, #tpu.memory_space<vmem>>, vector<1x32x384xf32>
    %194 = vector.shape_cast %193 : vector<1x32x384xf32> to vector<32x384xf32>
    %195 = arith.truncf %194 : vector<32x384xf32> to vector<32x384xbf16>
    %c1_219 = arith.constant 1 : index
    %c0_220 = arith.constant 0 : index
    %c0_221 = arith.constant 0 : index
    %196 = vector.load %arg4[%c1_219, %c0_220, %c0_221] : memref<5x384x256xbf16, #tpu.memory_space<vmem>>, vector<1x384x256xbf16>
    %197 = vector.shape_cast %196 : vector<1x384x256xbf16> to vector<384x256xbf16>
    %cst_222 = arith.constant dense<0.000000e+00> : vector<32x256xf32>
    %198 = tpu.matmul %195, %197, %cst_222 {dimension_numbers = #tpu.dot_dimension_numbers<[1], [0], [0], [1], [0, 0, 1, 1], [], []>} : vector<32x384xbf16>, vector<384x256xbf16>, vector<32x256xf32> -> vector<32x256xf32>
    %199 = arith.addf %192, %198 : vector<32x256xf32>
    %c0_223 = arith.constant 0 : index
    %c8_224 = arith.constant 8 : index
    %c0_225 = arith.constant 0 : index
    %200 = vector.load %arg11[%c0_223, %c8_224, %c0_225] : memref<4x40x384xf32, #tpu.memory_space<vmem>>, vector<1x32x384xf32>
    %201 = vector.shape_cast %200 : vector<1x32x384xf32> to vector<32x384xf32>
    %202 = arith.truncf %201 : vector<32x384xf32> to vector<32x384xbf16>
    %c2_226 = arith.constant 2 : index
    %c0_227 = arith.constant 0 : index
    %c0_228 = arith.constant 0 : index
    %203 = vector.load %arg4[%c2_226, %c0_227, %c0_228] : memref<5x384x256xbf16, #tpu.memory_space<vmem>>, vector<1x384x256xbf16>
    %204 = vector.shape_cast %203 : vector<1x384x256xbf16> to vector<384x256xbf16>
    %cst_229 = arith.constant dense<0.000000e+00> : vector<32x256xf32>
    %205 = tpu.matmul %202, %204, %cst_229 {dimension_numbers = #tpu.dot_dimension_numbers<[1], [0], [0], [1], [0, 0, 1, 1], [], []>} : vector<32x384xbf16>, vector<384x256xbf16>, vector<32x256xf32> -> vector<32x256xf32>
    %206 = arith.addf %199, %205 : vector<32x256xf32>
    %c1_230 = arith.constant 1 : index
    %c8_231 = arith.constant 8 : index
    %c0_232 = arith.constant 0 : index
    %207 = vector.load %arg11[%c1_230, %c8_231, %c0_232] : memref<4x40x384xf32, #tpu.memory_space<vmem>>, vector<1x32x384xf32>
    %208 = vector.shape_cast %207 : vector<1x32x384xf32> to vector<32x384xf32>
    %209 = arith.truncf %208 : vector<32x384xf32> to vector<32x384xbf16>
    %c3_233 = arith.constant 3 : index
    %c0_234 = arith.constant 0 : index
    %c0_235 = arith.constant 0 : index
    %210 = vector.load %arg4[%c3_233, %c0_234, %c0_235] : memref<5x384x256xbf16, #tpu.memory_space<vmem>>, vector<1x384x256xbf16>
    %211 = vector.shape_cast %210 : vector<1x384x256xbf16> to vector<384x256xbf16>
    %cst_236 = arith.constant dense<0.000000e+00> : vector<32x256xf32>
    %212 = tpu.matmul %209, %211, %cst_236 {dimension_numbers = #tpu.dot_dimension_numbers<[1], [0], [0], [1], [0, 0, 1, 1], [], []>} : vector<32x384xbf16>, vector<384x256xbf16>, vector<32x256xf32> -> vector<32x256xf32>
    %213 = arith.addf %206, %212 : vector<32x256xf32>
    %c2_237 = arith.constant 2 : index
    %c8_238 = arith.constant 8 : index
    %c0_239 = arith.constant 0 : index
    %214 = vector.load %arg11[%c2_237, %c8_238, %c0_239] : memref<4x40x384xf32, #tpu.memory_space<vmem>>, vector<1x32x384xf32>
    %215 = vector.shape_cast %214 : vector<1x32x384xf32> to vector<32x384xf32>
    %216 = arith.truncf %215 : vector<32x384xf32> to vector<32x384xbf16>
    %c4_240 = arith.constant 4 : index
    %c0_241 = arith.constant 0 : index
    %c0_242 = arith.constant 0 : index
    %217 = vector.load %arg4[%c4_240, %c0_241, %c0_242] : memref<5x384x256xbf16, #tpu.memory_space<vmem>>, vector<1x384x256xbf16>
    %218 = vector.shape_cast %217 : vector<1x384x256xbf16> to vector<384x256xbf16>
    %cst_243 = arith.constant dense<0.000000e+00> : vector<32x256xf32>
    %219 = tpu.matmul %216, %218, %cst_243 {dimension_numbers = #tpu.dot_dimension_numbers<[1], [0], [0], [1], [0, 0, 1, 1], [], []>} : vector<32x384xbf16>, vector<384x256xbf16>, vector<32x256xf32> -> vector<32x256xf32>
    %220 = arith.addf %213, %219 : vector<32x256xf32>
    %221 = vector.broadcast %145 : vector<1x256xf32> to vector<32x256xf32>
    %222 = arith.addf %220, %221 : vector<32x256xf32>
    %cst_244 = arith.constant 0.000000e+00 : f32
    %223 = vector.broadcast %cst_244 : f32 to vector<32x256xf32>
    %224 = arith.maximumf %222, %223 : vector<32x256xf32>
    %c1_245 = arith.constant 1 : index
    %c0_246 = arith.constant 0 : index
    %c0_247 = arith.constant 0 : index
    %225 = vector.load %arg12[%c1_245, %c0_246, %c0_247] : memref<2x32x256xf32, #tpu.memory_space<vmem>>, vector<1x32x256xf32>
    %226 = vector.shape_cast %225 : vector<1x32x256xf32> to vector<32x256xf32>
    %227 = vector.shape_cast %224 : vector<32x256xf32> to vector<1x32x256xf32>
    tpu.vector_store %arg12[%c1_245, %c0_246, %c0_247], %227 {strides = array<i32>} : memref<2x32x256xf32, #tpu.memory_space<vmem>>, vector<1x32x256xf32>,
    %c0_248 = arith.constant 0 : index
    %c0_249 = arith.constant 0 : index
    %228 = vector.load %arg7[%c0_248, %c0_249] : memref<1x64xf32, #tpu.memory_space<vmem>>, vector<1x64xf32>
    %c0_250 = arith.constant 0 : index
    %c0_251 = arith.constant 0 : index
    %c0_252 = arith.constant 0 : index
    %229 = vector.load %arg12[%c0_250, %c0_251, %c0_252] : memref<2x32x256xf32, #tpu.memory_space<vmem>>, vector<1x16x256xf32>
    %230 = vector.shape_cast %229 : vector<1x16x256xf32> to vector<16x256xf32>
    %231 = arith.truncf %230 : vector<16x256xf32> to vector<16x256xbf16>
    %c0_253 = arith.constant 0 : index
    %c0_254 = arith.constant 0 : index
    %c0_255 = arith.constant 0 : index
    %232 = vector.load %arg6[%c0_253, %c0_254, %c0_255] : memref<5x256x64xbf16, #tpu.memory_space<vmem>>, vector<1x256x64xbf16>
    %233 = vector.shape_cast %232 : vector<1x256x64xbf16> to vector<256x64xbf16>
    %cst_256 = arith.constant dense<0.000000e+00> : vector<16x64xf32>
    %234 = tpu.matmul %231, %233, %cst_256 {dimension_numbers = #tpu.dot_dimension_numbers<[1], [0], [0], [1], [0, 0, 1, 1], [], []>} : vector<16x256xbf16>, vector<256x64xbf16>, vector<16x64xf32> -> vector<16x64xf32>
    %c1_257 = arith.constant 1 : index
    %c0_258 = arith.constant 0 : index
    %c0_259 = arith.constant 0 : index
    %235 = vector.load %arg12[%c1_257, %c0_258, %c0_259] : memref<2x32x256xf32, #tpu.memory_space<vmem>>, vector<1x16x256xf32>
    %236 = vector.shape_cast %235 : vector<1x16x256xf32> to vector<16x256xf32>
    %237 = arith.truncf %236 : vector<16x256xf32> to vector<16x256xbf16>
    %c1_260 = arith.constant 1 : index
    %c0_261 = arith.constant 0 : index
    %c0_262 = arith.constant 0 : index
    %238 = vector.load %arg6[%c1_260, %c0_261, %c0_262] : memref<5x256x64xbf16, #tpu.memory_space<vmem>>, vector<1x256x64xbf16>
    %239 = vector.shape_cast %238 : vector<1x256x64xbf16> to vector<256x64xbf16>
    %cst_263 = arith.constant dense<0.000000e+00> : vector<16x64xf32>
    %240 = tpu.matmul %237, %239, %cst_263 {dimension_numbers = #tpu.dot_dimension_numbers<[1], [0], [0], [1], [0, 0, 1, 1], [], []>} : vector<16x256xbf16>, vector<256x64xbf16>, vector<16x64xf32> -> vector<16x64xf32>
    %241 = arith.addf %234, %240 : vector<16x64xf32>
    %c0_264 = arith.constant 0 : index
    %c8_265 = arith.constant 8 : index
    %c0_266 = arith.constant 0 : index
    %242 = vector.load %arg12[%c0_264, %c8_265, %c0_266] : memref<2x32x256xf32, #tpu.memory_space<vmem>>, vector<1x16x256xf32>
    %243 = vector.shape_cast %242 : vector<1x16x256xf32> to vector<16x256xf32>
    %244 = arith.truncf %243 : vector<16x256xf32> to vector<16x256xbf16>
    %c2_267 = arith.constant 2 : index
    %c0_268 = arith.constant 0 : index
    %c0_269 = arith.constant 0 : index
    %245 = vector.load %arg6[%c2_267, %c0_268, %c0_269] : memref<5x256x64xbf16, #tpu.memory_space<vmem>>, vector<1x256x64xbf16>
    %246 = vector.shape_cast %245 : vector<1x256x64xbf16> to vector<256x64xbf16>
    %cst_270 = arith.constant dense<0.000000e+00> : vector<16x64xf32>
    %247 = tpu.matmul %244, %246, %cst_270 {dimension_numbers = #tpu.dot_dimension_numbers<[1], [0], [0], [1], [0, 0, 1, 1], [], []>} : vector<16x256xbf16>, vector<256x64xbf16>, vector<16x64xf32> -> vector<16x64xf32>
    %248 = arith.addf %241, %247 : vector<16x64xf32>
    %c1_271 = arith.constant 1 : index
    %c8_272 = arith.constant 8 : index
    %c0_273 = arith.constant 0 : index
    %249 = vector.load %arg12[%c1_271, %c8_272, %c0_273] : memref<2x32x256xf32, #tpu.memory_space<vmem>>, vector<1x16x256xf32>
    %250 = vector.shape_cast %249 : vector<1x16x256xf32> to vector<16x256xf32>
    %251 = arith.truncf %250 : vector<16x256xf32> to vector<16x256xbf16>
    %c3_274 = arith.constant 3 : index
    %c0_275 = arith.constant 0 : index
    %c0_276 = arith.constant 0 : index
    %252 = vector.load %arg6[%c3_274, %c0_275, %c0_276] : memref<5x256x64xbf16, #tpu.memory_space<vmem>>, vector<1x256x64xbf16>
    %253 = vector.shape_cast %252 : vector<1x256x64xbf16> to vector<256x64xbf16>
    %cst_277 = arith.constant dense<0.000000e+00> : vector<16x64xf32>
    %254 = tpu.matmul %251, %253, %cst_277 {dimension_numbers = #tpu.dot_dimension_numbers<[1], [0], [0], [1], [0, 0, 1, 1], [], []>} : vector<16x256xbf16>, vector<256x64xbf16>, vector<16x64xf32> -> vector<16x64xf32>
    %255 = arith.addf %248, %254 : vector<16x64xf32>
    %c0_278 = arith.constant 0 : index
    %c16 = arith.constant 16 : index
    %c0_279 = arith.constant 0 : index
    %256 = vector.load %arg12[%c0_278, %c16, %c0_279] : memref<2x32x256xf32, #tpu.memory_space<vmem>>, vector<1x16x256xf32>
    %257 = vector.shape_cast %256 : vector<1x16x256xf32> to vector<16x256xf32>
    %258 = arith.truncf %257 : vector<16x256xf32> to vector<16x256xbf16>
    %c4_280 = arith.constant 4 : index
    %c0_281 = arith.constant 0 : index
    %c0_282 = arith.constant 0 : index
    %259 = vector.load %arg6[%c4_280, %c0_281, %c0_282] : memref<5x256x64xbf16, #tpu.memory_space<vmem>>, vector<1x256x64xbf16>
    %260 = vector.shape_cast %259 : vector<1x256x64xbf16> to vector<256x64xbf16>
    %cst_283 = arith.constant dense<0.000000e+00> : vector<16x64xf32>
    %261 = tpu.matmul %258, %260, %cst_283 {dimension_numbers = #tpu.dot_dimension_numbers<[1], [0], [0], [1], [0, 0, 1, 1], [], []>} : vector<16x256xbf16>, vector<256x64xbf16>, vector<16x64xf32> -> vector<16x64xf32>
    %262 = arith.addf %255, %261 : vector<16x64xf32>
    %263 = vector.broadcast %228 : vector<1x64xf32> to vector<16x64xf32>
    %264 = arith.addf %262, %263 : vector<16x64xf32>
    %cst_284 = arith.constant 0.000000e+00 : f32
    %265 = vector.broadcast %cst_284 : f32 to vector<16x64xf32>
    %266 = arith.maximumf %264, %265 : vector<16x64xf32>
    %267 = arith.truncf %266 : vector<16x64xf32> to vector<16x64xbf16>
    %268 = vector.extract_strided_slice %267 {offsets = [0, 0], sizes = [8, 64], strides = [1, 1]} : vector<16x64xbf16> to vector<8x64xbf16>
    %c0_285 = arith.constant 0 : index
    %c0_286 = arith.constant 0 : index
    %269 = vector.load %arg8[%c0_285, %c0_286] : memref<128x128xbf16, #tpu.memory_space<vmem>>, vector<64x128xbf16>
    %cst_287 = arith.constant dense<0.000000e+00> : vector<8x128xf32>
    %270 = tpu.matmul %268, %269, %cst_287 {dimension_numbers = #tpu.dot_dimension_numbers<[1], [0], [0], [1], [0, 0, 1, 1], [], []>} : vector<8x64xbf16>, vector<64x128xbf16>, vector<8x128xf32> -> vector<8x128xf32>
    %271 = vector.extract_strided_slice %267 {offsets = [8, 0], sizes = [8, 64], strides = [1, 1]} : vector<16x64xbf16> to vector<8x64xbf16>
    %c64 = arith.constant 64 : index
    %c0_288 = arith.constant 0 : index
    %272 = vector.load %arg8[%c64, %c0_288] : memref<128x128xbf16, #tpu.memory_space<vmem>>, vector<64x128xbf16>
    %cst_289 = arith.constant dense<0.000000e+00> : vector<8x128xf32>
    %273 = tpu.matmul %271, %272, %cst_289 {dimension_numbers = #tpu.dot_dimension_numbers<[1], [0], [0], [1], [0, 0, 1, 1], [], []>} : vector<8x64xbf16>, vector<64x128xbf16>, vector<8x128xf32> -> vector<8x128xf32>
    %274 = arith.addf %270, %273 : vector<8x128xf32>
    %c0_290 = arith.constant 0 : index
    %c0_291 = arith.constant 0 : index
    %275 = vector.load %arg9[%c0_290, %c0_291] : memref<1x128xf32, #tpu.memory_space<vmem>>, vector<1x128xf32>
    %276 = vector.broadcast %275 : vector<1x128xf32> to vector<8x128xf32>
    %277 = arith.addf %274, %276 : vector<8x128xf32>
    %c0_292 = arith.constant 0 : index
    %c0_293 = arith.constant 0 : index
    %278 = vector.load %arg10[%c0_292, %c0_293] : memref<8x128xf32, #tpu.memory_space<vmem>>, vector<8x128xf32>
    tpu.vector_store %arg10[%c0_292, %c0_293], %277 {strides = array<i32>} : memref<8x128xf32, #tpu.memory_space<vmem>>, vector<8x128xf32>,
    return
  }
  func.func @transform_0(%arg0: i32) -> (i32, i32, i32, i32) {
    %c0_i32 = arith.constant 0 : i32
    %c0_i32_0 = arith.constant 0 : i32
    %c0_i32_1 = arith.constant 0 : i32
    %c0_i32_2 = arith.constant 0 : i32
    return %arg0, %c0_i32, %c0_i32_0, %c0_i32_1 : i32, i32, i32, i32
  }
  func.func @transform_1(%arg0: i32) -> (i32, i32, i32) {
    %c0_i32 = arith.constant 0 : i32
    %c0_i32_0 = arith.constant 0 : i32
    %c0_i32_1 = arith.constant 0 : i32
    %c0_i32_2 = arith.constant 0 : i32
    return %c0_i32, %c0_i32_0, %c0_i32_1 : i32, i32, i32
  }
  func.func @transform_2(%arg0: i32) -> (i32, i32) {
    %c0_i32 = arith.constant 0 : i32
    %c0_i32_0 = arith.constant 0 : i32
    %c0_i32_1 = arith.constant 0 : i32
    return %c0_i32, %c0_i32_0 : i32, i32
  }
  func.func @transform_3(%arg0: i32) -> (i32, i32, i32) {
    %c0_i32 = arith.constant 0 : i32
    %c0_i32_0 = arith.constant 0 : i32
    %c0_i32_1 = arith.constant 0 : i32
    %c0_i32_2 = arith.constant 0 : i32
    return %c0_i32, %c0_i32_0, %c0_i32_1 : i32, i32, i32
  }
  func.func @transform_4(%arg0: i32) -> (i32, i32) {
    %c0_i32 = arith.constant 0 : i32
    %c0_i32_0 = arith.constant 0 : i32
    %c0_i32_1 = arith.constant 0 : i32
    return %c0_i32, %c0_i32_0 : i32, i32
  }
  func.func @transform_5(%arg0: i32) -> (i32, i32, i32) {
    %c0_i32 = arith.constant 0 : i32
    %c0_i32_0 = arith.constant 0 : i32
    %c0_i32_1 = arith.constant 0 : i32
    %c0_i32_2 = arith.constant 0 : i32
    return %c0_i32, %c0_i32_0, %c0_i32_1 : i32, i32, i32
  }
  func.func @transform_6(%arg0: i32) -> (i32, i32) {
    %c0_i32 = arith.constant 0 : i32
    %c0_i32_0 = arith.constant 0 : i32
    %c0_i32_1 = arith.constant 0 : i32
    return %c0_i32, %c0_i32_0 : i32, i32
  }
  func.func @transform_7(%arg0: i32) -> (i32, i32) {
    %c0_i32 = arith.constant 0 : i32
    %c0_i32_0 = arith.constant 0 : i32
    %c0_i32_1 = arith.constant 0 : i32
    return %c0_i32, %c0_i32_0 : i32, i32
  }
  func.func @transform_8(%arg0: i32) -> (i32, i32) {
    %c0_i32 = arith.constant 0 : i32
    %c0_i32_0 = arith.constant 0 : i32
    %c0_i32_1 = arith.constant 0 : i32
    return %c0_i32, %c0_i32_0 : i32, i32
  }
  func.func @transform_9(%arg0: i32) -> (i32, i32) {
    %c0_i32 = arith.constant 0 : i32
    %c0_i32_0 = arith.constant 0 : i32
    return %arg0, %c0_i32 : i32, i32
  }
}

</mosaic_0001>

<bundles_post_ra>
// kernel: dqn_forward.1
= control target key start
LH: loop header
LB: loop body
LE: loop exit
PB: predicated region body
PF: predicated region fallthrough
CT: control target
= control target key end

     0   :  { %14 = vsyncpa [#allocation5], 0  ;;  %s15875_s30 = smov [#allocation4]   ;;  %s18766_s0 = inlined_call_operand.vmem [shape: bf16[1,8,48,128], index: 0, kind: input, shape index: {}]   ;;  %s18767_s1 = inlined_call_operand.hbm [shape: bf16[5,128,384], index: 1, kind: input, shape index: {}]   ;;  %s18768_s2 = inlined_call_operand.vmem [shape: f32[1,384], index: 2, kind: input, shape index: {}]   ;;  %s18769_s3 = inlined_call_operand.vmem [shape: bf16[5,384,256], index: 3, kind: input, shape index: {}]   ;;  %s18770_s4 = inlined_call_operand.vmem [shape: f32[1,256], index: 4, kind: input, shape index: {}]   ;;  %s18771_s5 = inlined_call_operand.vmem [shape: bf16[5,256,64], index: 5, kind: input, shape index: {}]   ;;  %s18772_s6 = inlined_call_operand.vmem [shape: f32[1,64], index: 6, kind: input, shape index: {}]   ;;  %s18773_s7 = inlined_call_operand.vmem [shape: bf16[128,128], index: 7, kind: input, shape index: {}]   ;;  %s18774_s8 = inlined_call_operand.vmem [shape: f32[1,128], index: 8, kind: input, shape index: {}]   ;;  %s18775_s9 = inlined_call_operand.vmem [shape: f32[8,128], index: 9, kind: output, shape index: {}]  }
   0x1   :  { %s22_s10 = sshll.u32 %s15875_s30, 4  ;;  %s15851_s13 = scalar_lea.hbm %s18767_s1, 15360  ;;  %s23_s10 = int_to_ptr.vmem [resolvable:$true] %s22_s10 }
   0x2   :  { %p15852_p0 = scmp.ne.s32.totalorder %s18767_s1, %s15851_s13  ;;  %p15855_p1 = scmp.lt.u32.totalorder %s15851_s13, %s18767_s1 }
   0x4   :  { %p15857_p2 = pnand %p15855_p1, %p15852_p0 }
   0x6   :  { %15860 = shalt.err (!%p15857_p2)
}
   0x7   :  { %s15861_s18 = scalar_lea.vmem %s23_s10, 15360  ;;  %p15866_p4 = scmp.lt.s32.totalorder %s23_s10, %s23_s10 }
   0x8   :  { %p15862_p3 = scmp.ne.s32.totalorder %s23_s10, %s15861_s18  ;;  %p15867_p5 = scmp.lt.s32.totalorder %s15861_s18, %s15861_s18 }
   0xa   :  { %p15868_p6 = por %p15867_p5, %p15866_p4 }
   0xc   :  { %p15869_p7 = pnand %p15868_p6, %p15862_p3 }
   0xe   :  { %15872 = shalt.err (!%p15869_p7)
}
   0xf   :  { %s15876_s19 = smov 192   ;;  %s15877_s20 = smov 12  }
  0x10   :  { %28 = dma.hbm_to_vmem [thread:$0]  %s18767_s1, 15360, %s23_s10, [#allocation5], %s15876_s19, %s15876_s19, %s15877_s20  }
  0x11   :  { %15873 = dma.done.wait [#allocation5], 15360  }
  0x12   :  { %15874 = vsyncadd [#allocation5], 4294951936  ;;  %v18776_v0 = vmov 0.0   ;;  %vm15879_vm0 = vmmov 0   ;;  %v18780_v1 = vmov 0   ;;  %v14602_v27 = vld [vmem:[%s18766_s0 + $0x18] sm:$0xff]  }
  0x13   :  { %13744 = vmatprep.subr.bf16.mxu1 %v18776_v0  ;;  %13760 = vmatprep.mubr.msk.bf16.mxu1 %vm15879_vm0, %v18776_v0  ;;  %v14570_v2 = vld [vmem:[#allocation4 + $0xc4] ss:$12 sps:$4 sm:$0xff]   ;;  %v14572_v3 = vld [vmem:[#allocation4 + $0xc8] ss:$12 sps:$4 sm:$0xff]   ;;  %v14573_v4 = vld [vmem:[#allocation4 + $0xc0] ss:$12 sps:$4 sm:$0xff]  }
  0x14   :  { %300 = vmatprep.mubr.bf16.mxu0 %v18780_v1  ;;  %268 = vmatprep.subr.bf16.mxu0 %v14570_v2  ;;  %v14574_v5 = vld [vmem:[#allocation4 + $0xdc] ss:$12 sps:$4 sm:$0xff]   ;;  %v14576_v6 = vld [vmem:[#allocation4 + $0xe0] ss:$12 sps:$4 sm:$0xff]   ;;  %v14577_v7 = vld [vmem:[#allocation4 + $0xd8] ss:$12 sps:$4 sm:$0xff]  }
  0x15   :  { %13745 = vmatpush3.bf16.msra.mxu1 %v14572_v3  ;;  %269 = vmatpush1.bf16.msra.mxu0 %v14573_v4  ;;  %v14578_v8 = vld [vmem:[#allocation4 + $0xf4] ss:$12 sps:$4 sm:$0xff]   ;;  %v14580_v9 = vld [vmem:[#allocation4 + $0xf8] ss:$12 sps:$4 sm:$0xff]   ;;  %v14581_v10 = vld [vmem:[#allocation4 + $0xf0] ss:$12 sps:$4 sm:$0xff]  }
  0x16   :  { %13746 = vmatprep.subr.bf16.mxu1 %v18776_v0  ;;  %270 = vmatprep.subr.bf16.mxu0 %v14574_v5  ;;  %v14582_v11 = vld [vmem:[#allocation4 + $0x10c] ss:$12 sps:$4 sm:$0xff]   ;;  %v14584_v12 = vld [vmem:[#allocation4 + $0x110] ss:$12 sps:$4 sm:$0xff]   ;;  %v14585_v13 = vld [vmem:[#allocation4 + $0x108] ss:$12 sps:$4 sm:$0xff]  }
  0x17   :  { %v14586_v14 = vld [vmem:[#allocation4 + $0x124] ss:$12 sps:$4 sm:$0xff]   ;;  %v14588_v15 = vld [vmem:[#allocation4 + $0x128] ss:$12 sps:$4 sm:$0xff]   ;;  %v14589_v16 = vld [vmem:[#allocation4 + $0x120] ss:$12 sps:$4 sm:$0xff]  }
  0x18   :  { %v14590_v17 = vld [vmem:[#allocation4 + $0x13c] ss:$12 sps:$4 sm:$0xff]   ;;  %v14592_v18 = vld [vmem:[#allocation4 + $0x140] ss:$12 sps:$4 sm:$0xff]   ;;  %v14593_v19 = vld [vmem:[#allocation4 + $0x138] ss:$12 sps:$4 sm:$0xff]  }
  0x19   :  { %13747 = vmatpush3.bf16.msra.mxu1 %v14576_v6  ;;  %271 = vmatpush1.bf16.msra.mxu0 %v14577_v7  ;;  %v14594_v20 = vld [vmem:[#allocation4 + $0x154] ss:$12 sps:$4 sm:$0xff]   ;;  %v14596_v21 = vld [vmem:[#allocation4 + $0x158] ss:$12 sps:$4 sm:$0xff]   ;;  %v14597_v22 = vld [vmem:[#allocation4 + $0x150] ss:$12 sps:$4 sm:$0xff]  }
  0x1a   :  { %13748 = vmatprep.subr.bf16.mxu1 %v18776_v0  ;;  %272 = vmatprep.subr.bf16.mxu0 %v14578_v8  ;;  %v14598_v23 = vld [vmem:[#allocation4 + $0x16c] ss:$12 sps:$4 sm:$0xff]   ;;  %v14600_v24 = vld [vmem:[#allocation4 + $0x170] ss:$12 sps:$4 sm:$0xff]   ;;  %v14601_v25 = vld [vmem:[#allocation4 + $0x168] ss:$12 sps:$4 sm:$0xff]  }
  0x1b   :  { %v14605_v26 = vld [vmem:[#allocation4 + $0x4] ss:$12 sps:$4 sm:$0xff]   ;;  %v14606_v28 = vld [vmem:[#allocation4 + $0x8] ss:$12 sps:$4 sm:$0xff]   ;;  %v14603_v29 = vld [vmem:[#allocation4] ss:$12 sps:$4 sm:$0xff]  }
  0x1c   :  { %v14609_v30 = vld [vmem:[#allocation4 + $0x1c] ss:$12 sps:$4 sm:$0xff]   ;;  %v14610_v31 = vld [vmem:[#allocation4 + $0x20] ss:$12 sps:$4 sm:$0xff]   ;;  %v14607_v32 = vld [vmem:[#allocation4 + $0x18] ss:$12 sps:$4 sm:$0xff]  }
  0x1d   :  { %13749 = vmatpush3.bf16.msra.mxu1 %v14580_v9  ;;  %273 = vmatpush1.bf16.msra.mxu0 %v14581_v10  ;;  %v14613_v33 = vld [vmem:[#allocation4 + $0x34] ss:$12 sps:$4 sm:$0xff]   ;;  %v14614_v35 = vld [vmem:[#allocation4 + $0x38] ss:$12 sps:$4 sm:$0xff]   ;;  %v14611_v36 = vld [vmem:[#allocation4 + $0x30] ss:$12 sps:$4 sm:$0xff]  }
  0x1e   :  { %13750 = vmatprep.subr.bf16.mxu1 %v18776_v0  ;;  %274 = vmatprep.subr.bf16.mxu0 %v14582_v11  ;;  %v14619_v34 = vld [vmem:[%s18766_s0 + $0x20] sm:$0xff]   ;;  %v14617_v37 = vld [vmem:[#allocation4 + $0x4c] ss:$12 sps:$4 sm:$0xff]   ;;  %v14618_v38 = vld [vmem:[#allocation4 + $0x50] ss:$12 sps:$4 sm:$0xff]   ;;  %vm11570_vm1 = vcmask 523264  }
  0x1f   :  { %v14615_v39 = vld [vmem:[#allocation4 + $0x48] ss:$12 sps:$4 sm:$0xff]   ;;  %v14622_v40 = vld [vmem:[#allocation4 + $0x64] ss:$12 sps:$4 sm:$0xff]   ;;  %v14620_v43 = vld [vmem:[#allocation4 + $0x60] ss:$12 sps:$4 sm:$0xff]  }
  0x20   :  { %v14628_v41 = vld [vmem:[%s18766_s0 + $0x28] ss:$0 sps:$4 sm:$0xff]   ;;  %v14627_v45 = vld [vmem:[#allocation4 + $0x80] ss:$12 sps:$4 sm:$0xff]   ;;  %v14624_v46 = vld [vmem:[#allocation4 + $0x78] ss:$12 sps:$4 sm:$0xff]  }
  0x21   :  { %13751 = vmatpush3.bf16.msra.mxu1 %v14584_v12  ;;  %275 = vmatpush1.bf16.msra.mxu0 %v14585_v13  ;;  %v14623_v42 = vld [vmem:[#allocation4 + $0x68] ss:$12 sps:$4 sm:$0xff]   ;;  %v14632_v48 = vld [vmem:[#allocation4 + $0x98] ss:$12 sps:$4 sm:$0xff]   ;;  %v14629_v49 = vld [vmem:[#allocation4 + $0x90] ss:$12 sps:$4 sm:$0xff]  }
  0x22   :  { %13752 = vmatprep.subr.bf16.mxu1 %v18776_v0  ;;  %276 = vmatprep.subr.bf16.mxu0 %v14586_v14  ;;  %v14626_v44 = vld [vmem:[#allocation4 + $0x7c] ss:$12 sps:$4 sm:$0xff]   ;;  %v14631_v47 = vld [vmem:[#allocation4 + $0x94] ss:$12 sps:$4 sm:$0xff]   ;;  %v14635_v50 = vld [vmem:[#allocation4 + $0xac] ss:$12 sps:$4 sm:$0xff]  }
  0x23   :  { %v14636_v51 = vld [vmem:[#allocation4 + $0xb0] ss:$12 sps:$4 sm:$0xff]   ;;  %v14633_v52 = vld [vmem:[#allocation4 + $0xa8] ss:$12 sps:$4 sm:$0xff]   ;;  %v14637_v54 = vld [vmem:[%s18766_s0] sm:$0xff]  }
  0x24   :  { %v14640_v53 = vld [vmem:[#allocation4 + $0x184] ss:$12 sps:$4 sm:$0xff]   ;;  %v14641_v55 = vld [vmem:[#allocation4 + $0x188] ss:$12 sps:$4 sm:$0xff]   ;;  %v14638_v56 = vld [vmem:[#allocation4 + $0x180] ss:$12 sps:$4 sm:$0xff]  }
  0x25   :  { %13753 = vmatpush3.bf16.msra.mxu1 %v14588_v15  ;;  %277 = vmatpush1.bf16.msra.mxu0 %v14589_v16  ;;  %v14644_v57 = vld [vmem:[#allocation4 + $0x19c] ss:$12 sps:$4 sm:$0xff]   ;;  %v14645_v58 = vld [vmem:[#allocation4 + $0x1a0] ss:$12 sps:$4 sm:$0xff]   ;;  %v14642_v59 = vld [vmem:[#allocation4 + $0x198] ss:$12 sps:$4 sm:$0xff]  }
  0x26   :  { %13754 = vmatprep.subr.bf16.mxu1 %v18776_v0  ;;  %278 = vmatprep.subr.bf16.mxu0 %v14590_v17  ;;  %v14649_v60 = vld [vmem:[#allocation4 + $0x1b4] ss:$12 sps:$4 sm:$0xff]   ;;  %v14646_v61 = vld [vmem:[%s18766_s0 + $0x8] sm:$0xff]   ;;  %v14650_v62 = vld [vmem:[#allocation4 + $0x1b8] ss:$12 sps:$4 sm:$0xff]  }
  0x27   :  { %v14647_v63 = vld [vmem:[#allocation4 + $0x1b0] ss:$12 sps:$4 sm:$0xff]   ;;  %v14653_v2 = vld [vmem:[#allocation4 + $0x1cc] ss:$12 sps:$4 sm:$0xff]   ;;  %v14651_v4 = vld [vmem:[#allocation4 + $0x1c8] ss:$12 sps:$4 sm:$0xff]  }
  0x28   :  { %v14654_v3 = vld [vmem:[#allocation4 + $0x1d0] ss:$12 sps:$4 sm:$0xff]   ;;  %v14659_v7 = vld [vmem:[#allocation4 + $0x1e8] ss:$12 sps:$4 sm:$0xff]   ;;  %v14656_v8 = vld [vmem:[#allocation4 + $0x1e0] ss:$12 sps:$4 sm:$0xff]  }
  0x29   :  { %13755 = vmatpush3.bf16.msra.mxu1 %v14592_v18  ;;  %279 = vmatpush1.bf16.msra.mxu0 %v14593_v19  ;;  %v14658_v5 = vld [vmem:[#allocation4 + $0x1e4] ss:$12 sps:$4 sm:$0xff]   ;;  %v14662_v9 = vld [vmem:[#allocation4 + $0x1fc] ss:$12 sps:$4 sm:$0xff]   ;;  %v14663_v10 = vld [vmem:[#allocation4 + $0x200] ss:$12 sps:$4 sm:$0xff]  }
  0x2a   :  { %13756 = vmatprep.subr.bf16.mxu1 %v18776_v0  ;;  %280 = vmatprep.subr.bf16.mxu0 %v14594_v20  ;;  %v14655_v6 = vld [vmem:[%s18766_s0 + $0x10] ss:$0 sps:$4 sm:$0xff]   ;;  %v14660_v11 = vld [vmem:[#allocation4 + $0x1f8] ss:$12 sps:$4 sm:$0xff]   ;;  %v14666_v12 = vld [vmem:[#allocation4 + $0x214] ss:$12 sps:$4 sm:$0xff]  }
  0x2b   :  { %v14667_v13 = vld [vmem:[#allocation4 + $0x218] ss:$12 sps:$4 sm:$0xff]   ;;  %v14664_v14 = vld [vmem:[#allocation4 + $0x210] ss:$12 sps:$4 sm:$0xff]   ;;  %v14668_v17 = vld [vmem:[#allocation4 + $0x228] ss:$12 sps:$4 sm:$0xff]  }
  0x2c   :  { %v14670_v15 = vld [vmem:[#allocation4 + $0x22c] ss:$12 sps:$4 sm:$0xff]   ;;  %v14671_v16 = vld [vmem:[#allocation4 + $0x230] ss:$12 sps:$4 sm:$0xff]   ;;  %v14676_v20 = vld [vmem:[#allocation4 + $0x248] ss:$12 sps:$4 sm:$0xff]  }
  0x2d   :  { %13757 = vmatpush3.bf16.msra.mxu1 %v14596_v21  ;;  %281 = vmatpush1.bf16.msra.mxu0 %v14597_v22  ;;  %v14675_v18 = vld [vmem:[#allocation4 + $0x244] ss:$12 sps:$4 sm:$0xff]   ;;  %v14673_v21 = vld [vmem:[#allocation4 + $0x240] ss:$12 sps:$4 sm:$0xff]   ;;  %v14679_v22 = vld [vmem:[#allocation4 + $0x25c] ss:$12 sps:$4 sm:$0xff]  }
  0x2e   :  { %13758 = vmatprep.subr.bf16.mxu1 %v18776_v0  ;;  %282 = vmatprep.subr.bf16.mxu0 %v14598_v23  ;;  %v14672_v19 = vld [vmem:[%s18766_s0 + $0x30] sm:$0xff]   ;;  %v14680_v23 = vld [vmem:[#allocation4 + $0x260] ss:$12 sps:$4 sm:$0xff]  }
  0x31   :  { %13759 = vmatpush3.bf16.msra.mxu1 %v14600_v24  ;;  %283 = vmatpush1.bf16.msra.mxu0 %v14601_v25  ;;  %v14677_v24 = vld [vmem:[#allocation4 + $0x258] ss:$12 sps:$4 sm:$0xff]   ;;  %v14684_v25 = vld [vmem:[#allocation4 + $0x274] ss:$12 sps:$4 sm:$0xff]  }
  0x32   :  { %13772 = vmatprep.subr.bf16.mxu1 %v18776_v0  ;;  %529 = vmatprep.subr.bf16.mxu0 %v14605_v26  ;;  %v14681_v26 = vld [vmem:[%s18766_s0 + $0x38] sm:$0xff]  }
  0x34   :  { %13761 = vmatmul.mubr.bf16.vlgmr.msra.gmra.mrb[0].mxu1 %v14602_v27  ;;  %301 = vmatmul.mubr.bf16.vlgmr.msra.gmra.mrb[0].mxu0 %v14602_v27  ;;  %v14685_v27 = vld [vmem:[#allocation4 + $0x278] ss:$12 sps:$4 sm:$0xff]  }
  0x35   :  { %13773 = vmatpush3.bf16.msra.mxu1 %v14606_v28  ;;  %530 = vmatpush1.bf16.msra.mxu0 %v14603_v29  ;;  %v14682_v28 = vld [vmem:[#allocation4 + $0x270] ss:$12 sps:$4 sm:$0xff]   ;;  %v14688_v29 = vld [vmem:[#allocation4 + $0x28c] ss:$12 sps:$4 sm:$0xff]  }
  0x36   :  { %13774 = vmatprep.subr.bf16.mxu1 %v18776_v0  ;;  %531 = vmatprep.subr.bf16.mxu0 %v14609_v30  ;;  %v14689_v30 = vld [vmem:[#allocation4 + $0x290] ss:$12 sps:$4 sm:$0xff]  }
  0x37   :  { %310 = vmatprep.mubr.bf16.mxu0 %v18780_v1  ;;  %13764 = vmatprep.mubr.msk.bf16.mxu1 %vm15879_vm0, %v18776_v0 }
  0x39   :  { %13775 = vmatpush3.bf16.msra.mxu1 %v14610_v31  ;;  %532 = vmatpush1.bf16.msra.mxu0 %v14607_v32  ;;  %v14686_v31 = vld [vmem:[#allocation4 + $0x288] ss:$12 sps:$4 sm:$0xff]   ;;  %v14693_v32 = vld [vmem:[#allocation4 + $0x2a4] ss:$12 sps:$4 sm:$0xff]  }
  0x3a   :  { %13776 = vmatprep.subr.bf16.mxu1 %v18776_v0  ;;  %533 = vmatprep.subr.bf16.mxu0 %v14613_v33  ;;  %v14690_v33 = vld [vmem:[%s18766_s0 + $0x40] ss:$0 sps:$4 sm:$0xff]  }
  0x3c   :  { %13765 = vmatmul.mubr.bf16.gmra.mrb[4].mxu1 %v14619_v34  ;;  %311 = vmatmul.mubr.bf16.gmra.mrb[4].mxu0 %v14619_v34  ;;  %v14694_v34 = vld [vmem:[#allocation4 + $0x2a8] ss:$12 sps:$4 sm:$0xff]  }
  0x3d   :  { %13777 = vmatpush3.bf16.msra.mxu1 %v14614_v35  ;;  %534 = vmatpush1.bf16.msra.mxu0 %v14611_v36  ;;  %v14691_v35 = vld [vmem:[#allocation4 + $0x2a0] ss:$12 sps:$4 sm:$0xff]   ;;  %v14697_v36 = vld [vmem:[#allocation4 + $0x2bc] ss:$12 sps:$4 sm:$0xff]  }
  0x3e   :  { %13778 = vmatprep.subr.bf16.mxu1 %v18776_v0  ;;  %535 = vmatprep.subr.bf16.mxu0 %v14617_v37  ;;  %v14698_v37 = vld [vmem:[#allocation4 + $0x2c0] ss:$12 sps:$4 sm:$0xff]  }
  0x3f   :  { %320 = vmatprep.mubr.bf16.mxu0 %v18780_v1  ;;  %13768 = vmatprep.mubr.msk.bf16.mxu1 %vm15879_vm0, %v18776_v0 }
  0x41   :  { %13779 = vmatpush3.bf16.msra.mxu1 %v14618_v38  ;;  %536 = vmatpush1.bf16.msra.mxu0 %v14615_v39  ;;  %v14695_v38 = vld [vmem:[#allocation4 + $0x2b8] ss:$12 sps:$4 sm:$0xff]   ;;  %v14701_v39 = vld [vmem:[#allocation4 + $0x2d4] ss:$12 sps:$4 sm:$0xff]  }
  0x42   :  { %13780 = vmatprep.subr.bf16.mxu1 %v18776_v0  ;;  %537 = vmatprep.subr.bf16.mxu0 %v14622_v40  ;;  %v14702_v40 = vld [vmem:[#allocation4 + $0x2d8] ss:$12 sps:$4 sm:$0xff]  }
  0x44   :  { %13769 = vmatmul.mubr.bf16.gmra.mrb[8].mxu1 %v14628_v41  ;;  %321 = vmatmul.mubr.bf16.gmra.mrb[8].mxu0 %v14628_v41  ;;  %v14699_v41 = vld [vmem:[#allocation4 + $0x2d0] ss:$12 sps:$4 sm:$0xff]  }
  0x45   :  { %13781 = vmatpush3.bf16.msra.mxu1 %v14623_v42  ;;  %538 = vmatpush1.bf16.msra.mxu0 %v14620_v43  ;;  %v14705_v42 = vld [vmem:[#allocation4 + $0x2ec] ss:$12 sps:$4 sm:$0xff]   ;;  %v14706_v43 = vld [vmem:[#allocation4 + $0x2f0] ss:$12 sps:$4 sm:$0xff]  }
  0x46   :  { %13782 = vmatprep.subr.bf16.mxu1 %v18776_v0  ;;  %539 = vmatprep.subr.bf16.mxu0 %v14626_v44  ;;  %v14703_v44 = vld [vmem:[#allocation4 + $0x2e8] ss:$12 sps:$4 sm:$0xff]  }
  0x47   :  { %13788 = vmatprep.mubr.msk.bf16.mxu1 %vm15879_vm0, %v18776_v0  ;;  %561 = vmatprep.mubr.bf16.mxu0 %v18780_v1 }
  0x49   :  { %13783 = vmatpush3.bf16.msra.mxu1 %v14627_v45  ;;  %540 = vmatpush1.bf16.msra.mxu0 %v14624_v46  ;;  %v14710_v45 = vld [vmem:[#allocation4 + $0x304] ss:$12 sps:$4 sm:$0xff]   ;;  %v14707_v46 = vld [vmem:[%s18766_s0 + $0x48] sm:$0xff]  }
  0x4a   :  { %13784 = vmatprep.subr.bf16.mxu1 %v18776_v0  ;;  %541 = vmatprep.subr.bf16.mxu0 %v14631_v47  ;;  %v14711_v47 = vld [vmem:[#allocation4 + $0x308] ss:$12 sps:$4 sm:$0xff]  }
  0x4d   :  { %13785 = vmatpush3.bf16.msra.mxu1 %v14632_v48  ;;  %542 = vmatpush1.bf16.msra.mxu0 %v14629_v49  ;;  %v14708_v48 = vld [vmem:[#allocation4 + $0x300] ss:$12 sps:$4 sm:$0xff]   ;;  %v14714_v49 = vld [vmem:[#allocation4 + $0x31c] ss:$12 sps:$4 sm:$0xff]  }
  0x4e   :  { %13786 = vmatprep.subr.bf16.mxu1 %v18776_v0  ;;  %543 = vmatprep.subr.bf16.mxu0 %v14635_v50  ;;  %v14715_v50 = vld [vmem:[#allocation4 + $0x320] ss:$12 sps:$4 sm:$0xff]  }
  0x51   :  { %13787 = vmatpush3.bf16.msra.mxu1 %v14636_v51  ;;  %544 = vmatpush1.bf16.msra.mxu0 %v14633_v52  ;;  %v14712_v51 = vld [vmem:[#allocation4 + $0x318] ss:$12 sps:$4 sm:$0xff]   ;;  %v14719_v52 = vld [vmem:[#allocation4 + $0x334] ss:$12 sps:$4 sm:$0xff]  }
  0x52   :  { %13800 = vmatprep.subr.bf16.mxu1 %v18776_v0  ;;  %829 = vmatprep.subr.bf16.mxu0 %v14640_v53  ;;  %v14716_v53 = vld [vmem:[%s18766_s0 + $0x50] sm:$0xff]  }
  0x54   :  { %13789 = vmatmul.mubr.bf16.vlgmr.msra.gmra.mrb[12].mxu1 %v14637_v54  ;;  %562 = vmatmul.mubr.bf16.vlgmr.msra.gmra.mrb[0].mxu0 %v14637_v54  ;;  %v14720_v54 = vld [vmem:[#allocation4 + $0x338] ss:$12 sps:$4 sm:$0xff]  }
  0x55   :  { %13801 = vmatpush3.bf16.msra.mxu1 %v14641_v55  ;;  %830 = vmatpush1.bf16.msra.mxu0 %v14638_v56  ;;  %v14717_v55 = vld [vmem:[#allocation4 + $0x330] ss:$12 sps:$4 sm:$0xff]   ;;  %v14723_v56 = vld [vmem:[#allocation4 + $0x34c] ss:$12 sps:$4 sm:$0xff]  }
  0x56   :  { %13802 = vmatprep.subr.bf16.mxu1 %v18776_v0  ;;  %831 = vmatprep.subr.bf16.mxu0 %v14644_v57  ;;  %v14724_v57 = vld [vmem:[#allocation4 + $0x350] ss:$12 sps:$4 sm:$0xff]  }
  0x57   :  { %571 = vmatprep.mubr.bf16.mxu0 %v18780_v1  ;;  %13792 = vmatprep.mubr.msk.bf16.mxu1 %vm15879_vm0, %v18776_v0 }
  0x59   :  { %13803 = vmatpush3.bf16.msra.mxu1 %v14645_v58  ;;  %832 = vmatpush1.bf16.msra.mxu0 %v14642_v59  ;;  %v14721_v58 = vld [vmem:[#allocation4 + $0x348] ss:$12 sps:$4 sm:$0xff]   ;;  %v14728_v59 = vld [vmem:[#allocation4 + $0x364] ss:$12 sps:$4 sm:$0xff]  }
  0x5a   :  { %13804 = vmatprep.subr.bf16.mxu1 %v18776_v0  ;;  %833 = vmatprep.subr.bf16.mxu0 %v14649_v60  ;;  %v14725_v60 = vld [vmem:[%s18766_s0 + $0x58] ss:$0 sps:$4 sm:$0xff]  }
  0x5c   :  { %13793 = vmatmul.mubr.bf16.gmra.mrb[16].mxu1 %v14646_v61  ;;  %572 = vmatmul.mubr.bf16.gmra.mrb[4].mxu0 %v14646_v61  ;;  %v14729_v61 = vld [vmem:[#allocation4 + $0x368] ss:$12 sps:$4 sm:$0xff]  }
  0x5d   :  { %13805 = vmatpush3.bf16.msra.mxu1 %v14650_v62  ;;  %834 = vmatpush1.bf16.msra.mxu0 %v14647_v63  ;;  %v14726_v62 = vld [vmem:[#allocation4 + $0x360] ss:$12 sps:$4 sm:$0xff]   ;;  %v14732_v63 = vld [vmem:[#allocation4 + $0x37c] ss:$12 sps:$4 sm:$0xff]  }
  0x5e   :  { %13806 = vmatprep.subr.bf16.mxu1 %v18776_v0  ;;  %835 = vmatprep.subr.bf16.mxu0 %v14653_v2  ;;  %v14733_v2 = vld [vmem:[#allocation4 + $0x380] ss:$12 sps:$4 sm:$0xff]  }
  0x5f   :  { %581 = vmatprep.mubr.bf16.mxu0 %v18780_v1  ;;  %13796 = vmatprep.mubr.msk.bf16.mxu1 %vm15879_vm0, %v18776_v0 }
  0x61   :  { %13807 = vmatpush3.bf16.msra.mxu1 %v14654_v3  ;;  %836 = vmatpush1.bf16.msra.mxu0 %v14651_v4  ;;  %v14730_v3 = vld [vmem:[#allocation4 + $0x378] ss:$12 sps:$4 sm:$0xff]   ;;  %v14736_v4 = vld [vmem:[#allocation4 + $0x394] ss:$12 sps:$4 sm:$0xff]  }
  0x62   :  { %13808 = vmatprep.subr.bf16.mxu1 %v18776_v0  ;;  %837 = vmatprep.subr.bf16.mxu0 %v14658_v5  ;;  %v14737_v5 = vld [vmem:[#allocation4 + $0x398] ss:$12 sps:$4 sm:$0xff]  }
  0x64   :  { %13797 = vmatmul.mubr.bf16.gmra.mrb[20].mxu1 %v14655_v6  ;;  %582 = vmatmul.mubr.bf16.gmra.mrb[12].mxu0 %v14655_v6  ;;  %v14734_v6 = vld [vmem:[#allocation4 + $0x390] ss:$12 sps:$4 sm:$0xff]  }
  0x65   :  { %13809 = vmatpush3.bf16.msra.mxu1 %v14659_v7  ;;  %838 = vmatpush1.bf16.msra.mxu0 %v14656_v8  ;;  %v14740_v7 = vld [vmem:[#allocation4 + $0x3ac] ss:$12 sps:$4 sm:$0xff]   ;;  %v14741_v8 = vld [vmem:[#allocation4 + $0x3b0] ss:$12 sps:$4 sm:$0xff]  }
  0x66   :  { %13810 = vmatprep.subr.bf16.mxu1 %v18776_v0  ;;  %839 = vmatprep.subr.bf16.mxu0 %v14662_v9  ;;  %v14738_v9 = vld [vmem:[#allocation4 + $0x3a8] ss:$12 sps:$4 sm:$0xff]  }
  0x67   :  { %13816 = vmatprep.mubr.msk.bf16.mxu1 %vm15879_vm0, %v18776_v0  ;;  %861 = vmatprep.mubr.bf16.mxu0 %v18780_v1 }
  0x69   :  { %13811 = vmatpush3.bf16.msra.mxu1 %v14663_v10  ;;  %840 = vmatpush1.bf16.msra.mxu0 %v14660_v11  ;;  %v14745_v10 = vld [vmem:[#allocation4 + $0xc4] ss:$12 sps:$4 sm:$0xff]  }
  0x6a   :  { %13812 = vmatprep.subr.bf16.mxu1 %v18776_v0  ;;  %841 = vmatprep.subr.bf16.mxu0 %v14666_v12  ;;  %v14742_v11 = vld [vmem:[%s18766_s0 + $0x60] sm:$0xff]   ;;  %v14746_v12 = vld [vmem:[#allocation4 + $0xc8] ss:$12 sps:$4 sm:$0xff]  }
  0x6d   :  { %13813 = vmatpush3.bf16.msra.mxu1 %v14667_v13  ;;  %842 = vmatpush1.bf16.msra.mxu0 %v14664_v14  ;;  %v14743_v13 = vld [vmem:[#allocation4 + $0xc0] ss:$12 sps:$4 sm:$0xff]   ;;  %v14749_v14 = vld [vmem:[#allocation4 + $0xdc] ss:$12 sps:$4 sm:$0xff]  }
  0x6e   :  { %13814 = vmatprep.subr.bf16.mxu1 %v18776_v0  ;;  %843 = vmatprep.subr.bf16.mxu0 %v14670_v15  ;;  %v14750_v15 = vld [vmem:[#allocation4 + $0xe0] ss:$12 sps:$4 sm:$0xff]  }
  0x71   :  { %13815 = vmatpush3.bf16.msra.mxu1 %v14671_v16  ;;  %844 = vmatpush1.bf16.msra.mxu0 %v14668_v17  ;;  %v14747_v16 = vld [vmem:[#allocation4 + $0xd8] ss:$12 sps:$4 sm:$0xff]   ;;  %v14754_v17 = vld [vmem:[#allocation4 + $0xf4] ss:$12 sps:$4 sm:$0xff]  }
  0x72   :  { %13828 = vmatprep.subr.bf16.mxu1 %v18776_v0  ;;  %1144 = vmatprep.subr.bf16.mxu0 %v14675_v18  ;;  %v14751_v18 = vld [vmem:[%s18766_s0 + $0x68] sm:$0xff]  }
  0x74   :  { %13817 = vmatmul.mubr.bf16.vlgmr.msra.gmra.mrb[24].mxu1 %v14672_v19  ;;  %862 = vmatmul.mubr.bf16.vlgmr.msra.gmra.mrb[0].mxu0 %v14672_v19  ;;  %v14755_v19 = vld [vmem:[#allocation4 + $0xf8] ss:$12 sps:$4 sm:$0xff]  }
  0x75   :  { %13829 = vmatpush3.bf16.msra.mxu1 %v14676_v20  ;;  %1145 = vmatpush1.bf16.msra.mxu0 %v14673_v21  ;;  %v14752_v20 = vld [vmem:[#allocation4 + $0xf0] ss:$12 sps:$4 sm:$0xff]   ;;  %v14758_v21 = vld [vmem:[#allocation4 + $0x10c] ss:$12 sps:$4 sm:$0xff]  }
  0x76   :  { %13830 = vmatprep.subr.bf16.mxu1 %v18776_v0  ;;  %1146 = vmatprep.subr.bf16.mxu0 %v14679_v22  ;;  %v14759_v22 = vld [vmem:[#allocation4 + $0x110] ss:$12 sps:$4 sm:$0xff]  }
  0x77   :  { %13820 = vmatprep.mubr.msk.bf16.mxu1 %vm15879_vm0, %v18776_v0  ;;  %871 = vmatprep.mubr.bf16.mxu0 %v18780_v1 }
  0x79   :  { %13831 = vmatpush3.bf16.msra.mxu1 %v14680_v23  ;;  %1147 = vmatpush1.bf16.msra.mxu0 %v14677_v24  ;;  %v14756_v23 = vld [vmem:[#allocation4 + $0x108] ss:$12 sps:$4 sm:$0xff]   ;;  %v14763_v24 = vld [vmem:[#allocation4 + $0x124] ss:$12 sps:$4 sm:$0xff]  }
  0x7a   :  { %13832 = vmatprep.subr.bf16.mxu1 %v18776_v0  ;;  %1148 = vmatprep.subr.bf16.mxu0 %v14684_v25  ;;  %v14760_v25 = vld [vmem:[%s18766_s0 + $0x70] ss:$0 sps:$4 sm:$0xff]  }
  0x7c   :  { %13821 = vmatmul.mubr.bf16.gmra.mrb[28].mxu1 %v14681_v26  ;;  %872 = vmatmul.mubr.bf16.gmra.mrb[4].mxu0 %v14681_v26  ;;  %v14764_v26 = vld [vmem:[#allocation4 + $0x128] ss:$12 sps:$4 sm:$0xff]  }
  0x7d   :  { %13833 = vmatpush3.bf16.msra.mxu1 %v14685_v27  ;;  %1149 = vmatpush1.bf16.msra.mxu0 %v14682_v28  ;;  %v14761_v27 = vld [vmem:[#allocation4 + $0x120] ss:$12 sps:$4 sm:$0xff]   ;;  %v14767_v28 = vld [vmem:[#allocation4 + $0x13c] ss:$12 sps:$4 sm:$0xff]  }
  0x7e   :  { %13834 = vmatprep.subr.bf16.mxu1 %v18776_v0  ;;  %1150 = vmatprep.subr.bf16.mxu0 %v14688_v29  ;;  %v14768_v29 = vld [vmem:[#allocation4 + $0x140] ss:$12 sps:$4 sm:$0xff]  }
  0x7f   :  { %13824 = vmatprep.mubr.msk.bf16.mxu1 %vm15879_vm0, %v18776_v0  ;;  %881 = vmatprep.mubr.bf16.mxu0 %v18780_v1 }
  0x81   :  { %13835 = vmatpush3.bf16.msra.mxu1 %v14689_v30  ;;  %1151 = vmatpush1.bf16.msra.mxu0 %v14686_v31  ;;  %v14765_v30 = vld [vmem:[#allocation4 + $0x138] ss:$12 sps:$4 sm:$0xff]   ;;  %v14771_v31 = vld [vmem:[#allocation4 + $0x154] ss:$12 sps:$4 sm:$0xff]  }
  0x82   :  { %13836 = vmatprep.subr.bf16.mxu1 %v18776_v0  ;;  %1152 = vmatprep.subr.bf16.mxu0 %v14693_v32  ;;  %v14772_v32 = vld [vmem:[#allocation4 + $0x158] ss:$12 sps:$4 sm:$0xff]  }
  0x84   :  { %13825 = vmatmul.mubr.bf16.gmra.mrb[32].mxu1 %v14690_v33  ;;  %882 = vmatmul.mubr.bf16.gmra.mrb[16].mxu0 %v14690_v33  ;;  %v14769_v33 = vld [vmem:[#allocation4 + $0x150] ss:$12 sps:$4 sm:$0xff]  }
  0x85   :  { %13837 = vmatpush3.bf16.msra.mxu1 %v14694_v34  ;;  %1153 = vmatpush1.bf16.msra.mxu0 %v14691_v35  ;;  %v14775_v34 = vld [vmem:[#allocation4 + $0x16c] ss:$12 sps:$4 sm:$0xff]   ;;  %v14776_v35 = vld [vmem:[#allocation4 + $0x170] ss:$12 sps:$4 sm:$0xff]  }
  0x86   :  { %13838 = vmatprep.subr.bf16.mxu1 %v18776_v0  ;;  %1154 = vmatprep.subr.bf16.mxu0 %v14697_v36  ;;  %v14773_v36 = vld [vmem:[#allocation4 + $0x168] ss:$12 sps:$4 sm:$0xff]  }
  0x87   :  { %13844 = vmatprep.mubr.msk.bf16.mxu1 %vm15879_vm0, %v18776_v0  ;;  %1176 = vmatprep.mubr.bf16.mxu0 %v18780_v1 }
  0x89   :  { %13839 = vmatpush3.bf16.msra.mxu1 %v14698_v37  ;;  %1155 = vmatpush1.bf16.msra.mxu0 %v14695_v38  ;;  %v14780_v37 = vld [vmem:[#allocation4 + $0x4] ss:$12 sps:$4 sm:$0xff]   ;;  %v14777_v38 = vld [vmem:[%s18766_s0 + $0x48] sm:$0xff]  }
  0x8a   :  { %13840 = vmatprep.subr.bf16.mxu1 %v18776_v0  ;;  %1156 = vmatprep.subr.bf16.mxu0 %v14701_v39  ;;  %v14781_v39 = vld [vmem:[#allocation4 + $0x8] ss:$12 sps:$4 sm:$0xff]  }
  0x8d   :  { %13841 = vmatpush3.bf16.msra.mxu1 %v14702_v40  ;;  %1157 = vmatpush1.bf16.msra.mxu0 %v14699_v41  ;;  %v14778_v40 = vld [vmem:[#allocation4] ss:$12 sps:$4 sm:$0xff]   ;;  %v14784_v41 = vld [vmem:[#allocation4 + $0x1c] ss:$12 sps:$4 sm:$0xff]  }
  0x8e   :  { %13842 = vmatprep.subr.bf16.mxu1 %v18776_v0  ;;  %1158 = vmatprep.subr.bf16.mxu0 %v14705_v42  ;;  %v14785_v42 = vld [vmem:[#allocation4 + $0x20] ss:$12 sps:$4 sm:$0xff]  }
  0x91   :  { %13843 = vmatpush3.bf16.msra.mxu1 %v14706_v43  ;;  %1159 = vmatpush1.bf16.msra.mxu0 %v14703_v44  ;;  %v14782_v43 = vld [vmem:[#allocation4 + $0x18] ss:$12 sps:$4 sm:$0xff]   ;;  %v14788_v44 = vld [vmem:[#allocation4 + $0x34] ss:$12 sps:$4 sm:$0xff]  }
  0x92   :  { %13856 = vmatprep.subr.bf16.mxu1 %v18776_v0  ;;  %1459 = vmatprep.subr.bf16.mxu0 %v14710_v45  ;;  %v14794_v45 = vld [vmem:[%s18766_s0 + $0x50] sm:$0xff]  }
  0x94   :  { %13845 = vmatmul.mubr.bf16.vlgmr.msra.gmra.mrb[36].mxu1 %v14707_v46  ;;  %1177 = vmatmul.mubr.bf16.vlgmr.msra.gmra.mrb[0].mxu0 %v14707_v46  ;;  %v14789_v46 = vld [vmem:[#allocation4 + $0x38] ss:$12 sps:$4 sm:$0xff]  }
  0x95   :  { %13857 = vmatpush3.bf16.msra.mxu1 %v14711_v47  ;;  %1460 = vmatpush1.bf16.msra.mxu0 %v14708_v48  ;;  %v14786_v47 = vld [vmem:[#allocation4 + $0x30] ss:$12 sps:$4 sm:$0xff]   ;;  %v14792_v48 = vld [vmem:[#allocation4 + $0x4c] ss:$12 sps:$4 sm:$0xff]  }
  0x96   :  { %13858 = vmatprep.subr.bf16.mxu1 %v18776_v0  ;;  %1461 = vmatprep.subr.bf16.mxu0 %v14714_v49  ;;  %v14793_v49 = vld [vmem:[#allocation4 + $0x50] ss:$12 sps:$4 sm:$0xff]  }
  0x97   :  { %13848 = vmatprep.mubr.msk.bf16.mxu1 %vm15879_vm0, %v18776_v0  ;;  %1186 = vmatprep.mubr.bf16.mxu0 %v18780_v1 }
  0x99   :  { %13859 = vmatpush3.bf16.msra.mxu1 %v14715_v50  ;;  %1462 = vmatpush1.bf16.msra.mxu0 %v14712_v51  ;;  %v14790_v50 = vld [vmem:[#allocation4 + $0x48] ss:$12 sps:$4 sm:$0xff]   ;;  %v14797_v51 = vld [vmem:[#allocation4 + $0x64] ss:$12 sps:$4 sm:$0xff]  }
  0x9a   :  { %13860 = vmatprep.subr.bf16.mxu1 %v18776_v0  ;;  %1463 = vmatprep.subr.bf16.mxu0 %v14719_v52  ;;  %v14803_v52 = vld [vmem:[%s18766_s0 + $0x58] ss:$0 sps:$4 sm:$0xff]  }
  0x9c   :  { %13849 = vmatmul.mubr.bf16.gmra.mrb[40].mxu1 %v14716_v53  ;;  %1187 = vmatmul.mubr.bf16.gmra.mrb[4].mxu0 %v14716_v53  ;;  %v14798_v53 = vld [vmem:[#allocation4 + $0x68] ss:$12 sps:$4 sm:$0xff]  }
  0x9d   :  { %13861 = vmatpush3.bf16.msra.mxu1 %v14720_v54  ;;  %1464 = vmatpush1.bf16.msra.mxu0 %v14717_v55  ;;  %v14795_v54 = vld [vmem:[#allocation4 + $0x60] ss:$12 sps:$4 sm:$0xff]   ;;  %v14801_v55 = vld [vmem:[#allocation4 + $0x7c] ss:$12 sps:$4 sm:$0xff]  }
  0x9e   :  { %13862 = vmatprep.subr.bf16.mxu1 %v18776_v0  ;;  %1465 = vmatprep.subr.bf16.mxu0 %v14723_v56  ;;  %v14802_v56 = vld [vmem:[#allocation4 + $0x80] ss:$12 sps:$4 sm:$0xff]  }
  0x9f   :  { %13852 = vmatprep.mubr.msk.bf16.mxu1 %vm15879_vm0, %v18776_v0  ;;  %1196 = vmatprep.mubr.bf16.mxu0 %v18780_v1 }
  0xa1   :  { %13863 = vmatpush3.bf16.msra.mxu1 %v14724_v57  ;;  %1466 = vmatpush1.bf16.msra.mxu0 %v14721_v58  ;;  %v14799_v57 = vld [vmem:[#allocation4 + $0x78] ss:$12 sps:$4 sm:$0xff]   ;;  %v14806_v58 = vld [vmem:[#allocation4 + $0x94] ss:$12 sps:$4 sm:$0xff]  }
  0xa2   :  { %13864 = vmatprep.subr.bf16.mxu1 %v18776_v0  ;;  %1467 = vmatprep.subr.bf16.mxu0 %v14728_v59  ;;  %v14807_v59 = vld [vmem:[#allocation4 + $0x98] ss:$12 sps:$4 sm:$0xff]  }
  0xa4   :  { %13853 = vmatmul.mubr.bf16.gmra.mrb[44].mxu1 %v14725_v60  ;;  %1197 = vmatmul.mubr.bf16.gmra.mrb[20].mxu0 %v14725_v60  ;;  %v14804_v60 = vld [vmem:[#allocation4 + $0x90] ss:$12 sps:$4 sm:$0xff]  }
  0xa5   :  { %13865 = vmatpush3.bf16.msra.mxu1 %v14729_v61  ;;  %1468 = vmatpush1.bf16.msra.mxu0 %v14726_v62  ;;  %v14810_v61 = vld [vmem:[#allocation4 + $0xac] ss:$12 sps:$4 sm:$0xff]   ;;  %v14811_v62 = vld [vmem:[#allocation4 + $0xb0] ss:$12 sps:$4 sm:$0xff]  }
  0xa6   :  { %13866 = vmatprep.subr.bf16.mxu1 %v18776_v0  ;;  %1469 = vmatprep.subr.bf16.mxu0 %v14732_v63  ;;  %v14808_v63 = vld [vmem:[#allocation4 + $0xa8] ss:$12 sps:$4 sm:$0xff]  }
  0xa7   :  { %13872 = vmatprep.mubr.msk.bf16.mxu1 %vm15879_vm0, %v18776_v0  ;;  %1491 = vmatprep.mubr.bf16.mxu0 %v18780_v1 }
  0xa9   :  { %13867 = vmatpush3.bf16.msra.mxu1 %v14733_v2  ;;  %1470 = vmatpush1.bf16.msra.mxu0 %v14730_v3  ;;  %v14815_v2 = vld [vmem:[#allocation4 + $0x184] ss:$12 sps:$4 sm:$0xff]  }
  0xaa   :  { %13868 = vmatprep.subr.bf16.mxu1 %v18776_v0  ;;  %1471 = vmatprep.subr.bf16.mxu0 %v14736_v4  ;;  %v14812_v3 = vld [vmem:[%s18766_s0 + $0x30] sm:$0xff]  }
  0xab   :  { %v14816_v4 = vld [vmem:[#allocation4 + $0x188] ss:$12 sps:$4 sm:$0xff]  }
  0xad   :  { %13869 = vmatpush3.bf16.msra.mxu1 %v14737_v5  ;;  %1472 = vmatpush1.bf16.msra.mxu0 %v14734_v6  ;;  %v14813_v5 = vld [vmem:[#allocation4 + $0x180] ss:$12 sps:$4 sm:$0xff]   ;;  %v14819_v6 = vld [vmem:[#allocation4 + $0x19c] ss:$12 sps:$4 sm:$0xff]  }
  0xae   :  { %13870 = vmatprep.subr.bf16.mxu1 %v18776_v0  ;;  %1473 = vmatprep.subr.bf16.mxu0 %v14740_v7  ;;  %v14820_v7 = vld [vmem:[#allocation4 + $0x1a0] ss:$12 sps:$4 sm:$0xff]  }
  0xb1   :  { %13871 = vmatpush3.bf16.msra.mxu1 %v14741_v8  ;;  %1474 = vmatpush1.bf16.msra.mxu0 %v14738_v9  ;;  %v14817_v8 = vld [vmem:[#allocation4 + $0x198] ss:$12 sps:$4 sm:$0xff]   ;;  %v14824_v9 = vld [vmem:[#allocation4 + $0x1b4] ss:$12 sps:$4 sm:$0xff]  }
  0xb2   :  { %13884 = vmatprep.subr.bf16.mxu1 %v18776_v0  ;;  %1870 = vmatprep.subr.bf16.mxu0 %v14745_v10  ;;  %v14821_v10 = vld [vmem:[%s18766_s0 + $0x38] sm:$0xff]  }
  0xb4   :  { %13873 = vmatmul.mubr.bf16.vlgmr.msra.gmra.mrb[48].mxu1 %v14742_v11  ;;  %1492 = vmatmul.mubr.bf16.vlgmr.msra.gmra.mrb[0].mxu0 %v14742_v11  ;;  %v14825_v11 = vld [vmem:[#allocation4 + $0x1b8] ss:$12 sps:$4 sm:$0xff]  }
  0xb5   :  { %13885 = vmatpush3.bf16.msra.mxu1 %v14746_v12  ;;  %1871 = vmatpush1.bf16.msra.mxu0 %v14743_v13  ;;  %v14822_v12 = vld [vmem:[#allocation4 + $0x1b0] ss:$12 sps:$4 sm:$0xff]   ;;  %v14828_v13 = vld [vmem:[#allocation4 + $0x1cc] ss:$12 sps:$4 sm:$0xff]  }
  0xb6   :  { %13886 = vmatprep.subr.bf16.mxu1 %v18776_v0  ;;  %1872 = vmatprep.subr.bf16.mxu0 %v14749_v14  ;;  %v14829_v14 = vld [vmem:[#allocation4 + $0x1d0] ss:$12 sps:$4 sm:$0xff]  }
  0xb7   :  { %13876 = vmatprep.mubr.msk.bf16.mxu1 %vm15879_vm0, %v18776_v0  ;;  %1501 = vmatprep.mubr.bf16.mxu0 %v18780_v1 }
  0xb9   :  { %13887 = vmatpush3.bf16.msra.mxu1 %v14750_v15  ;;  %1873 = vmatpush1.bf16.msra.mxu0 %v14747_v16  ;;  %v14826_v15 = vld [vmem:[#allocation4 + $0x1c8] ss:$12 sps:$4 sm:$0xff]   ;;  %v14833_v16 = vld [vmem:[#allocation4 + $0x1e4] ss:$12 sps:$4 sm:$0xff]  }
  0xba   :  { %13888 = vmatprep.subr.bf16.mxu1 %v18776_v0  ;;  %1874 = vmatprep.subr.bf16.mxu0 %v14754_v17  ;;  %v14830_v17 = vld [vmem:[%s18766_s0 + $0x40] ss:$0 sps:$4 sm:$0xff]  }
  0xbc   :  { %13877 = vmatmul.mubr.bf16.gmra.mrb[52].mxu1 %v14751_v18  ;;  %1502 = vmatmul.mubr.bf16.gmra.mrb[4].mxu0 %v14751_v18  ;;  %v14834_v18 = vld [vmem:[#allocation4 + $0x1e8] ss:$12 sps:$4 sm:$0xff]  }
  0xbd   :  { %13889 = vmatpush3.bf16.msra.mxu1 %v14755_v19  ;;  %1875 = vmatpush1.bf16.msra.mxu0 %v14752_v20  ;;  %v1592_v19 = vlaneseq  ;;  %v14831_v20 = vld [vmem:[#allocation4 + $0x1e0] ss:$12 sps:$4 sm:$0xff]  }
  0xbe   :  { %13890 = vmatprep.subr.bf16.mxu1 %v18776_v0  ;;  %1876 = vmatprep.subr.bf16.mxu0 %v14758_v21  ;;  %v14837_v21 = vld [vmem:[#allocation4 + $0x1fc] ss:$12 sps:$4 sm:$0xff]  }
  0xbf   :  { %13880 = vmatprep.mubr.msk.bf16.mxu1 %vm15879_vm0, %v18776_v0  ;;  %1511 = vmatprep.mubr.bf16.mxu0 %v18780_v1 }
  0xc1   :  { %13891 = vmatpush3.bf16.msra.mxu1 %v14759_v22  ;;  %1877 = vmatpush1.bf16.msra.mxu0 %v14756_v23  ;;  %v14838_v22 = vld [vmem:[#allocation4 + $0x200] ss:$12 sps:$4 sm:$0xff]   ;;  %v16130_v23 = vshrl.u32 %v1592_v19, 7  ;;  %v14881_v19 = vld [vmem:[#allocation4 + $0x2f0] ss:$12 sps:$4 sm:$0xff]  }
  0xc2   :  { %13892 = vmatprep.subr.bf16.mxu1 %v18776_v0  ;;  %1878 = vmatprep.subr.bf16.mxu0 %v14763_v24  ;;  %v14835_v24 = vld [vmem:[#allocation4 + $0x1f8] ss:$12 sps:$4 sm:$0xff]  }
  0xc3   :  { %18811 = vst [vmem:[#allocation7_spill] sm:$0xff] %v16130_v23 }
  0xc4   :  { %13881 = vmatmul.mubr.bf16.gmra.mrb[56].mxu1 %v14760_v25  ;;  %1512 = vmatmul.mubr.bf16.gmra.mrb[24].mxu0 %v14760_v25  ;;  %v14841_v25 = vld [vmem:[#allocation4 + $0x214] ss:$12 sps:$4 sm:$0xff]  }
  0xc5   :  { %13893 = vmatpush3.bf16.msra.mxu1 %v14764_v26  ;;  %1879 = vmatpush1.bf16.msra.mxu0 %v14761_v27  ;;  %v1602_v27 = vsub.s32 2, %v16130_v23 }
  0xc6   :  { %13894 = vmatprep.subr.bf16.mxu1 %v18776_v0  ;;  %1880 = vmatprep.subr.bf16.mxu0 %v14767_v28 }
  0xc7   :  { %13900 = vmatprep.mubr.msk.bf16.mxu1 %vm15879_vm0, %v18776_v0  ;;  %1902 = vmatprep.mubr.bf16.mxu0 %v18780_v1 }
  0xc9   :  { %13895 = vmatpush3.bf16.msra.mxu1 %v14768_v29  ;;  %1881 = vmatpush1.bf16.msra.mxu0 %v14765_v30  ;;  %v47_v29 = vld [vmem:[%s18768_s2] sm:$0x7]  ;;  %v14839_v30 = vld [vmem:[#allocation4 + $0x210] ss:$12 sps:$4 sm:$0xff]  }
  0xca   :  { %13896 = vmatprep.subr.bf16.mxu1 %v18776_v0  ;;  %1882 = vmatprep.subr.bf16.mxu0 %v14771_v31  ;;  %v14842_v31 = vld [vmem:[#allocation4 + $0x218] ss:$12 sps:$4 sm:$0xff]  }
  0xcd   :  { %13897 = vmatpush3.bf16.msra.mxu1 %v14772_v32  ;;  %1883 = vmatpush1.bf16.msra.mxu0 %v14769_v33  ;;  %v16144_v33 = vrot.slane %v47_v29, %v1602_v27 }
  0xce   :  { %13898 = vmatprep.subr.bf16.mxu1 %v18776_v0  ;;  %1884 = vmatprep.subr.bf16.mxu0 %v14775_v34 }
  0xd1   :  { %13899 = vmatpush3.bf16.msra.mxu1 %v14776_v35  ;;  %1885 = vmatpush1.bf16.msra.mxu0 %v14773_v36  ;;  %v14845_v35 = vld [vmem:[#allocation4 + $0x22c] ss:$12 sps:$4 sm:$0xff]   ;;  %v14843_v36 = vld [vmem:[#allocation4 + $0x228] ss:$12 sps:$4 sm:$0xff]  }
  0xd2   :  { %13912 = vmatprep.subr.bf16.mxu1 %v18776_v0  ;;  %2131 = vmatprep.subr.bf16.mxu0 %v14780_v37  ;;  %v14846_v37 = vld [vmem:[#allocation4 + $0x230] ss:$12 sps:$4 sm:$0xff]  }
  0xd4   :  { %13901 = vmatmul.mubr.bf16.vlgmr.msra.gmra.mrb[60].mxu1 %v14777_v38  ;;  %1903 = vmatmul.mubr.bf16.vlgmr.msra.gmra.mrb[28].mxu0 %v14777_v38  ;;  %v14847_v38 = vld [vmem:[%s18766_s0 + $0x60] sm:$0xff]  }
  0xd5   :  { %13913 = vmatpush3.bf16.msra.mxu1 %v14781_v39  ;;  %2132 = vmatpush1.bf16.msra.mxu0 %v14778_v40  ;;  %v14850_v39 = vld [vmem:[#allocation4 + $0x244] ss:$12 sps:$4 sm:$0xff]  }
  0xd6   :  { %13914 = vmatprep.subr.bf16.mxu1 %v18776_v0  ;;  %2133 = vmatprep.subr.bf16.mxu0 %v14784_v41  ;;  %v14848_v41 = vld [vmem:[#allocation4 + $0x240] ss:$12 sps:$4 sm:$0xff]  }
  0xd7   :  { %1912 = vmatprep.mubr.bf16.mxu0 %v18780_v1  ;;  %13904 = vmatprep.mubr.msk.bf16.mxu1 %vm15879_vm0, %v18776_v0 }
  0xd9   :  { %13915 = vmatpush3.bf16.msra.mxu1 %v14785_v42  ;;  %2134 = vmatpush1.bf16.msra.mxu0 %v14782_v43  ;;  %v14851_v42 = vld [vmem:[#allocation4 + $0x248] ss:$12 sps:$4 sm:$0xff]  }
  0xda   :  { %13916 = vmatprep.subr.bf16.mxu1 %v18776_v0  ;;  %2135 = vmatprep.subr.bf16.mxu0 %v14788_v44 }
  0xdc   :  { %13905 = vmatmul.mubr.bf16.gmra.mrb[64].mxu1 %v14794_v45  ;;  %1913 = vmatmul.mubr.bf16.gmra.mrb[32].mxu0 %v14794_v45 }
  0xdd   :  { %13917 = vmatpush3.bf16.msra.mxu1 %v14789_v46  ;;  %2136 = vmatpush1.bf16.msra.mxu0 %v14786_v47  ;;  %v14854_v46 = vld [vmem:[#allocation4 + $0x25c] ss:$12 sps:$4 sm:$0xff]   ;;  %v14852_v47 = vld [vmem:[#allocation4 + $0x258] ss:$12 sps:$4 sm:$0xff]  }
  0xde   :  { %13918 = vmatprep.subr.bf16.mxu1 %v18776_v0  ;;  %2137 = vmatprep.subr.bf16.mxu0 %v14792_v48  ;;  %v14855_v48 = vld [vmem:[#allocation4 + $0x260] ss:$12 sps:$4 sm:$0xff]  }
  0xdf   :  { %1922 = vmatprep.mubr.bf16.mxu0 %v18780_v1  ;;  %13908 = vmatprep.mubr.msk.bf16.mxu1 %vm15879_vm0, %v18776_v0 }
  0xe1   :  { %13919 = vmatpush3.bf16.msra.mxu1 %v14793_v49  ;;  %2138 = vmatpush1.bf16.msra.mxu0 %v14790_v50  ;;  %v14856_v49 = vld [vmem:[%s18766_s0 + $0x68] sm:$0xff]   ;;  %v14859_v50 = vld [vmem:[#allocation4 + $0x274] ss:$12 sps:$4 sm:$0xff]  }
  0xe2   :  { %13920 = vmatprep.subr.bf16.mxu1 %v18776_v0  ;;  %2139 = vmatprep.subr.bf16.mxu0 %v14797_v51 }
  0xe4   :  { %13909 = vmatmul.mubr.bf16.gmra.mrb[68].mxu1 %v14803_v52  ;;  %1923 = vmatmul.mubr.bf16.gmra.mrb[36].mxu0 %v14803_v52  ;;  %v14857_v52 = vld [vmem:[#allocation4 + $0x270] ss:$12 sps:$4 sm:$0xff]  }
  0xe5   :  { %13921 = vmatpush3.bf16.msra.mxu1 %v14798_v53  ;;  %2140 = vmatpush1.bf16.msra.mxu0 %v14795_v54  ;;  %v14860_v53 = vld [vmem:[#allocation4 + $0x278] ss:$12 sps:$4 sm:$0xff]  }
  0xe6   :  { %13922 = vmatprep.subr.bf16.mxu1 %v18776_v0  ;;  %2141 = vmatprep.subr.bf16.mxu0 %v14801_v55 }
  0xe7   :  { %13928 = vmatprep.mubr.msk.bf16.mxu1 %vm15879_vm0, %v18776_v0  ;;  %2163 = vmatprep.mubr.bf16.mxu0 %v18780_v1 }
  0xe9   :  { %13923 = vmatpush3.bf16.msra.mxu1 %v14802_v56  ;;  %2142 = vmatpush1.bf16.msra.mxu0 %v14799_v57 }
  0xea   :  { %13924 = vmatprep.subr.bf16.mxu1 %v18776_v0  ;;  %2143 = vmatprep.subr.bf16.mxu0 %v14806_v58 }
  0xed   :  { %13925 = vmatpush3.bf16.msra.mxu1 %v14807_v59  ;;  %2144 = vmatpush1.bf16.msra.mxu0 %v14804_v60 }
  0xee   :  { %13926 = vmatprep.subr.bf16.mxu1 %v18776_v0  ;;  %2145 = vmatprep.subr.bf16.mxu0 %v14810_v61  ;;  %v14863_v61 = vld [vmem:[#allocation4 + $0x28c] ss:$12 sps:$4 sm:$0xff]  }
  0xf1   :  { %13927 = vmatpush3.bf16.msra.mxu1 %v14811_v62  ;;  %2146 = vmatpush1.bf16.msra.mxu0 %v14808_v63  ;;  %v14861_v62 = vld [vmem:[#allocation4 + $0x288] ss:$12 sps:$4 sm:$0xff]   ;;  %v14864_v63 = vld [vmem:[#allocation4 + $0x290] ss:$12 sps:$4 sm:$0xff]  }
  0xf2   :  { %13940 = vmatprep.subr.bf16.mxu1 %v18776_v0  ;;  %2429 = vmatprep.subr.bf16.mxu0 %v14815_v2  ;;  %v14865_v2 = vld [vmem:[%s18766_s0 + $0x70] ss:$0 sps:$4 sm:$0xff]  }
  0xf4   :  { %13929 = vmatmul.mubr.bf16.vlgmr.msra.gmra.mrb[72].mxu1 %v14812_v3  ;;  %2164 = vmatmul.mubr.bf16.vlgmr.msra.gmra.mrb[28].mxu0 %v14812_v3  ;;  %v14868_v3 = vld [vmem:[#allocation4 + $0x2a4] ss:$12 sps:$4 sm:$0xff]  }
  0xf5   :  { %13941 = vmatpush3.bf16.msra.mxu1 %v14816_v4  ;;  %2430 = vmatpush1.bf16.msra.mxu0 %v14813_v5  ;;  %v14869_v4 = vld [vmem:[#allocation4 + $0x2a8] ss:$12 sps:$4 sm:$0xff]   ;;  %v14866_v5 = vld [vmem:[#allocation4 + $0x2a0] ss:$12 sps:$4 sm:$0xff]  }
  0xf6   :  { %13942 = vmatprep.subr.bf16.mxu1 %v18776_v0  ;;  %2431 = vmatprep.subr.bf16.mxu0 %v14819_v6  ;;  %v14872_v6 = vld [vmem:[#allocation4 + $0x2bc] ss:$12 sps:$4 sm:$0xff]  }
  0xf7   :  { %2173 = vmatprep.mubr.bf16.mxu0 %v18780_v1  ;;  %13932 = vmatprep.mubr.msk.bf16.mxu1 %vm15879_vm0, %v18776_v0 }
  0xf9   :  { %13943 = vmatpush3.bf16.msra.mxu1 %v14820_v7  ;;  %2432 = vmatpush1.bf16.msra.mxu0 %v14817_v8  ;;  %v14873_v7 = vld [vmem:[#allocation4 + $0x2c0] ss:$12 sps:$4 sm:$0xff]   ;;  %v14870_v8 = vld [vmem:[#allocation4 + $0x2b8] ss:$12 sps:$4 sm:$0xff]  }
  0xfa   :  { %13944 = vmatprep.subr.bf16.mxu1 %v18776_v0  ;;  %2433 = vmatprep.subr.bf16.mxu0 %v14824_v9  ;;  %v14876_v9 = vld [vmem:[#allocation4 + $0x2d4] ss:$12 sps:$4 sm:$0xff]  }
  0xfc   :  { %13933 = vmatmul.mubr.bf16.gmra.mrb[76].mxu1 %v14821_v10  ;;  %2174 = vmatmul.mubr.bf16.gmra.mrb[32].mxu0 %v14821_v10 }
  0xfd   :  { %13945 = vmatpush3.bf16.msra.mxu1 %v14825_v11  ;;  %2434 = vmatpush1.bf16.msra.mxu0 %v14822_v12  ;;  %v14877_v11 = vld [vmem:[#allocation4 + $0x2d8] ss:$12 sps:$4 sm:$0xff]  }
  0xfe   :  { %13946 = vmatprep.subr.bf16.mxu1 %v18776_v0  ;;  %2435 = vmatprep.subr.bf16.mxu0 %v14828_v13 }
  0xff   :  { %2183 = vmatprep.mubr.bf16.mxu0 %v18780_v1  ;;  %13936 = vmatprep.mubr.msk.bf16.mxu1 %vm15879_vm0, %v18776_v0 }
 0x101   :  { %13947 = vmatpush3.bf16.msra.mxu1 %v14829_v14  ;;  %2436 = vmatpush1.bf16.msra.mxu0 %v14826_v15 }
 0x102   :  { %13948 = vmatprep.subr.bf16.mxu1 %v18776_v0  ;;  %2437 = vmatprep.subr.bf16.mxu0 %v14833_v16  ;;  %v14874_v16 = vld [vmem:[#allocation4 + $0x2d0] ss:$12 sps:$4 sm:$0xff]  }
 0x104   :  { %13937 = vmatmul.mubr.bf16.gmra.mrb[80].mxu1 %v14830_v17  ;;  %2184 = vmatmul.mubr.bf16.gmra.mrb[40].mxu0 %v14830_v17  ;;  %v14880_v17 = vld [vmem:[#allocation4 + $0x2ec] ss:$12 sps:$4 sm:$0xff]  }
 0x105   :  { %13949 = vmatpush3.bf16.msra.mxu1 %v14834_v18  ;;  %2438 = vmatpush1.bf16.msra.mxu0 %v14831_v20  ;;  %v14878_v20 = vld [vmem:[#allocation4 + $0x2e8] ss:$12 sps:$4 sm:$0xff]  }
 0x106   :  { %13950 = vmatprep.subr.bf16.mxu1 %v18776_v0  ;;  %2439 = vmatprep.subr.bf16.mxu0 %v14837_v21  ;;  %v14882_v21 = vld [vmem:[%s18766_s0 + $0x78] sm:$0xff]  }
 0x107   :  { %13956 = vmatprep.mubr.msk.bf16.mxu1 %vm15879_vm0, %v18776_v0  ;;  %v16135_v26 = vpop.f32.mrb[0].mxu1  ;;  %2461 = vmatprep.mubr.bf16.mxu0 %v18780_v1 }
 0x108   :  { %v13762_v28 = vpop.f32.mrb[1].mxu1 }
 0x109   :  { %13951 = vmatpush3.bf16.msra.mxu1 %v14838_v22  ;;  %v16142_v32 = vpop.f32.mrb[2].mxu1  ;;  %2440 = vmatpush1.bf16.msra.mxu0 %v14835_v24  ;;  %v14885_v22 = vld [vmem:[#allocation4 + $0x304] ss:$12 sps:$4 sm:$0xff]   ;;  %v14886_v24 = vld [vmem:[#allocation4 + $0x308] ss:$12 sps:$4 sm:$0xff]  }
 0x10a   :  { %13952 = vmatprep.subr.bf16.mxu1 %v18776_v0  ;;  %v13763_v34 = vpop.f32.mrb[3].mxu1  ;;  %2441 = vmatprep.subr.bf16.mxu0 %v14841_v25 }
 0x10b   :  { %v14887_v34 = vld [vmem:[#allocation4 + $0x318] ss:$12 sps:$4 sm:$0xff]  }
 0x10d   :  { %13953 = vmatpush3.bf16.msra.mxu1 %v14842_v31  ;;  %2442 = vmatpush1.bf16.msra.mxu0 %v14839_v30 }
 0x10e   :  { %13954 = vmatprep.subr.bf16.mxu1 %v18776_v0  ;;  %2443 = vmatprep.subr.bf16.mxu0 %v14845_v35  ;;  %v14890_v35 = vld [vmem:[#allocation4 + $0x320] ss:$12 sps:$4 sm:$0xff]  }
 0x10f   :  { %v16151_v40 = vpop.f32.mrb[4].mxu1 }
 0x110   :  { %v13766_v43 = vpop.f32.mrb[5].mxu1 }
 0x111   :  { %13955 = vmatpush3.bf16.msra.mxu1 %v14846_v37  ;;  %v16153_v44 = vpop.f32.mrb[6].mxu1  ;;  %2444 = vmatpush1.bf16.msra.mxu0 %v14843_v36  ;;  %v14891_v36 = vld [vmem:[%s18766_s0 + $0x80] sm:$0xff]  }
 0x112   :  { %13968 = vmatprep.subr.bf16.mxu1 %v18776_v0  ;;  %v13767_v45 = vpop.f32.mrb[7].mxu1  ;;  %2743 = vmatprep.subr.bf16.mxu0 %v14850_v39  ;;  %v14894_v37 = vld [vmem:[#allocation4 + $0x334] ss:$12 sps:$4 sm:$0xff]  }
 0x114   :  { %13957 = vmatmul.mubr.bf16.vlgmr.msra.gmra.mrb[84].mxu1 %v14847_v38  ;;  %2462 = vmatmul.mubr.bf16.vlgmr.msra.gmra.mrb[28].mxu0 %v14847_v38  ;;  %v14895_v38 = vld [vmem:[#allocation4 + $0x338] ss:$12 sps:$4 sm:$0xff]  }
 0x115   :  { %13969 = vmatpush3.bf16.msra.mxu1 %v14851_v42  ;;  %2744 = vmatpush1.bf16.msra.mxu0 %v14848_v41  ;;  %v14892_v41 = vld [vmem:[#allocation4 + $0x330] ss:$12 sps:$4 sm:$0xff]  }
 0x116   :  { %13970 = vmatprep.subr.bf16.mxu1 %v18776_v0  ;;  %2745 = vmatprep.subr.bf16.mxu0 %v14854_v46 }
 0x117   :  { %13960 = vmatprep.mubr.msk.bf16.mxu1 %vm15879_vm0, %v18776_v0  ;;  %v16162_v51 = vpop.f32.mrb[8].mxu1  ;;  %2471 = vmatprep.mubr.bf16.mxu0 %v18780_v1  ;;  %v16165_v54 = vpop.f32.mrb[8].mxu0 }
 0x118   :  { %v13770_v55 = vpop.f32.mrb[9].mxu1  ;;  %v16167_v56 = vpop.f32.mrb[9].mxu0 }
 0x119   :  { %13971 = vmatpush3.bf16.msra.mxu1 %v14855_v48  ;;  %v382_v57 = vpop.f32.mrb[10].mxu1  ;;  %2746 = vmatpush1.bf16.msra.mxu0 %v14852_v47  ;;  %v326_v58 = vpop.f32.mrb[10].mxu0  ;;  %v14903_v55 = vld [vmem:[#allocation4 + $0x364] ss:$12 sps:$4 sm:$0xff]  }
 0x11a   :  { %13972 = vmatprep.subr.bf16.mxu1 %v18776_v0  ;;  %v13771_v59 = vpop.f32.mrb[11].mxu1  ;;  %2747 = vmatprep.subr.bf16.mxu0 %v14859_v50  ;;  %v327_v60 = vpop.f32.mrb[11].mxu0  ;;  %v14901_v57 = vld [vmem:[#allocation4 + $0x360] ss:$12 sps:$4 sm:$0xff]   ;;  %v14907_v58 = vld [vmem:[#allocation4 + $0x37c] ss:$12 sps:$4 sm:$0xff]  }
 0x11b   :  { %v14905_v59 = vld [vmem:[#allocation4 + $0x378] ss:$12 sps:$4 sm:$0xff]   ;;  %v14908_v60 = vld [vmem:[#allocation4 + $0x380] ss:$12 sps:$4 sm:$0xff]  }
 0x11c   :  { %13961 = vmatmul.mubr.bf16.gmra.mrb[88].mxu1 %v14856_v49  ;;  %2472 = vmatmul.mubr.bf16.gmra.mrb[32].mxu0 %v14856_v49 }
 0x11d   :  { %13973 = vmatpush3.bf16.msra.mxu1 %v14860_v53  ;;  %2748 = vmatpush1.bf16.msra.mxu0 %v14857_v52  ;;  %v14898_v52 = vld [vmem:[#allocation4 + $0x34c] ss:$12 sps:$4 sm:$0xff]   ;;  %v14899_v53 = vld [vmem:[#allocation4 + $0x350] ss:$12 sps:$4 sm:$0xff]  }
 0x11e   :  { %13974 = vmatprep.subr.bf16.mxu1 %v18776_v0  ;;  %2749 = vmatprep.subr.bf16.mxu0 %v14863_v61 }
 0x11f   :  { %13964 = vmatprep.mubr.msk.bf16.mxu1 %vm15879_vm0, %v18776_v0  ;;  %2481 = vmatprep.mubr.bf16.mxu0 %v18780_v1 }
 0x121   :  { %13975 = vmatpush3.bf16.msra.mxu1 %v14864_v63  ;;  %2750 = vmatpush1.bf16.msra.mxu0 %v14861_v62  ;;  %v14911_v62 = vld [vmem:[#allocation4 + $0x394] ss:$12 sps:$4 sm:$0xff]  }
 0x122   :  { %13976 = vmatprep.subr.bf16.mxu1 %v18776_v0  ;;  %2751 = vmatprep.subr.bf16.mxu0 %v14868_v3  ;;  %v14912_v3 = vld [vmem:[#allocation4 + $0x398] ss:$12 sps:$4 sm:$0xff]  }
 0x124   :  { %13965 = vmatmul.mubr.bf16.gmra.mrb[92].mxu1 %v14865_v2  ;;  %2482 = vmatmul.mubr.bf16.gmra.mrb[44].mxu0 %v14865_v2 }
 0x125   :  { %13977 = vmatpush3.bf16.msra.mxu1 %v14869_v4  ;;  %2752 = vmatpush1.bf16.msra.mxu0 %v14866_v5 }
 0x126   :  { %13978 = vmatprep.subr.bf16.mxu1 %v18776_v0  ;;  %2753 = vmatprep.subr.bf16.mxu0 %v14872_v6  ;;  %v14909_v6 = vld [vmem:[#allocation4 + $0x390] ss:$12 sps:$4 sm:$0xff]  }
 0x127   :  { %v624_v10 = vpop.f32.mrb[12].mxu1  ;;  %13984 = vmatprep.mubr.msk.bf16.mxu1 %vm15879_vm0, %v18776_v0  ;;  %2775 = vmatprep.mubr.bf16.mxu0 %v18780_v1 }
 0x128   :  { %v16182_v12 = vadd.f32 %v624_v10, %v16135_v26  ;;  %v13790_v13 = vpop.f32.mrb[13].mxu1  ;;  %v14883_v26 = vld [vmem:[#allocation4 + $0x300] ss:$12 sps:$4 sm:$0xff]   ;;  %v14913_v10 = vld [vmem:[#allocation4 + $0x3a8] ss:$12 sps:$4 sm:$0xff]  }
 0x129   :  { %v627_v14 = vpop.f32.mrb[14].mxu1  ;;  %13979 = vmatpush3.bf16.msra.mxu1 %v14873_v7  ;;  %2754 = vmatpush1.bf16.msra.mxu0 %v14870_v8  ;;  %v14915_v8 = vld [vmem:[#allocation4 + $0x3ac] ss:$12 sps:$4 sm:$0xff]  }
 0x12a   :  { %v16186_v15 = vadd.f32 %v627_v14, %v16142_v32  ;;  %13980 = vmatprep.subr.bf16.mxu1 %v18776_v0  ;;  %v13791_v18 = vpop.f32.mrb[15].mxu1  ;;  %2755 = vmatprep.subr.bf16.mxu0 %v14876_v9  ;;  %v14889_v32 = vld [vmem:[#allocation4 + $0x31c] ss:$12 sps:$4 sm:$0xff]  }
 0x12b   :  { %v14916_v9 = vld [vmem:[#allocation4 + $0x3b0] ss:$12 sps:$4 sm:$0xff]   ;;  %v14921_v14 = vld [vmem:[#allocation4 + $0xc8] ss:$12 sps:$4 sm:$0xff]  }
 0x12d   :  { %13981 = vmatpush3.bf16.msra.mxu1 %v14877_v11  ;;  %2756 = vmatpush1.bf16.msra.mxu0 %v14874_v16  ;;  %v14917_v11 = vld [vmem:[%s18766_s0 + $0x90] sm:$0xff]  }
 0x12e   :  { %13982 = vmatprep.subr.bf16.mxu1 %v18776_v0  ;;  %2757 = vmatprep.subr.bf16.mxu0 %v14880_v17 }
 0x12f   :  { %v632_v25 = vpop.f32.mrb[16].mxu1 }
 0x130   :  { %v16194_v27 = vadd.f32 %v632_v25, %v16151_v40  ;;  %v13794_v28 = vpop.f32.mrb[17].mxu1 }
 0x131   :  { %13983 = vmatpush3.bf16.msra.mxu1 %v14881_v19  ;;  %v635_v29 = vpop.f32.mrb[18].mxu1  ;;  %2758 = vmatpush1.bf16.msra.mxu0 %v14878_v20  ;;  %v14918_v19 = vld [vmem:[#allocation4 + $0xc0] ss:$12 sps:$4 sm:$0xff]  }
 0x132   :  { %13996 = vmatprep.subr.bf16.mxu1 %v18776_v0  ;;  %v16198_v30 = vadd.f32 %v635_v29, %v16153_v44  ;;  %v13795_v31 = vpop.f32.mrb[19].mxu1  ;;  %3057 = vmatprep.subr.bf16.mxu0 %v14885_v22  ;;  %v14922_v22 = vld [vmem:[#allocation4 + $0xd8] ss:$12 sps:$4 sm:$0xff]   ;;  %v14927_v29 = vld [vmem:[#allocation4 + $0xf0] ss:$12 sps:$4 sm:$0xff]  }
 0x134   :  { %13985 = vmatmul.mubr.bf16.vlgmr.msra.gmra.mrb[96].mxu1 %v14882_v21  ;;  %2776 = vmatmul.mubr.bf16.vlgmr.msra.gmra.mrb[28].mxu0 %v14882_v21  ;;  %v14924_v21 = vld [vmem:[#allocation4 + $0xdc] ss:$12 sps:$4 sm:$0xff]  }
 0x135   :  { %13997 = vmatpush3.bf16.msra.mxu1 %v14886_v24  ;;  %3058 = vmatpush1.bf16.msra.mxu0 %v14883_v26  ;;  %v14925_v24 = vld [vmem:[#allocation4 + $0xe0] ss:$12 sps:$4 sm:$0xff]   ;;  %v14926_v26 = vld [vmem:[%s18766_s0 + $0x98] sm:$0xff]  }
 0x136   :  { %13998 = vmatprep.subr.bf16.mxu1 %v18776_v0  ;;  %3059 = vmatprep.subr.bf16.mxu0 %v14889_v32 }
 0x137   :  { %13988 = vmatprep.mubr.msk.bf16.mxu1 %vm15879_vm0, %v18776_v0  ;;  %v640_v39 = vpop.f32.mrb[20].mxu1  ;;  %v583_v40 = vpop.f32.mrb[12].mxu0  ;;  %2785 = vmatprep.mubr.bf16.mxu0 %v18780_v1 }
 0x138   :  { %v16208_v42 = vadd.f32 %v640_v39, %v16162_v51  ;;  %v13798_v43 = vpop.f32.mrb[21].mxu1  ;;  %v16211_v44 = vadd.f32 %v583_v40, %v16165_v54  ;;  %v585_v45 = vpop.f32.mrb[13].mxu0  ;;  %v14896_v51 = vld [vmem:[#allocation4 + $0x348] ss:$12 sps:$4 sm:$0xff]  }
 0x139   :  { %13999 = vmatpush3.bf16.msra.mxu1 %v14890_v35  ;;  %v643_v46 = vpop.f32.mrb[22].mxu1  ;;  %v16214_v47 = vadd.f32 %v585_v45, %v16167_v56  ;;  %3060 = vmatpush1.bf16.msra.mxu0 %v14887_v34  ;;  %v587_v48 = vpop.f32.mrb[14].mxu0  ;;  %v14900_v54 = vld [vmem:[%s18766_s0 + $0x88] ss:$0 sps:$4 sm:$0xff]   ;;  %v14934_v43 = vld [vmem:[#allocation4 + $0x110] ss:$12 sps:$4 sm:$0xff]  }
 0x13a   :  { %14000 = vmatprep.subr.bf16.mxu1 %v18776_v0  ;;  %v13799_v49 = vpop.f32.mrb[23].mxu1  ;;  %3061 = vmatprep.subr.bf16.mxu0 %v14894_v37  ;;  %v588_v50 = vpop.f32.mrb[15].mxu0  ;;  %v14904_v56 = vld [vmem:[#allocation4 + $0x368] ss:$12 sps:$4 sm:$0xff]   ;;  %v14938_v45 = vld [vmem:[#allocation4 + $0x124] ss:$12 sps:$4 sm:$0xff]  }
 0x13b   :  { %v14939_v46 = vld [vmem:[#allocation4 + $0x128] ss:$12 sps:$4 sm:$0xff]   ;;  %v14940_v49 = vld [vmem:[#allocation4 + $0x138] ss:$12 sps:$4 sm:$0xff]   ;;  %v14943_v50 = vld [vmem:[#allocation4 + $0x140] ss:$12 sps:$4 sm:$0xff]  }
 0x13c   :  { %13989 = vmatmul.mubr.bf16.gmra.mrb[100].mxu1 %v14891_v36  ;;  %2786 = vmatmul.mubr.bf16.gmra.mrb[32].mxu0 %v14891_v36  ;;  %v14942_v48 = vld [vmem:[#allocation4 + $0x13c] ss:$12 sps:$4 sm:$0xff]  }
 0x13d   :  { %14001 = vmatpush3.bf16.msra.mxu1 %v14895_v38  ;;  %3062 = vmatpush1.bf16.msra.mxu0 %v14892_v41  ;;  %v14933_v41 = vld [vmem:[#allocation4 + $0x10c] ss:$12 sps:$4 sm:$0xff]  }
 0x13e   :  { %14002 = vmatprep.subr.bf16.mxu1 %v18776_v0  ;;  %3063 = vmatprep.subr.bf16.mxu0 %v14898_v52 }
 0x13f   :  { %13992 = vmatprep.mubr.msk.bf16.mxu1 %vm15879_vm0, %v18776_v0  ;;  %2795 = vmatprep.mubr.bf16.mxu0 %v18780_v1 }
 0x141   :  { %14003 = vmatpush3.bf16.msra.mxu1 %v14899_v53  ;;  %3064 = vmatpush1.bf16.msra.mxu0 %v14896_v51  ;;  %v14946_v51 = vld [vmem:[#allocation4 + $0x154] ss:$12 sps:$4 sm:$0xff]  }
 0x142   :  { %14004 = vmatprep.subr.bf16.mxu1 %v18776_v0  ;;  %3065 = vmatprep.subr.bf16.mxu0 %v14903_v55 }
 0x144   :  { %13993 = vmatmul.mubr.bf16.gmra.mrb[104].mxu1 %v14900_v54  ;;  %2796 = vmatmul.mubr.bf16.gmra.mrb[48].mxu0 %v14900_v54  ;;  %v14947_v54 = vld [vmem:[#allocation4 + $0x158] ss:$12 sps:$4 sm:$0xff]  }
 0x145   :  { %14005 = vmatpush3.bf16.msra.mxu1 %v14904_v56  ;;  %3066 = vmatpush1.bf16.msra.mxu0 %v14901_v57  ;;  %v14944_v57 = vld [vmem:[#allocation4 + $0x150] ss:$12 sps:$4 sm:$0xff]  }
 0x146   :  { %14006 = vmatprep.subr.bf16.mxu1 %v18776_v0  ;;  %3067 = vmatprep.subr.bf16.mxu0 %v14907_v58 }
 0x147   :  { %v924_v61 = vpop.f32.mrb[24].mxu1  ;;  %14012 = vmatprep.mubr.msk.bf16.mxu1 %vm15879_vm0, %v18776_v0  ;;  %3089 = vmatprep.mubr.bf16.mxu0 %v18780_v1 }
 0x148   :  { %v16229_v63 = vadd.f32 %v924_v61, %v16182_v12  ;;  %v13818_v2 = vpop.f32.mrb[25].mxu1  ;;  %v14920_v12 = vld [vmem:[#allocation4 + $0xc4] ss:$12 sps:$4 sm:$0xff]  }
 0x149   :  { %v927_v4 = vpop.f32.mrb[26].mxu1  ;;  %14007 = vmatpush3.bf16.msra.mxu1 %v14908_v60  ;;  %3068 = vmatpush1.bf16.msra.mxu0 %v14905_v59  ;;  %v14950_v59 = vld [vmem:[#allocation4 + $0x16c] ss:$12 sps:$4 sm:$0xff]   ;;  %v14951_v61 = vld [vmem:[#allocation4 + $0x170] ss:$12 sps:$4 sm:$0xff]  }
 0x14a   :  { %v16233_v5 = vadd.f32 %v927_v4, %v16186_v15  ;;  %14008 = vmatprep.subr.bf16.mxu1 %v18776_v0  ;;  %v13819_v7 = vpop.f32.mrb[27].mxu1  ;;  %3069 = vmatprep.subr.bf16.mxu0 %v14911_v62  ;;  %v14948_v62 = vld [vmem:[#allocation4 + $0x168] ss:$12 sps:$4 sm:$0xff]   ;;  %v14952_v2 = vld [vmem:[%s18766_s0 + $0x78] sm:$0xff]  }
 0x14d   :  { %14009 = vmatpush3.bf16.msra.mxu1 %v14912_v3  ;;  %3070 = vmatpush1.bf16.msra.mxu0 %v14909_v6  ;;  %v14955_v3 = vld [vmem:[#allocation4 + $0x4] ss:$12 sps:$4 sm:$0xff]   ;;  %v14956_v6 = vld [vmem:[#allocation4 + $0x8] ss:$12 sps:$4 sm:$0xff]  }
 0x14e   :  { %14010 = vmatprep.subr.bf16.mxu1 %v18776_v0  ;;  %3071 = vmatprep.subr.bf16.mxu0 %v14915_v8  ;;  %v14953_v8 = vld [vmem:[#allocation4] ss:$12 sps:$4 sm:$0xff]  }
 0x14f   :  { %v932_v13 = vpop.f32.mrb[28].mxu1 }
 0x150   :  { %v16241_v15 = vadd.f32 %v932_v13, %v16194_v27  ;;  %v13822_v16 = vpop.f32.mrb[29].mxu1  ;;  %v14929_v27 = vld [vmem:[#allocation4 + $0xf4] ss:$12 sps:$4 sm:$0xff]  }
 0x151   :  { %v935_v17 = vpop.f32.mrb[30].mxu1  ;;  %14011 = vmatpush3.bf16.msra.mxu1 %v14916_v9  ;;  %3072 = vmatpush1.bf16.msra.mxu0 %v14913_v10  ;;  %v14960_v13 = vld [vmem:[#allocation4 + $0x20] ss:$12 sps:$4 sm:$0xff]   ;;  %v14964_v16 = vld [vmem:[#allocation4 + $0x38] ss:$12 sps:$4 sm:$0xff]  }
 0x152   :  { %v16244_v18 = vadd.f32 %v935_v17, %v16198_v30  ;;  %14024 = vmatprep.subr.bf16.mxu1 %v18776_v0  ;;  %v13823_v20 = vpop.f32.mrb[31].mxu1  ;;  %3453 = vmatprep.subr.bf16.mxu0 %v14920_v12  ;;  %v14930_v30 = vld [vmem:[#allocation4 + $0xf8] ss:$12 sps:$4 sm:$0xff]  }
 0x153   :  { %v14957_v12 = vld [vmem:[#allocation4 + $0x18] ss:$12 sps:$4 sm:$0xff]  }
 0x154   :  { %14013 = vmatmul.mubr.bf16.vlgmr.msra.gmra.mrb[108].mxu1 %v14917_v11  ;;  %3090 = vmatmul.mubr.bf16.vlgmr.msra.gmra.mrb[28].mxu0 %v14917_v11  ;;  %v14959_v11 = vld [vmem:[#allocation4 + $0x1c] ss:$12 sps:$4 sm:$0xff]   ;;  %v14969_v20 = vld [vmem:[%s18766_s0 + $0x80] sm:$0xff]  }
 0x155   :  { %14025 = vmatpush3.bf16.msra.mxu1 %v14921_v14  ;;  %3454 = vmatpush1.bf16.msra.mxu0 %v14918_v19  ;;  %v14961_v19 = vld [vmem:[#allocation4 + $0x30] ss:$12 sps:$4 sm:$0xff]  }
 0x156   :  { %14026 = vmatprep.subr.bf16.mxu1 %v18776_v0  ;;  %3455 = vmatprep.subr.bf16.mxu0 %v14924_v21 }
 0x157   :  { %v940_v25 = vpop.f32.mrb[32].mxu1  ;;  %14016 = vmatprep.mubr.msk.bf16.mxu1 %vm15879_vm0, %v18776_v0  ;;  %v883_v28 = vpop.f32.mrb[16].mxu0  ;;  %3099 = vmatprep.mubr.bf16.mxu0 %v18780_v1 }
 0x158   :  { %v13826_v31 = vpop.f32.mrb[33].mxu1  ;;  %v16255_v32 = vadd.f32 %v940_v25, %v16208_v42  ;;  %v16258_v34 = vadd.f32 %v883_v28, %v16211_v44  ;;  %v885_v35 = vpop.f32.mrb[17].mxu0  ;;  %v14931_v42 = vld [vmem:[#allocation4 + $0x108] ss:$12 sps:$4 sm:$0xff]   ;;  %v14935_v44 = vld [vmem:[%s18766_s0 + $0xa0] ss:$0 sps:$4 sm:$0xff]  }
 0x159   :  { %14027 = vmatpush3.bf16.msra.mxu1 %v14925_v24  ;;  %v943_v36 = vpop.f32.mrb[34].mxu1  ;;  %v16261_v37 = vadd.f32 %v885_v35, %v16214_v47  ;;  %3456 = vmatpush1.bf16.msra.mxu0 %v14922_v22  ;;  %v887_v38 = vpop.f32.mrb[18].mxu0  ;;  %v14936_v47 = vld [vmem:[#allocation4 + $0x120] ss:$12 sps:$4 sm:$0xff]   ;;  %v14968_v31 = vld [vmem:[#allocation4 + $0x50] ss:$12 sps:$4 sm:$0xff]  }
 0x15a   :  { %14028 = vmatprep.subr.bf16.mxu1 %v18776_v0  ;;  %v13827_v39 = vpop.f32.mrb[35].mxu1  ;;  %3457 = vmatprep.subr.bf16.mxu0 %v14929_v27  ;;  %v888_v40 = vpop.f32.mrb[19].mxu0  ;;  %v14973_v35 = vld [vmem:[#allocation4 + $0x68] ss:$12 sps:$4 sm:$0xff]   ;;  %v14970_v38 = vld [vmem:[#allocation4 + $0x60] ss:$12 sps:$4 sm:$0xff]  }
 0x15b   :  { %v14978_v36 = vld [vmem:[%s18766_s0 + $0x88] ss:$0 sps:$4 sm:$0xff]   ;;  %v18778_v39 = vsub.s32 1, %v16130_v23 }
 0x15c   :  { %14017 = vmatmul.mubr.bf16.gmra.mrb[112].mxu1 %v14926_v26  ;;  %3100 = vmatmul.mubr.bf16.gmra.mrb[32].mxu0 %v14926_v26  ;;  %v14976_v40 = vld [vmem:[#allocation4 + $0x7c] ss:$12 sps:$4 sm:$0xff]  }
 0x15d   :  { %14029 = vmatpush3.bf16.msra.mxu1 %v14930_v30  ;;  %3458 = vmatpush1.bf16.msra.mxu0 %v14927_v29  ;;  %v14967_v30 = vld [vmem:[#allocation4 + $0x4c] ss:$12 sps:$4 sm:$0xff]  }
 0x15e   :  { %14030 = vmatprep.subr.bf16.mxu1 %v18776_v0  ;;  %3459 = vmatprep.subr.bf16.mxu0 %v14933_v41  ;;  %v14974_v41 = vld [vmem:[#allocation4 + $0x78] ss:$12 sps:$4 sm:$0xff]  }
 0x15f   :  { %14020 = vmatprep.mubr.msk.bf16.mxu1 %vm15879_vm0, %v18776_v0  ;;  %3109 = vmatprep.mubr.bf16.mxu0 %v18780_v1 }
 0x161   :  { %14031 = vmatpush3.bf16.msra.mxu1 %v14934_v43  ;;  %3460 = vmatpush1.bf16.msra.mxu0 %v14931_v42  ;;  %v14977_v42 = vld [vmem:[#allocation4 + $0x80] ss:$12 sps:$4 sm:$0xff]  }
 0x162   :  { %14032 = vmatprep.subr.bf16.mxu1 %v18776_v0  ;;  %3461 = vmatprep.subr.bf16.mxu0 %v14938_v45  ;;  %v15850_v43 = vld [vmem:[%s18768_s2] sm:$0x7] }
 0x163   :  { %v16331_v45 = vrot.slane %v15850_v43, %v18778_v39  ;;  %v17509_v39 = vld [vmem:[%s18769_s3 + $0x450] ss:$8 sps:$4 sm:$0xff]  }
 0x164   :  { %14021 = vmatmul.mubr.bf16.gmra.mrb[116].mxu1 %v14935_v44  ;;  %3110 = vmatmul.mubr.bf16.gmra.mrb[52].mxu0 %v14935_v44 }
 0x165   :  { %14033 = vmatpush3.bf16.msra.mxu1 %v14939_v46  ;;  %3462 = vmatpush1.bf16.msra.mxu0 %v14936_v47  ;;  %v14981_v47 = vld [vmem:[#allocation4 + $0x94] ss:$12 sps:$4 sm:$0xff]  }
 0x166   :  { %14034 = vmatprep.subr.bf16.mxu1 %v18776_v0  ;;  %3463 = vmatprep.subr.bf16.mxu0 %v14942_v48 }
 0x167   :  { %v1239_v52 = vpop.f32.mrb[36].mxu1  ;;  %14040 = vmatprep.mubr.msk.bf16.mxu1 %vm15879_vm0, %v18776_v0  ;;  %3485 = vmatprep.mubr.bf16.mxu0 %v18780_v1 }
 0x168   :  { %v13846_v53 = vpop.f32.mrb[37].mxu1  ;;  %v16277_v55 = vadd.f32 %v1239_v52, %v16229_v63  ;;  %v14982_v52 = vld [vmem:[#allocation4 + $0x98] ss:$12 sps:$4 sm:$0xff]  }
 0x169   :  { %v1242_v56 = vpop.f32.mrb[38].mxu1  ;;  %14035 = vmatpush3.bf16.msra.mxu1 %v14943_v50  ;;  %3464 = vmatpush1.bf16.msra.mxu0 %v14940_v49 }
 0x16a   :  { %14036 = vmatprep.subr.bf16.mxu1 %v18776_v0  ;;  %v13847_v58 = vpop.f32.mrb[39].mxu1  ;;  %v16281_v60 = vadd.f32 %v1242_v56, %v16233_v5  ;;  %3465 = vmatprep.subr.bf16.mxu0 %v14946_v51 }
 0x16d   :  { %14037 = vmatpush3.bf16.msra.mxu1 %v14947_v54  ;;  %3466 = vmatpush1.bf16.msra.mxu0 %v14944_v57 }
 0x16e   :  { %14038 = vmatprep.subr.bf16.mxu1 %v18776_v0  ;;  %3467 = vmatprep.subr.bf16.mxu0 %v14950_v59 }
 0x16f   :  { %v1247_v63 = vpop.f32.mrb[40].mxu1 }
 0x170   :  { %v13850_v4 = vpop.f32.mrb[41].mxu1  ;;  %v16288_v7 = vadd.f32 %v1247_v63, %v16241_v15  ;;  %v14963_v15 = vld [vmem:[#allocation4 + $0x34] ss:$12 sps:$4 sm:$0xff]  }
 0x171   :  { %v1250_v5 = vpop.f32.mrb[42].mxu1  ;;  %14039 = vmatpush3.bf16.msra.mxu1 %v14951_v61  ;;  %3468 = vmatpush1.bf16.msra.mxu0 %v14948_v62  ;;  %v14985_v62 = vld [vmem:[#allocation4 + $0xac] ss:$12 sps:$4 sm:$0xff]  }
 0x172   :  { %14052 = vmatprep.subr.bf16.mxu1 %v18776_v0  ;;  %v13851_v9 = vpop.f32.mrb[43].mxu1  ;;  %v16292_v10 = vadd.f32 %v1250_v5, %v16244_v18  ;;  %3714 = vmatprep.subr.bf16.mxu0 %v14955_v3  ;;  %v14986_v3 = vld [vmem:[#allocation4 + $0xb0] ss:$12 sps:$4 sm:$0xff]  }
 0x173   :  { %v14983_v9 = vld [vmem:[#allocation4 + $0xa8] ss:$12 sps:$4 sm:$0xff]  }
 0x174   :  { %14041 = vmatmul.mubr.bf16.vlgmr.msra.gmra.mrb[120].mxu1 %v14952_v2  ;;  %3486 = vmatmul.mubr.bf16.vlgmr.msra.gmra.mrb[56].mxu0 %v14952_v2 }
 0x175   :  { %14053 = vmatpush3.bf16.msra.mxu1 %v14956_v6  ;;  %3715 = vmatpush1.bf16.msra.mxu0 %v14953_v8 }
 0x176   :  { %14054 = vmatprep.subr.bf16.mxu1 %v18776_v0  ;;  %3716 = vmatprep.subr.bf16.mxu0 %v14959_v11 }
 0x177   :  { %v1255_v14 = vpop.f32.mrb[44].mxu1  ;;  %3495 = vmatprep.mubr.bf16.mxu0 %v18780_v1  ;;  %v1198_v18 = vpop.f32.mrb[20].mxu0  ;;  %14044 = vmatprep.mubr.msk.bf16.mxu1 %vm15879_vm0, %v18776_v0 }
 0x178   :  { %v16297_v17 = vadd.f32 %v1255_v14, %v16255_v32  ;;  %v13854_v21 = vpop.f32.mrb[45].mxu1  ;;  %v16305_v22 = vadd.f32 %v1198_v18, %v16258_v34  ;;  %v1200_v24 = vpop.f32.mrb[21].mxu0  ;;  %v14965_v32 = vld [vmem:[#allocation4 + $0x48] ss:$12 sps:$4 sm:$0xff]   ;;  %v14972_v34 = vld [vmem:[#allocation4 + $0x64] ss:$12 sps:$4 sm:$0xff]  }
 0x179   :  { %14055 = vmatpush3.bf16.msra.mxu1 %v14960_v13  ;;  %v1258_v25 = vpop.f32.mrb[46].mxu1  ;;  %v16308_v26 = vadd.f32 %v1200_v24, %v16261_v37  ;;  %3717 = vmatpush1.bf16.msra.mxu0 %v14957_v12  ;;  %v1202_v27 = vpop.f32.mrb[22].mxu0  ;;  %v18779_v37 = vsub.s32 0, %v16130_v23  ;;  %v14987_v14 = vld [vmem:[%s18766_s0 + $0x60] sm:$0xff]  }
 0x17a   :  { %14056 = vmatprep.subr.bf16.mxu1 %v18776_v0  ;;  %v13855_v28 = vpop.f32.mrb[47].mxu1  ;;  %3718 = vmatprep.subr.bf16.mxu0 %v14963_v15  ;;  %v1203_v29 = vpop.f32.mrb[23].mxu0  ;;  %v14990_v18 = vld [vmem:[#allocation4 + $0x184] ss:$12 sps:$4 sm:$0xff]  }
 0x17b   :  { %v16326_v44 = vrot.slane %v15850_v43, %v18779_v37  ;;  %v14988_v28 = vld [vmem:[#allocation4 + $0x180] ss:$12 sps:$4 sm:$0xff]   ;;  %v15515_v37 = vld [vmem:[%s18769_s3 + $0x74] ss:$8 sps:$4 sm:$0xff]  }
 0x17c   :  { %14045 = vmatmul.mubr.bf16.gmra.mrb[124].mxu1 %v14969_v20  ;;  %3496 = vmatmul.mubr.bf16.gmra.mrb[60].mxu0 %v14969_v20  ;;  %v14995_v43 = vld [vmem:[#allocation4 + $0x1a0] ss:$12 sps:$4 sm:$0xff]  }
 0x17d   :  { %14057 = vmatpush3.bf16.msra.mxu1 %v14964_v16  ;;  %3719 = vmatpush1.bf16.msra.mxu0 %v14961_v19  ;;  %v14991_v19 = vld [vmem:[#allocation4 + $0x188] ss:$12 sps:$4 sm:$0xff]   ;;  %v15521_v23 = vld [vmem:[%s18769_s3 + $0x84] ss:$8 sps:$4 sm:$0xff]  }
 0x17e   :  { %14058 = vmatprep.subr.bf16.mxu1 %v18776_v0  ;;  %3720 = vmatprep.subr.bf16.mxu0 %v14967_v30 }
 0x17f   :  { %3505 = vmatprep.mubr.bf16.mxu0 %v18780_v1  ;;  %14048 = vmatprep.mubr.msk.bf16.mxu1 %vm15879_vm0, %v18776_v0 }
 0x181   :  { %14059 = vmatpush3.bf16.msra.mxu1 %v14968_v31  ;;  %3721 = vmatpush1.bf16.msra.mxu0 %v14965_v32 }
 0x182   :  { %14060 = vmatprep.subr.bf16.mxu1 %v18776_v0  ;;  %3722 = vmatprep.subr.bf16.mxu0 %v14972_v34 }
 0x184   :  { %14049 = vmatmul.mubr.bf16.gmra.mrb[128].mxu1 %v14978_v36  ;;  %3506 = vmatmul.mubr.bf16.gmra.mrb[64].mxu0 %v14978_v36 }
 0x185   :  { %14061 = vmatpush3.bf16.msra.mxu1 %v14973_v35  ;;  %3723 = vmatpush1.bf16.msra.mxu0 %v14970_v38 }
 0x186   :  { %14062 = vmatprep.subr.bf16.mxu1 %v18776_v0  ;;  %3724 = vmatprep.subr.bf16.mxu0 %v14976_v40 }
 0x187   :  { %v1554_v46 = vpop.f32.mrb[48].mxu1  ;;  %14068 = vmatprep.mubr.msk.bf16.mxu1 %vm15879_vm0, %v18776_v0  ;;  %v1493_v49 = vpop.f32.mrb[0].mxu0  ;;  %3746 = vmatprep.mubr.bf16.mxu0 %v18780_v1 }
 0x188   :  { %v1578_v48 = vadd.f32 %v1554_v46, %v16277_v55  ;;  %v13874_v50 = vpop.f32.mrb[49].mxu1  ;;  %v1607_v51 = vadd.f32 %v16326_v44, %v1493_v49  ;;  %v1495_v53 = vpop.f32.mrb[1].mxu0  ;;  %v14979_v55 = vld [vmem:[#allocation4 + $0x90] ss:$12 sps:$4 sm:$0xff]  }
 0x189   :  { %v1557_v54 = vpop.f32.mrb[50].mxu1  ;;  %14063 = vmatpush3.bf16.msra.mxu1 %v14977_v42  ;;  %v1608_v57 = vadd.f32 %v16331_v45, %v1495_v53  ;;  %v1497_v59 = vpop.f32.mrb[2].mxu0  ;;  %3725 = vmatpush1.bf16.msra.mxu0 %v14974_v41  ;;  %v14994_v42 = vld [vmem:[#allocation4 + $0x19c] ss:$12 sps:$4 sm:$0xff]  }
 0x18a   :  { %v1609_v56 = vadd.f32 %v16144_v33, %v1578_v48  ;;  %v1581_v58 = vadd.f32 %v1557_v54, %v16281_v60  ;;  %14064 = vmatprep.subr.bf16.mxu1 %v18776_v0  ;;  %v13875_v61 = vpop.f32.mrb[51].mxu1  ;;  %v1610_v63 = vadd.f32 %v16326_v44, %v1497_v59  ;;  %v1499_v2 = vpop.f32.mrb[3].mxu0  ;;  %3726 = vmatprep.subr.bf16.mxu0 %v14981_v47  ;;  %v1622_v6 = vmax.f32 %v1607_v51, 0.0  ;;  %v14996_v59 = vld [vmem:[%s18766_s0 + $0x68] sm:$0xff]  }
 0x18b   :  { %v1611_v8 = vadd.f32 %v16331_v45, %v1499_v2  ;;  %v1623_v60 = vmax.f32 %v1608_v57, 0.0  ;;  %v15000_v2 = vld [vmem:[#allocation4 + $0x1b8] ss:$12 sps:$4 sm:$0xff]  }
 0x18c   :  { %v1624_v4 = vmax.f32 %v1609_v56, 0.0  ;;  %v1612_v5 = vadd.f32 %v16144_v33, %v1581_v58  ;;  %v1625_v11 = vmax.f32 %v1610_v63, 0.0 }
 0x18d   :  { %14065 = vmatpush3.bf16.msra.mxu1 %v14982_v52  ;;  %v1626_v13 = vmax.f32 %v1611_v8, 0.0  ;;  %3727 = vmatpush1.bf16.msra.mxu0 %v14979_v55  ;;  %v14999_v55 = vld [vmem:[#allocation4 + $0x1b4] ss:$12 sps:$4 sm:$0xff]  }
 0x18e   :  { %v1627_v12 = vmax.f32 %v1612_v5, 0.0  ;;  %14066 = vmatprep.subr.bf16.mxu1 %v18776_v0  ;;  %v16349_v15 = vpack.c.bf16 %v1625_v11, %v1622_v6  ;;  %3728 = vmatprep.subr.bf16.mxu0 %v14985_v62 }
 0x18f   :  { %v1562_v16 = vpop.f32.mrb[52].mxu1  ;;  %v16353_v21 = vpack.c.bf16 %v1626_v13, %v1623_v60  ;;  %v1503_v25 = vpop.f32.mrb[4].mxu0 }
 0x190   :  { %v16351_v20 = vpack.c.bf16 %v1627_v12, %v1624_v4  ;;  %v1584_v24 = vadd.f32 %v1562_v16, %v16288_v7  ;;  %v13878_v27 = vpop.f32.mrb[53].mxu1  ;;  %v1613_v29 = vadd.f32 %v16326_v44, %v1503_v25  ;;  %v1505_v30 = vpop.f32.mrb[5].mxu0 }
 0x191   :  { %v1565_v31 = vpop.f32.mrb[54].mxu1  ;;  %14067 = vmatpush3.bf16.msra.mxu1 %v14986_v3  ;;  %v1614_v34 = vadd.f32 %v16331_v45, %v1505_v30  ;;  %v1507_v36 = vpop.f32.mrb[6].mxu0  ;;  %3729 = vmatpush1.bf16.msra.mxu0 %v14983_v9  ;;  %v15001_v27 = vld [vmem:[#allocation4 + $0x1c8] ss:$12 sps:$4 sm:$0xff]   ;;  %v15008_v30 = vld [vmem:[#allocation4 + $0x1e4] ss:$12 sps:$4 sm:$0xff]  }
 0x192   :  { %v1615_v32 = vadd.f32 %v16144_v33, %v1584_v24  ;;  %v1587_v35 = vadd.f32 %v1565_v31, %v16292_v10  ;;  %14080 = vmatprep.subr.bf16.mxu1 %v18776_v0  ;;  %v13879_v38 = vpop.f32.mrb[55].mxu1  ;;  %v1628_v7 = vmax.f32 %v1613_v29, 0.0  ;;  %v1616_v40 = vadd.f32 %v16326_v44, %v1507_v36  ;;  %v1509_v41 = vpop.f32.mrb[7].mxu0  ;;  %4012 = vmatprep.subr.bf16.mxu0 %v14990_v18  ;;  %v14992_v10 = vld [vmem:[#allocation4 + $0x198] ss:$12 sps:$4 sm:$0xff]  }
 0x193   :  { %v1629_v47 = vmax.f32 %v1614_v34, 0.0  ;;  %v1617_v49 = vadd.f32 %v16331_v45, %v1509_v41  ;;  %v15004_v18 = vld [vmem:[#allocation4 + $0x1d0] ss:$12 sps:$4 sm:$0xff]   ;;  %v15006_v34 = vld [vmem:[#allocation4 + $0x1e0] ss:$12 sps:$4 sm:$0xff]  }
 0x194   :  { %v1630_v46 = vmax.f32 %v1615_v32, 0.0  ;;  %v1618_v48 = vadd.f32 %v16144_v33, %v1587_v35  ;;  %14069 = vmatmul.mubr.bf16.vlgmr.msra.gmra.mrb[132].mxu1 %v14987_v14  ;;  %v16364_v50 = vpack.c.bf16 %v1628_v7, %v1625_v11  ;;  %v1631_v52 = vmax.f32 %v1616_v40, 0.0  ;;  %3747 = vmatmul.mubr.bf16.vlgmr.msra.gmra.mrb[56].mxu0 %v14987_v14  ;;  %v15005_v29 = vld [vmem:[%s18766_s0 + $0x70] ss:$0 sps:$4 sm:$0xff]   ;;  %v15009_v32 = vld [vmem:[#allocation4 + $0x1e8] ss:$12 sps:$4 sm:$0xff]  }
 0x195   :  { %14081 = vmatpush3.bf16.msra.mxu1 %v14991_v19  ;;  %v16368_v53 = vpack.c.bf16 %v1629_v47, %v1626_v13  ;;  %v1632_v56 = vmax.f32 %v1617_v49, 0.0  ;;  %4013 = vmatpush1.bf16.msra.mxu0 %v14988_v28  ;;  %v15012_v35 = vld [vmem:[#allocation4 + $0x1fc] ss:$12 sps:$4 sm:$0xff]   ;;  %v15013_v36 = vld [vmem:[#allocation4 + $0x200] ss:$12 sps:$4 sm:$0xff]  }
 0x196   :  { %v16366_v51 = vpack.c.bf16 %v1630_v46, %v1627_v12  ;;  %v1633_v54 = vmax.f32 %v1618_v48, 0.0  ;;  %14082 = vmatprep.subr.bf16.mxu1 %v18776_v0  ;;  %v16371_v57 = vpack.c.bf16 %v1631_v52, %v1628_v7  ;;  %4014 = vmatprep.subr.bf16.mxu0 %v14994_v42  ;;  %v15003_v12 = vld [vmem:[#allocation4 + $0x1cc] ss:$12 sps:$4 sm:$0xff]   ;;  %v15016_v7 = vld [vmem:[#allocation4 + $0x214] ss:$12 sps:$4 sm:$0xff]  }
 0x197   :  { %v1570_v58 = vpop.f32.mrb[56].mxu1  ;;  %3756 = vmatprep.mubr.bf16.mxu0 %v18780_v1  ;;  %v16377_v61 = vpack.c.bf16 %v1632_v56, %v1629_v47  ;;  %v1513_v63 = vpop.f32.mrb[24].mxu0  ;;  %14072 = vmatprep.mubr.msk.bf16.mxu1 %vm15879_vm0, %v18776_v0  ;;  %v15010_v38 = vld [vmem:[#allocation4 + $0x1f8] ss:$12 sps:$4 sm:$0xff]   ;;  %v15014_v41 = vld [vmem:[#allocation4 + $0x210] ss:$12 sps:$4 sm:$0xff]  }
 0x198   :  { %v1590_v62 = vadd.f32 %v1570_v58, %v16297_v17  ;;  %v13882_v3 = vpop.f32.mrb[57].mxu1  ;;  %v16382_v4 = vpack.c.bf16 %v1633_v54, %v1630_v46  ;;  %v1588_v6 = vadd.f32 %v1513_v63, %v16305_v22  ;;  %v1515_v5 = vpop.f32.mrb[25].mxu0  ;;  %v14997_v17 = vld [vmem:[#allocation4 + $0x1b0] ss:$12 sps:$4 sm:$0xff]   ;;  %v15020_v48 = vld [vmem:[#allocation4 + $0x22c] ss:$12 sps:$4 sm:$0xff]  }
 0x199   :  { %14083 = vmatpush3.bf16.msra.mxu1 %v14995_v43  ;;  %v1573_v8 = vpop.f32.mrb[58].mxu1  ;;  %v1589_v60 = vadd.f32 %v1515_v5, %v16308_v26  ;;  %4015 = vmatpush1.bf16.msra.mxu0 %v14992_v10  ;;  %v1517_v11 = vpop.f32.mrb[26].mxu0  ;;  %v15017_v43 = vld [vmem:[#allocation4 + $0x218] ss:$12 sps:$4 sm:$0xff]   ;;  %v15018_v49 = vld [vmem:[#allocation4 + $0x228] ss:$12 sps:$4 sm:$0xff]  }
 0x19a   :  { %v1621_v9 = vadd.f32 %v16144_v33, %v1590_v62  ;;  %14084 = vmatprep.subr.bf16.mxu1 %v18776_v0  ;;  %v13883_v13 = vpop.f32.mrb[59].mxu1  ;;  %v1619_v14 = vadd.f32 %v16326_v44, %v1588_v6  ;;  %4016 = vmatprep.subr.bf16.mxu0 %v14999_v55  ;;  %v1518_v16 = vpop.f32.mrb[27].mxu0  ;;  %v15021_v10 = vld [vmem:[#allocation4 + $0x230] ss:$12 sps:$4 sm:$0xff]   ;;  %v15026_v58 = vld [vmem:[#allocation4 + $0x248] ss:$12 sps:$4 sm:$0xff]  }
 0x19b   :  { %v1620_v19 = vadd.f32 %v16331_v45, %v1589_v60  ;;  %v15023_v62 = vld [vmem:[#allocation4 + $0x240] ss:$12 sps:$4 sm:$0xff]   ;;  %v15027_v3 = vld [vmem:[#allocation4 + $0x258] ss:$12 sps:$4 sm:$0xff]  }
 0x19c   :  { %v1636_v22 = vmax.f32 %v1621_v9, 0.0  ;;  %14073 = vmatmul.mubr.bf16.gmra.mrb[136].mxu1 %v14996_v59  ;;  %v1634_v24 = vmax.f32 %v1619_v14, 0.0  ;;  %3757 = vmatmul.mubr.bf16.gmra.mrb[60].mxu0 %v14996_v59  ;;  %v15030_v6 = vld [vmem:[#allocation4 + $0x260] ss:$12 sps:$4 sm:$0xff]   ;;  %v15031_v5 = vld [vmem:[%s18766_s0 + $0x98] sm:$0xff]  }
 0x19d   :  { %14085 = vmatpush3.bf16.msra.mxu1 %v15000_v2  ;;  %v1635_v25 = vmax.f32 %v1620_v19, 0.0  ;;  %4017 = vmatpush1.bf16.msra.mxu0 %v14997_v17  ;;  %v15029_v2 = vld [vmem:[#allocation4 + $0x25c] ss:$12 sps:$4 sm:$0xff]   ;;  %v15034_v8 = vld [vmem:[#allocation4 + $0x274] ss:$12 sps:$4 sm:$0xff]  }
 0x19e   :  { %v16390_v26 = vpack.c.bf16 %v1636_v22, %v1633_v54  ;;  %14086 = vmatprep.subr.bf16.mxu1 %v18776_v0  ;;  %v16393_v28 = vpack.c.bf16 %v1634_v24, %v1631_v52  ;;  %4018 = vmatprep.subr.bf16.mxu0 %v15003_v12  ;;  %v15022_v52 = vld [vmem:[%s18766_s0 + $0x90] sm:$0xff]   ;;  %v15035_v9 = vld [vmem:[#allocation4 + $0x278] ss:$12 sps:$4 sm:$0xff]  }
 0x19f   :  { %3766 = vmatprep.mubr.bf16.mxu0 %v18780_v1  ;;  %14076 = vmatprep.mubr.msk.bf16.mxu1 %vm15879_vm0, %v18776_v0  ;;  %v16401_v31 = vpack.c.bf16 %v1635_v25, %v1632_v56  ;;  %v15025_v54 = vld [vmem:[#allocation4 + $0x244] ss:$12 sps:$4 sm:$0xff]   ;;  %v15038_v19 = vld [vmem:[#allocation4 + $0x28c] ss:$12 sps:$4 sm:$0xff]   ;;  %v15036_v24 = vld [vmem:[#allocation4 + $0x288] ss:$12 sps:$4 sm:$0xff]  }
 0x1a0   :  { %v15032_v17 = vld [vmem:[#allocation4 + $0x270] ss:$12 sps:$4 sm:$0xff]  }
 0x1a1   :  { %14087 = vmatpush3.bf16.msra.mxu1 %v15004_v18  ;;  %4019 = vmatpush1.bf16.msra.mxu0 %v15001_v27  ;;  %v15039_v25 = vld [vmem:[#allocation4 + $0x290] ss:$12 sps:$4 sm:$0xff]   ;;  %v15040_v27 = vld [vmem:[%s18766_s0 + $0xa0] ss:$0 sps:$4 sm:$0xff]  }
 0x1a2   :  { %14088 = vmatprep.subr.bf16.mxu1 %v18776_v0  ;;  %4020 = vmatprep.subr.bf16.mxu0 %v15008_v30  ;;  %v15044_v30 = vld [vmem:[#allocation4 + $0x2a8] ss:$12 sps:$4 sm:$0xff]  }
 0x1a4   :  { %14077 = vmatmul.mubr.bf16.gmra.mrb[140].mxu1 %v15005_v29  ;;  %3767 = vmatmul.mubr.bf16.gmra.mrb[68].mxu0 %v15005_v29  ;;  %v15043_v29 = vld [vmem:[#allocation4 + $0x2a4] ss:$12 sps:$4 sm:$0xff]  }
 0x1a5   :  { %14089 = vmatpush3.bf16.msra.mxu1 %v15009_v32  ;;  %4021 = vmatpush1.bf16.msra.mxu0 %v15006_v34  ;;  %v15041_v32 = vld [vmem:[#allocation4 + $0x2a0] ss:$12 sps:$4 sm:$0xff]   ;;  %v15047_v34 = vld [vmem:[#allocation4 + $0x2bc] ss:$12 sps:$4 sm:$0xff]  }
 0x1a6   :  { %14090 = vmatprep.subr.bf16.mxu1 %v18776_v0  ;;  %4022 = vmatprep.subr.bf16.mxu0 %v15012_v35  ;;  %v15048_v35 = vld [vmem:[#allocation4 + $0x2c0] ss:$12 sps:$4 sm:$0xff]  }
 0x1a7   :  { %14096 = vmatprep.mubr.msk.bf16.mxu1 %vm15879_vm0, %v18776_v0  ;;  %v16407_v40 = vpop.f32.mrb[60].mxu1  ;;  %4044 = vmatprep.mubr.bf16.mxu0 %v18780_v1 }
 0x1a8   :  { %v13902_v42 = vpop.f32.mrb[61].mxu1 }
 0x1a9   :  { %14091 = vmatpush3.bf16.msra.mxu1 %v15013_v36  ;;  %v16410_v46 = vpop.f32.mrb[62].mxu1  ;;  %4023 = vmatpush1.bf16.msra.mxu0 %v15010_v38  ;;  %v15045_v36 = vld [vmem:[#allocation4 + $0x2b8] ss:$12 sps:$4 sm:$0xff]  }
 0x1aa   :  { %14092 = vmatprep.subr.bf16.mxu1 %v18776_v0  ;;  %v13903_v47 = vpop.f32.mrb[63].mxu1  ;;  %4024 = vmatprep.subr.bf16.mxu0 %v15016_v7  ;;  %v15051_v7 = vld [vmem:[#allocation4 + $0x2d4] ss:$12 sps:$4 sm:$0xff]  }
 0x1ab   :  { %v15052_v47 = vld [vmem:[#allocation4 + $0x2d8] ss:$12 sps:$4 sm:$0xff]  }
 0x1ad   :  { %14093 = vmatpush3.bf16.msra.mxu1 %v15017_v43  ;;  %4025 = vmatpush1.bf16.msra.mxu0 %v15014_v41 }
 0x1ae   :  { %14094 = vmatprep.subr.bf16.mxu1 %v18776_v0  ;;  %4026 = vmatprep.subr.bf16.mxu0 %v15020_v48 }
 0x1af   :  { %v16417_v56 = vpop.f32.mrb[64].mxu1 }
 0x1b0   :  { %v13906_v59 = vpop.f32.mrb[65].mxu1 }
 0x1b1   :  { %14095 = vmatpush3.bf16.msra.mxu1 %v15021_v10  ;;  %v16419_v55 = vpop.f32.mrb[66].mxu1  ;;  %4027 = vmatpush1.bf16.msra.mxu0 %v15018_v49  ;;  %v15049_v49 = vld [vmem:[#allocation4 + $0x2d0] ss:$12 sps:$4 sm:$0xff]   ;;  %v15055_v10 = vld [vmem:[#allocation4 + $0x2ec] ss:$12 sps:$4 sm:$0xff]  }
 0x1b2   :  { %14108 = vmatprep.subr.bf16.mxu1 %v18776_v0  ;;  %v13907_v63 = vpop.f32.mrb[67].mxu1  ;;  %4326 = vmatprep.subr.bf16.mxu0 %v15025_v54  ;;  %v15056_v54 = vld [vmem:[#allocation4 + $0x2f0] ss:$12 sps:$4 sm:$0xff]  }
 0x1b3   :  { %v15060_v59 = vld [vmem:[#allocation4 + $0x304] ss:$12 sps:$4 sm:$0xff]  }
 0x1b4   :  { %14097 = vmatmul.mubr.bf16.vlgmr.msra.gmra.mrb[144].mxu1 %v15022_v52  ;;  %4045 = vmatmul.mubr.bf16.vlgmr.msra.gmra.mrb[56].mxu0 %v15022_v52 }
 0x1b5   :  { %14109 = vmatpush3.bf16.msra.mxu1 %v15026_v58  ;;  %4327 = vmatpush1.bf16.msra.mxu0 %v15023_v62  ;;  %v15053_v58 = vld [vmem:[#allocation4 + $0x2e8] ss:$12 sps:$4 sm:$0xff]  }
 0x1b6   :  { %14110 = vmatprep.subr.bf16.mxu1 %v18776_v0  ;;  %4328 = vmatprep.subr.bf16.mxu0 %v15029_v2 }
 0x1b7   :  { %14100 = vmatprep.mubr.msk.bf16.mxu1 %vm15879_vm0, %v18776_v0  ;;  %v16428_v60 = vpop.f32.mrb[68].mxu1  ;;  %4054 = vmatprep.mubr.bf16.mxu0 %v18780_v1  ;;  %v16431_v11 = vpop.f32.mrb[36].mxu0 }
 0x1b8   :  { %v13910_v12 = vpop.f32.mrb[69].mxu1  ;;  %v16433_v13 = vpop.f32.mrb[37].mxu0 }
 0x1b9   :  { %14111 = vmatpush3.bf16.msra.mxu1 %v15030_v6  ;;  %v1984_v14 = vpop.f32.mrb[70].mxu1  ;;  %4329 = vmatpush1.bf16.msra.mxu0 %v15027_v3  ;;  %v1928_v16 = vpop.f32.mrb[38].mxu0  ;;  %v15058_v6 = vld [vmem:[#allocation4 + $0x300] ss:$12 sps:$4 sm:$0xff]   ;;  %v15062_v12 = vld [vmem:[#allocation4 + $0x318] ss:$12 sps:$4 sm:$0xff]  }
 0x1ba   :  { %14112 = vmatprep.subr.bf16.mxu1 %v18776_v0  ;;  %v13911_v18 = vpop.f32.mrb[71].mxu1  ;;  %4330 = vmatprep.subr.bf16.mxu0 %v15034_v8  ;;  %v1929_v22 = vpop.f32.mrb[39].mxu0  ;;  %v15069_v14 = vld [vmem:[#allocation4 + $0x334] ss:$12 sps:$4 sm:$0xff]  }
 0x1bc   :  { %14101 = vmatmul.mubr.bf16.gmra.mrb[148].mxu1 %v15031_v5  ;;  %4055 = vmatmul.mubr.bf16.gmra.mrb[60].mxu0 %v15031_v5 }
 0x1bd   :  { %14113 = vmatpush3.bf16.msra.mxu1 %v15035_v9  ;;  %4331 = vmatpush1.bf16.msra.mxu0 %v15032_v17  ;;  %v15064_v9 = vld [vmem:[#allocation4 + $0x31c] ss:$12 sps:$4 sm:$0xff]   ;;  %v15065_v17 = vld [vmem:[#allocation4 + $0x320] ss:$12 sps:$4 sm:$0xff]  }
 0x1be   :  { %14114 = vmatprep.subr.bf16.mxu1 %v18776_v0  ;;  %4332 = vmatprep.subr.bf16.mxu0 %v15038_v19 }
 0x1bf   :  { %14104 = vmatprep.mubr.msk.bf16.mxu1 %vm15879_vm0, %v18776_v0  ;;  %4064 = vmatprep.mubr.bf16.mxu0 %v18780_v1 }
 0x1c1   :  { %14115 = vmatpush3.bf16.msra.mxu1 %v15039_v25  ;;  %4333 = vmatpush1.bf16.msra.mxu0 %v15036_v24 }
 0x1c2   :  { %14116 = vmatprep.subr.bf16.mxu1 %v18776_v0  ;;  %4334 = vmatprep.subr.bf16.mxu0 %v15043_v29 }
 0x1c4   :  { %14105 = vmatmul.mubr.bf16.gmra.mrb[152].mxu1 %v15040_v27  ;;  %4065 = vmatmul.mubr.bf16.gmra.mrb[72].mxu0 %v15040_v27 }
 0x1c5   :  { %14117 = vmatpush3.bf16.msra.mxu1 %v15044_v30  ;;  %4335 = vmatpush1.bf16.msra.mxu0 %v15041_v32  ;;  %v15067_v30 = vld [vmem:[#allocation4 + $0x330] ss:$12 sps:$4 sm:$0xff]  }
 0x1c6   :  { %14118 = vmatprep.subr.bf16.mxu1 %v18776_v0  ;;  %4336 = vmatprep.subr.bf16.mxu0 %v15047_v34 }
 0x1c7   :  { %v2226_v38 = vpop.f32.mrb[72].mxu1  ;;  %14124 = vmatprep.mubr.msk.bf16.mxu1 %vm15879_vm0, %v18776_v0  ;;  %4358 = vmatprep.mubr.bf16.mxu0 %v18780_v1 }
 0x1c8   :  { %v16448_v41 = vadd.f32 %v2226_v38, %v16407_v40  ;;  %v13930_v42 = vpop.f32.mrb[73].mxu1  ;;  %v15057_v40 = vld [vmem:[%s18766_s0 + $0xa8] sm:$0xff]   ;;  %v15074_v38 = vld [vmem:[#allocation4 + $0x350] ss:$12 sps:$4 sm:$0xff]  }
 0x1c9   :  { %v2229_v43 = vpop.f32.mrb[74].mxu1  ;;  %14119 = vmatpush3.bf16.msra.mxu1 %v15048_v35  ;;  %4337 = vmatpush1.bf16.msra.mxu0 %v15045_v36  ;;  %v15071_v36 = vld [vmem:[#allocation4 + $0x348] ss:$12 sps:$4 sm:$0xff]   ;;  %v15076_v42 = vld [vmem:[#allocation4 + $0x360] ss:$12 sps:$4 sm:$0xff]  }
 0x1ca   :  { %v16452_v48 = vadd.f32 %v2229_v43, %v16410_v46  ;;  %14120 = vmatprep.subr.bf16.mxu1 %v18776_v0  ;;  %v13931_v52 = vpop.f32.mrb[75].mxu1  ;;  %4338 = vmatprep.subr.bf16.mxu0 %v15051_v7  ;;  %v15061_v46 = vld [vmem:[#allocation4 + $0x308] ss:$12 sps:$4 sm:$0xff]  }
 0x1cb   :  { %v15079_v7 = vld [vmem:[#allocation4 + $0x368] ss:$12 sps:$4 sm:$0xff]  }
 0x1cc   :  { %v15082_v43 = vld [vmem:[#allocation4 + $0x37c] ss:$12 sps:$4 sm:$0xff]   ;;  %v15086_v52 = vld [vmem:[#allocation4 + $0x394] ss:$12 sps:$4 sm:$0xff]  }
 0x1cd   :  { %14121 = vmatpush3.bf16.msra.mxu1 %v15052_v47  ;;  %4339 = vmatpush1.bf16.msra.mxu0 %v15049_v49  ;;  %v15083_v47 = vld [vmem:[#allocation4 + $0x380] ss:$12 sps:$4 sm:$0xff]   ;;  %v15080_v49 = vld [vmem:[#allocation4 + $0x378] ss:$12 sps:$4 sm:$0xff]  }
 0x1ce   :  { %14122 = vmatprep.subr.bf16.mxu1 %v18776_v0  ;;  %4340 = vmatprep.subr.bf16.mxu0 %v15055_v10 }
 0x1cf   :  { %v2234_v62 = vpop.f32.mrb[76].mxu1 }
 0x1d0   :  { %v16460_v63 = vadd.f32 %v2234_v62, %v16417_v56  ;;  %v13934_v2 = vpop.f32.mrb[77].mxu1  ;;  %v15066_v56 = vld [vmem:[%s18766_s0 + $0xb0] sm:$0xff]  }
 0x1d1   :  { %14123 = vmatpush3.bf16.msra.mxu1 %v15056_v54  ;;  %v2237_v3 = vpop.f32.mrb[78].mxu1  ;;  %4341 = vmatpush1.bf16.msra.mxu0 %v15053_v58  ;;  %v15084_v62 = vld [vmem:[#allocation4 + $0x390] ss:$12 sps:$4 sm:$0xff]  }
 0x1d2   :  { %14136 = vmatprep.subr.bf16.mxu1 %v18776_v0  ;;  %v16464_v5 = vadd.f32 %v2237_v3, %v16419_v55  ;;  %v13935_v8 = vpop.f32.mrb[79].mxu1  ;;  %4639 = vmatprep.subr.bf16.mxu0 %v15060_v59  ;;  %v15070_v55 = vld [vmem:[#allocation4 + $0x338] ss:$12 sps:$4 sm:$0xff]  }
 0x1d3   :  { %v15087_v59 = vld [vmem:[#allocation4 + $0x398] ss:$12 sps:$4 sm:$0xff]   ;;  %v15088_v8 = vld [vmem:[#allocation4 + $0x3a8] ss:$12 sps:$4 sm:$0xff]  }
 0x1d4   :  { %14125 = vmatmul.mubr.bf16.vlgmr.msra.gmra.mrb[156].mxu1 %v15057_v40  ;;  %4359 = vmatmul.mubr.bf16.vlgmr.msra.gmra.mrb[56].mxu0 %v15057_v40  ;;  %v15090_v3 = vld [vmem:[#allocation4 + $0x3ac] ss:$12 sps:$4 sm:$0xff]  }
 0x1d5   :  { %14137 = vmatpush3.bf16.msra.mxu1 %v15061_v46  ;;  %4640 = vmatpush1.bf16.msra.mxu0 %v15058_v6  ;;  %v15091_v6 = vld [vmem:[#allocation4 + $0x3b0] ss:$12 sps:$4 sm:$0xff]  }
 0x1d6   :  { %14138 = vmatprep.subr.bf16.mxu1 %v18776_v0  ;;  %4641 = vmatprep.subr.bf16.mxu0 %v15064_v9  ;;  %v15095_v9 = vld [vmem:[#allocation4 + $0xc4] ss:$12 sps:$4 sm:$0xff]  }
 0x1d7   :  { %14128 = vmatprep.mubr.msk.bf16.mxu1 %vm15879_vm0, %v18776_v0  ;;  %v2242_v16 = vpop.f32.mrb[80].mxu1  ;;  %v2185_v18 = vpop.f32.mrb[40].mxu0  ;;  %4368 = vmatprep.mubr.bf16.mxu0 %v18780_v1 }
 0x1d8   :  { %v16474_v22 = vadd.f32 %v2242_v16, %v16428_v60  ;;  %v13938_v19 = vpop.f32.mrb[81].mxu1  ;;  %v16477_v24 = vadd.f32 %v2185_v18, %v16431_v11  ;;  %v2187_v25 = vpop.f32.mrb[41].mxu0  ;;  %v15073_v60 = vld [vmem:[#allocation4 + $0x34c] ss:$12 sps:$4 sm:$0xff]  }
 0x1d9   :  { %14139 = vmatpush3.bf16.msra.mxu1 %v15065_v17  ;;  %v2245_v27 = vpop.f32.mrb[82].mxu1  ;;  %v16480_v29 = vadd.f32 %v2187_v25, %v16433_v13  ;;  %4642 = vmatpush1.bf16.msra.mxu0 %v15062_v12  ;;  %v2189_v32 = vpop.f32.mrb[42].mxu0  ;;  %v15075_v11 = vld [vmem:[%s18766_s0 + $0xb8] ss:$0 sps:$4 sm:$0xff]   ;;  %v15078_v13 = vld [vmem:[#allocation4 + $0x364] ss:$12 sps:$4 sm:$0xff]  }
 0x1da   :  { %14140 = vmatprep.subr.bf16.mxu1 %v18776_v0  ;;  %v13939_v34 = vpop.f32.mrb[83].mxu1  ;;  %4643 = vmatprep.subr.bf16.mxu0 %v15069_v14  ;;  %v2190_v35 = vpop.f32.mrb[43].mxu0  ;;  %v15096_v17 = vld [vmem:[#allocation4 + $0xc8] ss:$12 sps:$4 sm:$0xff]   ;;  %v15093_v16 = vld [vmem:[#allocation4 + $0xc0] ss:$12 sps:$4 sm:$0xff]  }
 0x1db   :  { %v15099_v19 = vld [vmem:[#allocation4 + $0xdc] ss:$12 sps:$4 sm:$0xff]   ;;  %v15100_v25 = vld [vmem:[#allocation4 + $0xe0] ss:$12 sps:$4 sm:$0xff]   ;;  %v15097_v27 = vld [vmem:[#allocation4 + $0xd8] ss:$12 sps:$4 sm:$0xff]  }
 0x1dc   :  { %14129 = vmatmul.mubr.bf16.gmra.mrb[160].mxu1 %v15066_v56  ;;  %4369 = vmatmul.mubr.bf16.gmra.mrb[60].mxu0 %v15066_v56  ;;  %v15105_v35 = vld [vmem:[#allocation4 + $0xf8] ss:$12 sps:$4 sm:$0xff]  }
 0x1dd   :  { %14141 = vmatpush3.bf16.msra.mxu1 %v15070_v55  ;;  %4644 = vmatpush1.bf16.msra.mxu0 %v15067_v30  ;;  %v15104_v30 = vld [vmem:[#allocation4 + $0xf4] ss:$12 sps:$4 sm:$0xff]  }
 0x1de   :  { %14142 = vmatprep.subr.bf16.mxu1 %v18776_v0  ;;  %4645 = vmatprep.subr.bf16.mxu0 %v15073_v60 }
 0x1df   :  { %14132 = vmatprep.mubr.msk.bf16.mxu1 %vm15879_vm0, %v18776_v0  ;;  %4378 = vmatprep.mubr.bf16.mxu0 %v18780_v1 }
 0x1e1   :  { %14143 = vmatpush3.bf16.msra.mxu1 %v15074_v38  ;;  %4646 = vmatpush1.bf16.msra.mxu0 %v15071_v36 }
 0x1e2   :  { %14144 = vmatprep.subr.bf16.mxu1 %v18776_v0  ;;  %4647 = vmatprep.subr.bf16.mxu0 %v15078_v13 }
 0x1e4   :  { %14133 = vmatmul.mubr.bf16.gmra.mrb[164].mxu1 %v15075_v11  ;;  %4379 = vmatmul.mubr.bf16.gmra.mrb[76].mxu0 %v15075_v11 }
 0x1e5   :  { %14145 = vmatpush3.bf16.msra.mxu1 %v15079_v7  ;;  %4648 = vmatpush1.bf16.msra.mxu0 %v15076_v42  ;;  %v15102_v7 = vld [vmem:[#allocation4 + $0xf0] ss:$12 sps:$4 sm:$0xff]  }
 0x1e6   :  { %14146 = vmatprep.subr.bf16.mxu1 %v18776_v0  ;;  %4649 = vmatprep.subr.bf16.mxu0 %v15082_v43 }
 0x1e7   :  { %v2524_v10 = vpop.f32.mrb[84].mxu1  ;;  %14152 = vmatprep.mubr.msk.bf16.mxu1 %vm15879_vm0, %v18776_v0  ;;  %4671 = vmatprep.mubr.bf16.mxu0 %v18780_v1 }
 0x1e8   :  { %v16495_v54 = vadd.f32 %v2524_v10, %v16448_v41  ;;  %v13958_v58 = vpop.f32.mrb[85].mxu1  ;;  %v15092_v41 = vld [vmem:[%s18766_s0 + $0x4] sm:$0xff]   ;;  %v15109_v10 = vld [vmem:[#allocation4 + $0x110] ss:$12 sps:$4 sm:$0xff]  }
 0x1e9   :  { %v2527_v40 = vpop.f32.mrb[86].mxu1  ;;  %14147 = vmatpush3.bf16.msra.mxu1 %v15083_v47  ;;  %4650 = vmatpush1.bf16.msra.mxu0 %v15080_v49  ;;  %v15108_v47 = vld [vmem:[#allocation4 + $0x10c] ss:$12 sps:$4 sm:$0xff]   ;;  %v15106_v49 = vld [vmem:[#allocation4 + $0x108] ss:$12 sps:$4 sm:$0xff]  }
 0x1ea   :  { %v16499_v46 = vadd.f32 %v2527_v40, %v16452_v48  ;;  %14148 = vmatprep.subr.bf16.mxu1 %v18776_v0  ;;  %v13959_v2 = vpop.f32.mrb[87].mxu1  ;;  %4651 = vmatprep.subr.bf16.mxu0 %v15086_v52  ;;  %v15114_v52 = vld [vmem:[#allocation4 + $0x128] ss:$12 sps:$4 sm:$0xff]   ;;  %v15111_v58 = vld [vmem:[#allocation4 + $0x120] ss:$12 sps:$4 sm:$0xff]  }
 0x1eb   :  { %v15117_v40 = vld [vmem:[#allocation4 + $0x13c] ss:$12 sps:$4 sm:$0xff]  }
 0x1ed   :  { %14149 = vmatpush3.bf16.msra.mxu1 %v15087_v59  ;;  %4652 = vmatpush1.bf16.msra.mxu0 %v15084_v62  ;;  %v15118_v59 = vld [vmem:[#allocation4 + $0x140] ss:$12 sps:$4 sm:$0xff]   ;;  %v15115_v62 = vld [vmem:[#allocation4 + $0x138] ss:$12 sps:$4 sm:$0xff]  }
 0x1ee   :  { %14150 = vmatprep.subr.bf16.mxu1 %v18776_v0  ;;  %4653 = vmatprep.subr.bf16.mxu0 %v15090_v3  ;;  %v15121_v3 = vld [vmem:[#allocation4 + $0x154] ss:$12 sps:$4 sm:$0xff]  }
 0x1ef   :  { %v2532_v48 = vpop.f32.mrb[88].mxu1 }
 0x1f0   :  { %v16507_v12 = vadd.f32 %v2532_v48, %v16460_v63  ;;  %v13962_v56 = vpop.f32.mrb[89].mxu1 }
 0x1f1   :  { %v2535_v14 = vpop.f32.mrb[90].mxu1  ;;  %14151 = vmatpush3.bf16.msra.mxu1 %v15091_v6  ;;  %4654 = vmatpush1.bf16.msra.mxu0 %v15088_v8 }
 0x1f2   :  { %v16510_v55 = vadd.f32 %v2535_v14, %v16464_v5  ;;  %14164 = vmatprep.subr.bf16.mxu1 %v18776_v0  ;;  %v13963_v18 = vpop.f32.mrb[91].mxu1  ;;  %5035 = vmatprep.subr.bf16.mxu0 %v15095_v9  ;;  %v15101_v5 = vld [vmem:[%s18766_s0 + $0xc] sm:$0xff]  }
 0x1f3   :  { %v15125_v14 = vld [vmem:[#allocation4 + $0x16c] ss:$12 sps:$4 sm:$0xff]   ;;  %v15123_v18 = vld [vmem:[#allocation4 + $0x168] ss:$12 sps:$4 sm:$0xff]  }
 0x1f4   :  { %14153 = vmatmul.mubr.bf16.vlgmr.msra.gmra.mrb[168].mxu1 %v15092_v41  ;;  %4672 = vmatmul.mubr.bf16.vlgmr.msra.gmra.mrb[56].mxu0 %v15092_v41  ;;  %v15122_v41 = vld [vmem:[#allocation4 + $0x158] ss:$12 sps:$4 sm:$0xff]  }
 0x1f5   :  { %14165 = vmatpush3.bf16.msra.mxu1 %v15096_v17  ;;  %5036 = vmatpush1.bf16.msra.mxu0 %v15093_v16  ;;  %v15119_v17 = vld [vmem:[#allocation4 + $0x150] ss:$12 sps:$4 sm:$0xff]  }
 0x1f6   :  { %14166 = vmatprep.subr.bf16.mxu1 %v18776_v0  ;;  %5037 = vmatprep.subr.bf16.mxu0 %v15099_v19  ;;  %v15126_v16 = vld [vmem:[#allocation4 + $0x170] ss:$12 sps:$4 sm:$0xff]  }
 0x1f7   :  { %v2540_v63 = vpop.f32.mrb[92].mxu1  ;;  %14156 = vmatprep.mubr.msk.bf16.mxu1 %vm15879_vm0, %v18776_v0  ;;  %v2483_v34 = vpop.f32.mrb[44].mxu0  ;;  %4681 = vmatprep.mubr.bf16.mxu0 %v18780_v1 }
 0x1f8   :  { %v16520_v32 = vadd.f32 %v2540_v63, %v16474_v22  ;;  %v13966_v60 = vpop.f32.mrb[93].mxu1  ;;  %v16524_v36 = vadd.f32 %v2483_v34, %v16477_v24  ;;  %v2485_v38 = vpop.f32.mrb[45].mxu0  ;;  %v15110_v24 = vld [vmem:[%s18766_s0 + $0x14] ss:$0 sps:$4 sm:$0xff]  }
 0x1f9   :  { %14167 = vmatpush3.bf16.msra.mxu1 %v15100_v25  ;;  %v2543_v11 = vpop.f32.mrb[94].mxu1  ;;  %v16527_v13 = vadd.f32 %v2485_v38, %v16480_v29  ;;  %5038 = vmatpush1.bf16.msra.mxu0 %v15097_v27  ;;  %v2487_v22 = vpop.f32.mrb[46].mxu0  ;;  %v15113_v29 = vld [vmem:[#allocation4 + $0x124] ss:$12 sps:$4 sm:$0xff]   ;;  %v15131_v25 = vld [vmem:[#allocation4 + $0x8] ss:$12 sps:$4 sm:$0xff]  }
 0x1fa   :  { %14168 = vmatprep.subr.bf16.mxu1 %v18776_v0  ;;  %v13967_v42 = vpop.f32.mrb[95].mxu1  ;;  %5039 = vmatprep.subr.bf16.mxu0 %v15104_v30  ;;  %v2488_v43 = vpop.f32.mrb[47].mxu0  ;;  %v15134_v60 = vld [vmem:[#allocation4 + $0x1c] ss:$12 sps:$4 sm:$0xff]   ;;  %v15135_v38 = vld [vmem:[#allocation4 + $0x20] ss:$12 sps:$4 sm:$0xff]  }
 0x1fb   :  { %v15132_v11 = vld [vmem:[#allocation4 + $0x18] ss:$12 sps:$4 sm:$0xff]   ;;  %v15144_v43 = vld [vmem:[%s18766_s0 + $0xb0] sm:$0xff]  }
 0x1fc   :  { %14157 = vmatmul.mubr.bf16.gmra.mrb[172].mxu1 %v15101_v5  ;;  %4682 = vmatmul.mubr.bf16.gmra.mrb[60].mxu0 %v15101_v5  ;;  %v15128_v5 = vld [vmem:[#allocation4] ss:$12 sps:$4 sm:$0xff]   ;;  %v15139_v22 = vld [vmem:[#allocation4 + $0x38] ss:$12 sps:$4 sm:$0xff]  }
 0x1fd   :  { %14169 = vmatpush3.bf16.msra.mxu1 %v15105_v35  ;;  %5040 = vmatpush1.bf16.msra.mxu0 %v15102_v7 }
 0x1fe   :  { %14170 = vmatprep.subr.bf16.mxu1 %v18776_v0  ;;  %5041 = vmatprep.subr.bf16.mxu0 %v15108_v47 }
 0x1ff   :  { %14160 = vmatprep.mubr.msk.bf16.mxu1 %vm15879_vm0, %v18776_v0  ;;  %4691 = vmatprep.mubr.bf16.mxu0 %v18780_v1 }
 0x201   :  { %14171 = vmatpush3.bf16.msra.mxu1 %v15109_v10  ;;  %5042 = vmatpush1.bf16.msra.mxu0 %v15106_v49 }
 0x202   :  { %14172 = vmatprep.subr.bf16.mxu1 %v18776_v0  ;;  %5043 = vmatprep.subr.bf16.mxu0 %v15113_v29 }
 0x204   :  { %14161 = vmatmul.mubr.bf16.gmra.mrb[176].mxu1 %v15110_v24  ;;  %4692 = vmatmul.mubr.bf16.gmra.mrb[80].mxu0 %v15110_v24 }
 0x205   :  { %14173 = vmatpush3.bf16.msra.mxu1 %v15114_v52  ;;  %5044 = vmatpush1.bf16.msra.mxu0 %v15111_v58 }
 0x206   :  { %14174 = vmatprep.subr.bf16.mxu1 %v18776_v0  ;;  %5045 = vmatprep.subr.bf16.mxu0 %v15117_v40 }
 0x207   :  { %v2838_v2 = vpop.f32.mrb[96].mxu1  ;;  %14180 = vmatprep.mubr.msk.bf16.mxu1 %vm15879_vm0, %v18776_v0  ;;  %5067 = vmatprep.mubr.bf16.mxu0 %v18780_v1 }
 0x208   :  { %v16542_v6 = vadd.f32 %v2838_v2, %v16495_v54  ;;  %v13986_v8 = vpop.f32.mrb[97].mxu1  ;;  %v15127_v54 = vld [vmem:[%s18766_s0 + $0xa8] sm:$0xff]   ;;  %v15143_v2 = vld [vmem:[#allocation4 + $0x50] ss:$12 sps:$4 sm:$0xff]  }
 0x209   :  { %v2841_v9 = vpop.f32.mrb[98].mxu1  ;;  %14175 = vmatpush3.bf16.msra.mxu1 %v15118_v59  ;;  %5046 = vmatpush1.bf16.msra.mxu0 %v15115_v62  ;;  %v15142_v59 = vld [vmem:[#allocation4 + $0x4c] ss:$12 sps:$4 sm:$0xff]   ;;  %v15140_v62 = vld [vmem:[#allocation4 + $0x48] ss:$12 sps:$4 sm:$0xff]  }
 0x20a   :  { %v16546_v48 = vadd.f32 %v2841_v9, %v16499_v46  ;;  %14176 = vmatprep.subr.bf16.mxu1 %v18776_v0  ;;  %v13987_v56 = vpop.f32.mrb[99].mxu1  ;;  %5047 = vmatprep.subr.bf16.mxu0 %v15121_v3  ;;  %v15130_v46 = vld [vmem:[#allocation4 + $0x4] ss:$12 sps:$4 sm:$0xff]   ;;  %v15148_v3 = vld [vmem:[#allocation4 + $0x68] ss:$12 sps:$4 sm:$0xff]  }
 0x20b   :  { %v15145_v8 = vld [vmem:[#allocation4 + $0x60] ss:$12 sps:$4 sm:$0xff]  }
 0x20c   :  { %v15152_v9 = vld [vmem:[#allocation4 + $0x80] ss:$12 sps:$4 sm:$0xff]  }
 0x20d   :  { %14177 = vmatpush3.bf16.msra.mxu1 %v15122_v41  ;;  %5048 = vmatpush1.bf16.msra.mxu0 %v15119_v17  ;;  %v15151_v41 = vld [vmem:[#allocation4 + $0x7c] ss:$12 sps:$4 sm:$0xff]   ;;  %v15149_v17 = vld [vmem:[#allocation4 + $0x78] ss:$12 sps:$4 sm:$0xff]  }
 0x20e   :  { %14178 = vmatprep.subr.bf16.mxu1 %v18776_v0  ;;  %5049 = vmatprep.subr.bf16.mxu0 %v15125_v14  ;;  %v15156_v14 = vld [vmem:[#allocation4 + $0x94] ss:$12 sps:$4 sm:$0xff]  }
 0x20f   :  { %v2846_v19 = vpop.f32.mrb[100].mxu1 }
 0x210   :  { %v16554_v27 = vadd.f32 %v2846_v19, %v16507_v12  ;;  %v13990_v63 = vpop.f32.mrb[101].mxu1  ;;  %v15138_v12 = vld [vmem:[#allocation4 + $0x34] ss:$12 sps:$4 sm:$0xff]   ;;  %v15157_v19 = vld [vmem:[#allocation4 + $0x98] ss:$12 sps:$4 sm:$0xff]  }
 0x211   :  { %v2849_v30 = vpop.f32.mrb[102].mxu1  ;;  %14179 = vmatpush3.bf16.msra.mxu1 %v15126_v16  ;;  %5050 = vmatpush1.bf16.msra.mxu0 %v15123_v18 }
 0x212   :  { %v16557_v34 = vadd.f32 %v2849_v30, %v16510_v55  ;;  %14192 = vmatprep.subr.bf16.mxu1 %v18776_v0  ;;  %v13991_v35 = vpop.f32.mrb[103].mxu1  ;;  %5296 = vmatprep.subr.bf16.mxu0 %v15130_v46 }
 0x214   :  { %14181 = vmatmul.mubr.bf16.vlgmr.msra.gmra.mrb[180].mxu1 %v15127_v54  ;;  %5068 = vmatmul.mubr.bf16.vlgmr.msra.gmra.mrb[84].mxu0 %v15127_v54 }
 0x215   :  { %14193 = vmatpush3.bf16.msra.mxu1 %v15131_v25  ;;  %5297 = vmatpush1.bf16.msra.mxu0 %v15128_v5 }
 0x216   :  { %14194 = vmatprep.subr.bf16.mxu1 %v18776_v0  ;;  %5298 = vmatprep.subr.bf16.mxu0 %v15134_v60 }
 0x217   :  { %v2854_v7 = vpop.f32.mrb[104].mxu1  ;;  %5077 = vmatprep.mubr.bf16.mxu0 %v18780_v1  ;;  %v2797_v42 = vpop.f32.mrb[48].mxu0  ;;  %14184 = vmatprep.mubr.msk.bf16.mxu1 %vm15879_vm0, %v18776_v0 }
 0x218   :  { %v16563_v55 = vadd.f32 %v2854_v7, %v16520_v32  ;;  %v13994_v47 = vpop.f32.mrb[105].mxu1  ;;  %v16571_v49 = vadd.f32 %v2797_v42, %v16524_v36  ;;  %v2799_v10 = vpop.f32.mrb[49].mxu0  ;;  %v15136_v32 = vld [vmem:[#allocation4 + $0x30] ss:$12 sps:$4 sm:$0xff]  }
 0x219   :  { %14195 = vmatpush3.bf16.msra.mxu1 %v15135_v38  ;;  %v2857_v24 = vpop.f32.mrb[106].mxu1  ;;  %v16574_v29 = vadd.f32 %v2799_v10, %v16527_v13  ;;  %5299 = vmatpush1.bf16.msra.mxu0 %v15132_v11  ;;  %v2801_v52 = vpop.f32.mrb[50].mxu0  ;;  %v15147_v36 = vld [vmem:[#allocation4 + $0x64] ss:$12 sps:$4 sm:$0xff]   ;;  %v15153_v13 = vld [vmem:[%s18766_s0 + $0xb8] ss:$0 sps:$4 sm:$0xff]  }
 0x21a   :  { %14196 = vmatprep.subr.bf16.mxu1 %v18776_v0  ;;  %v13995_v58 = vpop.f32.mrb[107].mxu1  ;;  %5300 = vmatprep.subr.bf16.mxu0 %v15138_v12  ;;  %v2802_v40 = vpop.f32.mrb[51].mxu0  ;;  %v15160_v11 = vld [vmem:[#allocation4 + $0xac] ss:$12 sps:$4 sm:$0xff]   ;;  %v15158_v47 = vld [vmem:[#allocation4 + $0xa8] ss:$12 sps:$4 sm:$0xff]  }
 0x21b   :  { %v15162_v40 = vld [vmem:[%s18766_s0 + $0x90] sm:$0xff]  }
 0x21c   :  { %14185 = vmatmul.mubr.bf16.gmra.mrb[184].mxu1 %v15144_v43  ;;  %5078 = vmatmul.mubr.bf16.gmra.mrb[88].mxu0 %v15144_v43 }
 0x21d   :  { %14197 = vmatpush3.bf16.msra.mxu1 %v15139_v22  ;;  %5301 = vmatpush1.bf16.msra.mxu0 %v15136_v32  ;;  %v15161_v22 = vld [vmem:[#allocation4 + $0xb0] ss:$12 sps:$4 sm:$0xff]  }
 0x21e   :  { %14198 = vmatprep.subr.bf16.mxu1 %v18776_v0  ;;  %5302 = vmatprep.subr.bf16.mxu0 %v15142_v59 }
 0x21f   :  { %5087 = vmatprep.mubr.bf16.mxu0 %v18780_v1  ;;  %14188 = vmatprep.mubr.msk.bf16.mxu1 %vm15879_vm0, %v18776_v0 }
 0x221   :  { %14199 = vmatpush3.bf16.msra.mxu1 %v15143_v2  ;;  %5303 = vmatpush1.bf16.msra.mxu0 %v15140_v62  ;;  %v15165_v2 = vld [vmem:[#allocation4 + $0x184] ss:$12 sps:$4 sm:$0xff]  }
 0x222   :  { %14200 = vmatprep.subr.bf16.mxu1 %v18776_v0  ;;  %5304 = vmatprep.subr.bf16.mxu0 %v15147_v36 }
 0x224   :  { %14189 = vmatmul.mubr.bf16.gmra.mrb[188].mxu1 %v15153_v13  ;;  %5088 = vmatmul.mubr.bf16.gmra.mrb[92].mxu0 %v15153_v13 }
 0x225   :  { %14201 = vmatpush3.bf16.msra.mxu1 %v15148_v3  ;;  %5305 = vmatpush1.bf16.msra.mxu0 %v15145_v8 }
 0x226   :  { %14202 = vmatprep.subr.bf16.mxu1 %v18776_v0  ;;  %5306 = vmatprep.subr.bf16.mxu0 %v15151_v41 }
 0x227   :  { %v3152_v56 = vpop.f32.mrb[108].mxu1  ;;  %14208 = vmatprep.mubr.msk.bf16.mxu1 %vm15879_vm0, %v18776_v0  ;;  %v3091_v18 = vpop.f32.mrb[28].mxu0  ;;  %5328 = vmatprep.mubr.bf16.mxu0 %v18780_v1 }
 0x228   :  { %v3176_v16 = vadd.f32 %v3152_v56, %v16542_v6  ;;  %v14014_v54 = vpop.f32.mrb[109].mxu1  ;;  %v3189_v46 = vadd.f32 %v3091_v18, %v16326_v44  ;;  %v3093_v25 = vpop.f32.mrb[29].mxu0  ;;  %v15154_v6 = vld [vmem:[#allocation4 + $0x90] ss:$12 sps:$4 sm:$0xff]  }
 0x229   :  { %v3155_v63 = vpop.f32.mrb[110].mxu1  ;;  %14203 = vmatpush3.bf16.msra.mxu1 %v15152_v9  ;;  %v3190_v30 = vadd.f32 %v3093_v25, %v16331_v45  ;;  %v3095_v60 = vpop.f32.mrb[30].mxu0  ;;  %5307 = vmatpush1.bf16.msra.mxu0 %v15149_v17  ;;  %v15166_v9 = vld [vmem:[#allocation4 + $0x188] ss:$12 sps:$4 sm:$0xff]  }
 0x22a   :  { %v3191_v5 = vadd.f32 %v3176_v16, %v16144_v33  ;;  %v3179_v35 = vadd.f32 %v3155_v63, %v16546_v48  ;;  %14204 = vmatprep.subr.bf16.mxu1 %v18776_v0  ;;  %v14015_v38 = vpop.f32.mrb[111].mxu1  ;;  %v3192_v12 = vadd.f32 %v3095_v60, %v16326_v44  ;;  %v3097_v7 = vpop.f32.mrb[31].mxu0  ;;  %5308 = vmatprep.subr.bf16.mxu0 %v15156_v14  ;;  %v3204_v24 = vmax.f32 %v3189_v46, 0.0  ;;  %v15163_v46 = vld [vmem:[#allocation4 + $0x180] ss:$12 sps:$4 sm:$0xff]  }
 0x22b   :  { %v3193_v43 = vadd.f32 %v3097_v7, %v16331_v45  ;;  %v3205_v32 = vmax.f32 %v3190_v30, 0.0  ;;  %v15169_v25 = vld [vmem:[#allocation4 + $0x19c] ss:$12 sps:$4 sm:$0xff]  }
 0x22c   :  { %v3194_v42 = vadd.f32 %v3179_v35, %v16144_v33  ;;  %v3206_v10 = vmax.f32 %v3191_v5, 0.0  ;;  %v3207_v48 = vmax.f32 %v3192_v12, 0.0  ;;  %v15170_v35 = vld [vmem:[#allocation4 + $0x1a0] ss:$12 sps:$4 sm:$0xff]  }
 0x22d   :  { %14205 = vmatpush3.bf16.msra.mxu1 %v15157_v19  ;;  %v3208_v58 = vmax.f32 %v3193_v43, 0.0  ;;  %5309 = vmatpush1.bf16.msra.mxu0 %v15154_v6 }
 0x22e   :  { %v3209_v52 = vmax.f32 %v3194_v42, 0.0  ;;  %14206 = vmatprep.subr.bf16.mxu1 %v18776_v0  ;;  %v16602_v59 = vpack.c.bf16 %v3207_v48, %v3204_v24  ;;  %5310 = vmatprep.subr.bf16.mxu0 %v15160_v11  ;;  %v15167_v11 = vld [vmem:[#allocation4 + $0x198] ss:$12 sps:$4 sm:$0xff]  }
 0x22f   :  { %v3160_v62 = vpop.f32.mrb[112].mxu1  ;;  %v16606_v13 = vpack.c.bf16 %v3208_v58, %v3205_v32  ;;  %v3101_v8 = vpop.f32.mrb[32].mxu0 }
 0x230   :  { %v16604_v36 = vpack.c.bf16 %v3209_v52, %v3206_v10  ;;  %v3182_v3 = vadd.f32 %v3160_v62, %v16554_v27  ;;  %v14018_v41 = vpop.f32.mrb[113].mxu1  ;;  %v3195_v17 = vadd.f32 %v3101_v8, %v16326_v44  ;;  %v3103_v56 = vpop.f32.mrb[33].mxu0 }
 0x231   :  { %v3163_v14 = vpop.f32.mrb[114].mxu1  ;;  %14207 = vmatpush3.bf16.msra.mxu1 %v15161_v22  ;;  %v3196_v18 = vadd.f32 %v3103_v56, %v16331_v45  ;;  %v3105_v19 = vpop.f32.mrb[34].mxu0  ;;  %5311 = vmatpush1.bf16.msra.mxu0 %v15158_v47  ;;  %v15173_v22 = vld [vmem:[#allocation4 + $0x1b4] ss:$12 sps:$4 sm:$0xff]   ;;  %v15171_v56 = vld [vmem:[#allocation4 + $0x1b0] ss:$12 sps:$4 sm:$0xff]  }
 0x232   :  { %v3197_v16 = vadd.f32 %v3182_v3, %v16144_v33  ;;  %v3185_v54 = vadd.f32 %v3163_v14, %v16557_v34  ;;  %14220 = vmatprep.subr.bf16.mxu1 %v18776_v0  ;;  %v14019_v27 = vpop.f32.mrb[115].mxu1  ;;  %v3210_v63 = vmax.f32 %v3195_v17, 0.0  ;;  %v16615_v5 = vadd.f32 %v3105_v19, %v16326_v44  ;;  %v3107_v30 = vpop.f32.mrb[35].mxu0  ;;  %5594 = vmatprep.subr.bf16.mxu0 %v15165_v2 }
 0x233   :  { %v3211_v6 = vmax.f32 %v3196_v18, 0.0  ;;  %v3199_v34 = vadd.f32 %v3107_v30, %v16331_v45  ;;  %v15182_v30 = vld [vmem:[#allocation4 + $0x1e4] ss:$12 sps:$4 sm:$0xff]  }
 0x234   :  { %v3212_v60 = vmax.f32 %v3197_v16, 0.0  ;;  %v3200_v38 = vadd.f32 %v3185_v54, %v16144_v33  ;;  %14209 = vmatmul.mubr.bf16.vlgmr.msra.gmra.mrb[192].mxu1 %v15162_v40  ;;  %v16619_v12 = vpack.c.bf16 %v3210_v63, %v3207_v48  ;;  %v3213_v7 = vmax.f32 %v16615_v5, 0.0  ;;  %5329 = vmatmul.mubr.bf16.vlgmr.msra.gmra.mrb[84].mxu0 %v15162_v40  ;;  %v15174_v48 = vld [vmem:[#allocation4 + $0x1b8] ss:$12 sps:$4 sm:$0xff]  }
 0x235   :  { %14221 = vmatpush3.bf16.msra.mxu1 %v15166_v9  ;;  %v16624_v43 = vpack.c.bf16 %v3211_v6, %v3208_v58  ;;  %v3214_v10 = vmax.f32 %v3199_v34, 0.0  ;;  %5595 = vmatpush1.bf16.msra.mxu0 %v15163_v46  ;;  %v15179_v58 = vld [vmem:[%s18766_s0 + $0x98] sm:$0xff]   ;;  %v15180_v34 = vld [vmem:[#allocation4 + $0x1e0] ss:$12 sps:$4 sm:$0xff]  }
 0x236   :  { %18812 = vst [vmem:[#allocation8_spill] sm:$0xff] %v16619_v12  ;;  %v16622_v42 = vpack.c.bf16 %v3212_v60, %v3209_v52  ;;  %v3215_v47 = vmax.f32 %v3200_v38, 0.0  ;;  %14222 = vmatprep.subr.bf16.mxu1 %v18776_v0  ;;  %v16627_v24 = vpack.c.bf16 %v3213_v7, %v3210_v63  ;;  %5596 = vmatprep.subr.bf16.mxu0 %v15169_v25  ;;  %v15177_v16 = vld [vmem:[#allocation4 + $0x1cc] ss:$12 sps:$4 sm:$0xff]   ;;  %v15178_v46 = vld [vmem:[#allocation4 + $0x1d0] ss:$12 sps:$4 sm:$0xff]  }
 0x237   :  { %v3168_v32 = vpop.f32.mrb[116].mxu1  ;;  %5338 = vmatprep.mubr.bf16.mxu0 %v18780_v1  ;;  %v16630_v62 = vpack.c.bf16 %v3214_v10, %v3211_v6  ;;  %v3111_v52 = vpop.f32.mrb[52].mxu0  ;;  %14212 = vmatprep.mubr.msk.bf16.mxu1 %vm15879_vm0, %v18776_v0  ;;  %v15175_v25 = vld [vmem:[#allocation4 + $0x1c8] ss:$12 sps:$4 sm:$0xff]   ;;  %v15617_v12 = vld [vmem:[%s18769_s3 + $0x304] ss:$8 sps:$4 sm:$0xff]  }
 0x238   :  { %18813 = vst [vmem:[#allocation9_spill] sm:$0xff] %v16622_v42  ;;  %v3188_v40 = vadd.f32 %v3168_v32, %v16563_v55  ;;  %v14022_v2 = vpop.f32.mrb[117].mxu1  ;;  %v16638_v3 = vpack.c.bf16 %v3215_v47, %v3212_v60  ;;  %v3186_v8 = vadd.f32 %v3111_v52, %v16571_v49  ;;  %v3113_v41 = vpop.f32.mrb[53].mxu0  ;;  %v15183_v6 = vld [vmem:[#allocation4 + $0x1e8] ss:$12 sps:$4 sm:$0xff]  }
 0x239   :  { %14223 = vmatpush3.bf16.msra.mxu1 %v15170_v35  ;;  %v3171_v9 = vpop.f32.mrb[118].mxu1  ;;  %v3187_v55 = vadd.f32 %v3113_v41, %v16574_v29  ;;  %5597 = vmatpush1.bf16.msra.mxu0 %v15167_v11  ;;  %v3115_v14 = vpop.f32.mrb[54].mxu0  ;;  %v15188_v35 = vld [vmem:[%s18766_s0 + $0xa0] ss:$0 sps:$4 sm:$0xff]   ;;  %v15186_v11 = vld [vmem:[#allocation4 + $0x1fc] ss:$12 sps:$4 sm:$0xff]  }
 0x23a   :  { %v3203_v17 = vadd.f32 %v3188_v40, %v16144_v33  ;;  %14224 = vmatprep.subr.bf16.mxu1 %v18776_v0  ;;  %v14023_v18 = vpop.f32.mrb[119].mxu1  ;;  %v3201_v54 = vadd.f32 %v3186_v8, %v16326_v44  ;;  %5598 = vmatprep.subr.bf16.mxu0 %v15173_v22  ;;  %v3116_v19 = vpop.f32.mrb[55].mxu0  ;;  %v15187_v22 = vld [vmem:[#allocation4 + $0x200] ss:$12 sps:$4 sm:$0xff]   ;;  %v15189_v32 = vld [vmem:[#allocation4 + $0x210] ss:$12 sps:$4 sm:$0xff]  }
 0x23b   :  { %v3202_v27 = vadd.f32 %v3187_v55, %v16331_v45  ;;  %v15195_v2 = vld [vmem:[#allocation4 + $0x22c] ss:$12 sps:$4 sm:$0xff]   ;;  %v15193_v8 = vld [vmem:[#allocation4 + $0x228] ss:$12 sps:$4 sm:$0xff]   ;;  %v15196_v41 = vld [vmem:[#allocation4 + $0x230] ss:$12 sps:$4 sm:$0xff]  }
 0x23c   :  { %v3218_v49 = vmax.f32 %v3203_v17, 0.0  ;;  %14213 = vmatmul.mubr.bf16.gmra.mrb[196].mxu1 %v15179_v58  ;;  %v3216_v63 = vmax.f32 %v3201_v54, 0.0  ;;  %5339 = vmatmul.mubr.bf16.gmra.mrb[88].mxu0 %v15179_v58  ;;  %v15200_v9 = vld [vmem:[#allocation4 + $0x244] ss:$12 sps:$4 sm:$0xff]   ;;  %v15201_v17 = vld [vmem:[#allocation4 + $0x248] ss:$12 sps:$4 sm:$0xff]  }
 0x23d   :  { %14225 = vmatpush3.bf16.msra.mxu1 %v15174_v48  ;;  %v3217_v5 = vmax.f32 %v3202_v27, 0.0  ;;  %5599 = vmatpush1.bf16.msra.mxu0 %v15171_v56  ;;  %v15192_v48 = vld [vmem:[#allocation4 + $0x218] ss:$12 sps:$4 sm:$0xff]   ;;  %v15198_v14 = vld [vmem:[#allocation4 + $0x240] ss:$12 sps:$4 sm:$0xff]  }
 0x23e   :  { %v16646_v29 = vpack.c.bf16 %v3218_v49, %v3215_v47  ;;  %14226 = vmatprep.subr.bf16.mxu1 %v18776_v0  ;;  %v16652_v60 = vpack.c.bf16 %v3216_v63, %v3213_v7  ;;  %5600 = vmatprep.subr.bf16.mxu0 %v15177_v16  ;;  %v15184_v47 = vld [vmem:[#allocation4 + $0x1f8] ss:$12 sps:$4 sm:$0xff]   ;;  %v15191_v7 = vld [vmem:[#allocation4 + $0x214] ss:$12 sps:$4 sm:$0xff]   ;;  %v15204_v19 = vld [vmem:[#allocation4 + $0x25c] ss:$12 sps:$4 sm:$0xff]  }
 0x23f   :  { %5348 = vmatprep.mubr.bf16.mxu0 %v18780_v1  ;;  %14216 = vmatprep.mubr.msk.bf16.mxu1 %vm15879_vm0, %v18776_v0  ;;  %v16657_v38 = vpack.c.bf16 %v3217_v5, %v3214_v10  ;;  %v15197_v56 = vld [vmem:[%s18766_s0 + $0x4] sm:$0xff]   ;;  %v15205_v49 = vld [vmem:[#allocation4 + $0x260] ss:$12 sps:$4 sm:$0xff]  }
 0x240   :  { %18814 = vst [vmem:[#allocation10_spill] sm:$0xff] %v16646_v29  ;;  %18815 = vst [vmem:[#allocation11_spill] sm:$0xff] %v16652_v60  ;;  %v15209_v27 = vld [vmem:[#allocation4 + $0x274] ss:$12 sps:$4 sm:$0xff]   ;;  %v15210_v63 = vld [vmem:[#allocation4 + $0x278] ss:$12 sps:$4 sm:$0xff]  }
 0x241   :  { %18816 = vst [vmem:[#allocation12_spill] sm:$0xff] %v16657_v38  ;;  %14227 = vmatpush3.bf16.msra.mxu1 %v15178_v46  ;;  %5601 = vmatpush1.bf16.msra.mxu0 %v15175_v25  ;;  %v15202_v46 = vld [vmem:[#allocation4 + $0x258] ss:$12 sps:$4 sm:$0xff]   ;;  %v15206_v25 = vld [vmem:[%s18766_s0 + $0xc] sm:$0xff]   ;;  %v15539_v29 = vld [vmem:[%s18769_s3 + $0xb4] ss:$8 sps:$4 sm:$0xff]  }
 0x242   :  { %14228 = vmatprep.subr.bf16.mxu1 %v18776_v0  ;;  %5602 = vmatprep.subr.bf16.mxu0 %v15182_v30  ;;  %v15207_v30 = vld [vmem:[#allocation4 + $0x270] ss:$12 sps:$4 sm:$0xff]   ;;  %v15534_v42 = vld [vmem:[%s18769_s3 + $0x4a0] ss:$8 sps:$4 sm:$0xff]  }
 0x243   :  { %v15611_v60 = vld [vmem:[%s18769_s3 + $0x174] ss:$8 sps:$4 sm:$0xff]   ;;  %v17769_v38 = vld [vmem:[%s18769_s3 + $0x560] ss:$8 sps:$4 sm:$0xff]  }
 0x244   :  { %14217 = vmatmul.mubr.bf16.gmra.mrb[200].mxu1 %v15188_v35  ;;  %5349 = vmatmul.mubr.bf16.gmra.mrb[96].mxu0 %v15188_v35  ;;  %18825 = vst [vmem:[#allocation20_spill] sm:$0xff] %v17769_v38 }
 0x245   :  { %14229 = vmatpush3.bf16.msra.mxu1 %v15183_v6  ;;  %5603 = vmatpush1.bf16.msra.mxu0 %v15180_v34 }
 0x246   :  { %14230 = vmatprep.subr.bf16.mxu1 %v18776_v0  ;;  %5604 = vmatprep.subr.bf16.mxu0 %v15186_v11 }
 0x247   :  { %14236 = vmatprep.mubr.msk.bf16.mxu1 %vm15879_vm0, %v18776_v0  ;;  %v16663_v10 = vpop.f32.mrb[120].mxu1  ;;  %5626 = vmatprep.mubr.bf16.mxu0 %v18780_v1 }
 0x248   :  { %v14042_v40 = vpop.f32.mrb[121].mxu1 }
 0x249   :  { %14231 = vmatpush3.bf16.msra.mxu1 %v15187_v22  ;;  %v16666_v52 = vpop.f32.mrb[122].mxu1  ;;  %5605 = vmatpush1.bf16.msra.mxu0 %v15184_v47  ;;  %v15214_v40 = vld [vmem:[#allocation4 + $0x290] ss:$12 sps:$4 sm:$0xff]  }
 0x24a   :  { %14232 = vmatprep.subr.bf16.mxu1 %v18776_v0  ;;  %v14043_v58 = vpop.f32.mrb[123].mxu1  ;;  %5606 = vmatprep.subr.bf16.mxu0 %v15191_v7 }
 0x24b   :  { %v15217_v58 = vld [vmem:[#allocation4 + $0x2a4] ss:$12 sps:$4 sm:$0xff]  }
 0x24d   :  { %14233 = vmatpush3.bf16.msra.mxu1 %v15192_v48  ;;  %5607 = vmatpush1.bf16.msra.mxu0 %v15189_v32  ;;  %v15213_v32 = vld [vmem:[#allocation4 + $0x28c] ss:$12 sps:$4 sm:$0xff]   ;;  %v15211_v48 = vld [vmem:[#allocation4 + $0x288] ss:$12 sps:$4 sm:$0xff]  }
 0x24e   :  { %14234 = vmatprep.subr.bf16.mxu1 %v18776_v0  ;;  %5608 = vmatprep.subr.bf16.mxu0 %v15195_v2  ;;  %v15218_v2 = vld [vmem:[#allocation4 + $0x2a8] ss:$12 sps:$4 sm:$0xff]  }
 0x24f   :  { %v16670_v55 = vpop.f32.mrb[124].mxu1 }
 0x250   :  { %v14046_v16 = vpop.f32.mrb[125].mxu1 }
 0x251   :  { %14235 = vmatpush3.bf16.msra.mxu1 %v15196_v41  ;;  %v16675_v18 = vpop.f32.mrb[126].mxu1  ;;  %5609 = vmatpush1.bf16.msra.mxu0 %v15193_v8  ;;  %v15223_v8 = vld [vmem:[%s18766_s0 + $0x14] ss:$0 sps:$4 sm:$0xff]   ;;  %v15215_v41 = vld [vmem:[#allocation4 + $0x2a0] ss:$12 sps:$4 sm:$0xff]  }
 0x252   :  { %14248 = vmatprep.subr.bf16.mxu1 %v18776_v0  ;;  %v14047_v54 = vpop.f32.mrb[127].mxu1  ;;  %5907 = vmatprep.subr.bf16.mxu0 %v15200_v9  ;;  %v15221_v9 = vld [vmem:[#allocation4 + $0x2bc] ss:$12 sps:$4 sm:$0xff]  }
 0x253   :  { %v15227_v54 = vld [vmem:[#allocation4 + $0x2d8] ss:$12 sps:$4 sm:$0xff]  }
 0x254   :  { %14237 = vmatmul.mubr.bf16.vlgmr.msra.gmra.mrb[204].mxu1 %v15197_v56  ;;  %5627 = vmatmul.mubr.bf16.vlgmr.msra.gmra.mrb[84].mxu0 %v15197_v56  ;;  %v15219_v56 = vld [vmem:[#allocation4 + $0x2b8] ss:$12 sps:$4 sm:$0xff]  }
 0x255   :  { %14249 = vmatpush3.bf16.msra.mxu1 %v15201_v17  ;;  %5908 = vmatpush1.bf16.msra.mxu0 %v15198_v14  ;;  %v15222_v17 = vld [vmem:[#allocation4 + $0x2c0] ss:$12 sps:$4 sm:$0xff]  }
 0x256   :  { %14250 = vmatprep.subr.bf16.mxu1 %v18776_v0  ;;  %5909 = vmatprep.subr.bf16.mxu0 %v15204_v19  ;;  %v15226_v14 = vld [vmem:[#allocation4 + $0x2d4] ss:$12 sps:$4 sm:$0xff]  }
 0x257   :  { %14240 = vmatprep.mubr.msk.bf16.mxu1 %vm15879_vm0, %v18776_v0  ;;  %v16684_v5 = vpop.f32.mrb[128].mxu1  ;;  %v16686_v35 = vpop.f32.mrb[64].mxu0  ;;  %5636 = vmatprep.mubr.bf16.mxu0 %v18780_v1 }
 0x258   :  { %v14050_v6 = vpop.f32.mrb[129].mxu1  ;;  %v16689_v34 = vpop.f32.mrb[65].mxu0 }
 0x259   :  { %14251 = vmatpush3.bf16.msra.mxu1 %v15205_v49  ;;  %v3567_v11 = vpop.f32.mrb[130].mxu1  ;;  %5910 = vmatpush1.bf16.msra.mxu0 %v15202_v46  ;;  %v3511_v22 = vpop.f32.mrb[66].mxu0  ;;  %v15231_v6 = vld [vmem:[#allocation4 + $0x2f0] ss:$12 sps:$4 sm:$0xff]  }
 0x25a   :  { %14252 = vmatprep.subr.bf16.mxu1 %v18776_v0  ;;  %v14051_v47 = vpop.f32.mrb[131].mxu1  ;;  %5911 = vmatprep.subr.bf16.mxu0 %v15209_v27  ;;  %v3512_v7 = vpop.f32.mrb[67].mxu0  ;;  %v15235_v11 = vld [vmem:[#allocation4 + $0x304] ss:$12 sps:$4 sm:$0xff]   ;;  %v15236_v22 = vld [vmem:[#allocation4 + $0x308] ss:$12 sps:$4 sm:$0xff]  }
 0x25b   :  { %v15233_v7 = vld [vmem:[#allocation4 + $0x300] ss:$12 sps:$4 sm:$0xff]  }
 0x25c   :  { %14241 = vmatmul.mubr.bf16.gmra.mrb[208].mxu1 %v15206_v25  ;;  %5637 = vmatmul.mubr.bf16.gmra.mrb[88].mxu0 %v15206_v25  ;;  %v15224_v25 = vld [vmem:[#allocation4 + $0x2d0] ss:$12 sps:$4 sm:$0xff]  }
 0x25d   :  { %14253 = vmatpush3.bf16.msra.mxu1 %v15210_v63  ;;  %5912 = vmatpush1.bf16.msra.mxu0 %v15207_v30  ;;  %v15230_v63 = vld [vmem:[#allocation4 + $0x2ec] ss:$12 sps:$4 sm:$0xff]  }
 0x25e   :  { %14254 = vmatprep.subr.bf16.mxu1 %v18776_v0  ;;  %5913 = vmatprep.subr.bf16.mxu0 %v15213_v32 }
 0x25f   :  { %5646 = vmatprep.mubr.bf16.mxu0 %v18780_v1  ;;  %14244 = vmatprep.mubr.msk.bf16.mxu1 %vm15879_vm0, %v18776_v0 }
 0x261   :  { %14255 = vmatpush3.bf16.msra.mxu1 %v15214_v40  ;;  %5914 = vmatpush1.bf16.msra.mxu0 %v15211_v48 }
 0x262   :  { %14256 = vmatprep.subr.bf16.mxu1 %v18776_v0  ;;  %5915 = vmatprep.subr.bf16.mxu0 %v15217_v58 }
 0x264   :  { %14245 = vmatmul.mubr.bf16.gmra.mrb[212].mxu1 %v15223_v8  ;;  %5647 = vmatmul.mubr.bf16.gmra.mrb[100].mxu0 %v15223_v8  ;;  %v15239_v8 = vld [vmem:[#allocation4 + $0x31c] ss:$12 sps:$4 sm:$0xff]  }
 0x265   :  { %14257 = vmatpush3.bf16.msra.mxu1 %v15218_v2  ;;  %5916 = vmatpush1.bf16.msra.mxu0 %v15215_v41  ;;  %v15240_v41 = vld [vmem:[#allocation4 + $0x320] ss:$12 sps:$4 sm:$0xff]  }
 0x266   :  { %14258 = vmatprep.subr.bf16.mxu1 %v18776_v0  ;;  %5917 = vmatprep.subr.bf16.mxu0 %v15221_v9  ;;  %v15244_v9 = vld [vmem:[#allocation4 + $0x334] ss:$12 sps:$4 sm:$0xff]  }
 0x267   :  { %v3809_v16 = vpop.f32.mrb[132].mxu1  ;;  %14264 = vmatprep.mubr.msk.bf16.mxu1 %vm15879_vm0, %v18776_v0  ;;  %5939 = vmatprep.mubr.bf16.mxu0 %v18780_v1 }
 0x268   :  { %v16704_v19 = vadd.f32 %v3809_v16, %v16663_v10  ;;  %v14070_v46 = vpop.f32.mrb[133].mxu1  ;;  %v15228_v10 = vld [vmem:[#allocation4 + $0x2e8] ss:$12 sps:$4 sm:$0xff]   ;;  %v15242_v16 = vld [vmem:[#allocation4 + $0x330] ss:$12 sps:$4 sm:$0xff]  }
 0x269   :  { %v3812_v49 = vpop.f32.mrb[134].mxu1  ;;  %14259 = vmatpush3.bf16.msra.mxu1 %v15222_v17  ;;  %5918 = vmatpush1.bf16.msra.mxu0 %v15219_v56  ;;  %v15245_v17 = vld [vmem:[#allocation4 + $0x338] ss:$12 sps:$4 sm:$0xff]  }
 0x26a   :  { %v16708_v27 = vadd.f32 %v3812_v49, %v16666_v52  ;;  %14260 = vmatprep.subr.bf16.mxu1 %v18776_v0  ;;  %v14071_v30 = vpop.f32.mrb[135].mxu1  ;;  %5919 = vmatprep.subr.bf16.mxu0 %v15226_v14  ;;  %v15232_v52 = vld [vmem:[%s18766_s0 + $0x1c] sm:$0xff]  }
 0x26d   :  { %14261 = vmatpush3.bf16.msra.mxu1 %v15227_v54  ;;  %5920 = vmatpush1.bf16.msra.mxu0 %v15224_v25 }
 0x26e   :  { %14262 = vmatprep.subr.bf16.mxu1 %v18776_v0  ;;  %5921 = vmatprep.subr.bf16.mxu0 %v15230_v63 }
 0x26f   :  { %v3817_v47 = vpop.f32.mrb[136].mxu1 }
 0x270   :  { %v16716_v32 = vadd.f32 %v3817_v47, %v16670_v55  ;;  %v14074_v48 = vpop.f32.mrb[137].mxu1  ;;  %v15237_v55 = vld [vmem:[#allocation4 + $0x318] ss:$12 sps:$4 sm:$0xff]  }
 0x271   :  { %14263 = vmatpush3.bf16.msra.mxu1 %v15231_v6  ;;  %v3820_v40 = vpop.f32.mrb[138].mxu1  ;;  %5922 = vmatpush1.bf16.msra.mxu0 %v15228_v10  ;;  %v15252_v47 = vld [vmem:[#allocation4 + $0x364] ss:$12 sps:$4 sm:$0xff]   ;;  %v15256_v48 = vld [vmem:[#allocation4 + $0x37c] ss:$12 sps:$4 sm:$0xff]  }
 0x272   :  { %14276 = vmatprep.subr.bf16.mxu1 %v18776_v0  ;;  %v16720_v58 = vadd.f32 %v3820_v40, %v16675_v18  ;;  %v14075_v2 = vpop.f32.mrb[139].mxu1  ;;  %6220 = vmatprep.subr.bf16.mxu0 %v15235_v11  ;;  %v15241_v18 = vld [vmem:[%s18766_s0 + $0x24] sm:$0xff]   ;;  %v15248_v11 = vld [vmem:[#allocation4 + $0x34c] ss:$12 sps:$4 sm:$0xff]  }
 0x273   :  { %v15257_v40 = vld [vmem:[#allocation4 + $0x380] ss:$12 sps:$4 sm:$0xff]   ;;  %v15254_v2 = vld [vmem:[#allocation4 + $0x378] ss:$12 sps:$4 sm:$0xff]  }
 0x274   :  { %14265 = vmatmul.mubr.bf16.vlgmr.msra.gmra.mrb[216].mxu1 %v15232_v52  ;;  %5940 = vmatmul.mubr.bf16.vlgmr.msra.gmra.mrb[84].mxu0 %v15232_v52  ;;  %v15258_v52 = vld [vmem:[%s18766_s0 + $0x2c] ss:$0 sps:$4 sm:$0xff]  }
 0x275   :  { %14277 = vmatpush3.bf16.msra.mxu1 %v15236_v22  ;;  %6221 = vmatpush1.bf16.msra.mxu0 %v15233_v7  ;;  %v15249_v22 = vld [vmem:[#allocation4 + $0x350] ss:$12 sps:$4 sm:$0xff]   ;;  %v15250_v7 = vld [vmem:[#allocation4 + $0x360] ss:$12 sps:$4 sm:$0xff]  }
 0x276   :  { %14278 = vmatprep.subr.bf16.mxu1 %v18776_v0  ;;  %6222 = vmatprep.subr.bf16.mxu0 %v15239_v8 }
 0x277   :  { %14268 = vmatprep.mubr.msk.bf16.mxu1 %vm15879_vm0, %v18776_v0  ;;  %v3825_v56 = vpop.f32.mrb[140].mxu1  ;;  %v3768_v14 = vpop.f32.mrb[68].mxu0  ;;  %5949 = vmatprep.mubr.bf16.mxu0 %v18780_v1 }
 0x278   :  { %v16729_v54 = vadd.f32 %v3825_v56, %v16684_v5  ;;  %v14078_v46 = vpop.f32.mrb[141].mxu1  ;;  %v16733_v49 = vadd.f32 %v3768_v14, %v16686_v35  ;;  %v3770_v25 = vpop.f32.mrb[69].mxu0  ;;  %v15246_v35 = vld [vmem:[#allocation4 + $0x348] ss:$12 sps:$4 sm:$0xff]   ;;  %v15259_v14 = vld [vmem:[#allocation4 + $0x390] ss:$12 sps:$4 sm:$0xff]  }
 0x279   :  { %14279 = vmatpush3.bf16.msra.mxu1 %v15240_v41  ;;  %v3828_v63 = vpop.f32.mrb[142].mxu1  ;;  %v16736_v30 = vadd.f32 %v3770_v25, %v16689_v34  ;;  %6223 = vmatpush1.bf16.msra.mxu0 %v15237_v55  ;;  %v3772_v6 = vpop.f32.mrb[70].mxu0  ;;  %v15253_v34 = vld [vmem:[#allocation4 + $0x368] ss:$12 sps:$4 sm:$0xff]   ;;  %v15265_v46 = vld [vmem:[#allocation4 + $0x3ac] ss:$12 sps:$4 sm:$0xff]  }
 0x27a   :  { %14280 = vmatprep.subr.bf16.mxu1 %v18776_v0  ;;  %v14079_v10 = vpop.f32.mrb[143].mxu1  ;;  %6224 = vmatprep.subr.bf16.mxu0 %v15244_v9  ;;  %v3773_v5 = vpop.f32.mrb[71].mxu0  ;;  %v15261_v41 = vld [vmem:[#allocation4 + $0x394] ss:$12 sps:$4 sm:$0xff]   ;;  %v15266_v25 = vld [vmem:[#allocation4 + $0x3b0] ss:$12 sps:$4 sm:$0xff]  }
 0x27b   :  { %v15267_v5 = vld [vmem:[%s18766_s0 + $0x34] sm:$0xff]  }
 0x27c   :  { %14269 = vmatmul.mubr.bf16.gmra.mrb[220].mxu1 %v15241_v18  ;;  %5950 = vmatmul.mubr.bf16.gmra.mrb[88].mxu0 %v15241_v18  ;;  %v15262_v18 = vld [vmem:[#allocation4 + $0x398] ss:$12 sps:$4 sm:$0xff]  }
 0x27d   :  { %14281 = vmatpush3.bf16.msra.mxu1 %v15245_v17  ;;  %6225 = vmatpush1.bf16.msra.mxu0 %v15242_v16 }
 0x27e   :  { %14282 = vmatprep.subr.bf16.mxu1 %v18776_v0  ;;  %6226 = vmatprep.subr.bf16.mxu0 %v15248_v11 }
 0x27f   :  { %5959 = vmatprep.mubr.bf16.mxu0 %v18780_v1  ;;  %14272 = vmatprep.mubr.msk.bf16.mxu1 %vm15879_vm0, %v18776_v0 }
 0x281   :  { %14283 = vmatpush3.bf16.msra.mxu1 %v15249_v22  ;;  %6227 = vmatpush1.bf16.msra.mxu0 %v15246_v35  ;;  %v15268_v35 = vld [vmem:[%s18769_s3 + $0x180] ss:$8 sps:$4 sm:$0xff]  }
 0x282   :  { %14284 = vmatprep.subr.bf16.mxu1 %v18776_v0  ;;  %6228 = vmatprep.subr.bf16.mxu0 %v15252_v47 }
 0x284   :  { %14273 = vmatmul.mubr.bf16.gmra.mrb[224].mxu1 %v15258_v52  ;;  %5960 = vmatmul.mubr.bf16.gmra.mrb[104].mxu0 %v15258_v52  ;;  %v15277_v52 = vld [vmem:[%s18769_s3 + $0x1a4] ss:$8 sps:$4 sm:$0xff]  }
 0x285   :  { %14285 = vmatpush3.bf16.msra.mxu1 %v15253_v34  ;;  %6229 = vmatpush1.bf16.msra.mxu0 %v15250_v7 }
 0x286   :  { %14286 = vmatprep.subr.bf16.mxu1 %v18776_v0  ;;  %6230 = vmatprep.subr.bf16.mxu0 %v15256_v48 }
 0x287   :  { %v4107_v8 = vpop.f32.mrb[144].mxu1  ;;  %14292 = vmatprep.mubr.msk.bf16.mxu1 %vm15879_vm0, %v18776_v0  ;;  %6252 = vmatprep.mubr.bf16.mxu0 %v18780_v1 }
 0x288   :  { %v16751_v55 = vadd.f32 %v4107_v8, %v16704_v19  ;;  %v14098_v9 = vpop.f32.mrb[145].mxu1  ;;  %v15263_v19 = vld [vmem:[#allocation4 + $0x3a8] ss:$12 sps:$4 sm:$0xff]  }
 0x289   :  { %v4110_v17 = vpop.f32.mrb[146].mxu1  ;;  %14287 = vmatpush3.bf16.msra.mxu1 %v15257_v40  ;;  %6231 = vmatpush1.bf16.msra.mxu0 %v15254_v2  ;;  %v15274_v40 = vld [vmem:[%s18766_s0 + $0x3c] sm:$0xff]  }
 0x28a   :  { %v16755_v56 = vadd.f32 %v4110_v17, %v16708_v27  ;;  %14288 = vmatprep.subr.bf16.mxu1 %v18776_v0  ;;  %v14099_v16 = vpop.f32.mrb[147].mxu1  ;;  %6232 = vmatprep.subr.bf16.mxu0 %v15261_v41  ;;  %v15270_v27 = vld [vmem:[%s18769_s3 + $0x184] ss:$8 sps:$4 sm:$0xff]  }
 0x28d   :  { %14289 = vmatpush3.bf16.msra.mxu1 %v15262_v18  ;;  %6233 = vmatpush1.bf16.msra.mxu0 %v15259_v14 }
 0x28e   :  { %14290 = vmatprep.subr.bf16.mxu1 %v18776_v0  ;;  %6234 = vmatprep.subr.bf16.mxu0 %v15265_v46  ;;  %v15280_v46 = vld [vmem:[%s18769_s3 + $0x1b4] ss:$8 sps:$4 sm:$0xff]  }
 0x28f   :  { %v4115_v63 = vpop.f32.mrb[148].mxu1 }
 0x290   :  { %v16763_v6 = vadd.f32 %v4115_v63, %v16716_v32  ;;  %v14102_v10 = vpop.f32.mrb[149].mxu1  ;;  %v15273_v32 = vld [vmem:[%s18769_s3 + $0x194] ss:$8 sps:$4 sm:$0xff]  }
 0x291   :  { %v4118_v11 = vpop.f32.mrb[150].mxu1  ;;  %14291 = vmatpush3.bf16.msra.mxu1 %v15266_v25  ;;  %6235 = vmatpush1.bf16.msra.mxu0 %v15263_v19  ;;  %v15281_v25 = vld [vmem:[%s18766_s0 + $0x44] ss:$0 sps:$4 sm:$0xff]   ;;  %v15282_v19 = vld [vmem:[%s18769_s3 + $0x1c0] ss:$8 sps:$4 sm:$0xff]  }
 0x292   :  { %v16769_v22 = vadd.f32 %v4118_v11, %v16720_v58  ;;  %v14103_v47 = vpop.f32.mrb[151].mxu1  ;;  %8894 = vmatprep.subr.bf16.mxu1 %v15270_v27  ;;  %6772 = vmatprep.subr.bf16.mxu0 %v15270_v27  ;;  %v15271_v58 = vld [vmem:[%s18769_s3 + $0x190] ss:$8 sps:$4 sm:$0xff]   ;;  %v15287_v63 = vld [vmem:[%s18769_s3 + $0x1d4] ss:$8 sps:$4 sm:$0xff]  }
 0x293   :  { %v15285_v27 = vld [vmem:[%s18769_s3 + $0x1d0] ss:$8 sps:$4 sm:$0xff]  }
 0x294   :  { %14293 = vmatmul.mubr.bf16.vlgmr.msra.gmra.mrb[228].mxu1 %v15267_v5  ;;  %6253 = vmatmul.mubr.bf16.vlgmr.msra.gmra.mrb[84].mxu0 %v15267_v5  ;;  %v15290_v5 = vld [vmem:[%s18769_s3 + $0x1e4] ss:$8 sps:$4 sm:$0xff]  }
 0x295   :  { %14296 = vmatprep.mubr.msk.bf16.mxu1 %vm15879_vm0, %v18776_v0  ;;  %6773 = vmatpush1.bf16.msra.mxu0 %v15268_v35 }
 0x296   :  { %6262 = vmatprep.mubr.bf16.mxu0 %v18780_v1  ;;  %6774 = vmatprep.subr.bf16.mxu0 %v15273_v32 }
 0x297   :  { %v4123_v34 = vpop.f32.mrb[152].mxu1  ;;  %8895 = vmatpush1.bf16.msra.mxu1 %v15268_v35  ;;  %v4066_v48 = vpop.f32.mrb[72].mxu0 }
 0x298   :  { %v16787_v7 = vadd.f32 %v4123_v34, %v16729_v54  ;;  %v14106_v2 = vpop.f32.mrb[153].mxu1  ;;  %8896 = vmatprep.subr.bf16.mxu1 %v15273_v32  ;;  %v16793_v8 = vadd.f32 %v4066_v48, %v16733_v49  ;;  %v4068_v41 = vpop.f32.mrb[73].mxu0  ;;  %v15275_v54 = vld [vmem:[%s18769_s3 + $0x1a0] ss:$8 sps:$4 sm:$0xff]   ;;  %v15278_v49 = vld [vmem:[%s18769_s3 + $0x1b0] ss:$8 sps:$4 sm:$0xff]  }
 0x299   :  { %v4126_v9 = vpop.f32.mrb[154].mxu1  ;;  %v16796_v18 = vadd.f32 %v4068_v41, %v16736_v30  ;;  %6775 = vmatpush1.bf16.msra.mxu0 %v15271_v58  ;;  %v4070_v17 = vpop.f32.mrb[74].mxu0  ;;  %v15284_v30 = vld [vmem:[%s18769_s3 + $0x1c4] ss:$8 sps:$4 sm:$0xff]   ;;  %v15293_v34 = vld [vmem:[%s18769_s3 + $0x1f4] ss:$8 sps:$4 sm:$0xff]  }
 0x29a   :  { %v14107_v14 = vpop.f32.mrb[155].mxu1  ;;  %6776 = vmatprep.subr.bf16.mxu0 %v15277_v52  ;;  %v4071_v16 = vpop.f32.mrb[75].mxu0  ;;  %v15294_v9 = vld [vmem:[%s18769_s3 + $0x200] ss:$8 sps:$4 sm:$0xff]   ;;  %v15299_v17 = vld [vmem:[%s18769_s3 + $0x214] ss:$8 sps:$4 sm:$0xff]  }
 0x29b   :  { %8897 = vmatpush1.bf16.msra.mxu1 %v15271_v58  ;;  %v15302_v14 = vld [vmem:[%s18769_s3 + $0x224] ss:$8 sps:$4 sm:$0xff]  }
 0x29c   :  { %14297 = vmatmul.mubr.bf16.gmra.mrb[232].mxu1 %v15274_v40  ;;  %8898 = vmatprep.subr.bf16.mxu1 %v15277_v52  ;;  %v15296_v52 = vld [vmem:[%s18769_s3 + $0x204] ss:$8 sps:$4 sm:$0xff]  }
 0x29d   :  { %6263 = vmatmul.mubr.bf16.gmra.mrb[88].mxu0 %v15274_v40  ;;  %14300 = vmatprep.mubr.msk.bf16.mxu1 %vm15879_vm0, %v18776_v0  ;;  %v15509_v0 = vld [vmem:[%s18769_s3 + $0x64] ss:$8 sps:$4 sm:$0xff]  }
 0x29e   :  { %6777 = vmatpush1.bf16.msra.mxu0 %v15275_v54  ;;  %6272 = vmatprep.mubr.bf16.mxu0 %v18780_v1 }
 0x29f   :  { %6778 = vmatprep.subr.bf16.mxu0 %v15280_v46  ;;  %8899 = vmatpush1.bf16.msra.mxu1 %v15275_v54 }
 0x2a0   :  { %8900 = vmatprep.subr.bf16.mxu1 %v15280_v46 }
 0x2a2   :  { %6779 = vmatpush1.bf16.msra.mxu0 %v15278_v49 }
 0x2a3   :  { %6780 = vmatprep.subr.bf16.mxu0 %v15284_v30  ;;  %8901 = vmatpush1.bf16.msra.mxu1 %v15278_v49 }
 0x2a4   :  { %8902 = vmatprep.subr.bf16.mxu1 %v15284_v30  ;;  %14301 = vmatmul.mubr.bf16.gmra.mrb[236].mxu1 %v15281_v25 }
 0x2a5   :  { %6273 = vmatmul.mubr.bf16.gmra.mrb[108].mxu0 %v15281_v25 }
 0x2a6   :  { %6781 = vmatpush1.bf16.msra.mxu0 %v15282_v19  ;;  %6804 = vmatprep.mubr.bf16.mxu0 %v16606_v13  ;;  %v15288_v13 = vld [vmem:[%s18769_s3 + $0x1e0] ss:$8 sps:$4 sm:$0xff]  }
 0x2a7   :  { %v4421_v10 = vpop.f32.mrb[156].mxu1  ;;  %6782 = vmatprep.subr.bf16.mxu0 %v15287_v63  ;;  %8903 = vmatpush1.bf16.msra.mxu1 %v15282_v19 }
 0x2a8   :  { %v16830_v11 = vadd.f32 %v4421_v10, %v16751_v55  ;;  %v14126_v35 = vpop.f32.mrb[157].mxu1  ;;  %8904 = vmatprep.subr.bf16.mxu1 %v15287_v63  ;;  %v15291_v55 = vld [vmem:[%s18769_s3 + $0x1f0] ss:$8 sps:$4 sm:$0xff]  }
 0x2a9   :  { %v4424_v47 = vpop.f32.mrb[158].mxu1  ;;  %v15305_v35 = vld [vmem:[%s18769_s3 + $0x234] ss:$8 sps:$4 sm:$0xff]  }
 0x2aa   :  { %v16833_v32 = vadd.f32 %v4424_v47, %v16755_v56  ;;  %6783 = vmatpush1.bf16.msra.mxu0 %v15285_v27  ;;  %v14127_v58 = vpop.f32.mrb[159].mxu1  ;;  %v15306_v47 = vld [vmem:[%s18769_s3 + $0x240] ss:$8 sps:$4 sm:$0xff]  }
 0x2ab   :  { %6784 = vmatprep.subr.bf16.mxu0 %v15290_v5  ;;  %8905 = vmatpush1.bf16.msra.mxu1 %v15285_v27  ;;  %v15300_v27 = vld [vmem:[%s18769_s3 + $0x220] ss:$8 sps:$4 sm:$0xff]   ;;  %v15309_v58 = vld [vmem:[%s18769_s3 + $0x250] ss:$8 sps:$4 sm:$0xff]  }
 0x2ac   :  { %8906 = vmatprep.subr.bf16.mxu1 %v15290_v5 }
 0x2ae   :  { %6785 = vmatpush1.bf16.msra.mxu0 %v15288_v13 }
 0x2af   :  { %v4429_v56 = vpop.f32.mrb[160].mxu1  ;;  %6786 = vmatprep.subr.bf16.mxu0 %v15293_v34  ;;  %8907 = vmatpush1.bf16.msra.mxu1 %v15288_v13  ;;  %v15311_v13 = vld [vmem:[%s18769_s3 + $0x254] ss:$8 sps:$4 sm:$0xff]  }
 0x2b0   :  { %v16848_v48 = vadd.f32 %v4429_v56, %v16763_v6  ;;  %v14130_v40 = vpop.f32.mrb[161].mxu1  ;;  %8908 = vmatprep.subr.bf16.mxu1 %v15293_v34  ;;  %v15297_v6 = vld [vmem:[%s18769_s3 + $0x210] ss:$8 sps:$4 sm:$0xff]  }
 0x2b1   :  { %v4432_v2 = vpop.f32.mrb[162].mxu1 }
 0x2b2   :  { %v16851_v41 = vadd.f32 %v4432_v2, %v16769_v22  ;;  %6787 = vmatpush1.bf16.msra.mxu0 %v15291_v55  ;;  %v14131_v54 = vpop.f32.mrb[163].mxu1 }
 0x2b3   :  { %6788 = vmatprep.subr.bf16.mxu0 %v15296_v52  ;;  %8909 = vmatpush1.bf16.msra.mxu1 %v15291_v55  ;;  %v15314_v55 = vld [vmem:[%s18769_s3 + $0x264] ss:$8 sps:$4 sm:$0xff]  }
 0x2b4   :  { %8910 = vmatprep.subr.bf16.mxu1 %v15296_v52 }
 0x2b6   :  { %6789 = vmatpush1.bf16.msra.mxu0 %v15294_v9 }
 0x2b7   :  { %v4437_v22 = vpop.f32.mrb[164].mxu1  ;;  %6790 = vmatprep.subr.bf16.mxu0 %v15299_v17  ;;  %8911 = vmatpush1.bf16.msra.mxu1 %v15294_v9  ;;  %v4380_v46 = vpop.f32.mrb[76].mxu0 }
 0x2b8   :  { %v16866_v16 = vadd.f32 %v4437_v22, %v16787_v7  ;;  %v14134_v49 = vpop.f32.mrb[165].mxu1  ;;  %8912 = vmatprep.subr.bf16.mxu1 %v15299_v17  ;;  %v16869_v30 = vadd.f32 %v4380_v46, %v16793_v8  ;;  %v4382_v25 = vpop.f32.mrb[77].mxu0  ;;  %v15303_v8 = vld [vmem:[%s18769_s3 + $0x230] ss:$8 sps:$4 sm:$0xff]   ;;  %v15312_v46 = vld [vmem:[%s18769_s3 + $0x260] ss:$8 sps:$4 sm:$0xff]  }
 0x2b9   :  { %v4440_v19 = vpop.f32.mrb[166].mxu1  ;;  %v16872_v63 = vadd.f32 %v4382_v25, %v16796_v18  ;;  %v4384_v10 = vpop.f32.mrb[78].mxu0  ;;  %v15308_v18 = vld [vmem:[%s18769_s3 + $0x244] ss:$8 sps:$4 sm:$0xff]  }
 0x2ba   :  { %6791 = vmatpush1.bf16.msra.mxu0 %v15297_v6  ;;  %v14135_v5 = vpop.f32.mrb[167].mxu1  ;;  %v4385_v7 = vpop.f32.mrb[79].mxu0  ;;  %v15317_v19 = vld [vmem:[%s18769_s3 + $0x274] ss:$8 sps:$4 sm:$0xff]  }
 0x2bb   :  { %6792 = vmatprep.subr.bf16.mxu0 %v15302_v14  ;;  %8913 = vmatpush1.bf16.msra.mxu1 %v15297_v6 }
 0x2bc   :  { %8914 = vmatprep.subr.bf16.mxu1 %v15302_v14 }
 0x2be   :  { %6793 = vmatpush1.bf16.msra.mxu0 %v15300_v27 }
 0x2bf   :  { %6794 = vmatprep.subr.bf16.mxu0 %v15305_v35  ;;  %8915 = vmatpush1.bf16.msra.mxu1 %v15300_v27 }
 0x2c0   :  { %8916 = vmatprep.subr.bf16.mxu1 %v15305_v35 }
 0x2c2   :  { %6795 = vmatpush1.bf16.msra.mxu0 %v15303_v8 }
 0x2c3   :  { %6796 = vmatprep.subr.bf16.mxu0 %v15308_v18  ;;  %8917 = vmatpush1.bf16.msra.mxu1 %v15303_v8 }
 0x2c4   :  { %8918 = vmatprep.subr.bf16.mxu1 %v15308_v18 }
 0x2c6   :  { %6797 = vmatpush1.bf16.msra.mxu0 %v15306_v47 }
 0x2c7   :  { %v4734_v34 = vpop.f32.mrb[168].mxu1  ;;  %6798 = vmatprep.subr.bf16.mxu0 %v15311_v13  ;;  %8919 = vmatpush1.bf16.msra.mxu1 %v15306_v47  ;;  %v4673_v52 = vpop.f32.mrb[56].mxu0  ;;  %v15315_v47 = vld [vmem:[%s18769_s3 + $0x270] ss:$8 sps:$4 sm:$0xff]  }
 0x2c8   :  { %v4758_v56 = vadd.f32 %v4734_v34, %v16830_v11  ;;  %v14154_v40 = vpop.f32.mrb[169].mxu1  ;;  %8920 = vmatprep.subr.bf16.mxu1 %v15311_v13  ;;  %v4771_v2 = vadd.f32 %v4673_v52, %v16326_v44  ;;  %v4675_v9 = vpop.f32.mrb[57].mxu0 }
 0x2c9   :  { %v4737_v54 = vpop.f32.mrb[170].mxu1  ;;  %v4772_v6 = vadd.f32 %v4675_v9, %v16331_v45  ;;  %v4677_v14 = vpop.f32.mrb[58].mxu0 }
 0x2ca   :  { %v4773_v17 = vadd.f32 %v4758_v56, %v16144_v33  ;;  %v4761_v22 = vadd.f32 %v4737_v54, %v16833_v32  ;;  %6799 = vmatpush1.bf16.msra.mxu0 %v15309_v58  ;;  %v14155_v11 = vpop.f32.mrb[171].mxu1  ;;  %v4774_v49 = vadd.f32 %v4677_v14, %v16326_v44  ;;  %v4679_v25 = vpop.f32.mrb[59].mxu0  ;;  %v4786_v10 = vmax.f32 %v4771_v2, 0.0 }
 0x2cb   :  { %6800 = vmatprep.subr.bf16.mxu0 %v15314_v55  ;;  %8921 = vmatpush1.bf16.msra.mxu1 %v15309_v58  ;;  %v4775_v32 = vadd.f32 %v4679_v25, %v16331_v45  ;;  %v4787_v35 = vmax.f32 %v4772_v6, 0.0  ;;  %v15320_v58 = vld [vmem:[%s18769_s3 + $0x284] ss:$8 sps:$4 sm:$0xff]   ;;  %v16932_v11 = vld [vmem:[%s18769_s3 + $0x280] ss:$8 sps:$4 sm:$0xff]  }
 0x2cc   :  { %v4776_v27 = vadd.f32 %v4761_v22, %v16144_v33  ;;  %8922 = vmatprep.subr.bf16.mxu1 %v15314_v55  ;;  %v4789_v5 = vmax.f32 %v4774_v49, 0.0  ;;  %v4788_v7 = vmax.f32 %v4773_v17, 0.0 }
 0x2cd   :  { %v4790_v18 = vmax.f32 %v4775_v32, 0.0 }
 0x2ce   :  { %v4791_v8 = vmax.f32 %v4776_v27, 0.0  ;;  %6801 = vmatpush1.bf16.msra.mxu0 %v15312_v46  ;;  %v16915_v13 = vpack.c.bf16 %v4789_v5, %v4786_v10  ;;  %v16938_v27 = vld [vmem:[%s18769_s3 + $0x294] ss:$8 sps:$4 sm:$0xff]  }
 0x2cf   :  { %v4742_v34 = vpop.f32.mrb[172].mxu1  ;;  %6802 = vmatprep.subr.bf16.mxu0 %v15317_v19  ;;  %8923 = vmatpush1.bf16.msra.mxu1 %v15312_v46  ;;  %v16922_v56 = vpack.c.bf16 %v4790_v18, %v4787_v35  ;;  %v4683_v40 = vpop.f32.mrb[60].mxu0 }
 0x2d0   :  { %v16920_v55 = vpack.c.bf16 %v4791_v8, %v4788_v7  ;;  %v4764_v52 = vadd.f32 %v4742_v34, %v16848_v48  ;;  %v14158_v2 = vpop.f32.mrb[173].mxu1  ;;  %8924 = vmatprep.subr.bf16.mxu1 %v15317_v19  ;;  %v4777_v9 = vadd.f32 %v4683_v40, %v16326_v44  ;;  %v4685_v54 = vpop.f32.mrb[61].mxu0 }
 0x2d1   :  { %v4745_v17 = vpop.f32.mrb[174].mxu1  ;;  %v4778_v22 = vadd.f32 %v4685_v54, %v16331_v45  ;;  %v4687_v46 = vpop.f32.mrb[62].mxu0 }
 0x2d2   :  { %v4779_v6 = vadd.f32 %v4764_v52, %v16144_v33  ;;  %v4767_v14 = vadd.f32 %v4745_v17, %v16851_v41  ;;  %6803 = vmatpush1.bf16.msra.mxu0 %v15315_v47  ;;  %v14159_v48 = vpop.f32.mrb[175].mxu1  ;;  %v4792_v49 = vmax.f32 %v4777_v9, 0.0  ;;  %v4780_v25 = vadd.f32 %v4687_v46, %v16326_v44  ;;  %v4689_v19 = vpop.f32.mrb[63].mxu0 }
 0x2d3   :  { %6825 = vmatprep.subr.bf16.mxu0 %v15320_v58  ;;  %8925 = vmatpush1.bf16.msra.mxu1 %v15315_v47  ;;  %v4793_v32 = vmax.f32 %v4778_v22, 0.0  ;;  %v4781_v7 = vadd.f32 %v4689_v19, %v16331_v45  ;;  %v16954_v47 = vld [vmem:[%s18769_s3 + $0x290] ss:$8 sps:$4 sm:$0xff]  }
 0x2d4   :  { %v4794_v41 = vmax.f32 %v4779_v6, 0.0  ;;  %v4782_v10 = vadd.f32 %v4767_v14, %v16144_v33  ;;  %8947 = vmatprep.subr.bf16.mxu1 %v15320_v58  ;;  %v16942_v35 = vpack.c.bf16 %v4792_v49, %v4789_v5  ;;  %v4795_v34 = vmax.f32 %v4780_v25, 0.0 }
 0x2d5   :  { %6805 = vmatmul.mubr.bf16.vlgmr.msra.gmra.mrb[112].mxu0 %v16602_v59  ;;  %v16947_v40 = vpack.c.bf16 %v4793_v32, %v4790_v18  ;;  %v4796_v9 = vmax.f32 %v4781_v7, 0.0  ;;  %v16962_v59 = vld [vmem:[%s18769_s3 + $0x2a4] ss:$8 sps:$4 sm:$0xff]  }
 0x2d6   :  { %18817 = vst [vmem:[#allocation13_spill] sm:$0xff] %v16942_v35  ;;  %v16945_v52 = vpack.c.bf16 %v4794_v41, %v4791_v8  ;;  %v4797_v2 = vmax.f32 %v4782_v10, 0.0  ;;  %6814 = vmatprep.mubr.bf16.mxu0 %v16630_v62  ;;  %6826 = vmatpush1.bf16.msra.mxu0 %v16932_v11  ;;  %v16956_v5 = vpack.c.bf16 %v4795_v34, %v4792_v49  ;;  %v16976_v49 = vld [vmem:[%s18769_s3 + $0x2a0] ss:$8 sps:$4 sm:$0xff]   ;;  %v15528_v35 = vld [vmem:[%s18769_s3 + $0x490] ss:$8 sps:$4 sm:$0xff]  }
 0x2d7   :  { %18819 = vst [vmem:[#allocation15_spill] sm:$0xff] %v16947_v40  ;;  %v4750_v58 = vpop.f32.mrb[176].mxu1  ;;  %6827 = vmatprep.subr.bf16.mxu0 %v16938_v27  ;;  %v16964_v8 = vpack.c.bf16 %v4796_v9, %v4793_v32  ;;  %v4693_v18 = vpop.f32.mrb[80].mxu0  ;;  %v18823_v40 = vmov 0  }
 0x2d8   :  { %18818 = vst [vmem:[#allocation14_spill] sm:$0xff] %v16945_v52  ;;  %v4770_v62 = vadd.f32 %v4750_v58, %v16866_v16  ;;  %v14162_v54 = vpop.f32.mrb[177].mxu1  ;;  %v16967_v17 = vpack.c.bf16 %v4797_v2, %v4794_v41  ;;  %v4768_v6 = vadd.f32 %v4693_v18, %v16869_v30  ;;  %v4695_v22 = vpop.f32.mrb[81].mxu0  ;;  %v16983_v41 = vld [vmem:[%s18769_s3 + $0x2b4] ss:$8 sps:$4 sm:$0xff]  }
 0x2d9   :  { %v4753_v14 = vpop.f32.mrb[178].mxu1  ;;  %v4769_v48 = vadd.f32 %v4695_v22, %v16872_v63  ;;  %v4697_v16 = vpop.f32.mrb[82].mxu0  ;;  %v17010_v54 = vld [vmem:[%s18769_s3 + $0x2c0] ss:$8 sps:$4 sm:$0xff]   ;;  %v15527_v52 = vld [vmem:[%s18769_s3 + $0x94] ss:$8 sps:$4 sm:$0xff]  }
 0x2da   :  { %v4785_v46 = vadd.f32 %v4770_v62, %v16144_v33  ;;  %6828 = vmatpush1.bf16.msra.mxu0 %v16954_v47  ;;  %v14163_v25 = vpop.f32.mrb[179].mxu1  ;;  %v4783_v19 = vadd.f32 %v4768_v6, %v16326_v44  ;;  %v4698_v30 = vpop.f32.mrb[83].mxu0  ;;  %v16993_v62 = vld [vmem:[%s18769_s3 + $0x2b0] ss:$8 sps:$4 sm:$0xff]   ;;  %v15338_v6 = vld [vmem:[%s18769_s3 + $0x2e4] ss:$8 sps:$4 sm:$0xff]  }
 0x2db   :  { %6829 = vmatprep.subr.bf16.mxu0 %v16962_v59  ;;  %v4784_v32 = vadd.f32 %v4769_v48, %v16331_v45  ;;  %v15336_v48 = vld [vmem:[%s18769_s3 + $0x2e0] ss:$8 sps:$4 sm:$0xff]   ;;  %v15341_v25 = vld [vmem:[%s18769_s3 + $0x2f4] ss:$8 sps:$4 sm:$0xff]   ;;  %v15344_v30 = vld [vmem:[%s18769_s3 + $0x4] ss:$8 sps:$4 sm:$0xff]  }
 0x2dc   :  { %v4800_v63 = vmax.f32 %v4785_v46, 0.0  ;;  %v4798_v10 = vmax.f32 %v4783_v19, 0.0  ;;  %v15339_v19 = vld [vmem:[%s18769_s3 + $0x2f0] ss:$8 sps:$4 sm:$0xff]  }
 0x2dd   :  { %6815 = vmatmul.mubr.bf16.gmra.mrb[116].mxu0 %v16627_v24  ;;  %v4799_v58 = vmax.f32 %v4784_v32, 0.0  ;;  %v17002_v24 = vld [vmem:[%s18769_s3 + $0x2c4] ss:$8 sps:$4 sm:$0xff]  }
 0x2de   :  { %v16987_v7 = vpack.c.bf16 %v4800_v63, %v4797_v2  ;;  %6830 = vmatpush1.bf16.msra.mxu0 %v16976_v49  ;;  %6857 = vmatprep.mubr.bf16.mxu0 %v18780_v1  ;;  %v16996_v18 = vpack.c.bf16 %v4798_v10, %v4795_v34  ;;  %v15335_v34 = vld [vmem:[%s18769_s3 + $0x2d4] ss:$8 sps:$4 sm:$0xff]  }
 0x2df   :  { %6831 = vmatprep.subr.bf16.mxu0 %v16983_v41  ;;  %v17004_v2 = vpack.c.bf16 %v4799_v58, %v4796_v9  ;;  %v15333_v9 = vld [vmem:[%s18769_s3 + $0x2d0] ss:$8 sps:$4 sm:$0xff]   ;;  %v15342_v58 = vld [vmem:[%s18769_s3] ss:$8 sps:$4 sm:$0xff]  }
 0x2e0   :  { %18820 = vst [vmem:[#allocation16_spill] sm:$0xff] %v16987_v7  ;;  %18821 = vst [vmem:[#allocation17_spill] sm:$0xff] %v16996_v18  ;;  %v17545_v7 = vld [vmem:[%s18769_s3 + $0x470] ss:$8 sps:$4 sm:$0xff]   ;;  %v17563_v18 = vld [vmem:[%s18769_s3 + $0x480] ss:$8 sps:$4 sm:$0xff]  }
 0x2e1   :  { %18822 = vst [vmem:[#allocation18_spill] sm:$0xff] %v17004_v2  ;;  %v15533_v2 = vld [vmem:[%s18769_s3 + $0xa4] ss:$8 sps:$4 sm:$0xff]  }
 0x2e2   :  { %6832 = vmatpush1.bf16.msra.mxu0 %v16993_v62 }
 0x2e3   :  { %6833 = vmatprep.subr.bf16.mxu0 %v17002_v24 }
 0x2e6   :  { %6834 = vmatpush1.bf16.msra.mxu0 %v17010_v54 }
 0x2e7   :  { %6835 = vmatprep.subr.bf16.mxu0 %v15335_v34  ;;  %v5130_v22 = vpop.f32.mrb[180].mxu1 }
 0x2e8   :  { %v14182_v14 = vpop.f32.mrb[181].mxu1 }
 0x2e9   :  { %v5133_v46 = vpop.f32.mrb[182].mxu1  ;;  %v15350_v14 = vld [vmem:[%s18769_s3 + $0x24] ss:$8 sps:$4 sm:$0xff]  }
 0x2ea   :  { %6836 = vmatpush1.bf16.msra.mxu0 %v15333_v9  ;;  %v14183_v16 = vpop.f32.mrb[183].mxu1  ;;  %v15347_v9 = vld [vmem:[%s18769_s3 + $0x14] ss:$8 sps:$4 sm:$0xff]  }
 0x2eb   :  { %6837 = vmatprep.subr.bf16.mxu0 %v15338_v6  ;;  %v15345_v6 = vld [vmem:[%s18769_s3 + $0x10] ss:$8 sps:$4 sm:$0xff]  }
 0x2ee   :  { %6838 = vmatpush1.bf16.msra.mxu0 %v15336_v48 }
 0x2ef   :  { %6839 = vmatprep.subr.bf16.mxu0 %v15341_v25  ;;  %v5138_v63 = vpop.f32.mrb[184].mxu1 }
 0x2f0   :  { %v14186_v32 = vpop.f32.mrb[185].mxu1 }
 0x2f1   :  { %v5141_v10 = vpop.f32.mrb[186].mxu1 }
 0x2f2   :  { %6840 = vmatpush1.bf16.msra.mxu0 %v15339_v19  ;;  %v14187_v34 = vpop.f32.mrb[187].mxu1 }
 0x2f3   :  { %7118 = vmatprep.subr.bf16.mxu0 %v15344_v30 }
 0x2f5   :  { %6858 = vmatmul.mubr.bf16.vlgmr.msra.gmra.mrb[112].mxu0 %v16604_v36  ;;  %v15348_v36 = vld [vmem:[%s18769_s3 + $0x20] ss:$8 sps:$4 sm:$0xff]  }
 0x2f6   :  { %7119 = vmatpush1.bf16.msra.mxu0 %v15342_v58  ;;  %6867 = vmatprep.mubr.bf16.mxu0 %v18780_v1 }
 0x2f7   :  { %7120 = vmatprep.subr.bf16.mxu0 %v15347_v9  ;;  %v5146_v48 = vpop.f32.mrb[188].mxu1  ;;  %v5089_v16 = vpop.f32.mrb[92].mxu0  ;;  %v15353_v9 = vld [vmem:[%s18769_s3 + $0x34] ss:$8 sps:$4 sm:$0xff]  }
 0x2f8   :  { %v14190_v25 = vpop.f32.mrb[189].mxu1  ;;  %v5091_v19 = vpop.f32.mrb[93].mxu0  ;;  %v15356_v48 = vld [vmem:[%s18769_s3 + $0x44] ss:$8 sps:$4 sm:$0xff]  }
 0x2f9   :  { %v5149_v30 = vpop.f32.mrb[190].mxu1  ;;  %v5093_v32 = vpop.f32.mrb[94].mxu0  ;;  %v15362_v25 = vld [vmem:[%s18769_s3 + $0x64] ss:$8 sps:$4 sm:$0xff]  }
 0x2fa   :  { %7121 = vmatpush1.bf16.msra.mxu0 %v15345_v6  ;;  %v14191_v58 = vpop.f32.mrb[191].mxu1  ;;  %v5094_v34 = vpop.f32.mrb[95].mxu0  ;;  %v15351_v6 = vld [vmem:[%s18769_s3 + $0x30] ss:$8 sps:$4 sm:$0xff]  }
 0x2fb   :  { %7122 = vmatprep.subr.bf16.mxu0 %v15350_v14  ;;  %v15354_v14 = vld [vmem:[%s18769_s3 + $0x40] ss:$8 sps:$4 sm:$0xff]  }
 0x2fc   :  { %v15360_v58 = vld [vmem:[%s18769_s3 + $0x60] ss:$8 sps:$4 sm:$0xff]  }
 0x2fd   :  { %6868 = vmatmul.mubr.bf16.gmra.mrb[116].mxu0 %v16638_v3  ;;  %v15359_v3 = vld [vmem:[%s18769_s3 + $0x54] ss:$8 sps:$4 sm:$0xff]  }
 0x2fe   :  { %7123 = vmatpush1.bf16.msra.mxu0 %v15348_v36  ;;  %7150 = vmatprep.mubr.bf16.mxu0 %v16353_v21  ;;  %v15357_v21 = vld [vmem:[%s18769_s3 + $0x50] ss:$8 sps:$4 sm:$0xff]  }
 0x2ff   :  { %7124 = vmatprep.subr.bf16.mxu0 %v15353_v9  ;;  %v15365_v9 = vld [vmem:[%s18769_s3 + $0x74] ss:$8 sps:$4 sm:$0xff]  }
 0x302   :  { %7125 = vmatpush1.bf16.msra.mxu0 %v15351_v6  ;;  %v15363_v6 = vld [vmem:[%s18769_s3 + $0x70] ss:$8 sps:$4 sm:$0xff]  }
 0x303   :  { %7126 = vmatprep.subr.bf16.mxu0 %v15356_v48 }
 0x306   :  { %7127 = vmatpush1.bf16.msra.mxu0 %v15354_v14 }
 0x307   :  { %v5391_v16 = vpop.f32.mrb[192].mxu1  ;;  %7128 = vmatprep.subr.bf16.mxu0 %v15359_v3 }
 0x308   :  { %v5392_v19 = vadd.f32 %v5391_v16, %v5130_v22  ;;  %v14210_v30 = vpop.f32.mrb[193].mxu1  ;;  %v15368_v22 = vld [vmem:[%s18769_s3 + $0x84] ss:$8 sps:$4 sm:$0xff]  }
 0x309   :  { %v5394_v36 = vpop.f32.mrb[194].mxu1  ;;  %v15371_v30 = vld [vmem:[%s18769_s3 + $0x94] ss:$8 sps:$4 sm:$0xff]  }
 0x30a   :  { %v5395_v32 = vadd.f32 %v5394_v36, %v5133_v46  ;;  %7129 = vmatpush1.bf16.msra.mxu0 %v15357_v21  ;;  %v14211_v34 = vpop.f32.mrb[195].mxu1  ;;  %v15366_v21 = vld [vmem:[%s18769_s3 + $0x80] ss:$8 sps:$4 sm:$0xff]   ;;  %v15369_v36 = vld [vmem:[%s18769_s3 + $0x90] ss:$8 sps:$4 sm:$0xff]  }
 0x30b   :  { %7130 = vmatprep.subr.bf16.mxu0 %v15362_v25 }
 0x30e   :  { %7131 = vmatpush1.bf16.msra.mxu0 %v15360_v58 }
 0x30f   :  { %7132 = vmatprep.subr.bf16.mxu0 %v15365_v9  ;;  %v5399_v46 = vpop.f32.mrb[196].mxu1 }
 0x310   :  { %v5400_v48 = vadd.f32 %v5399_v46, %v5138_v63  ;;  %v14214_v14 = vpop.f32.mrb[197].mxu1  ;;  %v15374_v63 = vld [vmem:[%s18769_s3 + $0xa4] ss:$8 sps:$4 sm:$0xff]  }
 0x311   :  { %v5402_v3 = vpop.f32.mrb[198].mxu1 }
 0x312   :  { %7133 = vmatpush1.bf16.msra.mxu0 %v15363_v6  ;;  %v5403_v16 = vadd.f32 %v5402_v3, %v5141_v10  ;;  %v14215_v25 = vpop.f32.mrb[199].mxu1 }
 0x313   :  { %7134 = vmatprep.subr.bf16.mxu0 %v15368_v22  ;;  %v15372_v22 = vld [vmem:[%s18769_s3 + $0xa0] ss:$8 sps:$4 sm:$0xff]   ;;  %v15375_v25 = vld [vmem:[%s18769_s3 + $0xb0] ss:$8 sps:$4 sm:$0xff]  }
 0x316   :  { %7135 = vmatpush1.bf16.msra.mxu0 %v15366_v21  ;;  %v15377_v21 = vld [vmem:[%s18769_s3 + $0xb4] ss:$8 sps:$4 sm:$0xff]  }
 0x317   :  { %7136 = vmatprep.subr.bf16.mxu0 %v15371_v30  ;;  %v5407_v58 = vpop.f32.mrb[200].mxu1  ;;  %v5350_v34 = vpop.f32.mrb[96].mxu0  ;;  %v15380_v30 = vld [vmem:[%s18769_s3 + $0xc4] ss:$8 sps:$4 sm:$0xff]  }
 0x318   :  { %v14218_v9 = vpop.f32.mrb[201].mxu1  ;;  %v5352_v10 = vpop.f32.mrb[97].mxu0  ;;  %v15381_v58 = vld [vmem:[%s18769_s3 + $0xd0] ss:$8 sps:$4 sm:$0xff]  }
 0x319   :  { %v5410_v6 = vpop.f32.mrb[202].mxu1  ;;  %v5354_v46 = vpop.f32.mrb[98].mxu0  ;;  %v15386_v9 = vld [vmem:[%s18769_s3 + $0xe4] ss:$8 sps:$4 sm:$0xff]  }
 0x31a   :  { %7137 = vmatpush1.bf16.msra.mxu0 %v15369_v36  ;;  %v14219_v14 = vpop.f32.mrb[203].mxu1  ;;  %v5355_v3 = vpop.f32.mrb[99].mxu0  ;;  %v15378_v36 = vld [vmem:[%s18769_s3 + $0xc0] ss:$8 sps:$4 sm:$0xff]  }
 0x31b   :  { %7138 = vmatprep.subr.bf16.mxu0 %v15374_v63  ;;  %v15383_v63 = vld [vmem:[%s18769_s3 + $0xd4] ss:$8 sps:$4 sm:$0xff]   ;;  %v15384_v14 = vld [vmem:[%s18769_s3 + $0xe0] ss:$8 sps:$4 sm:$0xff]  }
 0x31e   :  { %7139 = vmatpush1.bf16.msra.mxu0 %v15372_v22 }
 0x31f   :  { %7140 = vmatprep.subr.bf16.mxu0 %v15377_v21  ;;  %v15389_v21 = vld [vmem:[%s18769_s3 + $0xf4] ss:$8 sps:$4 sm:$0xff]  }
 0x322   :  { %7141 = vmatpush1.bf16.msra.mxu0 %v15375_v25  ;;  %v15387_v25 = vld [vmem:[%s18769_s3 + $0xf0] ss:$8 sps:$4 sm:$0xff]  }
 0x323   :  { %7142 = vmatprep.subr.bf16.mxu0 %v15380_v30 }
 0x326   :  { %7143 = vmatpush1.bf16.msra.mxu0 %v15378_v36 }
 0x327   :  { %v5689_v34 = vpop.f32.mrb[204].mxu1  ;;  %7144 = vmatprep.subr.bf16.mxu0 %v15383_v63 }
 0x328   :  { %v5713_v10 = vadd.f32 %v5689_v34, %v5392_v19  ;;  %v14238_v6 = vpop.f32.mrb[205].mxu1  ;;  %v15390_v34 = vld [vmem:[%s18769_s3 + $0x100] ss:$8 sps:$4 sm:$0xff]  }
 0x329   :  { %v5692_v22 = vpop.f32.mrb[206].mxu1  ;;  %v15395_v6 = vld [vmem:[%s18769_s3 + $0x114] ss:$8 sps:$4 sm:$0xff]  }
 0x32a   :  { %v5716_v46 = vadd.f32 %v5692_v22, %v5395_v32  ;;  %7145 = vmatpush1.bf16.msra.mxu0 %v15381_v58  ;;  %v14239_v3 = vpop.f32.mrb[207].mxu1  ;;  %v15392_v32 = vld [vmem:[%s18769_s3 + $0x104] ss:$8 sps:$4 sm:$0xff]  }
 0x32b   :  { %7146 = vmatprep.subr.bf16.mxu0 %v15386_v9 }
 0x32e   :  { %7147 = vmatpush1.bf16.msra.mxu0 %v15384_v14 }
 0x32f   :  { %v5697_v19 = vpop.f32.mrb[208].mxu1  ;;  %7148 = vmatprep.subr.bf16.mxu0 %v15389_v21 }
 0x330   :  { %v5719_v30 = vadd.f32 %v5697_v19, %v5400_v48  ;;  %v14242_v36 = vpop.f32.mrb[209].mxu1  ;;  %v15393_v48 = vld [vmem:[%s18769_s3 + $0x110] ss:$8 sps:$4 sm:$0xff]  }
 0x331   :  { %v5700_v63 = vpop.f32.mrb[210].mxu1  ;;  %v15401_v36 = vld [vmem:[%s18769_s3 + $0x134] ss:$8 sps:$4 sm:$0xff]  }
 0x332   :  { %v5722_v58 = vadd.f32 %v5700_v63, %v5403_v16  ;;  %7149 = vmatpush1.bf16.msra.mxu0 %v15387_v25  ;;  %v14243_v9 = vpop.f32.mrb[211].mxu1  ;;  %v15398_v16 = vld [vmem:[%s18769_s3 + $0x124] ss:$8 sps:$4 sm:$0xff]   ;;  %v15399_v63 = vld [vmem:[%s18769_s3 + $0x130] ss:$8 sps:$4 sm:$0xff]  }
 0x333   :  { %7171 = vmatprep.subr.bf16.mxu0 %v15392_v32  ;;  %v15402_v9 = vld [vmem:[%s18769_s3 + $0x140] ss:$8 sps:$4 sm:$0xff]  }
 0x335   :  { %7151 = vmatmul.mubr.bf16.vlgmr.msra.gmra.mrb[112].mxu0 %v16349_v15  ;;  %v15396_v15 = vld [vmem:[%s18769_s3 + $0x120] ss:$8 sps:$4 sm:$0xff]  }
 0x336   :  { %7160 = vmatprep.mubr.bf16.mxu0 %v16377_v61  ;;  %7172 = vmatpush1.bf16.msra.mxu0 %v15390_v34  ;;  %v15404_v34 = vld [vmem:[%s18769_s3 + $0x144] ss:$8 sps:$4 sm:$0xff]  }
 0x337   :  { %7173 = vmatprep.subr.bf16.mxu0 %v15395_v6  ;;  %v5705_v22 = vpop.f32.mrb[212].mxu1  ;;  %v5648_v14 = vpop.f32.mrb[100].mxu0  ;;  %v15405_v6 = vld [vmem:[%s18769_s3 + $0x150] ss:$8 sps:$4 sm:$0xff]  }
 0x338   :  { %v14246_v3 = vpop.f32.mrb[213].mxu1  ;;  %v5650_v21 = vpop.f32.mrb[101].mxu0 }
 0x339   :  { %v5708_v25 = vpop.f32.mrb[214].mxu1  ;;  %v5652_v61 = vpop.f32.mrb[102].mxu0 }
 0x33a   :  { %7174 = vmatpush1.bf16.msra.mxu0 %v15393_v48  ;;  %v14247_v19 = vpop.f32.mrb[215].mxu1  ;;  %v5653_v32 = vpop.f32.mrb[103].mxu0  ;;  %v15408_v25 = vld [vmem:[%s18769_s3 + $0x160] ss:$8 sps:$4 sm:$0xff]   ;;  %v15413_v61 = vld [vmem:[%s18769_s3 + $0x174] ss:$8 sps:$4 sm:$0xff]  }
 0x33b   :  { %7175 = vmatprep.subr.bf16.mxu0 %v15398_v16  ;;  %v15410_v16 = vld [vmem:[%s18769_s3 + $0x164] ss:$8 sps:$4 sm:$0xff]   ;;  %v15411_v19 = vld [vmem:[%s18769_s3 + $0x170] ss:$8 sps:$4 sm:$0xff]  }
 0x33d   :  { %7161 = vmatmul.mubr.bf16.gmra.mrb[116].mxu0 %v16371_v57  ;;  %v15407_v57 = vld [vmem:[%s18769_s3 + $0x154] ss:$8 sps:$4 sm:$0xff]  }
 0x33e   :  { %7176 = vmatpush1.bf16.msra.mxu0 %v15396_v15  ;;  %7203 = vmatprep.mubr.bf16.mxu0 %v18780_v1 }
 0x33f   :  { %7177 = vmatprep.subr.bf16.mxu0 %v15401_v36 }
 0x342   :  { %7178 = vmatpush1.bf16.msra.mxu0 %v15399_v63 }
 0x343   :  { %7179 = vmatprep.subr.bf16.mxu0 %v15404_v34 }
 0x346   :  { %7180 = vmatpush1.bf16.msra.mxu0 %v15402_v9  ;;  %v15414_v9 = vld [vmem:[%s18769_s3 + $0x300] ss:$8 sps:$4 sm:$0xff]  }
 0x347   :  { %v6002_v48 = vpop.f32.mrb[216].mxu1  ;;  %7181 = vmatprep.subr.bf16.mxu0 %v15407_v57 }
 0x348   :  { %v6026_v22 = vadd.f32 %v6002_v48, %v5713_v10  ;;  %v14266_v14 = vpop.f32.mrb[217].mxu1 }
 0x349   :  { %v6005_v3 = vpop.f32.mrb[218].mxu1 }
 0x34a   :  { %v6029_v21 = vadd.f32 %v6005_v3, %v5716_v46  ;;  %7182 = vmatpush1.bf16.msra.mxu0 %v15405_v6  ;;  %v14267_v15 = vpop.f32.mrb[219].mxu1  ;;  %v15416_v46 = vld [vmem:[%s18769_s3 + $0x304] ss:$8 sps:$4 sm:$0xff]   ;;  %v15419_v6 = vld [vmem:[%s18769_s3 + $0x314] ss:$8 sps:$4 sm:$0xff]  }
 0x34b   :  { %7183 = vmatprep.subr.bf16.mxu0 %v15410_v16 }
 0x34e   :  { %7184 = vmatpush1.bf16.msra.mxu0 %v15408_v25 }
 0x34f   :  { %v6010_v10 = vpop.f32.mrb[220].mxu1  ;;  %7185 = vmatprep.subr.bf16.mxu0 %v15413_v61 }
 0x350   :  { %v17187_v32 = vadd.f32 %v6010_v10, %v5719_v30  ;;  %v14270_v36 = vpop.f32.mrb[221].mxu1  ;;  %v15417_v30 = vld [vmem:[%s18769_s3 + $0x310] ss:$8 sps:$4 sm:$0xff]   ;;  %v15425_v10 = vld [vmem:[%s18769_s3 + $0x334] ss:$8 sps:$4 sm:$0xff]  }
 0x351   :  { %v6013_v63 = vpop.f32.mrb[222].mxu1  ;;  %v15428_v36 = vld [vmem:[%s18769_s3 + $0x344] ss:$8 sps:$4 sm:$0xff]  }
 0x352   :  { %v17189_v34 = vadd.f32 %v6013_v63, %v5722_v58  ;;  %7186 = vmatpush1.bf16.msra.mxu0 %v15411_v19  ;;  %v14271_v57 = vpop.f32.mrb[223].mxu1  ;;  %v15422_v58 = vld [vmem:[%s18769_s3 + $0x324] ss:$8 sps:$4 sm:$0xff]   ;;  %v15426_v63 = vld [vmem:[%s18769_s3 + $0x340] ss:$8 sps:$4 sm:$0xff]  }
 0x353   :  { %7531 = vmatprep.subr.bf16.mxu0 %v15416_v46  ;;  %v15423_v46 = vld [vmem:[%s18769_s3 + $0x330] ss:$8 sps:$4 sm:$0xff]  }
 0x355   :  { %7204 = vmatmul.mubr.bf16.vlgmr.msra.gmra.mrb[112].mxu0 %v16351_v20  ;;  %v15420_v20 = vld [vmem:[%s18769_s3 + $0x320] ss:$8 sps:$4 sm:$0xff]  }
 0x356   :  { %7532 = vmatpush1.bf16.msra.mxu0 %v15414_v9  ;;  %7213 = vmatprep.mubr.bf16.mxu0 %v18780_v1  ;;  %v15429_v9 = vld [vmem:[%s18769_s3 + $0x350] ss:$8 sps:$4 sm:$0xff]  }
 0x357   :  { %7533 = vmatprep.subr.bf16.mxu0 %v15419_v6  ;;  %v6018_v48 = vpop.f32.mrb[224].mxu1  ;;  %v5961_v16 = vpop.f32.mrb[104].mxu0  ;;  %v15434_v6 = vld [vmem:[%s18769_s3 + $0x364] ss:$8 sps:$4 sm:$0xff]  }
 0x358   :  { %v14274_v14 = vpop.f32.mrb[225].mxu1  ;;  %v5963_v3 = vpop.f32.mrb[105].mxu0 }
 0x359   :  { %v6021_v25 = vpop.f32.mrb[226].mxu1  ;;  %v5965_v15 = vpop.f32.mrb[106].mxu0 }
 0x35a   :  { %7534 = vmatpush1.bf16.msra.mxu0 %v15417_v30  ;;  %v14275_v61 = vpop.f32.mrb[227].mxu1  ;;  %v5966_v19 = vpop.f32.mrb[107].mxu0 }
 0x35b   :  { %7535 = vmatprep.subr.bf16.mxu0 %v15422_v58  ;;  %v15432_v19 = vld [vmem:[%s18769_s3 + $0x360] ss:$8 sps:$4 sm:$0xff]  }
 0x35d   :  { %7214 = vmatmul.mubr.bf16.gmra.mrb[116].mxu0 %v16382_v4  ;;  %v15431_v4 = vld [vmem:[%s18769_s3 + $0x354] ss:$8 sps:$4 sm:$0xff]  }
 0x35e   :  { %7536 = vmatpush1.bf16.msra.mxu0 %v15420_v20  ;;  %7563 = vmatprep.mubr.bf16.mxu0 %v16922_v56 }
 0x35f   :  { %7537 = vmatprep.subr.bf16.mxu0 %v15425_v10 }
 0x362   :  { %7538 = vmatpush1.bf16.msra.mxu0 %v15423_v46 }
 0x363   :  { %7539 = vmatprep.subr.bf16.mxu0 %v15428_v36  ;;  %v15437_v36 = vld [vmem:[%s18769_s3 + $0x374] ss:$8 sps:$4 sm:$0xff]  }
 0x366   :  { %7540 = vmatpush1.bf16.msra.mxu0 %v15426_v63 }
 0x367   :  { %v6315_v57 = vpop.f32.mrb[228].mxu1  ;;  %7541 = vmatprep.subr.bf16.mxu0 %v15431_v4  ;;  %v6254_v58 = vpop.f32.mrb[84].mxu0 }
 0x368   :  { %v6339_v30 = vadd.f32 %v6315_v57, %v6026_v22  ;;  %v14294_v48 = vpop.f32.mrb[229].mxu1  ;;  %v6352_v16 = vadd.f32 %v6254_v58, %v16326_v44  ;;  %v6256_v14 = vpop.f32.mrb[85].mxu0 }
 0x369   :  { %v6318_v3 = vpop.f32.mrb[230].mxu1  ;;  %v6353_v20 = vadd.f32 %v6256_v14, %v16331_v45  ;;  %v6258_v61 = vpop.f32.mrb[86].mxu0  ;;  %v15435_v14 = vld [vmem:[%s18769_s3 + $0x370] ss:$8 sps:$4 sm:$0xff]  }
 0x36a   :  { %v6354_v25 = vadd.f32 %v6339_v30, %v16144_v33  ;;  %v6342_v15 = vadd.f32 %v6318_v3, %v6029_v21  ;;  %7542 = vmatpush1.bf16.msra.mxu0 %v15429_v9  ;;  %v14295_v10 = vpop.f32.mrb[231].mxu1  ;;  %v6355_v22 = vadd.f32 %v6258_v61, %v16326_v44  ;;  %v6260_v46 = vpop.f32.mrb[87].mxu0  ;;  %v6367_v21 = vmax.f32 %v6352_v16, 0.0 }
 0x36b   :  { %7543 = vmatprep.subr.bf16.mxu0 %v15434_v6  ;;  %v6356_v4 = vadd.f32 %v6260_v46, %v16331_v45  ;;  %v6368_v30 = vmax.f32 %v6353_v20, 0.0 }
 0x36c   :  { %v6357_v63 = vadd.f32 %v6342_v15, %v16144_v33  ;;  %v6370_v57 = vmax.f32 %v6355_v22, 0.0  ;;  %v6369_v9 = vmax.f32 %v6354_v25, 0.0  ;;  %v17251_v15 = vld [vmem:[%s18769_s3 + $0x384] ss:$8 sps:$4 sm:$0xff]  }
 0x36d   :  { %v6371_v48 = vmax.f32 %v6356_v4, 0.0 }
 0x36e   :  { %v6372_v58 = vmax.f32 %v6357_v63, 0.0  ;;  %7544 = vmatpush1.bf16.msra.mxu0 %v15432_v19  ;;  %v17246_v6 = vpack.c.bf16 %v6370_v57, %v6367_v21 }
 0x36f   :  { %v6323_v3 = vpop.f32.mrb[232].mxu1  ;;  %7545 = vmatprep.subr.bf16.mxu0 %v15437_v36  ;;  %v17255_v25 = vpack.c.bf16 %v6371_v48, %v6368_v30 }
 0x370   :  { %v17253_v16 = vpack.c.bf16 %v6372_v58, %v6369_v9  ;;  %v6345_v20 = vadd.f32 %v6323_v3, %v17187_v32  ;;  %v6264_v61 = vpop.f32.mrb[88].mxu0  ;;  %v14298_v19 = vpop.f32.mrb[233].mxu1  ;;  %v17266_v32 = vld [vmem:[%s18769_s3 + $0x380] ss:$8 sps:$4 sm:$0xff]  }
 0x371   :  { %v6358_v10 = vadd.f32 %v6264_v61, %v16326_v44  ;;  %v6266_v22 = vpop.f32.mrb[89].mxu0  ;;  %v6326_v46 = vpop.f32.mrb[234].mxu1  ;;  %8926 = vmatprep.mubr.bf16.mxu1 %v17255_v25 }
 0x372   :  { %v6360_v63 = vadd.f32 %v6345_v20, %v16144_v33  ;;  %v6359_v36 = vadd.f32 %v6266_v22, %v16331_v45  ;;  %v6348_v4 = vadd.f32 %v6326_v46, %v17189_v34  ;;  %v6268_v21 = vpop.f32.mrb[90].mxu0  ;;  %7546 = vmatpush1.bf16.msra.mxu0 %v15435_v14  ;;  %v14299_v57 = vpop.f32.mrb[235].mxu1  ;;  %8927 = vmatmul.mubr.bf16.vlgmr.msra.gmra.mrb[240].mxu1 %v17246_v6  ;;  %v17274_v34 = vld [vmem:[%s18769_s3 + $0x394] ss:$8 sps:$4 sm:$0xff]   ;;  %v17284_v22 = vld [vmem:[%s18769_s3 + $0x390] ss:$8 sps:$4 sm:$0xff]  }
 0x373   :  { %v6361_v9 = vadd.f32 %v6268_v21, %v16326_v44  ;;  %v6270_v30 = vpop.f32.mrb[91].mxu0  ;;  %7547 = vmatprep.subr.bf16.mxu0 %v17251_v15  ;;  %8948 = vmatpush1.bf16.msra.mxu1 %v16932_v11  ;;  %v6373_v14 = vmax.f32 %v6358_v10, 0.0  ;;  %v17305_v21 = vld [vmem:[%s18769_s3 + $0x3a0] ss:$8 sps:$4 sm:$0xff]  }
 0x374   :  { %v6363_v58 = vadd.f32 %v6348_v4, %v16144_v33  ;;  %v6362_v48 = vadd.f32 %v6270_v30, %v16331_v45  ;;  %8949 = vmatprep.subr.bf16.mxu1 %v16938_v27  ;;  %v6375_v44 = vmax.f32 %v6360_v63, 0.0  ;;  %v6374_v20 = vmax.f32 %v6359_v36, 0.0  ;;  %v17292_v45 = vld [vmem:[%s18769_s3 + $0x3a4] ss:$8 sps:$4 sm:$0xff]   ;;  %v17321_v30 = vld [vmem:[%s18769_s3 + $0x3b0] ss:$8 sps:$4 sm:$0xff]  }
 0x375   :  { %v6376_v3 = vmax.f32 %v6361_v9, 0.0 }
 0x376   :  { %v6378_v61 = vmax.f32 %v6363_v58, 0.0  ;;  %v6377_v19 = vmax.f32 %v6362_v48, 0.0  ;;  %7548 = vmatpush1.bf16.msra.mxu0 %v17266_v32  ;;  %v17327_v58 = vld [vmem:[%s18769_s3 + $0x3c4] ss:$8 sps:$4 sm:$0xff]   ;;  %v17344_v48 = vld [vmem:[%s18769_s3 + $0x3d4] ss:$8 sps:$4 sm:$0xff]  }
 0x377   :  { %v17286_v33 = vpack.c.bf16 %v6376_v3, %v6373_v14  ;;  %7549 = vmatprep.subr.bf16.mxu0 %v17274_v34  ;;  %v6331_v11 = vpop.f32.mrb[236].mxu1  ;;  %8950 = vmatpush1.bf16.msra.mxu1 %v16954_v47  ;;  %v17312_v47 = vld [vmem:[%s18769_s3 + $0x3b4] ss:$8 sps:$4 sm:$0xff]   ;;  %v17357_v14 = vld [vmem:[%s18769_s3 + $0x3d0] ss:$8 sps:$4 sm:$0xff]  }
 0x378   :  { %v17294_v27 = vpack.c.bf16 %v6377_v19, %v6374_v20  ;;  %v17297_v10 = vpack.c.bf16 %v6378_v61, %v6375_v44  ;;  %v14302_v46 = vpop.f32.mrb[237].mxu1  ;;  %v6274_v63 = vpop.f32.mrb[108].mxu0  ;;  %8951 = vmatprep.subr.bf16.mxu1 %v16962_v59  ;;  %v15459_v3 = vld [vmem:[%s18769_s3 + $0x2e0] ss:$8 sps:$4 sm:$0xff]   ;;  %v15467_v44 = vld [vmem:[%s18769_s3 + $0x2f4] ss:$8 sps:$4 sm:$0xff]  }
 0x379   :  { %v6334_v36 = vpop.f32.mrb[238].mxu1  ;;  %v6276_v4 = vpop.f32.mrb[109].mxu0  ;;  %v17375_v20 = vld [vmem:[%s18769_s3 + $0x3e0] ss:$8 sps:$4 sm:$0xff]   ;;  %v17381_v61 = vld [vmem:[%s18769_s3 + $0x3f4] ss:$8 sps:$4 sm:$0xff]  }
 0x37a   :  { %7550 = vmatpush1.bf16.msra.mxu0 %v17284_v22  ;;  %8936 = vmatprep.mubr.bf16.mxu1 %v17294_v27  ;;  %v14303_v57 = vpop.f32.mrb[239].mxu1  ;;  %v6278_v9 = vpop.f32.mrb[110].mxu0  ;;  %v15465_v19 = vld [vmem:[%s18769_s3 + $0x2f0] ss:$8 sps:$4 sm:$0xff]   ;;  %v15473_v11 = vld [vmem:[%s18769_s3 + $0x4] ss:$8 sps:$4 sm:$0xff]  }
 0x37b   :  { %8937 = vmatmul.mubr.bf16.gmra.mrb[244].mxu1 %v17286_v33  ;;  %7551 = vmatprep.subr.bf16.mxu0 %v17292_v45  ;;  %v6279_v59 = vpop.f32.mrb[111].mxu0  ;;  %v17393_v46 = vld [vmem:[%s18769_s3 + $0x3f0] ss:$8 sps:$4 sm:$0xff]   ;;  %v17399_v63 = vld [vmem:[%s18769_s3 + $0x404] ss:$8 sps:$4 sm:$0xff]  }
 0x37c   :  { %8952 = vmatpush1.bf16.msra.mxu1 %v16976_v49  ;;  %8979 = vmatprep.mubr.bf16.mxu1 %v18780_v1  ;;  %v15455_v49 = vld [vmem:[%s18769_s3 + $0x2d4] ss:$8 sps:$4 sm:$0xff]   ;;  %v15471_v36 = vld [vmem:[%s18769_s3] ss:$8 sps:$4 sm:$0xff]   ;;  %v15477_v59 = vld [vmem:[%s18769_s3 + $0x10] ss:$8 sps:$4 sm:$0xff]  }
 0x37d   :  { %8953 = vmatprep.subr.bf16.mxu1 %v16983_v41  ;;  %v17338_v41 = vld [vmem:[%s18769_s3 + $0x3c0] ss:$8 sps:$4 sm:$0xff]   ;;  %v15479_v4 = vld [vmem:[%s18769_s3 + $0x14] ss:$8 sps:$4 sm:$0xff]  }
 0x37e   :  { %7552 = vmatpush1.bf16.msra.mxu0 %v17305_v21  ;;  %v17411_v57 = vld [vmem:[%s18769_s3 + $0x400] ss:$8 sps:$4 sm:$0xff]   ;;  %v17418_v9 = vld [vmem:[%s18769_s3 + $0x414] ss:$8 sps:$4 sm:$0xff]  }
 0x37f   :  { %7553 = vmatprep.subr.bf16.mxu0 %v17312_v47 }
 0x380   :  { %8954 = vmatpush1.bf16.msra.mxu1 %v16993_v62  ;;  %v15453_v62 = vld [vmem:[%s18769_s3 + $0x2d0] ss:$8 sps:$4 sm:$0xff]  }
 0x381   :  { %8955 = vmatprep.subr.bf16.mxu1 %v17002_v24  ;;  %v15461_v24 = vld [vmem:[%s18769_s3 + $0x2e4] ss:$8 sps:$4 sm:$0xff]  }
 0x382   :  { %7554 = vmatpush1.bf16.msra.mxu0 %v17321_v30 }
 0x383   :  { %7555 = vmatprep.subr.bf16.mxu0 %v17327_v58 }
 0x384   :  { %8956 = vmatpush1.bf16.msra.mxu1 %v17010_v54  ;;  %v17363_v54 = vld [vmem:[%s18769_s3 + $0x3e4] ss:$8 sps:$4 sm:$0xff]  }
 0x385   :  { %8957 = vmatprep.subr.bf16.mxu1 %v15455_v49  ;;  %v15485_v49 = vld [vmem:[%s18769_s3 + $0x24] ss:$8 sps:$4 sm:$0xff]  }
 0x386   :  { %7556 = vmatpush1.bf16.msra.mxu0 %v17338_v41 }
 0x387   :  { %7557 = vmatprep.subr.bf16.mxu0 %v17344_v48 }
 0x388   :  { %8958 = vmatpush1.bf16.msra.mxu1 %v15453_v62  ;;  %v17433_v62 = vld [vmem:[%s18769_s3 + $0x410] ss:$8 sps:$4 sm:$0xff]  }
 0x389   :  { %8959 = vmatprep.subr.bf16.mxu1 %v15461_v24  ;;  %v17439_v24 = vld [vmem:[%s18769_s3 + $0x424] ss:$8 sps:$4 sm:$0xff]  }
 0x38a   :  { %7558 = vmatpush1.bf16.msra.mxu0 %v17357_v14 }
 0x38b   :  { %7559 = vmatprep.subr.bf16.mxu0 %v17363_v54 }
 0x38c   :  { %8960 = vmatpush1.bf16.msra.mxu1 %v15459_v3  ;;  %v15483_v3 = vld [vmem:[%s18769_s3 + $0x20] ss:$8 sps:$4 sm:$0xff]  }
 0x38d   :  { %8961 = vmatprep.subr.bf16.mxu1 %v15467_v44  ;;  %v15491_v44 = vld [vmem:[%s18769_s3 + $0x34] ss:$8 sps:$4 sm:$0xff]  }
 0x38e   :  { %7560 = vmatpush1.bf16.msra.mxu0 %v17375_v20 }
 0x38f   :  { %7561 = vmatprep.subr.bf16.mxu0 %v17381_v61 }
 0x390   :  { %8962 = vmatpush1.bf16.msra.mxu1 %v15465_v19  ;;  %v17451_v19 = vld [vmem:[%s18769_s3 + $0x420] ss:$8 sps:$4 sm:$0xff]  }
 0x391   :  { %9240 = vmatprep.subr.bf16.mxu1 %v15473_v11  ;;  %v17458_v11 = vld [vmem:[%s18769_s3 + $0x434] ss:$8 sps:$4 sm:$0xff]  }
 0x392   :  { %7562 = vmatpush1.bf16.msra.mxu0 %v17393_v46 }
 0x393   :  { %8980 = vmatmul.mubr.bf16.vlgmr.msra.gmra.mrb[240].mxu1 %v17253_v16  ;;  %7584 = vmatprep.subr.bf16.mxu0 %v17399_v63 }
 0x394   :  { %9241 = vmatpush1.bf16.msra.mxu1 %v15471_v36  ;;  %8989 = vmatprep.mubr.bf16.mxu1 %v18780_v1  ;;  %v15489_v36 = vld [vmem:[%s18769_s3 + $0x30] ss:$8 sps:$4 sm:$0xff]  }
 0x395   :  { %7564 = vmatmul.mubr.bf16.vlgmr.msra.gmra.mrb[112].mxu0 %v16915_v13  ;;  %9242 = vmatprep.subr.bf16.mxu1 %v15479_v4  ;;  %v15497_v4 = vld [vmem:[%s18769_s3 + $0x44] ss:$8 sps:$4 sm:$0xff]  }
 0x396   :  { %7573 = vmatprep.mubr.bf16.mxu0 %v16964_v8  ;;  %7585 = vmatpush1.bf16.msra.mxu0 %v17411_v57 }
 0x397   :  { %7586 = vmatprep.subr.bf16.mxu0 %v17418_v9 }
 0x398   :  { %9243 = vmatpush1.bf16.msra.mxu1 %v15477_v59  ;;  %v17472_v59 = vld [vmem:[%s18769_s3 + $0x430] ss:$8 sps:$4 sm:$0xff]  }
 0x399   :  { %9244 = vmatprep.subr.bf16.mxu1 %v15485_v49  ;;  %v15495_v49 = vld [vmem:[%s18769_s3 + $0x40] ss:$8 sps:$4 sm:$0xff]  }
 0x39a   :  { %7587 = vmatpush1.bf16.msra.mxu0 %v17433_v62 }
 0x39b   :  { %8990 = vmatmul.mubr.bf16.gmra.mrb[248].mxu1 %v17297_v10  ;;  %7588 = vmatprep.subr.bf16.mxu0 %v17439_v24 }
 0x39c   :  { %9245 = vmatpush1.bf16.msra.mxu1 %v15483_v3  ;;  %9272 = vmatprep.mubr.bf16.mxu1 %v16922_v56  ;;  %v17479_v56 = vld [vmem:[%s18769_s3 + $0x444] ss:$8 sps:$4 sm:$0xff]   ;;  %v15503_v3 = vld [vmem:[%s18769_s3 + $0x54] ss:$8 sps:$4 sm:$0xff]  }
 0x39d   :  { %7574 = vmatmul.mubr.bf16.gmra.mrb[116].mxu0 %v16956_v5  ;;  %9246 = vmatprep.subr.bf16.mxu1 %v15491_v44  ;;  %v17491_v44 = vld [vmem:[%s18769_s3 + $0x440] ss:$8 sps:$4 sm:$0xff]  }
 0x39e   :  { %7589 = vmatpush1.bf16.msra.mxu0 %v17451_v19  ;;  %7616 = vmatprep.mubr.bf16.mxu0 %v18780_v1  ;;  %v17527_v1 = vld [vmem:[%s18769_s3 + $0x460] ss:$8 sps:$4 sm:$0xff]  }
 0x39f   :  { %7590 = vmatprep.subr.bf16.mxu0 %v17458_v11 }
 0x3a0   :  { %9247 = vmatpush1.bf16.msra.mxu1 %v15489_v36  ;;  %v17497_v36 = vld [vmem:[%s18769_s3 + $0x454] ss:$8 sps:$4 sm:$0xff]  }
 0x3a1   :  { %9248 = vmatprep.subr.bf16.mxu1 %v15497_v4  ;;  %v15501_v4 = vld [vmem:[%s18769_s3 + $0x50] ss:$8 sps:$4 sm:$0xff]  }
 0x3a2   :  { %7591 = vmatpush1.bf16.msra.mxu0 %v17472_v59 }
 0x3a3   :  { %7592 = vmatprep.subr.bf16.mxu0 %v17479_v56 }
 0x3a4   :  { %9249 = vmatpush1.bf16.msra.mxu1 %v15495_v49  ;;  %v17515_v49 = vld [vmem:[%s18769_s3 + $0x464] ss:$8 sps:$4 sm:$0xff]  }
 0x3a5   :  { %9250 = vmatprep.subr.bf16.mxu1 %v15503_v3  ;;  %v15507_v3 = vld [vmem:[%s18769_s3 + $0x60] ss:$8 sps:$4 sm:$0xff]  }
 0x3a6   :  { %7593 = vmatpush1.bf16.msra.mxu0 %v17491_v44 }
 0x3a7   :  { %7594 = vmatprep.subr.bf16.mxu0 %v17497_v36 }
 0x3a8   :  { %9251 = vmatpush1.bf16.msra.mxu1 %v15501_v4  ;;  %v17533_v4 = vld [vmem:[%s18769_s3 + $0x474] ss:$8 sps:$4 sm:$0xff]  }
 0x3a9   :  { %9252 = vmatprep.subr.bf16.mxu1 %v15509_v0  ;;  %v15513_v0 = vld [vmem:[%s18769_s3 + $0x70] ss:$8 sps:$4 sm:$0xff]  }
 0x3aa   :  { %7595 = vmatpush1.bf16.msra.mxu0 %v17509_v39 }
 0x3ab   :  { %7596 = vmatprep.subr.bf16.mxu0 %v17515_v49 }
 0x3ac   :  { %9253 = vmatpush1.bf16.msra.mxu1 %v15507_v3  ;;  %v17551_v3 = vld [vmem:[%s18769_s3 + $0x484] ss:$8 sps:$4 sm:$0xff]  }
 0x3ad   :  { %9254 = vmatprep.subr.bf16.mxu1 %v15515_v37  ;;  %v15519_v37 = vld [vmem:[%s18769_s3 + $0x80] ss:$8 sps:$4 sm:$0xff]  }
 0x3ae   :  { %7597 = vmatpush1.bf16.msra.mxu0 %v17527_v1 }
 0x3af   :  { %7598 = vmatprep.subr.bf16.mxu0 %v17533_v4 }
 0x3b0   :  { %9255 = vmatpush1.bf16.msra.mxu1 %v15513_v0  ;;  %v15530_v0 = vld [vmem:[%s18769_s3 + $0x494] ss:$8 sps:$4 sm:$0xff]  }
 0x3b1   :  { %9256 = vmatprep.subr.bf16.mxu1 %v15521_v23  ;;  %v15525_v23 = vld [vmem:[%s18769_s3 + $0x90] ss:$8 sps:$4 sm:$0xff]  }
 0x3b2   :  { %7599 = vmatpush1.bf16.msra.mxu0 %v17545_v7 }
 0x3b3   :  { %7952 = vmatprep.subr.bf16.mxu0 %v17551_v3 }
 0x3b4   :  { %9257 = vmatpush1.bf16.msra.mxu1 %v15519_v37  ;;  %v15536_v37 = vld [vmem:[%s18769_s3 + $0x4a4] ss:$8 sps:$4 sm:$0xff]  }
 0x3b5   :  { %7617 = vmatmul.mubr.bf16.vlgmr.msra.gmra.mrb[112].mxu0 %v16920_v55  ;;  %9258 = vmatprep.subr.bf16.mxu1 %v15527_v52  ;;  %v15531_v52 = vld [vmem:[%s18769_s3 + $0xa0] ss:$8 sps:$4 sm:$0xff]  }
 0x3b6   :  { %7953 = vmatpush1.bf16.msra.mxu0 %v17563_v18  ;;  %7626 = vmatprep.mubr.bf16.mxu0 %v18823_v40 }
 0x3b7   :  { %7954 = vmatprep.subr.bf16.mxu0 %v15530_v0  ;;  %v15542_v0 = vld [vmem:[%s18769_s3 + $0x4b4] ss:$8 sps:$4 sm:$0xff]  }
 0x3b8   :  { %9259 = vmatpush1.bf16.msra.mxu1 %v15525_v23  ;;  %v15537_v23 = vld [vmem:[%s18769_s3 + $0xb0] ss:$8 sps:$4 sm:$0xff]  }
 0x3b9   :  { %9260 = vmatprep.subr.bf16.mxu1 %v15533_v2  ;;  %v15540_v2 = vld [vmem:[%s18769_s3 + $0x4b0] ss:$8 sps:$4 sm:$0xff]  }
 0x3ba   :  { %7955 = vmatpush1.bf16.msra.mxu0 %v15528_v35  ;;  %v15545_v35 = vld [vmem:[%s18769_s3 + $0xc4] ss:$8 sps:$4 sm:$0xff]  }
 0x3bb   :  { %7956 = vmatprep.subr.bf16.mxu0 %v15536_v37  ;;  %v15548_v37 = vld [vmem:[%s18769_s3 + $0x4c4] ss:$8 sps:$4 sm:$0xff]  }
 0x3bc   :  { %9261 = vmatpush1.bf16.msra.mxu1 %v15531_v52  ;;  %v15554_v52 = vld [vmem:[%s18769_s3 + $0x4d4] ss:$8 sps:$4 sm:$0xff]  }
 0x3bd   :  { %7627 = vmatmul.mubr.bf16.gmra.mrb[116].mxu0 %v16967_v17  ;;  %9262 = vmatprep.subr.bf16.mxu1 %v15539_v29  ;;  %v15543_v29 = vld [vmem:[%s18769_s3 + $0xc0] ss:$8 sps:$4 sm:$0xff]  }
 0x3be   :  { %7957 = vmatpush1.bf16.msra.mxu0 %v15534_v42  ;;  %7984 = vmatprep.mubr.bf16.mxu0 %v17255_v25  ;;  %v15551_v42 = vld [vmem:[%s18769_s3 + $0xd4] ss:$8 sps:$4 sm:$0xff]   ;;  %v15546_v25 = vld [vmem:[%s18769_s3 + $0x4c0] ss:$8 sps:$4 sm:$0xff]  }
 0x3bf   :  { %7958 = vmatprep.subr.bf16.mxu0 %v15542_v0  ;;  %v15549_v0 = vld [vmem:[%s18769_s3 + $0xd0] ss:$8 sps:$4 sm:$0xff]  }
 0x3c0   :  { %9263 = vmatpush1.bf16.msra.mxu1 %v15537_v23  ;;  %v15557_v23 = vld [vmem:[%s18769_s3 + $0xe4] ss:$8 sps:$4 sm:$0xff]  }
 0x3c1   :  { %9264 = vmatprep.subr.bf16.mxu1 %v15545_v35  ;;  %v15552_v35 = vld [vmem:[%s18769_s3 + $0x4d0] ss:$8 sps:$4 sm:$0xff]  }
 0x3c2   :  { %7959 = vmatpush1.bf16.msra.mxu0 %v15540_v2  ;;  %v15560_v2 = vld [vmem:[%s18769_s3 + $0x4e4] ss:$8 sps:$4 sm:$0xff]  }
 0x3c3   :  { %7960 = vmatprep.subr.bf16.mxu0 %v15548_v37  ;;  %v15555_v37 = vld [vmem:[%s18769_s3 + $0xe0] ss:$8 sps:$4 sm:$0xff]  }
 0x3c4   :  { %9265 = vmatpush1.bf16.msra.mxu1 %v15543_v29  ;;  %v15563_v29 = vld [vmem:[%s18769_s3 + $0xf4] ss:$8 sps:$4 sm:$0xff]  }
 0x3c5   :  { %9266 = vmatprep.subr.bf16.mxu1 %v15551_v42  ;;  %v15558_v42 = vld [vmem:[%s18769_s3 + $0x4e0] ss:$8 sps:$4 sm:$0xff]  }
 0x3c6   :  { %7961 = vmatpush1.bf16.msra.mxu0 %v15546_v25  ;;  %v15566_v25 = vld [vmem:[%s18769_s3 + $0x4f4] ss:$8 sps:$4 sm:$0xff]  }
 0x3c7   :  { %7962 = vmatprep.subr.bf16.mxu0 %v15554_v52  ;;  %v15561_v52 = vld [vmem:[%s18769_s3 + $0xf0] ss:$8 sps:$4 sm:$0xff]  }
 0x3c8   :  { %9267 = vmatpush1.bf16.msra.mxu1 %v15549_v0  ;;  %v15569_v0 = vld [vmem:[%s18769_s3 + $0x104] ss:$8 sps:$4 sm:$0xff]  }
 0x3c9   :  { %9268 = vmatprep.subr.bf16.mxu1 %v15557_v23  ;;  %v15564_v23 = vld [vmem:[%s18769_s3 + $0x4f0] ss:$8 sps:$4 sm:$0xff]  }
 0x3ca   :  { %7963 = vmatpush1.bf16.msra.mxu0 %v15552_v35  ;;  %v15572_v35 = vld [vmem:[%s18769_s3 + $0x504] ss:$8 sps:$4 sm:$0xff]  }
 0x3cb   :  { %7964 = vmatprep.subr.bf16.mxu0 %v15560_v2  ;;  %v15567_v2 = vld [vmem:[%s18769_s3 + $0x100] ss:$8 sps:$4 sm:$0xff]  }
 0x3cc   :  { %9269 = vmatpush1.bf16.msra.mxu1 %v15555_v37  ;;  %v15575_v37 = vld [vmem:[%s18769_s3 + $0x114] ss:$8 sps:$4 sm:$0xff]  }
 0x3cd   :  { %9270 = vmatprep.subr.bf16.mxu1 %v15563_v29  ;;  %v15570_v29 = vld [vmem:[%s18769_s3 + $0x500] ss:$8 sps:$4 sm:$0xff]  }
 0x3ce   :  { %7965 = vmatpush1.bf16.msra.mxu0 %v15558_v42  ;;  %v15578_v42 = vld [vmem:[%s18769_s3 + $0x514] ss:$8 sps:$4 sm:$0xff]  }
 0x3cf   :  { %7966 = vmatprep.subr.bf16.mxu0 %v15566_v25  ;;  %v15573_v25 = vld [vmem:[%s18769_s3 + $0x110] ss:$8 sps:$4 sm:$0xff]  }
 0x3d0   :  { %9271 = vmatpush1.bf16.msra.mxu1 %v15561_v52  ;;  %v15581_v52 = vld [vmem:[%s18769_s3 + $0x124] ss:$8 sps:$4 sm:$0xff]  }
 0x3d1   :  { %9293 = vmatprep.subr.bf16.mxu1 %v15569_v0  ;;  %v15579_v0 = vld [vmem:[%s18769_s3 + $0x120] ss:$8 sps:$4 sm:$0xff]  }
 0x3d2   :  { %7967 = vmatpush1.bf16.msra.mxu0 %v15564_v23  ;;  %v15587_v23 = vld [vmem:[%s18769_s3 + $0x134] ss:$8 sps:$4 sm:$0xff]  }
 0x3d3   :  { %9273 = vmatmul.mubr.bf16.vlgmr.msra.gmra.mrb[240].mxu1 %v16915_v13  ;;  %7968 = vmatprep.subr.bf16.mxu0 %v15572_v35  ;;  %v15576_v13 = vld [vmem:[%s18769_s3 + $0x510] ss:$8 sps:$4 sm:$0xff]   ;;  %v17695_v35 = vld [vmem:[%s18769_s3 + $0x520] ss:$8 sps:$4 sm:$0xff]  }
 0x3d4   :  { %9282 = vmatprep.mubr.bf16.mxu1 %v16964_v8  ;;  %9294 = vmatpush1.bf16.msra.mxu1 %v15567_v2  ;;  %v17684_v8 = vld [vmem:[%s18769_s3 + $0x524] ss:$8 sps:$4 sm:$0xff]   ;;  %v17702_v2 = vld [vmem:[%s18769_s3 + $0x534] ss:$8 sps:$4 sm:$0xff]  }
 0x3d5   :  { %9295 = vmatprep.subr.bf16.mxu1 %v15575_v37  ;;  %v15585_v37 = vld [vmem:[%s18769_s3 + $0x130] ss:$8 sps:$4 sm:$0xff]  }
 0x3d6   :  { %7969 = vmatpush1.bf16.msra.mxu0 %v15570_v29  ;;  %v15593_v29 = vld [vmem:[%s18769_s3 + $0x144] ss:$8 sps:$4 sm:$0xff]  }
 0x3d7   :  { %7970 = vmatprep.subr.bf16.mxu0 %v15578_v42  ;;  %v17721_v42 = vld [vmem:[%s18769_s3 + $0x544] ss:$8 sps:$4 sm:$0xff]  }
 0x3d8   :  { %9296 = vmatpush1.bf16.msra.mxu1 %v15573_v25  ;;  %v15591_v25 = vld [vmem:[%s18769_s3 + $0x140] ss:$8 sps:$4 sm:$0xff]  }
 0x3d9   :  { %9297 = vmatprep.subr.bf16.mxu1 %v15581_v52  ;;  %v15599_v52 = vld [vmem:[%s18769_s3 + $0x154] ss:$8 sps:$4 sm:$0xff]  }
 0x3da   :  { %7971 = vmatpush1.bf16.msra.mxu0 %v15576_v13  ;;  %v17733_v13 = vld [vmem:[%s18769_s3 + $0x540] ss:$8 sps:$4 sm:$0xff]  }
 0x3db   :  { %9283 = vmatmul.mubr.bf16.gmra.mrb[252].mxu1 %v16956_v5  ;;  %7972 = vmatprep.subr.bf16.mxu0 %v17684_v8  ;;  %v17715_v5 = vld [vmem:[%s18769_s3 + $0x530] ss:$8 sps:$4 sm:$0xff]  }
 0x3dc   :  { %9298 = vmatpush1.bf16.msra.mxu1 %v15579_v0  ;;  %9325 = vmatprep.mubr.bf16.mxu1 %v18823_v40  ;;  %v17739_v0 = vld [vmem:[%s18769_s3 + $0x554] ss:$8 sps:$4 sm:$0xff]  }
 0x3dd   :  { %9299 = vmatprep.subr.bf16.mxu1 %v15587_v23  ;;  %v15597_v23 = vld [vmem:[%s18769_s3 + $0x150] ss:$8 sps:$4 sm:$0xff]  }
 0x3de   :  { %7973 = vmatpush1.bf16.msra.mxu0 %v17695_v35 }
 0x3df   :  { %7974 = vmatprep.subr.bf16.mxu0 %v17702_v2 }
 0x3e0   :  { %9300 = vmatpush1.bf16.msra.mxu1 %v15585_v37  ;;  %v15605_v37 = vld [vmem:[%s18769_s3 + $0x164] ss:$8 sps:$4 sm:$0xff]  }
 0x3e1   :  { %9301 = vmatprep.subr.bf16.mxu1 %v15593_v29  ;;  %v17751_v29 = vld [vmem:[%s18769_s3 + $0x550] ss:$8 sps:$4 sm:$0xff]  }
 0x3e2   :  { %7975 = vmatpush1.bf16.msra.mxu0 %v17715_v5 }
 0x3e3   :  { %7976 = vmatprep.subr.bf16.mxu0 %v17721_v42 }
 0x3e4   :  { %9302 = vmatpush1.bf16.msra.mxu1 %v15591_v25  ;;  %v17757_v25 = vld [vmem:[%s18769_s3 + $0x564] ss:$8 sps:$4 sm:$0xff]  }
 0x3e5   :  { %9303 = vmatprep.subr.bf16.mxu1 %v15599_v52  ;;  %18824 = vst [vmem:[#allocation19_spill] sm:$0xff] %v17757_v25  ;;  %v15603_v52 = vld [vmem:[%s18769_s3 + $0x160] ss:$8 sps:$4 sm:$0xff]  }
 0x3e6   :  { %7977 = vmatpush1.bf16.msra.mxu0 %v17733_v13 }
 0x3e7   :  { %7978 = vmatprep.subr.bf16.mxu0 %v17739_v0 }
 0x3e8   :  { %9304 = vmatpush1.bf16.msra.mxu1 %v15597_v23  ;;  %v17775_v23 = vld [vmem:[%s18769_s3 + $0x574] ss:$8 sps:$4 sm:$0xff]  }
 0x3e9   :  { %9305 = vmatprep.subr.bf16.mxu1 %v15605_v37  ;;  %18826 = vst [vmem:[#allocation21_spill] sm:$0xff] %v17775_v23  ;;  %v15609_v37 = vld [vmem:[%s18769_s3 + $0x170] ss:$8 sps:$4 sm:$0xff]  }
 0x3ea   :  { %7979 = vmatpush1.bf16.msra.mxu0 %v17751_v29 }
 0x3eb   :  { %7980 = vmatprep.subr.bf16.mxu0 %v17757_v25  ;;  %v17787_v25 = vld [vmem:[%s18769_s3 + $0x570] ss:$8 sps:$4 sm:$0xff]  }
 0x3ec   :  { %9306 = vmatpush1.bf16.msra.mxu1 %v15603_v52  ;;  %v17793_v52 = vld [vmem:[%s18769_s3 + $0x584] ss:$8 sps:$4 sm:$0xff]  }
 0x3ed   :  { %9307 = vmatprep.subr.bf16.mxu1 %v15611_v60  ;;  %v15615_v60 = vld [vmem:[%s18769_s3 + $0x300] ss:$8 sps:$4 sm:$0xff]  }
 0x3ee   :  { %7981 = vmatpush1.bf16.msra.mxu0 %v17769_v38  ;;  %v15623_v38 = vld [vmem:[%s18769_s3 + $0x314] ss:$8 sps:$4 sm:$0xff]  }
 0x3ef   :  { %7982 = vmatprep.subr.bf16.mxu0 %v17775_v23  ;;  %v17805_v23 = vld [vmem:[%s18769_s3 + $0x580] ss:$8 sps:$4 sm:$0xff]  }
 0x3f0   :  { %9308 = vmatpush1.bf16.msra.mxu1 %v15609_v37  ;;  %v17812_v37 = vld [vmem:[%s18769_s3 + $0x594] ss:$8 sps:$4 sm:$0xff]  }
 0x3f1   :  { %9652 = vmatprep.subr.bf16.mxu1 %v15617_v12  ;;  %18827 = vst [vmem:[#allocation22_spill] sm:$0xff] %v17812_v37  ;;  %v15621_v12 = vld [vmem:[%s18769_s3 + $0x310] ss:$8 sps:$4 sm:$0xff]  }
 0x3f2   :  { %7983 = vmatpush1.bf16.msra.mxu0 %v17787_v25 }
 0x3f3   :  { %9326 = vmatmul.mubr.bf16.vlgmr.msra.gmra.mrb[240].mxu1 %v16920_v55  ;;  %8005 = vmatprep.subr.bf16.mxu0 %v17793_v52  ;;  %v15629_v55 = vld [vmem:[%s18769_s3 + $0x324] ss:$8 sps:$4 sm:$0xff]  }
 0x3f4   :  { %9653 = vmatpush1.bf16.msra.mxu1 %v15615_v60  ;;  %9335 = vmatprep.mubr.bf16.mxu1 %v18823_v40  ;;  %v17827_v60 = vld [vmem:[%s18769_s3 + $0x590] ss:$8 sps:$4 sm:$0xff]  }
 0x3f5   :  { %7985 = vmatmul.mubr.bf16.vlgmr.msra.gmra.mrb[112].mxu0 %v17246_v6  ;;  %9654 = vmatprep.subr.bf16.mxu1 %v15623_v38  ;;  %v17833_v6 = vld [vmem:[%s18769_s3 + $0x5a4] ss:$8 sps:$4 sm:$0xff]   ;;  %v15627_v38 = vld [vmem:[%s18769_s3 + $0x320] ss:$8 sps:$4 sm:$0xff]  }
 0x3f6   :  { %7994 = vmatprep.mubr.bf16.mxu0 %v17294_v27  ;;  %8006 = vmatpush1.bf16.msra.mxu0 %v17805_v23  ;;  %18828 = vst [vmem:[#allocation23_spill] sm:$0xff] %v17833_v6  ;;  %v15635_v27 = vld [vmem:[%s18769_s3 + $0x334] ss:$8 sps:$4 sm:$0xff]  }
 0x3f7   :  { %8007 = vmatprep.subr.bf16.mxu0 %v17812_v37  ;;  %v17845_v37 = vld [vmem:[%s18769_s3 + $0x5a0] ss:$8 sps:$4 sm:$0xff]  }
 0x3f8   :  { %9655 = vmatpush1.bf16.msra.mxu1 %v15621_v12  ;;  %v17852_v12 = vld [vmem:[%s18769_s3 + $0x5b4] ss:$8 sps:$4 sm:$0xff]  }
 0x3f9   :  { %9656 = vmatprep.subr.bf16.mxu1 %v15629_v55  ;;  %18829 = vst [vmem:[#allocation24_spill] sm:$0xff] %v17852_v12  ;;  %v15633_v55 = vld [vmem:[%s18769_s3 + $0x330] ss:$8 sps:$4 sm:$0xff]  }
 0x3fa   :  { %8008 = vmatpush1.bf16.msra.mxu0 %v17827_v60 }
 0x3fb   :  { %9336 = vmatmul.mubr.bf16.gmra.mrb[0].mxu1 %v16967_v17  ;;  %8009 = vmatprep.subr.bf16.mxu0 %v17833_v6  ;;  %v15641_v17 = vld [vmem:[%s18769_s3 + $0x344] ss:$8 sps:$4 sm:$0xff]   ;;  %v17866_v6 = vld [vmem:[%s18769_s3 + $0x5b0] ss:$8 sps:$4 sm:$0xff]  }
 0x3fc   :  { %9657 = vmatpush1.bf16.msra.mxu1 %v15627_v38  ;;  %9684 = vmatprep.mubr.bf16.mxu1 %v16368_v53  ;;  %18830 = vst [vmem:[#allocation25_spill] sm:$0xff] %v17866_v6  ;;  %v15639_v38 = vld [vmem:[%s18769_s3 + $0x340] ss:$8 sps:$4 sm:$0xff]  }
 0x3fd   :  { %7995 = vmatmul.mubr.bf16.gmra.mrb[116].mxu0 %v17286_v33  ;;  %9658 = vmatprep.subr.bf16.mxu1 %v15635_v27  ;;  %v17873_v33 = vld [vmem:[%s18769_s3 + $0x5c4] ss:$8 sps:$4 sm:$0xff]   ;;  %v15647_v27 = vld [vmem:[%s18769_s3 + $0x354] ss:$8 sps:$4 sm:$0xff]  }
 0x3fe   :  { %8010 = vmatpush1.bf16.msra.mxu0 %v17845_v37  ;;  %8037 = vmatprep.mubr.bf16.mxu0 %v18823_v40  ;;  %18831 = vst [vmem:[#allocation26_spill] sm:$0xff] %v17873_v33 }
 0x3ff   :  { %8011 = vmatprep.subr.bf16.mxu0 %v17852_v12  ;;  %v17885_v12 = vld [vmem:[%s18769_s3 + $0x5c0] ss:$8 sps:$4 sm:$0xff]  }
 0x400   :  { %9659 = vmatpush1.bf16.msra.mxu1 %v15633_v55  ;;  %18832 = vst [vmem:[#allocation27_spill] sm:$0xff] %v17885_v12  ;;  %v17891_v55 = vld [vmem:[%s18769_s3 + $0x5d4] ss:$8 sps:$4 sm:$0xff]  }
 0x401   :  { %9660 = vmatprep.subr.bf16.mxu1 %v15641_v17  ;;  %18833 = vst [vmem:[#allocation28_spill] sm:$0xff] %v17891_v55  ;;  %v15645_v17 = vld [vmem:[%s18769_s3 + $0x350] ss:$8 sps:$4 sm:$0xff]  }
 0x402   :  { %8012 = vmatpush1.bf16.msra.mxu0 %v17866_v6  ;;  %v15653_v6 = vld [vmem:[%s18769_s3 + $0x364] ss:$8 sps:$4 sm:$0xff]  }
 0x403   :  { %8013 = vmatprep.subr.bf16.mxu0 %v17873_v33  ;;  %v17903_v33 = vld [vmem:[%s18769_s3 + $0x5d0] ss:$8 sps:$4 sm:$0xff]  }
 0x404   :  { %9661 = vmatpush1.bf16.msra.mxu1 %v15639_v38  ;;  %18834 = vst [vmem:[#allocation29_spill] sm:$0xff] %v17903_v33  ;;  %v17909_v38 = vld [vmem:[%s18769_s3 + $0x5e4] ss:$8 sps:$4 sm:$0xff]  }
 0x405   :  { %9662 = vmatprep.subr.bf16.mxu1 %v15647_v27  ;;  %18835 = vst [vmem:[#allocation30_spill] sm:$0xff] %v17909_v38  ;;  %v15651_v27 = vld [vmem:[%s18769_s3 + $0x360] ss:$8 sps:$4 sm:$0xff]  }
 0x406   :  { %8014 = vmatpush1.bf16.msra.mxu0 %v17885_v12  ;;  %v15659_v12 = vld [vmem:[%s18769_s3 + $0x374] ss:$8 sps:$4 sm:$0xff]  }
 0x407   :  { %8015 = vmatprep.subr.bf16.mxu0 %v17891_v55  ;;  %v17921_v55 = vld [vmem:[%s18769_s3 + $0x5e0] ss:$8 sps:$4 sm:$0xff]  }
 0x408   :  { %9663 = vmatpush1.bf16.msra.mxu1 %v15645_v17  ;;  %v17927_v17 = vld [vmem:[%s18769_s3 + $0x5f4] ss:$8 sps:$4 sm:$0xff]  }
 0x409   :  { %9664 = vmatprep.subr.bf16.mxu1 %v15653_v6  ;;  %v15657_v6 = vld [vmem:[%s18769_s3 + $0x370] ss:$8 sps:$4 sm:$0xff]  }
 0x40a   :  { %8016 = vmatpush1.bf16.msra.mxu0 %v17903_v33  ;;  %v17936_v33 = vld [vmem:[%s18769_s3 + $0x5f0] ss:$8 sps:$4 sm:$0xff]  }
 0x40b   :  { %8017 = vmatprep.subr.bf16.mxu0 %v17909_v38  ;;  %v17942_v38 = vld [vmem:[%s18769_s3 + $0x604] ss:$8 sps:$4 sm:$0xff]  }
 0x40c   :  { %9665 = vmatpush1.bf16.msra.mxu1 %v15651_v27  ;;  %v17955_v27 = vld [vmem:[%s18769_s3 + $0x614] ss:$8 sps:$4 sm:$0xff]  }
 0x40d   :  { %9666 = vmatprep.subr.bf16.mxu1 %v15659_v12  ;;  %v17949_v12 = vld [vmem:[%s18769_s3 + $0x600] ss:$8 sps:$4 sm:$0xff]  }
 0x40e   :  { %8018 = vmatpush1.bf16.msra.mxu0 %v17921_v55 }
 0x40f   :  { %8019 = vmatprep.subr.bf16.mxu0 %v17927_v17 }
 0x410   :  { %9667 = vmatpush1.bf16.msra.mxu1 %v15657_v6  ;;  %v17971_v6 = vld [vmem:[%s18769_s3 + $0x624] ss:$8 sps:$4 sm:$0xff]  }
 0x411   :  { %9668 = vmatprep.subr.bf16.mxu1 %v17251_v15  ;;  %v17964_v15 = vld [vmem:[%s18769_s3 + $0x610] ss:$8 sps:$4 sm:$0xff]  }
 0x412   :  { %8020 = vmatpush1.bf16.msra.mxu0 %v17936_v33 }
 0x413   :  { %8373 = vmatprep.subr.bf16.mxu0 %v17942_v38 }
 0x414   :  { %9669 = vmatpush1.bf16.msra.mxu1 %v17266_v32  ;;  %v17985_v32 = vld [vmem:[%s18769_s3 + $0x634] ss:$8 sps:$4 sm:$0xff]  }
 0x415   :  { %8038 = vmatmul.mubr.bf16.vlgmr.msra.gmra.mrb[112].mxu0 %v17253_v16  ;;  %9670 = vmatprep.subr.bf16.mxu1 %v17274_v34  ;;  %v17979_v16 = vld [vmem:[%s18769_s3 + $0x620] ss:$8 sps:$4 sm:$0xff]   ;;  %v17995_v34 = vld [vmem:[%s18769_s3 + $0x630] ss:$8 sps:$4 sm:$0xff]  }
 0x416   :  { %8374 = vmatpush1.bf16.msra.mxu0 %v17949_v12  ;;  %8047 = vmatprep.mubr.bf16.mxu0 %v18823_v40 }
 0x417   :  { %8375 = vmatprep.subr.bf16.mxu0 %v17955_v27 }
 0x418   :  { %9671 = vmatpush1.bf16.msra.mxu1 %v17284_v22  ;;  %v18001_v22 = vld [vmem:[%s18769_s3 + $0x644] ss:$8 sps:$4 sm:$0xff]  }
 0x419   :  { %9672 = vmatprep.subr.bf16.mxu1 %v17292_v45  ;;  %v18015_v45 = vld [vmem:[%s18769_s3 + $0x654] ss:$8 sps:$4 sm:$0xff]  }
 0x41a   :  { %8376 = vmatpush1.bf16.msra.mxu0 %v17964_v15 }
 0x41b   :  { %8377 = vmatprep.subr.bf16.mxu0 %v17971_v6 }
 0x41c   :  { %9673 = vmatpush1.bf16.msra.mxu1 %v17305_v21  ;;  %v18029_v21 = vld [vmem:[%s18769_s3 + $0x664] ss:$8 sps:$4 sm:$0xff]  }
 0x41d   :  { %8048 = vmatmul.mubr.bf16.gmra.mrb[116].mxu0 %v17297_v10  ;;  %9674 = vmatprep.subr.bf16.mxu1 %v17312_v47  ;;  %v18023_v10 = vld [vmem:[%s18769_s3 + $0x650] ss:$8 sps:$4 sm:$0xff]   ;;  %v18037_v47 = vld [vmem:[%s18769_s3 + $0x660] ss:$8 sps:$4 sm:$0xff]  }
 0x41e   :  { %8378 = vmatpush1.bf16.msra.mxu0 %v17979_v16  ;;  %8405 = vmatprep.mubr.bf16.mxu0 %v16368_v53  ;;  %v18009_v53 = vld [vmem:[%s18769_s3 + $0x640] ss:$8 sps:$4 sm:$0xff]  }
 0x41f   :  { %8379 = vmatprep.subr.bf16.mxu0 %v17985_v32 }
 0x420   :  { %9675 = vmatpush1.bf16.msra.mxu1 %v17321_v30  ;;  %v18043_v30 = vld [vmem:[%s18769_s3 + $0x674] ss:$8 sps:$4 sm:$0xff]  }
 0x421   :  { %9676 = vmatprep.subr.bf16.mxu1 %v17327_v58  ;;  %v18051_v58 = vld [vmem:[%s18769_s3 + $0x670] ss:$8 sps:$4 sm:$0xff]  }
 0x422   :  { %8380 = vmatpush1.bf16.msra.mxu0 %v17995_v34 }
 0x423   :  { %8381 = vmatprep.subr.bf16.mxu0 %v18001_v22 }
 0x424   :  { %9677 = vmatpush1.bf16.msra.mxu1 %v17338_v41  ;;  %v18057_v41 = vld [vmem:[%s18769_s3 + $0x684] ss:$8 sps:$4 sm:$0xff]  }
 0x425   :  { %9678 = vmatprep.subr.bf16.mxu1 %v17344_v48  ;;  %v18065_v48 = vld [vmem:[%s18769_s3 + $0x680] ss:$8 sps:$4 sm:$0xff]  }
 0x426   :  { %8382 = vmatpush1.bf16.msra.mxu0 %v18009_v53 }
 0x427   :  { %8383 = vmatprep.subr.bf16.mxu0 %v18015_v45 }
 0x428   :  { %9679 = vmatpush1.bf16.msra.mxu1 %v17357_v14  ;;  %v18072_v14 = vld [vmem:[%s18769_s3 + $0x694] ss:$8 sps:$4 sm:$0xff]  }
 0x429   :  { %9680 = vmatprep.subr.bf16.mxu1 %v17363_v54  ;;  %v18081_v54 = vld [vmem:[%s18769_s3 + $0x690] ss:$8 sps:$4 sm:$0xff]  }
 0x42a   :  { %8384 = vmatpush1.bf16.msra.mxu0 %v18023_v10 }
 0x42b   :  { %8385 = vmatprep.subr.bf16.mxu0 %v18029_v21 }
 0x42c   :  { %9681 = vmatpush1.bf16.msra.mxu1 %v17375_v20  ;;  %v18087_v20 = vld [vmem:[%s18769_s3 + $0x6a4] ss:$8 sps:$4 sm:$0xff]  }
 0x42d   :  { %9682 = vmatprep.subr.bf16.mxu1 %v17381_v61  ;;  %v18095_v61 = vld [vmem:[%s18769_s3 + $0x6a0] ss:$8 sps:$4 sm:$0xff]  }
 0x42e   :  { %8386 = vmatpush1.bf16.msra.mxu0 %v18037_v47 }
 0x42f   :  { %8387 = vmatprep.subr.bf16.mxu0 %v18043_v30 }
 0x430   :  { %9683 = vmatpush1.bf16.msra.mxu1 %v17393_v46  ;;  %v18102_v46 = vld [vmem:[%s18769_s3 + $0x6b4] ss:$8 sps:$4 sm:$0xff]  }
 0x431   :  { %9705 = vmatprep.subr.bf16.mxu1 %v17399_v63  ;;  %v18111_v63 = vld [vmem:[%s18769_s3 + $0x6b0] ss:$8 sps:$4 sm:$0xff]  }
 0x432   :  { %8388 = vmatpush1.bf16.msra.mxu0 %v18051_v58 }
 0x433   :  { %9685 = vmatmul.mubr.bf16.vlgmr.msra.gmra.mrb[240].mxu1 %v16364_v50  ;;  %8389 = vmatprep.subr.bf16.mxu0 %v18057_v41 }
 0x434   :  { %9694 = vmatprep.mubr.bf16.mxu1 %v16401_v31  ;;  %9706 = vmatpush1.bf16.msra.mxu1 %v17411_v57  ;;  %v18117_v57 = vld [vmem:[%s18769_s3 + $0x6c4] ss:$8 sps:$4 sm:$0xff]  }
 0x435   :  { %9707 = vmatprep.subr.bf16.mxu1 %v17418_v9  ;;  %v18125_v9 = vld [vmem:[%s18769_s3 + $0x6c0] ss:$8 sps:$4 sm:$0xff]  }
 0x436   :  { %8390 = vmatpush1.bf16.msra.mxu0 %v18065_v48 }
 0x437   :  { %8391 = vmatprep.subr.bf16.mxu0 %v18072_v14 }
 0x438   :  { %9708 = vmatpush1.bf16.msra.mxu1 %v17433_v62  ;;  %v18131_v62 = vld [vmem:[%s18769_s3 + $0x6d4] ss:$8 sps:$4 sm:$0xff]  }
 0x439   :  { %9709 = vmatprep.subr.bf16.mxu1 %v17439_v24  ;;  %v18139_v24 = vld [vmem:[%s18769_s3 + $0x6d0] ss:$8 sps:$4 sm:$0xff]  }
 0x43a   :  { %8392 = vmatpush1.bf16.msra.mxu0 %v18081_v54 }
 0x43b   :  { %9695 = vmatmul.mubr.bf16.gmra.mrb[4].mxu1 %v16393_v28  ;;  %8393 = vmatprep.subr.bf16.mxu0 %v18087_v20 }
 0x43c   :  { %9710 = vmatpush1.bf16.msra.mxu1 %v17451_v19  ;;  %9737 = vmatprep.mubr.bf16.mxu1 %v18823_v40  ;;  %v18145_v19 = vld [vmem:[%s18769_s3 + $0x6e4] ss:$8 sps:$4 sm:$0xff]  }
 0x43d   :  { %9711 = vmatprep.subr.bf16.mxu1 %v17458_v11  ;;  %v18153_v11 = vld [vmem:[%s18769_s3 + $0x6e0] ss:$8 sps:$4 sm:$0xff]  }
 0x43e   :  { %8394 = vmatpush1.bf16.msra.mxu0 %v18095_v61 }
 0x43f   :  { %8395 = vmatprep.subr.bf16.mxu0 %v18102_v46 }
 0x440   :  { %9712 = vmatpush1.bf16.msra.mxu1 %v17472_v59  ;;  %v18159_v59 = vld [vmem:[%s18769_s3 + $0x6f4] ss:$8 sps:$4 sm:$0xff]  }
 0x441   :  { %9713 = vmatprep.subr.bf16.mxu1 %v17479_v56  ;;  %18836 = vst [vmem:[#allocation31_spill] sm:$0xff] %v18159_v59  ;;  %v18169_v56 = vld [vmem:[%s18769_s3 + $0x6f0] ss:$8 sps:$4 sm:$0xff]  }
 0x442   :  { %8396 = vmatpush1.bf16.msra.mxu0 %v18111_v63 }
 0x443   :  { %8397 = vmatprep.subr.bf16.mxu0 %v18117_v57 }
 0x444   :  { %9714 = vmatpush1.bf16.msra.mxu1 %v17491_v44 }
 0x445   :  { %9715 = vmatprep.subr.bf16.mxu1 %v17497_v36  ;;  %v18177_v36 = vld [vmem:[%s18769_s3 + $0x704] ss:$8 sps:$4 sm:$0xff]  }
 0x446   :  { %8398 = vmatpush1.bf16.msra.mxu0 %v18125_v9  ;;  %18837 = vst [vmem:[#allocation32_spill] sm:$0xff] %v18177_v36 }
 0x447   :  { %8399 = vmatprep.subr.bf16.mxu0 %v18131_v62 }
 0x448   :  { %9716 = vmatpush1.bf16.msra.mxu1 %v17509_v39 }
 0x449   :  { %9717 = vmatprep.subr.bf16.mxu1 %v17515_v49 }
 0x44a   :  { %8400 = vmatpush1.bf16.msra.mxu0 %v18139_v24 }
 0x44b   :  { %8401 = vmatprep.subr.bf16.mxu0 %v18145_v19 }
 0x44c   :  { %9718 = vmatpush1.bf16.msra.mxu1 %v17527_v1 }
 0x44d   :  { %9719 = vmatprep.subr.bf16.mxu1 %v17533_v4  ;;  %v15716_v4 = vld [vmem:[%s18769_s3 + $0x494] ss:$8 sps:$4 sm:$0xff]  }
 0x44e   :  { %8402 = vmatpush1.bf16.msra.mxu0 %v18153_v11  ;;  %v18164_v39 = vpop.f32.mrb[244].mxu1 }
 0x44f   :  { %v18171_v44 = vpop.f32.mrb[245].mxu1  ;;  %8403 = vmatprep.subr.bf16.mxu0 %v18159_v59  ;;  %v18188_v59 = vld [vmem:[%s18769_s3 + $0x700] ss:$8 sps:$4 sm:$0xff]  }
 0x450   :  { %9720 = vmatpush1.bf16.msra.mxu1 %v17545_v7  ;;  %v8942_v1 = vpop.f32.mrb[246].mxu1  ;;  %18838 = vst [vmem:[#allocation33_spill] sm:$0xff] %v18188_v59  ;;  %v18195_v7 = vld [vmem:[%s18769_s3 + $0x714] ss:$8 sps:$4 sm:$0xff]  }
 0x451   :  { %v8944_v49 = vpop.f32.mrb[247].mxu1  ;;  %10072 = vmatprep.subr.bf16.mxu1 %v17551_v3  ;;  %18839 = vst [vmem:[#allocation34_spill] sm:$0xff] %v18195_v7  ;;  %v15714_v3 = vld [vmem:[%s18769_s3 + $0x490] ss:$8 sps:$4 sm:$0xff]   ;;  %v15722_v1 = vld [vmem:[%s18769_s3 + $0x4a4] ss:$8 sps:$4 sm:$0xff]  }
 0x452   :  { %8404 = vmatpush1.bf16.msra.mxu0 %v18169_v56  ;;  %v15720_v49 = vld [vmem:[%s18769_s3 + $0x4a0] ss:$8 sps:$4 sm:$0xff]  }
 0x453   :  { %9738 = vmatmul.mubr.bf16.vlgmr.msra.gmra.mrb[240].mxu1 %v16366_v51  ;;  %8426 = vmatprep.subr.bf16.mxu0 %v18177_v36 }
 0x454   :  { %10073 = vmatpush1.bf16.msra.mxu1 %v17563_v18  ;;  %9747 = vmatprep.mubr.bf16.mxu1 %v18823_v40  ;;  %v18211_v18 = vld [vmem:[%s18769_s3 + $0x710] ss:$8 sps:$4 sm:$0xff]  }
 0x455   :  { %8406 = vmatmul.mubr.bf16.vlgmr.msra.gmra.mrb[112].mxu0 %v16364_v50  ;;  %10074 = vmatprep.subr.bf16.mxu1 %v15716_v4  ;;  %18840 = vst [vmem:[#allocation35_spill] sm:$0xff] %v18211_v18  ;;  %v18217_v50 = vld [vmem:[%s18769_s3 + $0x724] ss:$8 sps:$4 sm:$0xff]   ;;  %v18229_v4 = vld [vmem:[%s18769_s3 + $0x720] ss:$8 sps:$4 sm:$0xff]  }
 0x456   :  { %8415 = vmatprep.mubr.bf16.mxu0 %v16401_v31  ;;  %8427 = vmatpush1.bf16.msra.mxu0 %v18188_v59  ;;  %18841 = vst [vmem:[#allocation36_spill] sm:$0xff] %v18217_v50  ;;  %v15728_v31 = vld [vmem:[%s18769_s3 + $0x4b4] ss:$8 sps:$4 sm:$0xff]   ;;  %18842 = vst [vmem:[#allocation37_spill] sm:$0xff] %v18229_v4  ;;  %v15756_v59 = vld [vmem:[%s18769_s3 + $0x500] ss:$8 sps:$4 sm:$0xff]  }
 0x457   :  { %8428 = vmatprep.subr.bf16.mxu0 %v18195_v7 }
 0x458   :  { %10075 = vmatpush1.bf16.msra.mxu1 %v15714_v3  ;;  %v18236_v3 = vld [vmem:[%s18769_s3 + $0x734] ss:$8 sps:$4 sm:$0xff]  }
 0x459   :  { %10076 = vmatprep.subr.bf16.mxu1 %v15722_v1  ;;  %18843 = vst [vmem:[#allocation38_spill] sm:$0xff] %v18236_v3  ;;  %v15726_v1 = vld [vmem:[%s18769_s3 + $0x4b0] ss:$8 sps:$4 sm:$0xff]  }
 0x45a   :  { %8429 = vmatpush1.bf16.msra.mxu0 %v18211_v18  ;;  %v15734_v18 = vld [vmem:[%s18769_s3 + $0x4c4] ss:$8 sps:$4 sm:$0xff]  }
 0x45b   :  { %9748 = vmatmul.mubr.bf16.gmra.mrb[8].mxu1 %v16390_v26  ;;  %8430 = vmatprep.subr.bf16.mxu0 %v18217_v50  ;;  %v18250_v50 = vld [vmem:[%s18769_s3 + $0x730] ss:$8 sps:$4 sm:$0xff]  }
 0x45c   :  { %10077 = vmatpush1.bf16.msra.mxu1 %v15720_v49  ;;  %10104 = vmatprep.mubr.bf16.mxu1 %v16624_v43  ;;  %18844 = vst [vmem:[#allocation39_spill] sm:$0xff] %v18250_v50  ;;  %v15732_v43 = vld [vmem:[%s18769_s3 + $0x4c0] ss:$8 sps:$4 sm:$0xff]   ;;  %v15740_v49 = vld [vmem:[%s18769_s3 + $0x4d4] ss:$8 sps:$4 sm:$0xff]  }
 0x45d   :  { %8416 = vmatmul.mubr.bf16.gmra.mrb[116].mxu0 %v16393_v28  ;;  %10078 = vmatprep.subr.bf16.mxu1 %v15728_v31  ;;  %v18257_v28 = vld [vmem:[%s18769_s3 + $0x744] ss:$8 sps:$4 sm:$0xff]   ;;  %v18269_v31 = vld [vmem:[%s18769_s3 + $0x740] ss:$8 sps:$4 sm:$0xff]  }
 0x45e   :  { %8431 = vmatpush1.bf16.msra.mxu0 %v18229_v4  ;;  %8458 = vmatprep.mubr.bf16.mxu0 %v18823_v40  ;;  %18845 = vst [vmem:[#allocation40_spill] sm:$0xff] %v18257_v28  ;;  %18846 = vst [vmem:[#allocation41_spill] sm:$0xff] %v18269_v31 }
 0x45f   :  { %8432 = vmatprep.subr.bf16.mxu0 %v18236_v3 }
 0x460   :  { %10079 = vmatpush1.bf16.msra.mxu1 %v15726_v1  ;;  %v18275_v1 = vld [vmem:[%s18769_s3 + $0x754] ss:$8 sps:$4 sm:$0xff]  }
 0x461   :  { %10080 = vmatprep.subr.bf16.mxu1 %v15734_v18  ;;  %18847 = vst [vmem:[#allocation42_spill] sm:$0xff] %v18275_v1  ;;  %v15738_v18 = vld [vmem:[%s18769_s3 + $0x4d0] ss:$8 sps:$4 sm:$0xff]  }
 0x462   :  { %8433 = vmatpush1.bf16.msra.mxu0 %v18250_v50  ;;  %v15746_v50 = vld [vmem:[%s18769_s3 + $0x4e4] ss:$8 sps:$4 sm:$0xff]  }
 0x463   :  { %8434 = vmatprep.subr.bf16.mxu0 %v18257_v28  ;;  %v18287_v28 = vld [vmem:[%s18769_s3 + $0x750] ss:$8 sps:$4 sm:$0xff]  }
 0x464   :  { %10081 = vmatpush1.bf16.msra.mxu1 %v15732_v43  ;;  %18848 = vst [vmem:[#allocation43_spill] sm:$0xff] %v18287_v28  ;;  %v18293_v43 = vld [vmem:[%s18769_s3 + $0x764] ss:$8 sps:$4 sm:$0xff]  }
 0x465   :  { %10082 = vmatprep.subr.bf16.mxu1 %v15740_v49  ;;  %18849 = vst [vmem:[#allocation44_spill] sm:$0xff] %v18293_v43  ;;  %v15744_v49 = vld [vmem:[%s18769_s3 + $0x4e0] ss:$8 sps:$4 sm:$0xff]  }
 0x466   :  { %8435 = vmatpush1.bf16.msra.mxu0 %v18269_v31  ;;  %v15752_v31 = vld [vmem:[%s18769_s3 + $0x4f4] ss:$8 sps:$4 sm:$0xff]  }
 0x467   :  { %8436 = vmatprep.subr.bf16.mxu0 %v18275_v1  ;;  %v18305_v1 = vld [vmem:[%s18769_s3 + $0x760] ss:$8 sps:$4 sm:$0xff]  }
 0x468   :  { %10083 = vmatpush1.bf16.msra.mxu1 %v15738_v18  ;;  %18850 = vst [vmem:[#allocation45_spill] sm:$0xff] %v18305_v1  ;;  %v18311_v18 = vld [vmem:[%s18769_s3 + $0x774] ss:$8 sps:$4 sm:$0xff]  }
 0x469   :  { %10084 = vmatprep.subr.bf16.mxu1 %v15746_v50  ;;  %v15750_v50 = vld [vmem:[%s18769_s3 + $0x4f0] ss:$8 sps:$4 sm:$0xff]  }
 0x46a   :  { %8437 = vmatpush1.bf16.msra.mxu0 %v18287_v28  ;;  %v15758_v28 = vld [vmem:[%s18769_s3 + $0x504] ss:$8 sps:$4 sm:$0xff]  }
 0x46b   :  { %8438 = vmatprep.subr.bf16.mxu0 %v18293_v43  ;;  %v18323_v43 = vld [vmem:[%s18769_s3 + $0x770] ss:$8 sps:$4 sm:$0xff]  }
 0x46c   :  { %10085 = vmatpush1.bf16.msra.mxu1 %v15744_v49 }
 0x46d   :  { %10086 = vmatprep.subr.bf16.mxu1 %v15752_v31 }
 0x46e   :  { %v8991_v3 = vpop.f32.mrb[248].mxu1  ;;  %8439 = vmatpush1.bf16.msra.mxu0 %v18305_v1  ;;  %v15761_v1 = vld [vmem:[%s18769_s3 + $0x514] ss:$8 sps:$4 sm:$0xff]  }
 0x46f   :  { %v8992_v4 = vadd.f32 %v8991_v3, %v18164_v39  ;;  %v8993_v49 = vpop.f32.mrb[249].mxu1  ;;  %8440 = vmatprep.subr.bf16.mxu0 %v18311_v18  ;;  %v15759_v39 = vld [vmem:[%s18769_s3 + $0x510] ss:$8 sps:$4 sm:$0xff]  }
 0x470   :  { %v8994_v7 = vadd.f32 %v8993_v49, %v18171_v44  ;;  %v8995_v31 = vpop.f32.mrb[250].mxu1  ;;  %10087 = vmatpush1.bf16.msra.mxu1 %v15750_v50  ;;  %v18866_v50 = vld [vmem:[#allocation9_spill] sm:$0xff]  ;;  %v15769_v49 = vld [vmem:[%s18771_s5 + $0x18] sm:$0xff]  }
 0x471   :  { %v8997_v36 = vpop.f32.mrb[251].mxu1  ;;  %10088 = vmatprep.subr.bf16.mxu1 %v15758_v28  ;;  %v15770_v31 = vld [vmem:[%s18771_s5 + $0x60] sm:$0xff]  }
 0x472   :  { %8441 = vmatpush1.bf16.msra.mxu0 %v18323_v43 }
 0x474   :  { %10089 = vmatpush1.bf16.msra.mxu1 %v15756_v59  ;;  %v18852_v59 = vld [vmem:[#allocation20_spill] sm:$0xff] }
 0x475   :  { %8459 = vmatmul.mubr.bf16.vlgmr.msra.gmra.mrb[112].mxu0 %v16366_v51  ;;  %10090 = vmatprep.subr.bf16.mxu1 %v15761_v1  ;;  %v18851_v51 = vld [vmem:[#allocation19_spill] sm:$0xff] }
 0x476   :  { %8468 = vmatprep.mubr.bf16.mxu0 %v18823_v40 }
 0x478   :  { %10091 = vmatpush1.bf16.msra.mxu1 %v15759_v39  ;;  %v15771_v39 = vld [vmem:[%s18771_s5 + $0x20] sm:$0xff]  }
 0x479   :  { %10092 = vmatprep.subr.bf16.mxu1 %v17684_v8  ;;  %v18853_v8 = vld [vmem:[#allocation21_spill] sm:$0xff] }
 0x47c   :  { %10093 = vmatpush1.bf16.msra.mxu1 %v17695_v35  ;;  %v18855_v35 = vld [vmem:[#allocation12_spill] sm:$0xff] }
 0x47d   :  { %8469 = vmatmul.mubr.bf16.gmra.mrb[116].mxu0 %v16390_v26  ;;  %10094 = vmatprep.subr.bf16.mxu1 %v17702_v2  ;;  %v18854_v26 = vld [vmem:[#allocation8_spill] sm:$0xff]  ;;  %v18856_v2 = vld [vmem:[#allocation22_spill] sm:$0xff] }
 0x480   :  { %10095 = vmatpush1.bf16.msra.mxu1 %v17715_v5  ;;  %v18857_v5 = vld [vmem:[#allocation23_spill] sm:$0xff] }
 0x481   :  { %10096 = vmatprep.subr.bf16.mxu1 %v17721_v42  ;;  %v18858_v42 = vld [vmem:[#allocation11_spill] sm:$0xff] }
 0x484   :  { %10097 = vmatpush1.bf16.msra.mxu1 %v17733_v13  ;;  %v18859_v13 = vld [vmem:[#allocation24_spill] sm:$0xff] }
 0x485   :  { %10098 = vmatprep.subr.bf16.mxu1 %v17739_v0  ;;  %v18860_v0 = vld [vmem:[#allocation25_spill] sm:$0xff] }
 0x488   :  { %10099 = vmatpush1.bf16.msra.mxu1 %v17751_v29  ;;  %v18861_v29 = vld [vmem:[#allocation26_spill] sm:$0xff] }
 0x489   :  { %10100 = vmatprep.subr.bf16.mxu1 %v18851_v51  ;;  %v15772_v51 = vld [vmem:[%s18771_s5 + $0x68] sm:$0xff]  }
 0x48c   :  { %10101 = vmatpush1.bf16.msra.mxu1 %v18852_v59  ;;  %v15773_v59 = vld [vmem:[%s18771_s5 + $0x28] sm:$0xff]  }
 0x48d   :  { %10102 = vmatprep.subr.bf16.mxu1 %v18853_v8  ;;  %v15774_v8 = vld [vmem:[%s18771_s5 + $0x70] sm:$0xff]  }
 0x490   :  { %10103 = vmatpush1.bf16.msra.mxu1 %v17787_v25  ;;  %v18862_v25 = vld [vmem:[#allocation27_spill] sm:$0xff] }
 0x491   :  { %10125 = vmatprep.subr.bf16.mxu1 %v17793_v52  ;;  %v18864_v52 = vld [vmem:[#allocation29_spill] sm:$0xff] }
 0x493   :  { %10105 = vmatmul.mubr.bf16.vlgmr.msra.gmra.mrb[240].mxu1 %v18854_v26  ;;  %v15775_v26 = vld [vmem:[%s18771_s5 + $0x30] sm:$0xff]  }
 0x494   :  { %10114 = vmatprep.mubr.bf16.mxu1 %v18855_v35  ;;  %10126 = vmatpush1.bf16.msra.mxu1 %v17805_v23  ;;  %v18863_v23 = vld [vmem:[#allocation28_spill] sm:$0xff]  ;;  %v15776_v35 = vld [vmem:[%s18771_s5 + $0x78] sm:$0xff]  }
 0x495   :  { %10127 = vmatprep.subr.bf16.mxu1 %v18856_v2  ;;  %v15777_v2 = vld [vmem:[%s18771_s5 + $0x38] sm:$0xff]  }
 0x498   :  { %10128 = vmatpush1.bf16.msra.mxu1 %v17827_v60  ;;  %v18865_v60 = vld [vmem:[#allocation30_spill] sm:$0xff] }
 0x499   :  { %10129 = vmatprep.subr.bf16.mxu1 %v18857_v5 }
 0x49b   :  { %10115 = vmatmul.mubr.bf16.gmra.mrb[12].mxu1 %v18858_v42 }
 0x49c   :  { %10130 = vmatpush1.bf16.msra.mxu1 %v17845_v37  ;;  %10157 = vmatprep.mubr.bf16.mxu1 %v18823_v40 }
 0x49d   :  { %10131 = vmatprep.subr.bf16.mxu1 %v18859_v13 }
 0x4a0   :  { %10132 = vmatpush1.bf16.msra.mxu1 %v18860_v0 }
 0x4a1   :  { %10133 = vmatprep.subr.bf16.mxu1 %v18861_v29 }
 0x4a4   :  { %10134 = vmatpush1.bf16.msra.mxu1 %v18862_v25 }
 0x4a5   :  { %10135 = vmatprep.subr.bf16.mxu1 %v18863_v23 }
 0x4a8   :  { %10136 = vmatpush1.bf16.msra.mxu1 %v18864_v52 }
 0x4a9   :  { %10137 = vmatprep.subr.bf16.mxu1 %v18865_v60  ;;  %v6398_v60 = vld [vmem:[%s18770_s4] sm:$0x3] }
 0x4ac   :  { %10138 = vmatpush1.bf16.msra.mxu1 %v17921_v55  ;;  %v18867_v55 = vld [vmem:[#allocation10_spill] sm:$0xff] }
 0x4ad   :  { %10139 = vmatprep.subr.bf16.mxu1 %v17927_v17 }
 0x4ae   :  { %v9284_v37 = vpop.f32.mrb[252].mxu1 }
 0x4af   :  { %v9285_v44 = vadd.f32 %v9284_v37, %v8992_v4  ;;  %v9286_v36 = vpop.f32.mrb[253].mxu1  ;;  %v15766_v4 = vld [vmem:[%s18771_s5 + $0x50] sm:$0xff]   ;;  %v18889_v37 = vld [vmem:[#allocation7_spill] sm:$0xff] }
 0x4b0   :  { %v9287_v3 = vadd.f32 %v9286_v36, %v8994_v7  ;;  %v9288_v28 = vpop.f32.mrb[254].mxu1  ;;  %10140 = vmatpush1.bf16.msra.mxu1 %v17936_v33  ;;  %v18868_v33 = vld [vmem:[#allocation15_spill] sm:$0xff]  ;;  %v15765_v7 = vld [vmem:[%s18771_s5 + $0x8] sm:$0xff]  }
 0x4b1   :  { %v9290_v1 = vpop.f32.mrb[255].mxu1  ;;  %10492 = vmatprep.subr.bf16.mxu1 %v17942_v38 }
 0x4b3   :  { %10158 = vmatmul.mubr.bf16.vlgmr.msra.gmra.mrb[240].mxu1 %v18866_v50 }
 0x4b4   :  { %10493 = vmatpush1.bf16.msra.mxu1 %v17949_v12  ;;  %10167 = vmatprep.mubr.bf16.mxu1 %v18823_v40 }
 0x4b5   :  { %10494 = vmatprep.subr.bf16.mxu1 %v17955_v27 }
 0x4b8   :  { %10495 = vmatpush1.bf16.msra.mxu1 %v17964_v15 }
 0x4b9   :  { %10496 = vmatprep.subr.bf16.mxu1 %v17971_v6 }
 0x4bb   :  { %10168 = vmatmul.mubr.bf16.gmra.mrb[16].mxu1 %v18867_v55 }
 0x4bc   :  { %10497 = vmatpush1.bf16.msra.mxu1 %v17979_v16  ;;  %10524 = vmatprep.mubr.bf16.mxu1 %v18868_v33  ;;  %v18869_v16 = vld [vmem:[#allocation31_spill] sm:$0xff] }
 0x4bd   :  { %10498 = vmatprep.subr.bf16.mxu1 %v17985_v32  ;;  %v18870_v32 = vld [vmem:[#allocation32_spill] sm:$0xff] }
 0x4c0   :  { %10499 = vmatpush1.bf16.msra.mxu1 %v17995_v34  ;;  %v18871_v34 = vld [vmem:[#allocation13_spill] sm:$0xff] }
 0x4c1   :  { %10500 = vmatprep.subr.bf16.mxu1 %v18001_v22  ;;  %v18872_v22 = vld [vmem:[#allocation18_spill] sm:$0xff] }
 0x4c4   :  { %10501 = vmatpush1.bf16.msra.mxu1 %v18009_v53  ;;  %v18873_v53 = vld [vmem:[#allocation33_spill] sm:$0xff] }
 0x4c5   :  { %10502 = vmatprep.subr.bf16.mxu1 %v18015_v45  ;;  %v18874_v45 = vld [vmem:[#allocation34_spill] sm:$0xff] }
 0x4c8   :  { %10503 = vmatpush1.bf16.msra.mxu1 %v18023_v10  ;;  %v18875_v10 = vld [vmem:[#allocation35_spill] sm:$0xff] }
 0x4c9   :  { %10504 = vmatprep.subr.bf16.mxu1 %v18029_v21  ;;  %v18876_v21 = vld [vmem:[#allocation36_spill] sm:$0xff] }
 0x4cc   :  { %10505 = vmatpush1.bf16.msra.mxu1 %v18037_v47  ;;  %v18877_v47 = vld [vmem:[#allocation17_spill] sm:$0xff] }
 0x4cd   :  { %10506 = vmatprep.subr.bf16.mxu1 %v18043_v30  ;;  %v18878_v30 = vld [vmem:[#allocation37_spill] sm:$0xff] }
 0x4ce   :  { %v9337_v38 = vpop.f32.mrb[0].mxu1 }
 0x4cf   :  { %v18392_v17 = vadd.f32 %v9337_v38, %v9285_v44  ;;  %v9339_v12 = vpop.f32.mrb[1].mxu1  ;;  %v18890_v44 = vsub.s32 0, %v18889_v37 }
 0x4d0   :  { %v18394_v27 = vadd.f32 %v9339_v12, %v9287_v3  ;;  %v9341_v15 = vpop.f32.mrb[2].mxu1  ;;  %10507 = vmatpush1.bf16.msra.mxu1 %v18051_v58  ;;  %v18879_v58 = vld [vmem:[#allocation38_spill] sm:$0xff]  ;;  %v18891_v3 = vsub.s32 1, %v18889_v37 }
 0x4d1   :  { %v9343_v6 = vpop.f32.mrb[3].mxu1  ;;  %10508 = vmatprep.subr.bf16.mxu1 %v18057_v41  ;;  %v18880_v41 = vld [vmem:[#allocation39_spill] sm:$0xff]  ;;  %v18495_v36 = vrot.slane %v6398_v60, %v18890_v44 }
 0x4d2   :  { %v18499_v28 = vrot.slane %v6398_v60, %v18891_v3  ;;  %v15804_v60 = vld [vmem:[%s18771_s5 + $0x1e8] sm:$0xff]   ;;  %v15805_v44 = vld [vmem:[%s18771_s5 + $0x140] sm:$0xff]  }
 0x4d3   :  { %v15806_v3 = vld [vmem:[%s18771_s5 + $0x1a8] sm:$0xff]  }
 0x4d4   :  { %10509 = vmatpush1.bf16.msra.mxu1 %v18065_v48  ;;  %v18881_v48 = vld [vmem:[#allocation40_spill] sm:$0xff] }
 0x4d5   :  { %10510 = vmatprep.subr.bf16.mxu1 %v18072_v14  ;;  %v18882_v14 = vld [vmem:[#allocation41_spill] sm:$0xff] }
 0x4d8   :  { %10511 = vmatpush1.bf16.msra.mxu1 %v18081_v54  ;;  %v18883_v54 = vld [vmem:[#allocation42_spill] sm:$0xff] }
 0x4d9   :  { %10512 = vmatprep.subr.bf16.mxu1 %v18087_v20  ;;  %v18884_v20 = vld [vmem:[#allocation43_spill] sm:$0xff] }
 0x4dc   :  { %10513 = vmatpush1.bf16.msra.mxu1 %v18095_v61  ;;  %v18885_v61 = vld [vmem:[#allocation44_spill] sm:$0xff] }
 0x4dd   :  { %10514 = vmatprep.subr.bf16.mxu1 %v18102_v46  ;;  %v18886_v46 = vld [vmem:[#allocation45_spill] sm:$0xff] }
 0x4e0   :  { %10515 = vmatpush1.bf16.msra.mxu1 %v18111_v63  ;;  %v15762_v63 = vld [vmem:[%s18771_s5 + $0x40] sm:$0xff]  }
 0x4e1   :  { %10516 = vmatprep.subr.bf16.mxu1 %v18117_v57 }
 0x4e4   :  { %10517 = vmatpush1.bf16.msra.mxu1 %v18125_v9 }
 0x4e5   :  { %10518 = vmatprep.subr.bf16.mxu1 %v18131_v62 }
 0x4e8   :  { %10519 = vmatpush1.bf16.msra.mxu1 %v18139_v24  ;;  %v15763_v24 = vld [vmem:[%s18771_s5] sm:$0xff]  }
 0x4e9   :  { %10520 = vmatprep.subr.bf16.mxu1 %v18145_v19 }
 0x4ec   :  { %10521 = vmatpush1.bf16.msra.mxu1 %v18153_v11  ;;  %v15764_v11 = vld [vmem:[%s18771_s5 + $0x48] sm:$0xff]  }
 0x4ed   :  { %10522 = vmatprep.subr.bf16.mxu1 %v18869_v16 }
 0x4f0   :  { %10523 = vmatpush1.bf16.msra.mxu1 %v18169_v56  ;;  %v18887_v56 = vld [vmem:[#allocation14_spill] sm:$0xff] }
 0x4f1   :  { %10545 = vmatprep.subr.bf16.mxu1 %v18870_v32 }
 0x4f3   :  { %10525 = vmatmul.mubr.bf16.vlgmr.msra.gmra.mrb[240].mxu1 %v18871_v34  ;;  %v15778_v34 = vld [vmem:[%s18771_s5 + $0xc0] sm:$0xff]  }
 0x4f4   :  { %10534 = vmatprep.mubr.bf16.mxu1 %v18872_v22  ;;  %10546 = vmatpush1.bf16.msra.mxu1 %v18873_v53  ;;  %v15779_v53 = vld [vmem:[%s18771_s5 + $0x80] sm:$0xff]  }
 0x4f5   :  { %10547 = vmatprep.subr.bf16.mxu1 %v18874_v45  ;;  %13624 = vmatprep.subr.bf16.mxu0 %v15778_v34 }
 0x4f6   :  { %13625 = vmatpush3.bf16.msra.mxu0 %v15779_v53 }
 0x4f8   :  { %10548 = vmatpush1.bf16.msra.mxu1 %v18875_v10 }
 0x4f9   :  { %10549 = vmatprep.subr.bf16.mxu1 %v18876_v21 }
 0x4fb   :  { %10535 = vmatmul.mubr.bf16.gmra.mrb[20].mxu1 %v18877_v47 }
 0x4fc   :  { %10550 = vmatpush1.bf16.msra.mxu1 %v18878_v30  ;;  %10577 = vmatprep.mubr.bf16.mxu1 %v18823_v40  ;;  %v15780_v30 = vld [vmem:[%s18771_s5 + $0xc8] sm:$0xff]  }
 0x4fd   :  { %10551 = vmatprep.subr.bf16.mxu1 %v18879_v58  ;;  %v15781_v58 = vld [vmem:[%s18771_s5 + $0x88] sm:$0xff]   ;;  %13626 = vmatprep.subr.bf16.mxu0 %v15780_v30 }
 0x4fe   :  { %13627 = vmatpush3.bf16.msra.mxu0 %v15781_v58 }
 0x500   :  { %10552 = vmatpush1.bf16.msra.mxu1 %v18880_v41 }
 0x501   :  { %10553 = vmatprep.subr.bf16.mxu1 %v18881_v48 }
 0x504   :  { %10554 = vmatpush1.bf16.msra.mxu1 %v18882_v14  ;;  %v15782_v14 = vld [vmem:[%s18771_s5 + $0xd0] sm:$0xff]  }
 0x505   :  { %10555 = vmatprep.subr.bf16.mxu1 %v18883_v54  ;;  %v15784_v54 = vld [vmem:[%s18771_s5 + $0x1c0] sm:$0xff]   ;;  %13628 = vmatprep.subr.bf16.mxu0 %v15782_v14 }
 0x508   :  { %10556 = vmatpush1.bf16.msra.mxu1 %v18884_v20 }
 0x509   :  { %10557 = vmatprep.subr.bf16.mxu1 %v18885_v61 }
 0x50c   :  { %10558 = vmatpush1.bf16.msra.mxu1 %v18886_v46 }
 0x50d   :  { %10559 = vmatprep.subr.bf16.mxu1 %v18311_v18  ;;  %v18888_v18 = vld [vmem:[#allocation16_spill] sm:$0xff] }
 0x50e   :  { %v9696_v57 = vpop.f32.mrb[4].mxu1 }
 0x50f   :  { %v9698_v9 = vpop.f32.mrb[5].mxu1 }
 0x510   :  { %v9700_v62 = vpop.f32.mrb[6].mxu1  ;;  %10560 = vmatpush1.bf16.msra.mxu1 %v18323_v43  ;;  %v15767_v43 = vld [vmem:[%s18771_s5 + $0x10] sm:$0xff]  }
 0x511   :  { %v9702_v19 = vpop.f32.mrb[7].mxu1  ;;  %13646 = vmatprep.subr.bf16.mxu1 %v15762_v63  ;;  %v15786_v63 = vld [vmem:[%s18771_s5 + $0x180] sm:$0xff]  }
 0x513   :  { %10578 = vmatmul.mubr.bf16.vlgmr.msra.gmra.mrb[240].mxu1 %v18887_v56  ;;  %v15790_v56 = vld [vmem:[%s18771_s5 + $0x188] sm:$0xff]  }
 0x514   :  { %10587 = vmatprep.mubr.bf16.mxu1 %v18823_v40  ;;  %13647 = vmatpush3.bf16.msra.mxu1 %v15763_v24  ;;  %v15768_v40 = vld [vmem:[%s18771_s5 + $0x58] sm:$0xff]  }
 0x515   :  { %13648 = vmatprep.subr.bf16.mxu1 %v15764_v11  ;;  %v15783_v11 = vld [vmem:[%s18771_s5 + $0x90] sm:$0xff]  }
 0x516   :  { %13629 = vmatpush3.bf16.msra.mxu0 %v15783_v11  ;;  %v15807_v11 = vld [vmem:[%s18771_s5 + $0x100] sm:$0xff]  }
 0x518   :  { %13649 = vmatpush3.bf16.msra.mxu1 %v15765_v7 }
 0x519   :  { %13650 = vmatprep.subr.bf16.mxu1 %v15766_v4 }
 0x51b   :  { %10588 = vmatmul.mubr.bf16.gmra.mrb[24].mxu1 %v18888_v18 }
 0x51c   :  { %13651 = vmatpush3.bf16.msra.mxu1 %v15767_v43  ;;  %v15785_v43 = vld [vmem:[%s18771_s5 + $0xd8] sm:$0xff]  }
 0x51d   :  { %13652 = vmatprep.subr.bf16.mxu1 %v15768_v40  ;;  %v15792_v40 = vld [vmem:[%s18771_s5 + $0x1d0] sm:$0xff]   ;;  %13630 = vmatprep.subr.bf16.mxu0 %v15785_v43  ;;  %v15809_v43 = vld [vmem:[%s18771_s5 + $0x148] sm:$0xff]  }
 0x520   :  { %13653 = vmatpush3.bf16.msra.mxu1 %v15769_v49 }
 0x521   :  { %13654 = vmatprep.subr.bf16.mxu1 %v15770_v31  ;;  %v15787_v31 = vld [vmem:[%s18771_s5 + $0x98] sm:$0xff]  }
 0x522   :  { %13631 = vmatpush3.bf16.msra.mxu0 %v15787_v31 }
 0x524   :  { %13655 = vmatpush3.bf16.msra.mxu1 %v15771_v39  ;;  %v15794_v39 = vld [vmem:[%s18771_s5 + $0x190] sm:$0xff]  }
 0x525   :  { %13656 = vmatprep.subr.bf16.mxu1 %v15772_v51  ;;  %v15789_v51 = vld [vmem:[%s18771_s5 + $0xe0] sm:$0xff]  }
 0x526   :  { %13632 = vmatprep.subr.bf16.mxu0 %v15789_v51 }
 0x528   :  { %13657 = vmatpush3.bf16.msra.mxu1 %v15773_v59  ;;  %v15791_v59 = vld [vmem:[%s18771_s5 + $0xa0] sm:$0xff]  }
 0x529   :  { %13658 = vmatprep.subr.bf16.mxu1 %v15774_v8  ;;  %v15793_v8 = vld [vmem:[%s18771_s5 + $0xe8] sm:$0xff]   ;;  %13633 = vmatpush3.bf16.msra.mxu0 %v15791_v59 }
 0x52a   :  { %13634 = vmatprep.subr.bf16.mxu0 %v15793_v8  ;;  %v15811_v8 = vld [vmem:[%s18771_s5 + $0x108] sm:$0xff]  }
 0x52c   :  { %13659 = vmatpush3.bf16.msra.mxu1 %v15775_v26  ;;  %v15795_v26 = vld [vmem:[%s18771_s5 + $0xa8] sm:$0xff]  }
 0x52d   :  { %13660 = vmatprep.subr.bf16.mxu1 %v15776_v35  ;;  %13635 = vmatpush3.bf16.msra.mxu0 %v15795_v26  ;;  %v15796_v35 = vld [vmem:[%s18771_s5 + $0x1d8] sm:$0xff]  }
 0x52e   :  { %v9749_v5 = vpop.f32.mrb[8].mxu1 }
 0x52f   :  { %v9750_v42 = vadd.f32 %v9749_v5, %v9696_v57  ;;  %v9751_v13 = vpop.f32.mrb[9].mxu1  ;;  %v15788_v57 = vld [vmem:[%s18771_s5 + $0x1c8] sm:$0xff]   ;;  %v15798_v5 = vld [vmem:[%s18771_s5 + $0x198] sm:$0xff]  }
 0x530   :  { %v9752_v0 = vadd.f32 %v9751_v13, %v9698_v9  ;;  %v9753_v29 = vpop.f32.mrb[10].mxu1  ;;  %13661 = vmatpush3.bf16.msra.mxu1 %v15777_v2  ;;  %v15797_v2 = vld [vmem:[%s18771_s5 + $0xf0] sm:$0xff]   ;;  %v15800_v13 = vld [vmem:[%s18771_s5 + $0x1e0] sm:$0xff]  }
 0x531   :  { %v18485_v25 = vadd.f32 %v9750_v42, %v18392_v17  ;;  %v9755_v23 = vpop.f32.mrb[11].mxu1  ;;  %13690 = vmatprep.subr.bf16.mxu1 %v15784_v54  ;;  %v15799_v42 = vld [vmem:[%s18771_s5 + $0xb0] sm:$0xff]   ;;  %13636 = vmatprep.subr.bf16.mxu0 %v15797_v2  ;;  %v15802_v29 = vld [vmem:[%s18771_s5 + $0x1a0] sm:$0xff]  }
 0x532   :  { %v18488_v52 = vadd.f32 %v9752_v0, %v18394_v27  ;;  %13637 = vmatpush3.bf16.msra.mxu0 %v15799_v42  ;;  %v15801_v0 = vld [vmem:[%s18771_s5 + $0xf8] sm:$0xff]  }
 0x533   :  { %v15803_v23 = vld [vmem:[%s18771_s5 + $0xb8] sm:$0xff]   ;;  %13638 = vmatprep.subr.bf16.mxu0 %v15801_v0 }
 0x536   :  { %13639 = vmatpush3.bf16.msra.mxu0 %v15803_v23  ;;  %v15819_v23 = vld [vmem:[%s18771_s5 + $0x120] sm:$0xff]  }
 0x537   :  { %13668 = vmatprep.subr.bf16.mxu0 %v15805_v44  ;;  %v15822_v44 = vld [vmem:[%s18771_s5 + $0x170] sm:$0xff]  }
 0x548   :  { %v8460_v1 = vpop.f32.mrb[112].mxu0 }
 0x549   :  { %v8498_v50 = vadd.f32 %v18495_v36, %v8460_v1  ;;  %v8462_v55 = vpop.f32.mrb[113].mxu0 }
 0x54a   :  { %v8499_v33 = vadd.f32 %v18499_v28, %v8462_v55  ;;  %v8464_v38 = vpop.f32.mrb[114].mxu0 }
 0x54b   :  { %v8500_v17 = vadd.f32 %v18495_v36, %v8464_v38  ;;  %v8466_v12 = vpop.f32.mrb[115].mxu0  ;;  %v8506_v15 = vmax.f32 %v8498_v50, 0.0  ;;  %v15810_v38 = vld [vmem:[%s18771_s5 + $0x1b0] sm:$0xff]  }
 0x54c   :  { %v8501_v27 = vadd.f32 %v18499_v28, %v8466_v12  ;;  %v8507_v16 = vmax.f32 %v8499_v33, 0.0  ;;  %v15808_v33 = vld [vmem:[%s18771_s5 + $0x1f0] sm:$0xff]   ;;  %v15814_v12 = vld [vmem:[%s18771_s5 + $0x1b8] sm:$0xff]  }
 0x54d   :  { %v8508_v6 = vmax.f32 %v8500_v17, 0.0  ;;  %v15812_v17 = vld [vmem:[%s18771_s5 + $0x1f8] sm:$0xff]  }
 0x54e   :  { %v8509_v32 = vmax.f32 %v8501_v27, 0.0  ;;  %v18892_v27 = vmov 0.0  }
 0x54f   :  { %v10636_v22 = vpack.c.bf16 %v8508_v6, %v8506_v15 }
 0x550   :  { %v10637_v45 = vpack.c.bf16 %v8509_v32, %v8507_v16  ;;  %v8470_v10 = vpop.f32.mrb[116].mxu0 }
 0x551   :  { %v8502_v21 = vadd.f32 %v18495_v36, %v8470_v10  ;;  %v8472_v47 = vpop.f32.mrb[117].mxu0 }
 0x552   :  { %v8503_v41 = vadd.f32 %v18499_v28, %v8472_v47  ;;  %v8474_v48 = vpop.f32.mrb[118].mxu0  ;;  %10974 = vmatprep.mubr.bf16.mxu1 %v10637_v45 }
 0x553   :  { %v8510_v20 = vmax.f32 %v8502_v21, 0.0  ;;  %v8504_v61 = vadd.f32 %v18495_v36, %v8474_v48  ;;  %v8476_v46 = vpop.f32.mrb[119].mxu0  ;;  %10975 = vmatmul.mubr.bf16.vlgmr.msra.gmra.mrb[28].mxu1 %v10636_v22 }
 0x554   :  { %v8511_v9 = vmax.f32 %v8503_v41, 0.0  ;;  %v8505_v62 = vadd.f32 %v18499_v28, %v8476_v46  ;;  %13691 = vmatpush3.bf16.msra.mxu1 %v15786_v63 }
 0x555   :  { %v18533_v24 = vpack.c.bf16 %v8510_v20, %v8508_v6  ;;  %v8512_v19 = vmax.f32 %v8504_v61, 0.0  ;;  %13692 = vmatprep.subr.bf16.mxu1 %v15788_v57 }
 0x556   :  { %v18541_v7 = vpack.c.bf16 %v8511_v9, %v8509_v32  ;;  %v8513_v4 = vmax.f32 %v8505_v62, 0.0 }
 0x557   :  { %v18549_v18 = vpack.c.bf16 %v8512_v19, %v8510_v20 }
 0x558   :  { %v18551_v49 = vpack.c.bf16 %v8513_v4, %v8511_v9  ;;  %13693 = vmatpush3.bf16.msra.mxu1 %v15790_v56 }
 0x559   :  { %13694 = vmatprep.subr.bf16.mxu1 %v15792_v40 }
 0x55c   :  { %13695 = vmatpush3.bf16.msra.mxu1 %v15794_v39 }
 0x55d   :  { %13696 = vmatprep.subr.bf16.mxu1 %v15796_v35  ;;  %v15813_v35 = vld [vmem:[%s18771_s5 + $0x150] sm:$0xff]  }
 0x560   :  { %13697 = vmatpush3.bf16.msra.mxu1 %v15798_v5 }
 0x561   :  { %13698 = vmatprep.subr.bf16.mxu1 %v15800_v13 }
 0x564   :  { %13699 = vmatpush3.bf16.msra.mxu1 %v15802_v29  ;;  %v15818_v29 = vld [vmem:[%s18771_s5 + $0x160] sm:$0xff]  }
 0x565   :  { %13700 = vmatprep.subr.bf16.mxu1 %v15804_v60  ;;  %v15820_v60 = vld [vmem:[%s18771_s5 + $0x168] sm:$0xff]  }
 0x568   :  { %13701 = vmatpush3.bf16.msra.mxu1 %v15806_v3  ;;  %v15823_v3 = vld [vmem:[%s18771_s5 + $0x130] sm:$0xff]  }
 0x569   :  { %13702 = vmatprep.subr.bf16.mxu1 %v15808_v33  ;;  %v15827_v33 = vld [vmem:[%s18771_s5 + $0x200] sm:$0xff]  }
 0x56c   :  { %13703 = vmatpush3.bf16.msra.mxu1 %v15810_v38  ;;  %v15828_v38 = vld [vmem:[%s18771_s5 + $0x248] sm:$0xff]  }
 0x56d   :  { %13704 = vmatprep.subr.bf16.mxu1 %v15812_v17  ;;  %v15829_v17 = vld [vmem:[%s18771_s5 + $0x208] sm:$0xff]  }
 0x56e   :  { %v10116_v37 = vpop.f32.mrb[12].mxu1 }
 0x56f   :  { %v10118_v1 = vpop.f32.mrb[13].mxu1 }
 0x570   :  { %v10120_v50 = vpop.f32.mrb[14].mxu1  ;;  %13705 = vmatpush3.bf16.msra.mxu1 %v15814_v12  ;;  %v15830_v12 = vld [vmem:[%s18771_s5 + $0x250] sm:$0xff]  }
 0x571   :  { %v10122_v55 = vpop.f32.mrb[15].mxu1  ;;  %14304 = vmatprep.subr.bf16.mxu1 %v18892_v27  ;;  %v15825_v50 = vld [vmem:[%s18771_s5 + $0x138] sm:$0xff]  }
 0x572   :  { %v15826_v55 = vld [vmem:[%s18771_s5 + $0x240] sm:$0xff]  }
 0x58e   :  { %v10169_v15 = vpop.f32.mrb[16].mxu1 }
 0x58f   :  { %v10170_v6 = vadd.f32 %v10169_v15, %v10116_v37  ;;  %v10171_v16 = vpop.f32.mrb[17].mxu1  ;;  %v15821_v37 = vld [vmem:[%s18771_s5 + $0x128] sm:$0xff]   ;;  %v15831_v15 = vld [vmem:[%s18771_s5 + $0x210] sm:$0xff]  }
 0x590   :  { %v10172_v32 = vadd.f32 %v10171_v16, %v10118_v1  ;;  %v10173_v34 = vpop.f32.mrb[18].mxu1  ;;  %v15824_v1 = vld [vmem:[%s18771_s5 + $0x178] sm:$0xff]   ;;  %v15835_v16 = vld [vmem:[%s18771_s5 + $0x220] sm:$0xff]  }
 0x591   :  { %v10182_v22 = vadd.f32 %v10170_v6, %v18485_v25  ;;  %v10175_v53 = vpop.f32.mrb[19].mxu1  ;;  %v15834_v6 = vld [vmem:[%s18771_s5 + $0x260] sm:$0xff]   ;;  %v15837_v34 = vld [vmem:[%s18771_s5 + $0x228] sm:$0xff]  }
 0x592   :  { %v10183_v45 = vadd.f32 %v10172_v32, %v18488_v52  ;;  %v15836_v32 = vld [vmem:[%s18771_s5 + $0x268] sm:$0xff]  }
 0x5ce   :  { %v10536_v10 = vpop.f32.mrb[20].mxu1 }
 0x5cf   :  { %v10538_v21 = vpop.f32.mrb[21].mxu1 }
 0x5d0   :  { %v10540_v47 = vpop.f32.mrb[22].mxu1 }
 0x5d1   :  { %v10542_v30 = vpop.f32.mrb[23].mxu1 }
 0x5e6   :  { %v10579_v58 = vpop.f32.mrb[240].mxu1 }
 0x5e7   :  { %v10606_v41 = vadd.f32 %v10579_v58, %v18495_v36  ;;  %v10581_v48 = vpop.f32.mrb[241].mxu1 }
 0x5e8   :  { %v10607_v14 = vadd.f32 %v10581_v48, %v18499_v28  ;;  %v10583_v54 = vpop.f32.mrb[242].mxu1  ;;  %v15841_v48 = vld [vmem:[%s18771_s5 + $0x238] sm:$0xff]  }
 0x5e9   :  { %v10608_v20 = vadd.f32 %v10583_v54, %v18495_v36  ;;  %v10585_v61 = vpop.f32.mrb[243].mxu1  ;;  %v10614_v25 = vmax.f32 %v10606_v41, 0.0  ;;  %v15843_v54 = vld [vmem:[%s18773_s7 + $0x28] sm:$0xff]  }
 0x5ea   :  { %v10609_v46 = vadd.f32 %v10585_v61, %v18499_v28  ;;  %v10615_v57 = vmax.f32 %v10607_v14, 0.0  ;;  %v15842_v14 = vld [vmem:[%s18773_s7 + $0x20] sm:$0xff]  }
 0x5eb   :  { %v10616_v63 = vmax.f32 %v10608_v20, 0.0  ;;  %v15844_v20 = vld [vmem:[%s18773_s7 + $0x30] sm:$0xff]  }
 0x5ec   :  { %v10617_v52 = vmax.f32 %v10609_v46, 0.0 }
 0x5ed   :  { %v10674_v9 = vpack.c.bf16 %v10616_v63, %v10614_v25 }
 0x5ee   :  { %v10675_v62 = vpack.c.bf16 %v10617_v52, %v10615_v57  ;;  %v10589_v19 = vpop.f32.mrb[24].mxu1 }
 0x5ef   :  { %v10590_v56 = vadd.f32 %v10589_v19, %v10536_v10  ;;  %v10591_v4 = vpop.f32.mrb[25].mxu1 }
 0x5f0   :  { %v10592_v40 = vadd.f32 %v10591_v4, %v10538_v21  ;;  %v10593_v31 = vpop.f32.mrb[26].mxu1  ;;  %10837 = vmatprep.mubr.bf16.mxu0 %v10675_v62  ;;  %v15840_v21 = vld [vmem:[%s18771_s5 + $0x278] sm:$0xff]  }
 0x5f1   :  { %v10602_v39 = vadd.f32 %v10590_v56, %v10182_v22  ;;  %v10595_v51 = vpop.f32.mrb[27].mxu1  ;;  %10838 = vmatmul.mubr.bf16.vlgmr.msra.gmra.mrb[120].mxu0 %v10674_v9  ;;  %v15838_v22 = vld [vmem:[%s18771_s5 + $0x270] sm:$0xff]  }
 0x5f2   :  { %v10603_v59 = vadd.f32 %v10592_v40, %v10183_v45  ;;  %13669 = vmatpush3.bf16.msra.mxu0 %v15807_v11  ;;  %11150 = vmatprep.mubr.bf16.mxu0 %v18541_v7  ;;  %v15815_v7 = vld [vmem:[%s18771_s5 + $0x110] sm:$0xff]  }
 0x5f3   :  { %v10610_v26 = vadd.f32 %v10602_v39, %v18495_v36  ;;  %13670 = vmatprep.subr.bf16.mxu0 %v15809_v43  ;;  %v15816_v36 = vld [vmem:[%s18771_s5 + $0x158] sm:$0xff]   ;;  %v15839_v45 = vld [vmem:[%s18771_s5 + $0x230] sm:$0xff]  }
 0x5f4   :  { %v10611_v2 = vadd.f32 %v10603_v59, %v18499_v28  ;;  %v15817_v28 = vld [vmem:[%s18771_s5 + $0x118] sm:$0xff]  }
 0x5f5   :  { %v10618_v5 = vmax.f32 %v10610_v26, 0.0 }
 0x5f6   :  { %v10619_v42 = vmax.f32 %v10611_v2, 0.0  ;;  %13671 = vmatpush3.bf16.msra.mxu0 %v15811_v8 }
 0x5f7   :  { %v11165_v13 = vpack.c.bf16 %v10618_v5, %v10616_v63  ;;  %13672 = vmatprep.subr.bf16.mxu0 %v15813_v35 }
 0x5f8   :  { %v11166_v0 = vpack.c.bf16 %v10619_v42, %v10617_v52 }
 0x5fa   :  { %13673 = vmatpush3.bf16.msra.mxu0 %v15815_v7  ;;  %11328 = vmatprep.mubr.bf16.mxu1 %v11166_v0 }
 0x5fb   :  { %11329 = vmatmul.mubr.bf16.vlgmr.msra.gmra.mrb[32].mxu1 %v11165_v13  ;;  %13674 = vmatprep.subr.bf16.mxu0 %v15816_v36 }
 0x5fc   :  { %14312 = vmatprep.mubr.msk.bf16.mxu1 %vm15879_vm0, %v18892_v27  ;;  %14305 = vmatpush3.bf16.msra.mxu1 %v15842_v14 }
 0x5fd   :  { %14306 = vmatprep.subr.bf16.mxu1 %v18892_v27 }
 0x5fe   :  { %13675 = vmatpush3.bf16.msra.mxu0 %v15817_v28  ;;  %v13392_v28 = vld [vmem:[%s18772_s6] ss:$0 sm:$0xff] }
 0x5ff   :  { %13676 = vmatprep.subr.bf16.mxu0 %v15818_v29 }
 0x600   :  { %14307 = vmatpush3.bf16.msra.mxu1 %v15843_v54 }
 0x601   :  { %14308 = vmatprep.subr.bf16.mxu1 %v18892_v27 }
 0x602   :  { %13677 = vmatpush3.bf16.msra.mxu0 %v15819_v23 }
 0x603   :  { %13678 = vmatprep.subr.bf16.mxu0 %v15820_v60 }
 0x604   :  { %14309 = vmatpush3.bf16.msra.mxu1 %v15844_v20 }
 0x605   :  { %14310 = vmatprep.subr.bf16.mxu1 %v18892_v27 }
 0x606   :  { %13679 = vmatpush3.bf16.msra.mxu0 %v15821_v37 }
 0x607   :  { %13680 = vmatprep.subr.bf16.mxu0 %v15822_v44 }
 0x60a   :  { %13681 = vmatpush3.bf16.msra.mxu0 %v15823_v3 }
 0x60b   :  { %13682 = vmatprep.subr.bf16.mxu0 %v15824_v1 }
 0x60e   :  { %13683 = vmatpush3.bf16.msra.mxu0 %v15825_v50 }
 0x60f   :  { %13712 = vmatprep.subr.bf16.mxu0 %v15826_v55 }
 0x611   :  { %11151 = vmatmul.mubr.bf16.vlgmr.msra.gmra.mrb[124].mxu0 %v18533_v24  ;;  %v15832_v24 = vld [vmem:[%s18771_s5 + $0x258] sm:$0xff]  }
 0x612   :  { %13713 = vmatpush3.bf16.msra.mxu0 %v15827_v33  ;;  %11506 = vmatprep.mubr.bf16.mxu0 %v18551_v49  ;;  %v15833_v49 = vld [vmem:[%s18771_s5 + $0x218] sm:$0xff]   ;;  %v15846_v33 = vld [vmem:[%s18773_s7] sm:$0xff]  }
 0x613   :  { %13714 = vmatprep.subr.bf16.mxu0 %v15828_v38 }
 0x616   :  { %13715 = vmatpush3.bf16.msra.mxu0 %v15829_v17  ;;  %v15847_v17 = vld [vmem:[%s18773_s7 + $0x8] sm:$0xff]  }
 0x617   :  { %13716 = vmatprep.subr.bf16.mxu0 %v15830_v12  ;;  %v15848_v12 = vld [vmem:[%s18773_s7 + $0x10] sm:$0xff]  }
 0x61a   :  { %13717 = vmatpush3.bf16.msra.mxu0 %v15831_v15  ;;  %v15849_v15 = vld [vmem:[%s18773_s7 + $0x18] sm:$0xff]  }
 0x61b   :  { %13718 = vmatprep.subr.bf16.mxu0 %v15832_v24 }
 0x61e   :  { %13719 = vmatpush3.bf16.msra.mxu0 %v15833_v49 }
 0x61f   :  { %13720 = vmatprep.subr.bf16.mxu0 %v15834_v6 }
 0x622   :  { %13721 = vmatpush3.bf16.msra.mxu0 %v15835_v16 }
 0x623   :  { %13722 = vmatprep.subr.bf16.mxu0 %v15836_v32 }
 0x626   :  { %13723 = vmatpush3.bf16.msra.mxu0 %v15837_v34  ;;  %v13662_v53 = vpop.f32.mrb[28].mxu1  ;;  %v13403_v34 = vld [vmem:[%s18774_s8] ss:$0 sm:$0xff] }
 0x627   :  { %v13663_v10 = vpop.f32.mrb[29].mxu1  ;;  %13724 = vmatprep.subr.bf16.mxu0 %v15838_v22 }
 0x628   :  { %v13664_v47 = vadd.f32 %v13663_v10, %v13662_v53  ;;  %v13665_v30 = vpop.f32.mrb[30].mxu1 }
 0x629   :  { %v13666_v58 = vpop.f32.mrb[31].mxu1 }
 0x62a   :  { %13725 = vmatpush3.bf16.msra.mxu0 %v15839_v45  ;;  %v13667_v41 = vadd.f32 %v13666_v58, %v13665_v30 }
 0x62b   :  { %13726 = vmatprep.subr.bf16.mxu0 %v15840_v21 }
 0x62e   :  { %13727 = vmatpush3.bf16.msra.mxu0 %v15841_v48 }
 0x631   :  { %11507 = vmatmul.mubr.bf16.vlgmr.msra.gmra.mrb[128].mxu0 %v18549_v18  ;;  %v15845_v18 = vld [vmem:[%s18773_s7 + $0x38] sm:$0xff]  }
 0x632   :  { %14311 = vmatpush3.bf16.msra.mxu1 %v15845_v18 }
 0x633   :  { %14316 = vmatprep.subr.bf16.mxu1 %v18892_v27 }
 0x6c4   :  { %v13640_v61 = vpop.f32.mrb[120].mxu0 }
 0x6c5   :  { %v13641_v46 = vpop.f32.mrb[121].mxu0 }
 0x6c6   :  { %v13642_v25 = vadd.f32 %v13641_v46, %v13640_v61  ;;  %v13643_v63 = vpop.f32.mrb[122].mxu0 }
 0x6c7   :  { %v13644_v57 = vpop.f32.mrb[123].mxu0 }
 0x6c8   :  { %v10977_v52 = vadd.f32 %v13664_v47, %v13642_v25  ;;  %v13645_v9 = vadd.f32 %v13644_v57, %v13643_v63 }
 0x6ca   :  { %v10980_v62 = vadd.f32 %v13667_v41, %v13645_v9 }
 0x6ce   :  { %v13706_v19 = vpop.f32.mrb[32].mxu1 }
 0x6cf   :  { %v13707_v11 = vpop.f32.mrb[33].mxu1 }
 0x6d0   :  { %v13708_v56 = vadd.f32 %v13707_v11, %v13706_v19  ;;  %v13709_v4 = vpop.f32.mrb[34].mxu1 }
 0x6d1   :  { %v13710_v43 = vpop.f32.mrb[35].mxu1 }
 0x6d2   :  { %v13711_v40 = vadd.f32 %v13710_v43, %v13709_v4 }
 0x6e4   :  { %v13684_v31 = vpop.f32.mrb[124].mxu0 }
 0x6e5   :  { %v13685_v39 = vpop.f32.mrb[125].mxu0 }
 0x6e6   :  { %v13686_v51 = vadd.f32 %v13685_v39, %v13684_v31  ;;  %v13687_v59 = vpop.f32.mrb[126].mxu0 }
 0x6e7   :  { %v13688_v8 = vpop.f32.mrb[127].mxu0 }
 0x6e8   :  { %v11159_v26 = vadd.f32 %v13686_v51, %v10977_v52  ;;  %v13689_v35 = vadd.f32 %v13688_v8, %v13687_v59 }
 0x6ea   :  { %v11160_v2 = vadd.f32 %v13689_v35, %v10980_v62  ;;  %v11337_v5 = vadd.f32 %v13708_v56, %v11159_v26 }
 0x6ec   :  { %v11338_v42 = vadd.f32 %v13711_v40, %v11160_v2 }
 0x704   :  { %v13728_v7 = vpop.f32.mrb[128].mxu0 }
 0x705   :  { %v13729_v13 = vpop.f32.mrb[129].mxu0 }
 0x706   :  { %v13730_v36 = vadd.f32 %v13729_v13, %v13728_v7  ;;  %v13731_v0 = vpop.f32.mrb[130].mxu0 }
 0x707   :  { %v13732_v29 = vpop.f32.mrb[131].mxu0 }
 0x708   :  { %v11515_v23 = vadd.f32 %v13730_v36, %v11337_v5  ;;  %v13733_v60 = vadd.f32 %v13732_v29, %v13731_v0 }
 0x70a   :  { %v11523_v37 = vadd.f32 %v13392_v28, %v11515_v23  ;;  %v11516_v44 = vadd.f32 %v13733_v60, %v11338_v42 }
 0x70c   :  { %v11524_v3 = vadd.f32 %v13392_v28, %v11516_v44  ;;  %v11525_v1 = vmax.f32 %v11523_v37, 0.0 }
 0x70e   :  { %v11526_v50 = vmax.f32 %v11524_v3, 0.0 }
 0x710   :  { %v11527_v55 = vpack.c.bf16 %v11526_v50, %v11525_v1 }
 0x712   :  { %v11545_v38 = vrot.slane %v11527_v55, 4 }
 0x714   :  { %14313 = vmatmul.mubr.msk.bf16.vlgmr.msra.gmra.mrb[36].mxu1 %vm11570_vm1, %v11545_v38 }
 0x715   :  { %14317 = vmatpush3.bf16.msra.mxu1 %v15846_v33  ;;  %14324 = vmatprep.mubr.msk.bf16.mxu1 %vm15879_vm0, %v18892_v27 }
 0x716   :  { %14318 = vmatprep.subr.bf16.mxu1 %v18892_v27 }
 0x719   :  { %14319 = vmatpush3.bf16.msra.mxu1 %v15847_v17 }
 0x71a   :  { %14320 = vmatprep.subr.bf16.mxu1 %v18892_v27 }
 0x71d   :  { %14321 = vmatpush3.bf16.msra.mxu1 %v15848_v12 }
 0x71e   :  { %14322 = vmatprep.subr.bf16.mxu1 %v18892_v27 }
 0x721   :  { %14323 = vmatpush3.bf16.msra.mxu1 %v15849_v15 }
 0x724   :  { %14325 = vmatmul.mubr.msk.bf16.vlgmr.msra.gmra.mrb[40].mxu1 %vm11570_vm1, %v11527_v55 }
 0x7e7   :  { %v11608_v24 = vpop.f32.mrb[36].mxu1 }
 0x7e8   :  { %v14314_v49 = vpop.f32.mrb[37].mxu1 }
 0x7e9   :  { %v11611_v6 = vpop.f32.mrb[38].mxu1 }
 0x7ea   :  { %v14315_v16 = vpop.f32.mrb[39].mxu1 }
 0x7f7   :  { %v11675_v32 = vpop.f32.mrb[40].mxu1 }
 0x7f8   :  { %v11676_v22 = vadd.f32 %v11675_v32, %v11608_v24  ;;  %v14326_v53 = vpop.f32.mrb[41].mxu1 }
 0x7f9   :  { %v11678_v45 = vpop.f32.mrb[42].mxu1 }
 0x7fa   :  { %v11688_v10 = vadd.f32 %v13403_v34, %v11676_v22  ;;  %v14327_v21 = vpop.f32.mrb[43].mxu1 }
 0x7fc   :  { %11689 = vst [vmem:[%s18775_s9] sm:$0xff] %v11688_v10 }
 0x7fd   :  { %11694 = vsyncpa [#allocation5], 1 }

</bundles_post_ra>
